<compile_context>
chip_gen: v6e
topology: v6e:2x2x1
jax: 0.10.0
libtpu: 0.0.40
codegen_flags: <defaults>
</compile_context>

<pallas_src>
import functools
import math

import jax
import jax.numpy as jnp
import numpy as np
from jax.experimental import pallas as pl
from jax.experimental.pallas import tpu as pltpu


# ----------------------------------------------------------------------------
# Fused Pallas kernel: one grid step == one batch sample; everything in VMEM.
# Layout convention inside the kernel: feature maps are (C, N), N = H*W on lanes.
# ----------------------------------------------------------------------------
def fused_block_kernel(x_ref, mask_ref, wf1_ref, g1_ref, b1_ref,
                       wf2_ref, g2_ref, b2_ref, lng_ref, lnb_ref,
                       wqkv_ref, wproj_ref, bproj_ref, wst_ref, out_ref,
                       *, H, W, num_heads, head_dim):
    N = H * W
    C = out_ref.shape[1]                      # out_channels

    x_cn = x_ref[0].astype(jnp.float32)       # (Cin, N)
    mask = mask_ref[...]                      # (9, N) halo masks (1 = valid)

    def conv_gn_silu(inp_cn, wft, gamma, beta):
        # EfficientConvBlock: depthwise 3x3 + pointwise 1x1 fused into a single
        # im2col matmul (weights pre-fused in the wrapper), then GroupNorm(1)+SiLU.
        taps = []
        for k in range(9):
            ky, kx = divmod(k, 3)
            s = (ky - 1) * W + (kx - 1)       # flat pixel shift of tap k
            if s == 0:
                taps.append(inp_cn)
            else:
                t = pltpu.roll(inp_cn, (-s) % N, axis=1)   # t[:, n] = inp[:, n+s]
                taps.append(t * mask[k:k + 1, :])          # zero out-of-bounds taps
        col = jnp.concatenate(taps, axis=0)                # (9*Cin, N)
        y = jnp.dot(wft, col, preferred_element_type=jnp.float32)   # (C, N) on MXU
        mu = jnp.mean(y, axis=(0, 1), keepdims=True)       # GroupNorm(num_groups=1)
        var = jnp.mean((y - mu) ** 2, axis=(0, 1), keepdims=True)
        yn = (y - mu) * jax.lax.rsqrt(var + 1e-5) * gamma + beta
        return yn * jax.nn.sigmoid(yn)                     # SiLU

    h1 = conv_gn_silu(x_cn, wf1_ref[...], g1_ref[...], b1_ref[...])   # (C, N)
    h2 = conv_gn_silu(h1, wf2_ref[...], g2_ref[...], b2_ref[...])     # (C, N)

    # ---- EfficientAttentionBlock (sequence-major for the (N, N) matmuls) ----
    xh = h2.T                                                          # (N, C)
    mu = jnp.mean(xh, axis=-1, keepdims=True)
    var = jnp.mean((xh - mu) ** 2, axis=-1, keepdims=True)
    xn = (xh - mu) * jax.lax.rsqrt(var + 1e-5) * lng_ref[...] + lnb_ref[...]

    qkv = jnp.dot(xn, wqkv_ref[...], preferred_element_type=jnp.float32)  # (N, 3C)
    head_outs = []
    for h in range(num_heads):
        lo = h * head_dim
        q = qkv[:, lo:lo + head_dim].astype(jnp.bfloat16)          # scale folded in Wq
        k = qkv[:, C + lo:C + lo + head_dim].astype(jnp.bfloat16)
        v = qkv[:, 2 * C + lo:2 * C + lo + head_dim].astype(jnp.bfloat16)
        dots = jax.lax.dot_general(q, k, (((1,), (1,)), ((), ())),
                                   preferred_element_type=jnp.float32)    # (N, N)
        p = jax.nn.softmax(dots, axis=-1)
        head_outs.append(jnp.dot(p.astype(jnp.bfloat16), v,
                                 preferred_element_type=jnp.float32))     # (N, D)
    o_cat = jnp.concatenate(head_outs, axis=1)                            # (N, C)
    attn = jnp.dot(o_cat, wproj_ref[...],
                   preferred_element_type=jnp.float32) + bproj_ref[...]   # (N, C)

    # 1x1 shortcut conv computed directly in (C, N): Ws^T (C,Cin) @ x (Cin,N)
    res = jnp.dot(wst_ref[...], x_cn, preferred_element_type=jnp.float32)

    out_ref[0] = (attn.T + res).astype(out_ref.dtype)                     # (C, N)


# ----------------------------------------------------------------------------
# Wrapper: weight pre-fusion / packing + a single pallas_call over the batch.
# ----------------------------------------------------------------------------
def _build_halo_masks(H, W):
    N = H * W
    ii, jj = np.divmod(np.arange(N), W)
    m = np.zeros((9, N), np.float32)
    for k in range(9):
        ky, kx = divmod(k, 3)
        dy, dx = ky - 1, kx - 1
        m[k] = ((ii + dy >= 0) & (ii + dy < H) &
                (jj + dx >= 0) & (jj + dx < W)).astype(np.float32)
    return m


def optimized_res_block(x_nchw, p, *, num_heads=4):
    B, Cin, H, W = x_nchw.shape
    N = H * W
    Cout = p["wp1"].shape[1]
    D = Cout // num_heads

    # Exact fusion of (depthwise, pointwise): both ops are linear.
    wf1_t = (p["wd1"][:, :, None] * p["wp1"][None, :, :]).reshape(9 * Cin, Cout).T
    wf2_t = (p["wd2"][:, :, None] * p["wp2"][None, :, :]).reshape(9 * Cout, Cout).T
    scale = 1.0 / math.sqrt(D)
    wq = jnp.transpose(p["wqkv"][0] * scale, (1, 0, 2)).reshape(Cout, Cout)
    wk = jnp.transpose(p["wqkv"][1], (1, 0, 2)).reshape(Cout, Cout)
    wv = jnp.transpose(p["wqkv"][2], (1, 0, 2)).reshape(Cout, Cout)
    wqkv_p = jnp.concatenate([wq, wk, wv], axis=1)          # (C, 3C)
    wproj_p = p["wproj"].reshape(Cout, Cout)                # (C, C)
    ws_t = p["ws"].T                                        # (Cout, Cin)
    g1, b1 = p["g1"].T, p["b1"].T                           # (Cout, 1)
    g2, b2 = p["g2"].T, p["b2"].T

    mask = jnp.asarray(_build_halo_masks(H, W))             # (9, N)
    x_cn = x_nchw.reshape(B, Cin, N)                        # NCHW -> (B, C, N)

    kernel = functools.partial(fused_block_kernel, H=H, W=W,
                               num_heads=num_heads, head_dim=D)

    def full(shape):
        return pl.BlockSpec(shape, lambda b: (0,) * len(shape))

    out = pl.pallas_call(
        kernel,
        grid=(B,),
        in_specs=[
            pl.BlockSpec((1, Cin, N), lambda b: (b, 0, 0)),   # x, one sample / step
            full((9, N)),                                     # halo masks
            full((Cout, 9 * Cin)), full((Cout, 1)), full((Cout, 1)),   # conv1
            full((Cout, 9 * Cout)), full((Cout, 1)), full((Cout, 1)),  # conv2
            full((1, Cout)), full((1, Cout)),                 # LayerNorm gamma/beta
            full((Cout, 3 * Cout)), full((Cout, Cout)), full((1, Cout)),  # attention
            full((Cout, Cin)),                                # shortcut 1x1
        ],
        out_specs=pl.BlockSpec((1, Cout, N), lambda b: (b, 0, 0)),
        out_shape=jax.ShapeDtypeStruct((B, Cout, N), jnp.float32),
        compiler_params=pltpu.CompilerParams(
            dimension_semantics=("parallel",)),
    )(x_cn, mask, wf1_t, g1, b1, wf2_t, g2, b2,
      p["ln_g"], p["ln_b"], wqkv_p, wproj_p, p["bproj"], ws_t)

    return out.reshape(B, Cout, H, W)         # lane-dense (B, Cout, N) -> NCHW


# ----------------------------------------------------------------------------
# Pure-JAX reference (same math, same parameter layout) for verification
# ----------------------------------------------------------------------------
def reference(x_nchw, p):
    x = jnp.transpose(x_nchw, (0, 2, 3, 1))
    B, H, W, Cin = x.shape
    N = H * W

    def conv_block_ref(xh, wd, wp, g, b):
        Bq, Hq, Wq, Cq = xh.shape
        xpad = jnp.pad(xh, ((0, 0), (1, 1), (1, 1), (0, 0)))
        acc = jnp.zeros_like(xh)
        for k in range(9):
            ky, kx = divmod(k, 3)
            acc = acc + xpad[:, ky:ky + Hq, kx:kx + Wq, :] * wd[k]
        y = acc.reshape(Bq, Hq * Wq, Cq) @ wp
        mean = y.mean(axis=(1, 2), keepdims=True)
        var = ((y - mean) ** 2).mean(axis=(1, 2), keepdims=True)
        yn = (y - mean) * jax.lax.rsqrt(var + 1e-5) * g + b
        return yn * jax.nn.sigmoid(yn)

    h1 = conv_block_ref(x, p["wd1"], p["wp1"], p["g1"], p["b1"])
    Cout = h1.shape[-1]
    h2 = conv_block_ref(h1.reshape(B, H, W, Cout), p["wd2"], p["wp2"], p["g2"], p["b2"])

    mean = h2.mean(-1, keepdims=True)
    var = ((h2 - mean) ** 2).mean(-1, keepdims=True)
    xn = (h2 - mean) * jax.lax.rsqrt(var + 1e-5) * p["ln_g"] + p["ln_b"]
    nh, d = p["wqkv"].shape[1], p["wqkv"].shape[3]
    acc = jnp.zeros((B, N, Cout), jnp.float32)
    for hd in range(nh):
        q = xn @ p["wqkv"][0, hd]
        k = xn @ p["wqkv"][1, hd]
        v = xn @ p["wqkv"][2, hd]
        dots = jnp.einsum("bnd,bmd->bnm", q, k) / math.sqrt(d)
        a = jax.nn.softmax(dots, axis=-1)
        o = jnp.einsum("bnm,bmd->bnd", a, v)
        acc = acc + o @ p["wproj"][hd]
    acc = acc + p["bproj"]
    res = x.reshape(B, N, Cin) @ p["ws"]
    out = acc + res
    return jnp.transpose(out.reshape(B, H, W, Cout), (0, 3, 1, 2))


# ----------------------------------------------------------------------------
# Deterministic parameter init (synthetic, matches module's shapes)
# ----------------------------------------------------------------------------
def init_params(key, cin, cout, num_heads):
    d = cout // num_heads
    ks = jax.random.split(key, 14)
    rnd = lambda k, shape, s=0.1: jax.random.normal(k, shape, jnp.float32) * s
    return dict(
        wd1=rnd(ks[0], (9, cin)),                 # depthwise1 (3x3 taps, per channel)
        wp1=rnd(ks[1], (cin, cout)),              # pointwise1
        g1=1.0 + rnd(ks[2], (1, cout)),           # GroupNorm1 gamma
        b1=rnd(ks[3], (1, cout)),                 # GroupNorm1 beta
        wd2=rnd(ks[4], (9, cout)),                # depthwise2
        wp2=rnd(ks[5], (cout, cout)),             # pointwise2
        g2=1.0 + rnd(ks[6], (1, cout)),           # GroupNorm2 gamma
        b2=rnd(ks[7], (1, cout)),                 # GroupNorm2 beta
        ln_g=1.0 + rnd(ks[8], (1, cout)),         # attention LayerNorm gamma
        ln_b=rnd(ks[9], (1, cout)),               # attention LayerNorm beta
        wqkv=rnd(ks[10], (3, num_heads, cout, d)),  # per-head q/k/v projections
        wproj=rnd(ks[11], (num_heads, d, cout)),    # per-head rows of proj weight
        bproj=rnd(ks[12], (1, cout)),             # proj bias
        ws=rnd(ks[13], (cin, cout)),              # shortcut 1x1 conv
    )


if __name__ == "__main__":
    B, Cin, Cout, H, W = 2, 4, 16, 16, 16
    NUM_HEADS = 4

    key = jax.random.PRNGKey(0)
    kx, kp = jax.random.split(key)
    x = jax.random.normal(kx, (B, Cin, H, W), jnp.float32)
    params = init_params(kp, Cin, Cout, NUM_HEADS)

    out = jax.jit(optimized_res_block)(x, params)
    out = jax.block_until_ready(out)
    assert out.shape == (B, Cout, H, W)

    ref = reference(x, params)
    np.testing.assert_allclose(np.asarray(out), np.asarray(ref), rtol=2e-2, atol=2e-2)

    print("KERNEL_OK")
</pallas_src>

<mosaic_0001>
module attributes {stable_mosaic.version = 11 : i64} {
  func.func @fused_block_kernel(%arg0: i32, %arg1: memref<1x4x256xf32, #tpu.memory_space<vmem>>, %arg2: memref<9x256xf32, #tpu.memory_space<vmem>>, %arg3: memref<16x36xf32, #tpu.memory_space<vmem>>, %arg4: memref<16x1xf32, #tpu.memory_space<vmem>>, %arg5: memref<16x1xf32, #tpu.memory_space<vmem>>, %arg6: memref<16x144xf32, #tpu.memory_space<vmem>>, %arg7: memref<16x1xf32, #tpu.memory_space<vmem>>, %arg8: memref<16x1xf32, #tpu.memory_space<vmem>>, %arg9: memref<1x16xf32, #tpu.memory_space<vmem>>, %arg10: memref<1x16xf32, #tpu.memory_space<vmem>>, %arg11: memref<16x48xf32, #tpu.memory_space<vmem>>, %arg12: memref<16x16xf32, #tpu.memory_space<vmem>>, %arg13: memref<1x16xf32, #tpu.memory_space<vmem>>, %arg14: memref<16x4xf32, #tpu.memory_space<vmem>>, %arg15: memref<1x16x256xf32, #tpu.memory_space<vmem>>) attributes {dimension_semantics = [#tpu.dimension_semantics<parallel>], iteration_bounds = array<i64: 2>, scalar_prefetch = 0 : i64, scratch_operands = 0 : i64, tpu.core_type = #tpu.core_type<tc>, window_params = [{transform_indices = @transform_0, window_bounds = array<i64: 1, 4, 256>}, {pipeline_mode = #tpu.pipeline_mode<synchronous>, transform_indices = @transform_1, window_bounds = array<i64: 9, 256>}, {pipeline_mode = #tpu.pipeline_mode<synchronous>, transform_indices = @transform_2, window_bounds = array<i64: 16, 36>}, {pipeline_mode = #tpu.pipeline_mode<synchronous>, transform_indices = @transform_3, window_bounds = array<i64: 16, 1>}, {pipeline_mode = #tpu.pipeline_mode<synchronous>, transform_indices = @transform_4, window_bounds = array<i64: 16, 1>}, {pipeline_mode = #tpu.pipeline_mode<synchronous>, transform_indices = @transform_5, window_bounds = array<i64: 16, 144>}, {pipeline_mode = #tpu.pipeline_mode<synchronous>, transform_indices = @transform_6, window_bounds = array<i64: 16, 1>}, {pipeline_mode = #tpu.pipeline_mode<synchronous>, transform_indices = @transform_7, window_bounds = array<i64: 16, 1>}, {pipeline_mode = #tpu.pipeline_mode<synchronous>, transform_indices = @transform_8, window_bounds = array<i64: 1, 16>}, {pipeline_mode = #tpu.pipeline_mode<synchronous>, transform_indices = @transform_9, window_bounds = array<i64: 1, 16>}, {pipeline_mode = #tpu.pipeline_mode<synchronous>, transform_indices = @transform_10, window_bounds = array<i64: 16, 48>}, {pipeline_mode = #tpu.pipeline_mode<synchronous>, transform_indices = @transform_11, window_bounds = array<i64: 16, 16>}, {pipeline_mode = #tpu.pipeline_mode<synchronous>, transform_indices = @transform_12, window_bounds = array<i64: 1, 16>}, {pipeline_mode = #tpu.pipeline_mode<synchronous>, transform_indices = @transform_13, window_bounds = array<i64: 16, 4>}, {transform_indices = @transform_14, window_bounds = array<i64: 1, 16, 256>}]} {
    %c0 = arith.constant 0 : index
    %c0_0 = arith.constant 0 : index
    %c0_1 = arith.constant 0 : index
    %0 = vector.load %arg1[%c0, %c0_0, %c0_1] : memref<1x4x256xf32, #tpu.memory_space<vmem>>, vector<1x4x256xf32>
    %1 = vector.shape_cast %0 : vector<1x4x256xf32> to vector<4x256xf32>
    %c0_2 = arith.constant 0 : index
    %c0_3 = arith.constant 0 : index
    %2 = vector.load %arg2[%c0_2, %c0_3] : memref<9x256xf32, #tpu.memory_space<vmem>>, vector<9x256xf32>
    %c0_4 = arith.constant 0 : index
    %c0_5 = arith.constant 0 : index
    %3 = vector.load %arg3[%c0_4, %c0_5] : memref<16x36xf32, #tpu.memory_space<vmem>>, vector<16x36xf32>
    %c0_6 = arith.constant 0 : index
    %c0_7 = arith.constant 0 : index
    %4 = vector.load %arg4[%c0_6, %c0_7] : memref<16x1xf32, #tpu.memory_space<vmem>>, vector<16x1xf32>
    %c0_8 = arith.constant 0 : index
    %c0_9 = arith.constant 0 : index
    %5 = vector.load %arg5[%c0_8, %c0_9] : memref<16x1xf32, #tpu.memory_space<vmem>>, vector<16x1xf32>
    %c17_i32 = arith.constant 17 : i32
    %6 = tpu.dynamic_rotate %1 by %c17_i32 dim 1 : vector<4x256xf32>, i32 -> vector<4x256xf32>
    %7 = vector.extract_strided_slice %2 {offsets = [0, 0], sizes = [1, 256], strides = [1, 1]} : vector<9x256xf32> to vector<1x256xf32>
    %8 = vector.broadcast %7 : vector<1x256xf32> to vector<4x256xf32>
    %9 = arith.mulf %6, %8 : vector<4x256xf32>
    %c16_i32 = arith.constant 16 : i32
    %10 = tpu.dynamic_rotate %1 by %c16_i32 dim 1 : vector<4x256xf32>, i32 -> vector<4x256xf32>
    %11 = vector.extract_strided_slice %2 {offsets = [1, 0], sizes = [1, 256], strides = [1, 1]} : vector<9x256xf32> to vector<1x256xf32>
    %12 = vector.broadcast %11 : vector<1x256xf32> to vector<4x256xf32>
    %13 = arith.mulf %10, %12 : vector<4x256xf32>
    %c15_i32 = arith.constant 15 : i32
    %14 = tpu.dynamic_rotate %1 by %c15_i32 dim 1 : vector<4x256xf32>, i32 -> vector<4x256xf32>
    %15 = vector.extract_strided_slice %2 {offsets = [2, 0], sizes = [1, 256], strides = [1, 1]} : vector<9x256xf32> to vector<1x256xf32>
    %16 = vector.broadcast %15 : vector<1x256xf32> to vector<4x256xf32>
    %17 = arith.mulf %14, %16 : vector<4x256xf32>
    %c1_i32 = arith.constant 1 : i32
    %18 = tpu.dynamic_rotate %1 by %c1_i32 dim 1 : vector<4x256xf32>, i32 -> vector<4x256xf32>
    %19 = vector.extract_strided_slice %2 {offsets = [3, 0], sizes = [1, 256], strides = [1, 1]} : vector<9x256xf32> to vector<1x256xf32>
    %20 = vector.broadcast %19 : vector<1x256xf32> to vector<4x256xf32>
    %21 = arith.mulf %18, %20 : vector<4x256xf32>
    %c255_i32 = arith.constant 255 : i32
    %22 = tpu.dynamic_rotate %1 by %c255_i32 dim 1 : vector<4x256xf32>, i32 -> vector<4x256xf32>
    %23 = vector.extract_strided_slice %2 {offsets = [5, 0], sizes = [1, 256], strides = [1, 1]} : vector<9x256xf32> to vector<1x256xf32>
    %24 = vector.broadcast %23 : vector<1x256xf32> to vector<4x256xf32>
    %25 = arith.mulf %22, %24 : vector<4x256xf32>
    %c241_i32 = arith.constant 241 : i32
    %26 = tpu.dynamic_rotate %1 by %c241_i32 dim 1 : vector<4x256xf32>, i32 -> vector<4x256xf32>
    %27 = vector.extract_strided_slice %2 {offsets = [6, 0], sizes = [1, 256], strides = [1, 1]} : vector<9x256xf32> to vector<1x256xf32>
    %28 = vector.broadcast %27 : vector<1x256xf32> to vector<4x256xf32>
    %29 = arith.mulf %26, %28 : vector<4x256xf32>
    %c240_i32 = arith.constant 240 : i32
    %30 = tpu.dynamic_rotate %1 by %c240_i32 dim 1 : vector<4x256xf32>, i32 -> vector<4x256xf32>
    %31 = vector.extract_strided_slice %2 {offsets = [7, 0], sizes = [1, 256], strides = [1, 1]} : vector<9x256xf32> to vector<1x256xf32>
    %32 = vector.broadcast %31 : vector<1x256xf32> to vector<4x256xf32>
    %33 = arith.mulf %30, %32 : vector<4x256xf32>
    %c239_i32 = arith.constant 239 : i32
    %34 = tpu.dynamic_rotate %1 by %c239_i32 dim 1 : vector<4x256xf32>, i32 -> vector<4x256xf32>
    %35 = vector.extract_strided_slice %2 {offsets = [8, 0], sizes = [1, 256], strides = [1, 1]} : vector<9x256xf32> to vector<1x256xf32>
    %36 = vector.broadcast %35 : vector<1x256xf32> to vector<4x256xf32>
    %37 = arith.mulf %34, %36 : vector<4x256xf32>
    %38 = tpu.concatenate %9, %13, %17, %21, %1, %25, %29, %33, %37 in 0 : vector<4x256xf32>, vector<4x256xf32>, vector<4x256xf32>, vector<4x256xf32>, vector<4x256xf32>, vector<4x256xf32>, vector<4x256xf32>, vector<4x256xf32>, vector<4x256xf32> -> vector<36x256xf32>
    %cst = arith.constant dense<0.000000e+00> : vector<16x256xf32>
    %39 = tpu.matmul %3, %38, %cst {dimension_numbers = #tpu.dot_dimension_numbers<[1], [0], [0], [1], [0, 0, 1, 1], [], []>} : vector<16x36xf32>, vector<36x256xf32>, vector<16x256xf32> -> vector<16x256xf32>
    %40 = vector.shape_cast %39 : vector<16x256xf32> to vector<1x16x256xf32>
    %cst_10 = arith.constant dense<0.000000e+00> : vector<1xf32>
    %41 = vector.multi_reduction <add>, %40, %cst_10 [1, 2] : vector<1x16x256xf32> to vector<1xf32>
    %42 = vector.shape_cast %41 : vector<1xf32> to vector<1x1x1xf32>
    %43 = vector.extract %42[0, 0, 0] : f32 from vector<1x1x1xf32>
    %44 = vector.broadcast %43 : f32 to vector<1x1xf32>
    %cst_11 = arith.constant 4.096000e+03 : f32
    %45 = vector.broadcast %cst_11 : f32 to vector<1x1xf32>
    %46 = arith.divf %44, %45 : vector<1x1xf32>
    %47 = vector.broadcast %46 : vector<1x1xf32> to vector<16x256xf32>
    %48 = arith.subf %39, %47 : vector<16x256xf32>
    %49 = arith.mulf %48, %48 : vector<16x256xf32>
    %50 = vector.shape_cast %49 : vector<16x256xf32> to vector<1x16x256xf32>
    %cst_12 = arith.constant dense<0.000000e+00> : vector<1xf32>
    %51 = vector.multi_reduction <add>, %50, %cst_12 [1, 2] : vector<1x16x256xf32> to vector<1xf32>
    %52 = vector.shape_cast %51 : vector<1xf32> to vector<1x1x1xf32>
    %53 = vector.extract %52[0, 0, 0] : f32 from vector<1x1x1xf32>
    %54 = vector.broadcast %53 : f32 to vector<1x1xf32>
    %cst_13 = arith.constant 4.096000e+03 : f32
    %55 = vector.broadcast %cst_13 : f32 to vector<1x1xf32>
    %56 = arith.divf %54, %55 : vector<1x1xf32>
    %57 = vector.broadcast %46 : vector<1x1xf32> to vector<16x256xf32>
    %58 = arith.subf %39, %57 : vector<16x256xf32>
    %cst_14 = arith.constant 9.99999974E-6 : f32
    %59 = vector.broadcast %cst_14 : f32 to vector<1x1xf32>
    %60 = arith.addf %56, %59 : vector<1x1xf32>
    %61 = math.rsqrt %60 : vector<1x1xf32>
    %62 = vector.broadcast %61 : vector<1x1xf32> to vector<16x256xf32>
    %63 = arith.mulf %58, %62 : vector<16x256xf32>
    %64 = vector.broadcast %4 : vector<16x1xf32> to vector<16x256xf32>
    %65 = arith.mulf %63, %64 : vector<16x256xf32>
    %66 = vector.broadcast %5 : vector<16x1xf32> to vector<16x256xf32>
    %67 = arith.addf %65, %66 : vector<16x256xf32>
    %68 = arith.negf %67 : vector<16x256xf32>
    %69 = math.exp %68 : vector<16x256xf32>
    %cst_15 = arith.constant 1.000000e+00 : f32
    %70 = vector.broadcast %cst_15 : f32 to vector<16x256xf32>
    %71 = arith.addf %70, %69 : vector<16x256xf32>
    %72 = arith.divf %70, %71 : vector<16x256xf32>
    %73 = arith.mulf %67, %72 : vector<16x256xf32>
    %c0_16 = arith.constant 0 : index
    %c0_17 = arith.constant 0 : index
    %74 = vector.load %arg6[%c0_16, %c0_17] : memref<16x144xf32, #tpu.memory_space<vmem>>, vector<16x144xf32>
    %c0_18 = arith.constant 0 : index
    %c0_19 = arith.constant 0 : index
    %75 = vector.load %arg7[%c0_18, %c0_19] : memref<16x1xf32, #tpu.memory_space<vmem>>, vector<16x1xf32>
    %c0_20 = arith.constant 0 : index
    %c0_21 = arith.constant 0 : index
    %76 = vector.load %arg8[%c0_20, %c0_21] : memref<16x1xf32, #tpu.memory_space<vmem>>, vector<16x1xf32>
    %c17_i32_22 = arith.constant 17 : i32
    %77 = tpu.dynamic_rotate %73 by %c17_i32_22 dim 1 : vector<16x256xf32>, i32 -> vector<16x256xf32>
    %78 = vector.extract_strided_slice %2 {offsets = [0, 0], sizes = [1, 256], strides = [1, 1]} : vector<9x256xf32> to vector<1x256xf32>
    %79 = vector.broadcast %78 : vector<1x256xf32> to vector<16x256xf32>
    %80 = arith.mulf %77, %79 : vector<16x256xf32>
    %c16_i32_23 = arith.constant 16 : i32
    %81 = tpu.dynamic_rotate %73 by %c16_i32_23 dim 1 : vector<16x256xf32>, i32 -> vector<16x256xf32>
    %82 = vector.extract_strided_slice %2 {offsets = [1, 0], sizes = [1, 256], strides = [1, 1]} : vector<9x256xf32> to vector<1x256xf32>
    %83 = vector.broadcast %82 : vector<1x256xf32> to vector<16x256xf32>
    %84 = arith.mulf %81, %83 : vector<16x256xf32>
    %c15_i32_24 = arith.constant 15 : i32
    %85 = tpu.dynamic_rotate %73 by %c15_i32_24 dim 1 : vector<16x256xf32>, i32 -> vector<16x256xf32>
    %86 = vector.extract_strided_slice %2 {offsets = [2, 0], sizes = [1, 256], strides = [1, 1]} : vector<9x256xf32> to vector<1x256xf32>
    %87 = vector.broadcast %86 : vector<1x256xf32> to vector<16x256xf32>
    %88 = arith.mulf %85, %87 : vector<16x256xf32>
    %c1_i32_25 = arith.constant 1 : i32
    %89 = tpu.dynamic_rotate %73 by %c1_i32_25 dim 1 : vector<16x256xf32>, i32 -> vector<16x256xf32>
    %90 = vector.extract_strided_slice %2 {offsets = [3, 0], sizes = [1, 256], strides = [1, 1]} : vector<9x256xf32> to vector<1x256xf32>
    %91 = vector.broadcast %90 : vector<1x256xf32> to vector<16x256xf32>
    %92 = arith.mulf %89, %91 : vector<16x256xf32>
    %c255_i32_26 = arith.constant 255 : i32
    %93 = tpu.dynamic_rotate %73 by %c255_i32_26 dim 1 : vector<16x256xf32>, i32 -> vector<16x256xf32>
    %94 = vector.extract_strided_slice %2 {offsets = [5, 0], sizes = [1, 256], strides = [1, 1]} : vector<9x256xf32> to vector<1x256xf32>
    %95 = vector.broadcast %94 : vector<1x256xf32> to vector<16x256xf32>
    %96 = arith.mulf %93, %95 : vector<16x256xf32>
    %c241_i32_27 = arith.constant 241 : i32
    %97 = tpu.dynamic_rotate %73 by %c241_i32_27 dim 1 : vector<16x256xf32>, i32 -> vector<16x256xf32>
    %98 = vector.extract_strided_slice %2 {offsets = [6, 0], sizes = [1, 256], strides = [1, 1]} : vector<9x256xf32> to vector<1x256xf32>
    %99 = vector.broadcast %98 : vector<1x256xf32> to vector<16x256xf32>
    %100 = arith.mulf %97, %99 : vector<16x256xf32>
    %c240_i32_28 = arith.constant 240 : i32
    %101 = tpu.dynamic_rotate %73 by %c240_i32_28 dim 1 : vector<16x256xf32>, i32 -> vector<16x256xf32>
    %102 = vector.extract_strided_slice %2 {offsets = [7, 0], sizes = [1, 256], strides = [1, 1]} : vector<9x256xf32> to vector<1x256xf32>
    %103 = vector.broadcast %102 : vector<1x256xf32> to vector<16x256xf32>
    %104 = arith.mulf %101, %103 : vector<16x256xf32>
    %c239_i32_29 = arith.constant 239 : i32
    %105 = tpu.dynamic_rotate %73 by %c239_i32_29 dim 1 : vector<16x256xf32>, i32 -> vector<16x256xf32>
    %106 = vector.extract_strided_slice %2 {offsets = [8, 0], sizes = [1, 256], strides = [1, 1]} : vector<9x256xf32> to vector<1x256xf32>
    %107 = vector.broadcast %106 : vector<1x256xf32> to vector<16x256xf32>
    %108 = arith.mulf %105, %107 : vector<16x256xf32>
    %109 = tpu.concatenate %80, %84, %88, %92, %73, %96, %100, %104, %108 in 0 : vector<16x256xf32>, vector<16x256xf32>, vector<16x256xf32>, vector<16x256xf32>, vector<16x256xf32>, vector<16x256xf32>, vector<16x256xf32>, vector<16x256xf32>, vector<16x256xf32> -> vector<144x256xf32>
    %cst_30 = arith.constant dense<0.000000e+00> : vector<16x256xf32>
    %110 = tpu.matmul %74, %109, %cst_30 {dimension_numbers = #tpu.dot_dimension_numbers<[1], [0], [0], [1], [0, 0, 1, 1], [], []>} : vector<16x144xf32>, vector<144x256xf32>, vector<16x256xf32> -> vector<16x256xf32>
    %111 = vector.shape_cast %110 : vector<16x256xf32> to vector<1x16x256xf32>
    %cst_31 = arith.constant dense<0.000000e+00> : vector<1xf32>
    %112 = vector.multi_reduction <add>, %111, %cst_31 [1, 2] : vector<1x16x256xf32> to vector<1xf32>
    %113 = vector.shape_cast %112 : vector<1xf32> to vector<1x1x1xf32>
    %114 = vector.extract %113[0, 0, 0] : f32 from vector<1x1x1xf32>
    %115 = vector.broadcast %114 : f32 to vector<1x1xf32>
    %cst_32 = arith.constant 4.096000e+03 : f32
    %116 = vector.broadcast %cst_32 : f32 to vector<1x1xf32>
    %117 = arith.divf %115, %116 : vector<1x1xf32>
    %118 = vector.broadcast %117 : vector<1x1xf32> to vector<16x256xf32>
    %119 = arith.subf %110, %118 : vector<16x256xf32>
    %120 = arith.mulf %119, %119 : vector<16x256xf32>
    %121 = vector.shape_cast %120 : vector<16x256xf32> to vector<1x16x256xf32>
    %cst_33 = arith.constant dense<0.000000e+00> : vector<1xf32>
    %122 = vector.multi_reduction <add>, %121, %cst_33 [1, 2] : vector<1x16x256xf32> to vector<1xf32>
    %123 = vector.shape_cast %122 : vector<1xf32> to vector<1x1x1xf32>
    %124 = vector.extract %123[0, 0, 0] : f32 from vector<1x1x1xf32>
    %125 = vector.broadcast %124 : f32 to vector<1x1xf32>
    %cst_34 = arith.constant 4.096000e+03 : f32
    %126 = vector.broadcast %cst_34 : f32 to vector<1x1xf32>
    %127 = arith.divf %125, %126 : vector<1x1xf32>
    %128 = vector.broadcast %117 : vector<1x1xf32> to vector<16x256xf32>
    %129 = arith.subf %110, %128 : vector<16x256xf32>
    %cst_35 = arith.constant 9.99999974E-6 : f32
    %130 = vector.broadcast %cst_35 : f32 to vector<1x1xf32>
    %131 = arith.addf %127, %130 : vector<1x1xf32>
    %132 = math.rsqrt %131 : vector<1x1xf32>
    %133 = vector.broadcast %132 : vector<1x1xf32> to vector<16x256xf32>
    %134 = arith.mulf %129, %133 : vector<16x256xf32>
    %135 = vector.broadcast %75 : vector<16x1xf32> to vector<16x256xf32>
    %136 = arith.mulf %134, %135 : vector<16x256xf32>
    %137 = vector.broadcast %76 : vector<16x1xf32> to vector<16x256xf32>
    %138 = arith.addf %136, %137 : vector<16x256xf32>
    %139 = arith.negf %138 : vector<16x256xf32>
    %140 = math.exp %139 : vector<16x256xf32>
    %cst_36 = arith.constant 1.000000e+00 : f32
    %141 = vector.broadcast %cst_36 : f32 to vector<16x256xf32>
    %142 = arith.addf %141, %140 : vector<16x256xf32>
    %143 = arith.divf %141, %142 : vector<16x256xf32>
    %144 = arith.mulf %138, %143 : vector<16x256xf32>
    %145 = tpu.transpose %144, [1, 0] : vector<16x256xf32> -> vector<256x16xf32>
    %cst_37 = arith.constant dense<0.000000e+00> : vector<256xf32>
    %146 = vector.multi_reduction <add>, %145, %cst_37 [1] : vector<256x16xf32> to vector<256xf32>
    %147 = vector.shape_cast %146 : vector<256xf32> to vector<256x1xf32>
    %cst_38 = arith.constant 1.600000e+01 : f32
    %148 = vector.broadcast %cst_38 : f32 to vector<256x1xf32>
    %149 = arith.divf %147, %148 : vector<256x1xf32>
    %150 = vector.broadcast %149 : vector<256x1xf32> to vector<256x16xf32>
    %151 = arith.subf %145, %150 : vector<256x16xf32>
    %152 = arith.mulf %151, %151 : vector<256x16xf32>
    %cst_39 = arith.constant dense<0.000000e+00> : vector<256xf32>
    %153 = vector.multi_reduction <add>, %152, %cst_39 [1] : vector<256x16xf32> to vector<256xf32>
    %154 = vector.shape_cast %153 : vector<256xf32> to vector<256x1xf32>
    %cst_40 = arith.constant 1.600000e+01 : f32
    %155 = vector.broadcast %cst_40 : f32 to vector<256x1xf32>
    %156 = arith.divf %154, %155 : vector<256x1xf32>
    %157 = vector.broadcast %149 : vector<256x1xf32> to vector<256x16xf32>
    %158 = arith.subf %145, %157 : vector<256x16xf32>
    %cst_41 = arith.constant 9.99999974E-6 : f32
    %159 = vector.broadcast %cst_41 : f32 to vector<256x1xf32>
    %160 = arith.addf %156, %159 : vector<256x1xf32>
    %161 = math.rsqrt %160 : vector<256x1xf32>
    %162 = vector.broadcast %161 : vector<256x1xf32> to vector<256x16xf32>
    %163 = arith.mulf %158, %162 : vector<256x16xf32>
    %c0_42 = arith.constant 0 : index
    %c0_43 = arith.constant 0 : index
    %164 = vector.load %arg9[%c0_42, %c0_43] : memref<1x16xf32, #tpu.memory_space<vmem>>, vector<1x16xf32>
    %165 = vector.broadcast %164 : vector<1x16xf32> to vector<256x16xf32>
    %166 = arith.mulf %163, %165 : vector<256x16xf32>
    %c0_44 = arith.constant 0 : index
    %c0_45 = arith.constant 0 : index
    %167 = vector.load %arg10[%c0_44, %c0_45] : memref<1x16xf32, #tpu.memory_space<vmem>>, vector<1x16xf32>
    %168 = vector.broadcast %167 : vector<1x16xf32> to vector<256x16xf32>
    %169 = arith.addf %166, %168 : vector<256x16xf32>
    %c0_46 = arith.constant 0 : index
    %c0_47 = arith.constant 0 : index
    %170 = vector.load %arg11[%c0_46, %c0_47] : memref<16x48xf32, #tpu.memory_space<vmem>>, vector<16x48xf32>
    %cst_48 = arith.constant dense<0.000000e+00> : vector<256x48xf32>
    %171 = tpu.matmul %169, %170, %cst_48 {dimension_numbers = #tpu.dot_dimension_numbers<[1], [0], [0], [1], [0, 0, 1, 1], [], []>} : vector<256x16xf32>, vector<16x48xf32>, vector<256x48xf32> -> vector<256x48xf32>
    %172 = vector.extract_strided_slice %171 {offsets = [0, 0], sizes = [256, 4], strides = [1, 1]} : vector<256x48xf32> to vector<256x4xf32>
    %173 = arith.truncf %172 : vector<256x4xf32> to vector<256x4xbf16>
    %174 = vector.extract_strided_slice %171 {offsets = [0, 16], sizes = [256, 4], strides = [1, 1]} : vector<256x48xf32> to vector<256x4xf32>
    %175 = arith.truncf %174 : vector<256x4xf32> to vector<256x4xbf16>
    %176 = vector.extract_strided_slice %171 {offsets = [0, 32], sizes = [256, 4], strides = [1, 1]} : vector<256x48xf32> to vector<256x4xf32>
    %177 = arith.truncf %176 : vector<256x4xf32> to vector<256x4xbf16>
    %cst_49 = arith.constant dense<0.000000e+00> : vector<256x256xf32>
    %178 = tpu.matmul %173, %175, %cst_49 {dimension_numbers = #tpu.dot_dimension_numbers<[1], [1], [0], [0], [0, 0, 1, 0], [], []>} : vector<256x4xbf16>, vector<256x4xbf16>, vector<256x256xf32> -> vector<256x256xf32>
    %cst_50 = arith.constant dense<0xFF800000> : vector<256xf32>
    %179 = vector.multi_reduction <maximumf>, %178, %cst_50 [1] : vector<256x256xf32> to vector<256xf32>
    %cst_51 = arith.constant 0xFF800000 : f32
    %180 = vector.broadcast %cst_51 : f32 to vector<256xf32>
    %181 = arith.maximumf %180, %179 : vector<256xf32>
    %182 = vector.shape_cast %181 : vector<256xf32> to vector<256x1xf32>
    %183 = vector.broadcast %182 : vector<256x1xf32> to vector<256x256xf32>
    %184 = arith.subf %178, %183 : vector<256x256xf32>
    %185 = math.exp %184 : vector<256x256xf32>
    %cst_52 = arith.constant dense<0.000000e+00> : vector<256xf32>
    %186 = vector.multi_reduction <add>, %185, %cst_52 [1] : vector<256x256xf32> to vector<256xf32>
    %187 = vector.shape_cast %186 : vector<256xf32> to vector<256x1xf32>
    %188 = vector.broadcast %187 : vector<256x1xf32> to vector<256x256xf32>
    %189 = arith.divf %185, %188 : vector<256x256xf32>
    %190 = arith.truncf %189 : vector<256x256xf32> to vector<256x256xbf16>
    %cst_53 = arith.constant dense<0.000000e+00> : vector<256x4xf32>
    %191 = tpu.matmul %190, %177, %cst_53 {dimension_numbers = #tpu.dot_dimension_numbers<[1], [0], [0], [1], [0, 0, 1, 1], [], []>} : vector<256x256xbf16>, vector<256x4xbf16>, vector<256x4xf32> -> vector<256x4xf32>
    %192 = vector.extract_strided_slice %171 {offsets = [0, 4], sizes = [256, 4], strides = [1, 1]} : vector<256x48xf32> to vector<256x4xf32>
    %193 = arith.truncf %192 : vector<256x4xf32> to vector<256x4xbf16>
    %194 = vector.extract_strided_slice %171 {offsets = [0, 20], sizes = [256, 4], strides = [1, 1]} : vector<256x48xf32> to vector<256x4xf32>
    %195 = arith.truncf %194 : vector<256x4xf32> to vector<256x4xbf16>
    %196 = vector.extract_strided_slice %171 {offsets = [0, 36], sizes = [256, 4], strides = [1, 1]} : vector<256x48xf32> to vector<256x4xf32>
    %197 = arith.truncf %196 : vector<256x4xf32> to vector<256x4xbf16>
    %cst_54 = arith.constant dense<0.000000e+00> : vector<256x256xf32>
    %198 = tpu.matmul %193, %195, %cst_54 {dimension_numbers = #tpu.dot_dimension_numbers<[1], [1], [0], [0], [0, 0, 1, 0], [], []>} : vector<256x4xbf16>, vector<256x4xbf16>, vector<256x256xf32> -> vector<256x256xf32>
    %cst_55 = arith.constant dense<0xFF800000> : vector<256xf32>
    %199 = vector.multi_reduction <maximumf>, %198, %cst_55 [1] : vector<256x256xf32> to vector<256xf32>
    %cst_56 = arith.constant 0xFF800000 : f32
    %200 = vector.broadcast %cst_56 : f32 to vector<256xf32>
    %201 = arith.maximumf %200, %199 : vector<256xf32>
    %202 = vector.shape_cast %201 : vector<256xf32> to vector<256x1xf32>
    %203 = vector.broadcast %202 : vector<256x1xf32> to vector<256x256xf32>
    %204 = arith.subf %198, %203 : vector<256x256xf32>
    %205 = math.exp %204 : vector<256x256xf32>
    %cst_57 = arith.constant dense<0.000000e+00> : vector<256xf32>
    %206 = vector.multi_reduction <add>, %205, %cst_57 [1] : vector<256x256xf32> to vector<256xf32>
    %207 = vector.shape_cast %206 : vector<256xf32> to vector<256x1xf32>
    %208 = vector.broadcast %207 : vector<256x1xf32> to vector<256x256xf32>
    %209 = arith.divf %205, %208 : vector<256x256xf32>
    %210 = arith.truncf %209 : vector<256x256xf32> to vector<256x256xbf16>
    %cst_58 = arith.constant dense<0.000000e+00> : vector<256x4xf32>
    %211 = tpu.matmul %210, %197, %cst_58 {dimension_numbers = #tpu.dot_dimension_numbers<[1], [0], [0], [1], [0, 0, 1, 1], [], []>} : vector<256x256xbf16>, vector<256x4xbf16>, vector<256x4xf32> -> vector<256x4xf32>
    %212 = vector.extract_strided_slice %171 {offsets = [0, 8], sizes = [256, 4], strides = [1, 1]} : vector<256x48xf32> to vector<256x4xf32>
    %213 = arith.truncf %212 : vector<256x4xf32> to vector<256x4xbf16>
    %214 = vector.extract_strided_slice %171 {offsets = [0, 24], sizes = [256, 4], strides = [1, 1]} : vector<256x48xf32> to vector<256x4xf32>
    %215 = arith.truncf %214 : vector<256x4xf32> to vector<256x4xbf16>
    %216 = vector.extract_strided_slice %171 {offsets = [0, 40], sizes = [256, 4], strides = [1, 1]} : vector<256x48xf32> to vector<256x4xf32>
    %217 = arith.truncf %216 : vector<256x4xf32> to vector<256x4xbf16>
    %cst_59 = arith.constant dense<0.000000e+00> : vector<256x256xf32>
    %218 = tpu.matmul %213, %215, %cst_59 {dimension_numbers = #tpu.dot_dimension_numbers<[1], [1], [0], [0], [0, 0, 1, 0], [], []>} : vector<256x4xbf16>, vector<256x4xbf16>, vector<256x256xf32> -> vector<256x256xf32>
    %cst_60 = arith.constant dense<0xFF800000> : vector<256xf32>
    %219 = vector.multi_reduction <maximumf>, %218, %cst_60 [1] : vector<256x256xf32> to vector<256xf32>
    %cst_61 = arith.constant 0xFF800000 : f32
    %220 = vector.broadcast %cst_61 : f32 to vector<256xf32>
    %221 = arith.maximumf %220, %219 : vector<256xf32>
    %222 = vector.shape_cast %221 : vector<256xf32> to vector<256x1xf32>
    %223 = vector.broadcast %222 : vector<256x1xf32> to vector<256x256xf32>
    %224 = arith.subf %218, %223 : vector<256x256xf32>
    %225 = math.exp %224 : vector<256x256xf32>
    %cst_62 = arith.constant dense<0.000000e+00> : vector<256xf32>
    %226 = vector.multi_reduction <add>, %225, %cst_62 [1] : vector<256x256xf32> to vector<256xf32>
    %227 = vector.shape_cast %226 : vector<256xf32> to vector<256x1xf32>
    %228 = vector.broadcast %227 : vector<256x1xf32> to vector<256x256xf32>
    %229 = arith.divf %225, %228 : vector<256x256xf32>
    %230 = arith.truncf %229 : vector<256x256xf32> to vector<256x256xbf16>
    %cst_63 = arith.constant dense<0.000000e+00> : vector<256x4xf32>
    %231 = tpu.matmul %230, %217, %cst_63 {dimension_numbers = #tpu.dot_dimension_numbers<[1], [0], [0], [1], [0, 0, 1, 1], [], []>} : vector<256x256xbf16>, vector<256x4xbf16>, vector<256x4xf32> -> vector<256x4xf32>
    %232 = vector.extract_strided_slice %171 {offsets = [0, 12], sizes = [256, 4], strides = [1, 1]} : vector<256x48xf32> to vector<256x4xf32>
    %233 = arith.truncf %232 : vector<256x4xf32> to vector<256x4xbf16>
    %234 = vector.extract_strided_slice %171 {offsets = [0, 28], sizes = [256, 4], strides = [1, 1]} : vector<256x48xf32> to vector<256x4xf32>
    %235 = arith.truncf %234 : vector<256x4xf32> to vector<256x4xbf16>
    %236 = vector.extract_strided_slice %171 {offsets = [0, 44], sizes = [256, 4], strides = [1, 1]} : vector<256x48xf32> to vector<256x4xf32>
    %237 = arith.truncf %236 : vector<256x4xf32> to vector<256x4xbf16>
    %cst_64 = arith.constant dense<0.000000e+00> : vector<256x256xf32>
    %238 = tpu.matmul %233, %235, %cst_64 {dimension_numbers = #tpu.dot_dimension_numbers<[1], [1], [0], [0], [0, 0, 1, 0], [], []>} : vector<256x4xbf16>, vector<256x4xbf16>, vector<256x256xf32> -> vector<256x256xf32>
    %cst_65 = arith.constant dense<0xFF800000> : vector<256xf32>
    %239 = vector.multi_reduction <maximumf>, %238, %cst_65 [1] : vector<256x256xf32> to vector<256xf32>
    %cst_66 = arith.constant 0xFF800000 : f32
    %240 = vector.broadcast %cst_66 : f32 to vector<256xf32>
    %241 = arith.maximumf %240, %239 : vector<256xf32>
    %242 = vector.shape_cast %241 : vector<256xf32> to vector<256x1xf32>
    %243 = vector.broadcast %242 : vector<256x1xf32> to vector<256x256xf32>
    %244 = arith.subf %238, %243 : vector<256x256xf32>
    %245 = math.exp %244 : vector<256x256xf32>
    %cst_67 = arith.constant dense<0.000000e+00> : vector<256xf32>
    %246 = vector.multi_reduction <add>, %245, %cst_67 [1] : vector<256x256xf32> to vector<256xf32>
    %247 = vector.shape_cast %246 : vector<256xf32> to vector<256x1xf32>
    %248 = vector.broadcast %247 : vector<256x1xf32> to vector<256x256xf32>
    %249 = arith.divf %245, %248 : vector<256x256xf32>
    %250 = arith.truncf %249 : vector<256x256xf32> to vector<256x256xbf16>
    %cst_68 = arith.constant dense<0.000000e+00> : vector<256x4xf32>
    %251 = tpu.matmul %250, %237, %cst_68 {dimension_numbers = #tpu.dot_dimension_numbers<[1], [0], [0], [1], [0, 0, 1, 1], [], []>} : vector<256x256xbf16>, vector<256x4xbf16>, vector<256x4xf32> -> vector<256x4xf32>
    %252 = tpu.concatenate %191, %211, %231, %251 in 1 : vector<256x4xf32>, vector<256x4xf32>, vector<256x4xf32>, vector<256x4xf32> -> vector<256x16xf32>
    %c0_69 = arith.constant 0 : index
    %c0_70 = arith.constant 0 : index
    %253 = vector.load %arg12[%c0_69, %c0_70] : memref<16x16xf32, #tpu.memory_space<vmem>>, vector<16x16xf32>
    %cst_71 = arith.constant dense<0.000000e+00> : vector<256x16xf32>
    %254 = tpu.matmul %252, %253, %cst_71 {dimension_numbers = #tpu.dot_dimension_numbers<[1], [0], [0], [1], [0, 0, 1, 1], [], []>} : vector<256x16xf32>, vector<16x16xf32>, vector<256x16xf32> -> vector<256x16xf32>
    %c0_72 = arith.constant 0 : index
    %c0_73 = arith.constant 0 : index
    %255 = vector.load %arg13[%c0_72, %c0_73] : memref<1x16xf32, #tpu.memory_space<vmem>>, vector<1x16xf32>
    %256 = vector.broadcast %255 : vector<1x16xf32> to vector<256x16xf32>
    %257 = arith.addf %254, %256 : vector<256x16xf32>
    %c0_74 = arith.constant 0 : index
    %c0_75 = arith.constant 0 : index
    %258 = vector.load %arg14[%c0_74, %c0_75] : memref<16x4xf32, #tpu.memory_space<vmem>>, vector<16x4xf32>
    %cst_76 = arith.constant dense<0.000000e+00> : vector<16x256xf32>
    %259 = tpu.matmul %258, %1, %cst_76 {dimension_numbers = #tpu.dot_dimension_numbers<[1], [0], [0], [1], [0, 0, 1, 1], [], []>} : vector<16x4xf32>, vector<4x256xf32>, vector<16x256xf32> -> vector<16x256xf32>
    %260 = tpu.transpose %257, [1, 0] : vector<256x16xf32> -> vector<16x256xf32>
    %261 = arith.addf %260, %259 : vector<16x256xf32>
    %c0_77 = arith.constant 0 : index
    %c0_78 = arith.constant 0 : index
    %c0_79 = arith.constant 0 : index
    %262 = vector.load %arg15[%c0_77, %c0_78, %c0_79] : memref<1x16x256xf32, #tpu.memory_space<vmem>>, vector<1x16x256xf32>
    %263 = vector.shape_cast %262 : vector<1x16x256xf32> to vector<16x256xf32>
    %264 = vector.shape_cast %261 : vector<16x256xf32> to vector<1x16x256xf32>
    tpu.vector_store %arg15[%c0_77, %c0_78, %c0_79], %264 {strides = array<i32>} : memref<1x16x256xf32, #tpu.memory_space<vmem>>, vector<1x16x256xf32>,
    return
  }
  func.func @transform_0(%arg0: i32) -> (i32, i32, i32) {
    %c0_i32 = arith.constant 0 : i32
    %c0_i32_0 = arith.constant 0 : i32
    %c0_i32_1 = arith.constant 0 : i32
    return %arg0, %c0_i32, %c0_i32_0 : i32, i32, i32
  }
  func.func @transform_1(%arg0: i32) -> (i32, i32) {
    %c0_i32 = arith.constant 0 : i32
    %c0_i32_0 = arith.constant 0 : i32
    %c0_i32_1 = arith.constant 0 : i32
    return %c0_i32, %c0_i32_0 : i32, i32
  }
  func.func @transform_2(%arg0: i32) -> (i32, i32) {
    %c0_i32 = arith.constant 0 : i32
    %c0_i32_0 = arith.constant 0 : i32
    %c0_i32_1 = arith.constant 0 : i32
    return %c0_i32, %c0_i32_0 : i32, i32
  }
  func.func @transform_3(%arg0: i32) -> (i32, i32) {
    %c0_i32 = arith.constant 0 : i32
    %c0_i32_0 = arith.constant 0 : i32
    %c0_i32_1 = arith.constant 0 : i32
    return %c0_i32, %c0_i32_0 : i32, i32
  }
  func.func @transform_4(%arg0: i32) -> (i32, i32) {
    %c0_i32 = arith.constant 0 : i32
    %c0_i32_0 = arith.constant 0 : i32
    %c0_i32_1 = arith.constant 0 : i32
    return %c0_i32, %c0_i32_0 : i32, i32
  }
  func.func @transform_5(%arg0: i32) -> (i32, i32) {
    %c0_i32 = arith.constant 0 : i32
    %c0_i32_0 = arith.constant 0 : i32
    %c0_i32_1 = arith.constant 0 : i32
    return %c0_i32, %c0_i32_0 : i32, i32
  }
  func.func @transform_6(%arg0: i32) -> (i32, i32) {
    %c0_i32 = arith.constant 0 : i32
    %c0_i32_0 = arith.constant 0 : i32
    %c0_i32_1 = arith.constant 0 : i32
    return %c0_i32, %c0_i32_0 : i32, i32
  }
  func.func @transform_7(%arg0: i32) -> (i32, i32) {
    %c0_i32 = arith.constant 0 : i32
    %c0_i32_0 = arith.constant 0 : i32
    %c0_i32_1 = arith.constant 0 : i32
    return %c0_i32, %c0_i32_0 : i32, i32
  }
  func.func @transform_8(%arg0: i32) -> (i32, i32) {
    %c0_i32 = arith.constant 0 : i32
    %c0_i32_0 = arith.constant 0 : i32
    %c0_i32_1 = arith.constant 0 : i32
    return %c0_i32, %c0_i32_0 : i32, i32
  }
  func.func @transform_9(%arg0: i32) -> (i32, i32) {
    %c0_i32 = arith.constant 0 : i32
    %c0_i32_0 = arith.constant 0 : i32
    %c0_i32_1 = arith.constant 0 : i32
    return %c0_i32, %c0_i32_0 : i32, i32
  }
  func.func @transform_10(%arg0: i32) -> (i32, i32) {
    %c0_i32 = arith.constant 0 : i32
    %c0_i32_0 = arith.constant 0 : i32
    %c0_i32_1 = arith.constant 0 : i32
    return %c0_i32, %c0_i32_0 : i32, i32
  }
  func.func @transform_11(%arg0: i32) -> (i32, i32) {
    %c0_i32 = arith.constant 0 : i32
    %c0_i32_0 = arith.constant 0 : i32
    %c0_i32_1 = arith.constant 0 : i32
    return %c0_i32, %c0_i32_0 : i32, i32
  }
  func.func @transform_12(%arg0: i32) -> (i32, i32) {
    %c0_i32 = arith.constant 0 : i32
    %c0_i32_0 = arith.constant 0 : i32
    %c0_i32_1 = arith.constant 0 : i32
    return %c0_i32, %c0_i32_0 : i32, i32
  }
  func.func @transform_13(%arg0: i32) -> (i32, i32) {
    %c0_i32 = arith.constant 0 : i32
    %c0_i32_0 = arith.constant 0 : i32
    %c0_i32_1 = arith.constant 0 : i32
    return %c0_i32, %c0_i32_0 : i32, i32
  }
  func.func @transform_14(%arg0: i32) -> (i32, i32, i32) {
    %c0_i32 = arith.constant 0 : i32
    %c0_i32_0 = arith.constant 0 : i32
    %c0_i32_1 = arith.constant 0 : i32
    return %arg0, %c0_i32, %c0_i32_0 : i32, i32, i32
  }
}

</mosaic_0001>

<bundles_post_ra>
// kernel: optimized_res_block.1
= control target key start
LH: loop header
LB: loop body
LE: loop exit
PB: predicated region body
PF: predicated region fallthrough
CT: control target
= control target key end

     0   :  { %s9397_s29 = smov 0   ;;  %s14292_s0 = inlined_call_operand.vmem [shape: f32[2,4,256], index: 0, kind: input, shape index: {}]   ;;  %s14293_s1 = inlined_call_operand.vmem [shape: f32[9,256], index: 1, kind: input, shape index: {}]   ;;  %s14294_s2 = inlined_call_operand.vmem [shape: f32[16,36], index: 2, kind: input, shape index: {}]   ;;  %s14295_s3 = inlined_call_operand.vmem [shape: f32[16,1], index: 3, kind: input, shape index: {}]   ;;  %s14296_s4 = inlined_call_operand.vmem [shape: f32[16,1], index: 4, kind: input, shape index: {}]   ;;  %s14297_s5 = inlined_call_operand.vmem [shape: f32[16,144], index: 5, kind: input, shape index: {}]   ;;  %s14298_s6 = inlined_call_operand.vmem [shape: f32[16,1], index: 6, kind: input, shape index: {}]   ;;  %s14299_s7 = inlined_call_operand.vmem [shape: f32[16,1], index: 7, kind: input, shape index: {}]   ;;  %s14300_s8 = inlined_call_operand.vmem [shape: f32[1,16], index: 8, kind: input, shape index: {}]   ;;  %s14301_s9 = inlined_call_operand.vmem [shape: f32[1,16], index: 9, kind: input, shape index: {}]   ;;  %s14302_s10 = inlined_call_operand.vmem [shape: f32[16,48], index: 10, kind: input, shape index: {}]   ;;  %s14303_s11 = inlined_call_operand.vmem [shape: f32[16,16], index: 11, kind: input, shape index: {}]   ;;  %s14304_s12 = inlined_call_operand.vmem [shape: f32[1,16], index: 12, kind: input, shape index: {}]   ;;  %s14305_s13 = inlined_call_operand.vmem [shape: f32[16,4], index: 13, kind: input, shape index: {}]   ;;  %s14306_s14 = inlined_call_operand.vmem [shape: f32[2,16,256], index: 14, kind: output, shape index: {}]  }
   0x1 LB: > { %s7368_s30 = sadd.s32 4294967295, %s9297_s29   ;;  %p7372_p0 = scmp.ge.s32.totalorder %s9297_s29, 1  ;;  %s9297_s29 = sphi %s9397_s29, %s24_s29  }
   0x2   : > { %p412_p1 = scmp.lt.s32.totalorder %s9297_s29, 3 }
   0x4   : > { %p413_p2 = pnand %p7372_p0, %p412_p1 }
   0x6   : > { %416 = sbr.rel (%p413_p2) target bundleno = 4927 (0x133f), region = 76 }
   0xb   : > { %p458_p3 = scmp.lt.s32.totalorder %s7368_s30, 1  ;;  %s14307_s19 = smov 111   ;;  %v14313_v2 = vmov 0.0   ;;  %v487_v3 = vlaneseq  ;;  %v9462_v9 = vld [vmem:[%s14293_s1 + $0x8] sm:$0xff]  ;;  %v9468_v11 = vld [vmem:[%s14293_s1 + $0x18] ss:$0 sm:$0xff] }
   0xc   : > { %s9300_s20 = smov 112   ;;  %s9301_s21 = smov 127   ;;  %731 = vmatprep.mubr.f32.mxu0 %v14313_v2  ;;  %v9473_v12 = vld [vmem:[%s14293_s1] sm:$0xff]  ;;  %v9478_v13 = vld [vmem:[%s14293_s1 + $0x10] ss:$0 sm:$0xff]  ;;  %vm645_vm1 = vcmask 1043456  }
   0xd   : > { %s15393_s30 = smov (!%p458_p3, %s7368_s30), 1  ;;  %s9302_s22 = smov 113   ;;  %v9453_v4 = vshrl.u32 %v487_v3, 7  ;;  %v9455_v5 = vand.u32 127, %v487_v3  ;;  %vm654_vm9 = vcmask 293888   ;;  %vm979_vm10 = vcmask 130048  }
   0xe   : > { %s7530_s15 = sshll.u32 %s15393_s30, 3  ;;  %s9303_s23 = smov 1   ;;  %vm2107_vm11 = vcmask 31744   ;;  %vm6756_vm12 = vcmask 64512   ;;  %vm6789_vm13 = vcmask 97280  }
   0xf   : > { %s9411_s18 = scalar_lea.vmem %s14292_s0, %s7530_s15  ;;  %s14311_s24 = smov 16   ;;  %v562_v8 = vsub.s32 5, %v9453_v4  ;;  %vm608_vm0 = vcmp.lt.s32.totalorder %v9455_v5, 111  ;;  %v596_v10 = vsub.s32 7, %v9453_v4  ;;  %vm557_vm2 = vcmp.lt.s32.totalorder %v9455_v5, 127 }
  0x10   : > { %v9414_v0 = vld [vmem:[%s9411_s18] sm:$0xff]  ;;  %s9306_s25 = smov 15   ;;  %s14309_s26 = smov 17   ;;  %v579_v16 = vsub.s32 6, %v9453_v4  ;;  %vm591_vm3 = vcmp.lt.s32.totalorder %v9455_v5, 112  ;;  %vm574_vm4 = vcmp.lt.s32.totalorder %v9455_v5, 113 }
  0x11   : > { %604 = vrot.lane.b32.xlu1 %v9414_v0, %s14307_s19  ;;  %587 = vrot.lane.b32.xlu0 %v9414_v0, %s9300_s20  ;;  %v9422_v1 = vcombine.high %v9414_v0, %v9414_v0  ;;  %v9487_v19 = vrot.slane %v9462_v9, %v562_v8  ;;  %v9492_v21 = vrot.slane %v9473_v12, %v596_v10  ;;  %v545_v42 = vsub.s32 3, %v9453_v4  ;;  %s9314_s27 = smov 100   ;;  %s9315_s28 = smov 116  }
  0x12   : > { %v9495_v22 = vrot.slane %v9462_v9, %v596_v10  ;;  %v9499_v24 = vrot.slane %v9473_v12, %v562_v8  ;;  %v9504_v27 = vrot.slane %v9473_v12, %v579_v16  ;;  %v9519_v35 = vrot.slane %v9462_v9, %v579_v16 }
  0x13   : > { %14617 = vst [vmem:[#allocation2_spill] sm:$0xff] %v9422_v1  ;;  %vm540_vm5 = vcmp.lt.s32.totalorder %v9455_v5, 1  ;;  %v9533_v52 = vrot.slane %v9473_v12, %v545_v42  ;;  %v9536_v53 = vrot.slane %v9462_v9, %v545_v42  ;;  %v511_v54 = vsub.s32 1, %v9453_v4  ;;  %v474_v42 = vld [vmem:[%s14294_s2] sm:$0xff] }
  0x14   : > { %v528_v58 = vsub.s32 2, %v9453_v4  ;;  %vm506_vm6 = vcmp.lt.s32.totalorder %v9455_v5, 16  ;;  %v494_v62 = vsub.s32 0, %v9453_v4  ;;  %vm523_vm7 = vcmp.lt.s32.totalorder %v9455_v5, 15 }
  0x15   : > { %553 = vrot.lane.b32.xlu0 %v9414_v0, %s9301_s21  ;;  %606 = vrot.lane.b32.xlu1 %v9422_v1, %s14307_s19  ;;  %vm489_vm8 = vcmp.lt.s32.totalorder %v9455_v5, 17  ;;  %v845_v5 = vld [vmem:[%s14297_s5 + $0x10] sm:$0xff]  ;;  %s9311_s19 = smov 124  }
  0x16   : > { %v9563_v8 = vrot.slane %v9462_v9, %v528_v58  ;;  %v9571_v16 = vrot.slane %v9473_v12, %v494_v62 }
  0x19   : > { %555 = vrot.lane.b32.xlu1 %v9422_v1, %s9301_s21  ;;  %589 = vrot.lane.b32.xlu0 %v9422_v1, %s9300_s20 }
  0x1d   : > { %572 = vrot.lane.b32.xlu1 %v9422_v1, %s9302_s22  ;;  %570 = vrot.lane.b32.xlu0 %v9414_v0, %s9302_s22 }
  0x21   : > { %538 = vrot.lane.b32.xlu1 %v9422_v1, %s9303_s23  ;;  %536 = vrot.lane.b32.xlu0 %v9414_v0, %s9303_s23 }
  0x25   : > { %504 = vrot.lane.b32.xlu1 %v9422_v1, %s14311_s24  ;;  %502 = vrot.lane.b32.xlu0 %v9414_v0, %s14311_s24  ;;  %s9312_s24 = smov 104  }
  0x29   : > { %521 = vrot.lane.b32.xlu1 %v9422_v1, %s9306_s25  ;;  %519 = vrot.lane.b32.xlu0 %v9414_v0, %s9306_s25 }
  0x2d   : > { %485 = vrot.lane.b32.xlu1 %v9422_v1, %s14309_s26  ;;  %483 = vrot.lane.b32.xlu0 %v9414_v0, %s14309_s26 }
  0x83   : > { %v605_v6 = vpop.permute.xlu1 %604  ;;  %v588_v7 = vpop.permute.xlu0 %587 }
  0x87   : > { %v554_v14 = vpop.permute.xlu0 %553  ;;  %v607_v15 = vpop.permute.xlu1 %606 }
  0x88   : > { %v609_v17 = vsel %vm608_vm0, %v605_v6, %v607_v15  ;;  %v610_v18 = vsel %vm608_vm0, %v607_v15, %v605_v6  ;;  %v9553_v6 = vrot.slane %v9473_v12, %v511_v54 }
  0x89   : > { %v620_v20 = vmul.f32 %v9468_v11, %v610_v18  ;;  %v619_v23 = vmul.f32 %v9478_v13, %v609_v17  ;;  %v9574_v17 = vrot.slane %v9462_v9, %v494_v62 }
  0x8b   : > { %7379 = vmatprep.subr.msk.mxu0 %vm645_vm1, %v620_v20  ;;  %v556_v25 = vpop.permute.xlu1 %555  ;;  %v590_v26 = vpop.permute.xlu0 %589 }
  0x8c   : > { %v558_v28 = vsel %vm557_vm2, %v554_v14, %v556_v25  ;;  %v559_v29 = vsel %vm557_vm2, %v556_v25, %v554_v14  ;;  %v592_v30 = vsel %vm591_vm3, %v588_v7, %v590_v26  ;;  %v593_v31 = vsel %vm591_vm3, %v590_v26, %v588_v7  ;;  %7380 = vmatpush1.msk.msra.mxu0 %vm645_vm1, %v619_v23 }
  0x8d   : > { %v569_v32 = vmul.f32 %v9487_v19, %v559_v29  ;;  %v602_v33 = vmul.f32 %v9492_v21, %v592_v30  ;;  %v603_v34 = vmul.f32 %v9495_v22, %v593_v31  ;;  %v568_v36 = vmul.f32 %v9499_v24, %v558_v28 }
  0x8e   : > { %v9556_v7 = vrot.slane %v9462_v9, %v511_v54  ;;  %v477_v54 = vld [vmem:[%s14295_s3 + $0x8] sm:$0xff] }
  0x8f   : > { %v573_v37 = vpop.permute.xlu1 %572  ;;  %v571_v38 = vpop.permute.xlu0 %570  ;;  %v636_v39 = vrot.slane %v569_v32, 4  ;;  %v641_v43 = vrot.slane %v602_v33, 4  ;;  %v642_v44 = vrot.slane %v603_v34, 4  ;;  %v635_v47 = vrot.slane %v568_v36, 4 }
  0x90   : > { %v575_v40 = vsel %vm574_vm4, %v571_v38, %v573_v37  ;;  %v576_v41 = vsel %vm574_vm4, %v573_v37, %v571_v38 }
  0x91   : > { %v585_v45 = vmul.f32 %v9504_v27, %v575_v40  ;;  %v586_v46 = vmul.f32 %v9519_v35, %v576_v41  ;;  %v651_v57 = vsel %vm645_vm1, %v9422_v1, %v636_v39  ;;  %v650_v59 = vsel %vm645_vm1, %v9414_v0, %v635_v47 }
  0x92   : > { %v9560_v0 = vrot.slane %v9473_v12, %v528_v58 }
  0x93   : > { %v539_v48 = vpop.permute.xlu1 %538  ;;  %v537_v49 = vpop.permute.xlu0 %536  ;;  %v653_v50 = vsel %vm645_vm1, %v586_v46, %v642_v44  ;;  %v652_v51 = vsel %vm645_vm1, %v585_v45, %v641_v43  ;;  %v475_v43 = vld [vmem:[%s14294_s2 + $0x8] sm:$0xff] }
  0x94   : > { %691 = vmatprep.subr.mxu0 %v653_v50  ;;  %v541_v55 = vsel %vm540_vm5, %v537_v49, %v539_v48  ;;  %v542_v56 = vsel %vm540_vm5, %v539_v48, %v537_v49 }
  0x95   : > { %692 = vmatpush1.msra.mxu0 %v652_v51  ;;  %v551_v63 = vmul.f32 %v9533_v52, %v542_v56  ;;  %v552_v3 = vmul.f32 %v9536_v53, %v541_v55  ;;  %v9308_v51 = vmov 0  }
  0x96   : > { %693 = vmatprep.subr.mxu0 %v651_v57  ;;  %8420 = vset.pattern.permute.xlu1 %v9308_v51 }
  0x97   : > { %v505_v60 = vpop.permute.xlu1 %504  ;;  %694 = vmatpush1.msra.mxu0 %v650_v59  ;;  %v503_v61 = vpop.permute.xlu0 %502  ;;  %v629_v18 = vrot.slane %v551_v63, 4  ;;  %v630_v20 = vrot.slane %v552_v3, 4  ;;  %8419 = vset.pattern.permute.xlu0 %v9308_v51 }
  0x98   : > { %v507_v4 = vsel %vm506_vm6, %v503_v61, %v505_v60  ;;  %v508_v10 = vsel %vm506_vm6, %v505_v60, %v503_v61 }
  0x99   : > { %v517_v26 = vmul.f32 %v9553_v6, %v508_v10  ;;  %v518_v28 = vmul.f32 %v9556_v7, %v507_v4 }
  0x9b   : > { %v522_v14 = vpop.permute.xlu1 %521  ;;  %v520_v15 = vpop.permute.xlu0 %519  ;;  %v623_v36 = vrot.slane %v517_v26, 4  ;;  %v624_v37 = vrot.slane %v518_v28, 4 }
  0x9c   : > { %v524_v23 = vsel %vm523_vm7, %v520_v15, %v522_v14  ;;  %v525_v25 = vsel %vm523_vm7, %v522_v14, %v520_v15 }
  0x9d   : > { %v534_v29 = vmul.f32 %v9560_v0, %v525_v25  ;;  %v535_v12 = vmul.f32 %v9563_v8, %v524_v23 }
  0x9f   : > { %v486_v30 = vpop.permute.xlu1 %485  ;;  %v484_v31 = vpop.permute.xlu0 %483  ;;  %v649_v9 = vsel %vm645_vm1, %v535_v12, %v630_v20  ;;  %v648_v32 = vsel %vm645_vm1, %v534_v29, %v629_v18  ;;  %v476_v29 = vld [vmem:[%s14295_s3] sm:$0xff]  ;;  %v479_v12 = vld [vmem:[%s14296_s4 + $0x8] sm:$0xff] }
  0xa0   : > { %v490_v33 = vsel %vm489_vm8, %v484_v31, %v486_v30  ;;  %v491_v34 = vsel %vm489_vm8, %v486_v30, %v484_v31  ;;  %695 = vmatprep.subr.mxu0 %v649_v9  ;;  %v478_v30 = vld [vmem:[%s14296_s4] sm:$0xff] }
  0xa1   : > { %v500_v38 = vmul.f32 %v9571_v16, %v491_v34  ;;  %v501_v39 = vmul.f32 %v9574_v17, %v490_v33  ;;  %696 = vmatpush1.msra.mxu0 %v648_v32 }
  0xa3   : > { %v647_v40 = vsel %vm645_vm1, %v501_v39, %v624_v37  ;;  %v646_v41 = vsel %vm645_vm1, %v500_v38, %v623_v36 }
  0xa4   : > { %697 = vmatprep.subr.mxu0 %v647_v40 }
  0xa5   : > { %698 = vmatpush1.msra.mxu0 %v646_v41 }
  0xa6   : > { %7381 = vmatmul.mubr.msk.f32.vlgmr.msra.gmra.mxu0 %vm654_vm9, %v474_v42 }
  0xa7   : > { %737 = vmatprep.mubr.f32.mxu0 %v14313_v2 }
  0xaa   : > { %7382 = vmatmul.mubr.msk.f32.gmra.mxu0 %vm654_vm9, %v475_v43 }
 0x166   : > { %v733_v44 = vpop.f32.mrf.mxu0 }
 0x168   : > { %v735_v45 = vpop.f32.mrf.mxu0 }
 0x169   : > { %v744_v46 = vadd.f32 %v735_v45, %v733_v44 }
 0x16a   : > { %v739_v47 = vpop.f32.mrf.mxu0 }
 0x16b   : > { %v745_v48 = vadd.f32 %v744_v46, %v739_v47 }
 0x16c   : > { %v741_v49 = vpop.f32.mrf.mxu0 }
 0x16d   : > { %v746_v50 = vadd.f32 %v745_v48, %v741_v49 }
 0x16f   : > { %747 = vadd.xlane.f32.xlu0 %v746_v50 }
 0x185   : > { %794 = vperm.xlu0 %8419, %v477_v54  }
 0x1f8   : > { %v748_v55 = vpop.xlane.xlu0 %747 }
 0x1f9   : > { %v749_v56 = vrot.slane %v748_v55, 4 }
 0x1fb   : > { %v750_v57 = vadd.f32 %v749_v56, %v748_v55 }
 0x1fd   : > { %v751_v58 = vrot.slane %v750_v57, 2 }
 0x1ff   : > { %v752_v59 = vadd.f32 %v751_v58, %v750_v57 }
 0x201   : > { %v753_v60 = vrot.slane %v752_v59, 1 }
 0x203   : > { %v754_v61 = vadd.f32 %v753_v60, %v752_v59 }
 0x205   : > { %8380 = vpush %v754_v61 }
 0x236   : > { %s8381_s16 = spop %8380 }
 0x237   : > { %v756_v62 = vstv %s8381_s16  ;;  %s14618_s16 = smov 16  }
 0x238   : > { %v758_v63 = vmul.f32 0.00024414063, %v756_v62 }
 0x23a   : > { %v759_v3 = vsub.f32 %v733_v44, %v758_v63  ;;  %v760_v4 = vsub.f32 %v735_v45, %v758_v63  ;;  %v761_v10 = vsub.f32 %v739_v47, %v758_v63  ;;  %v762_v14 = vsub.f32 %v741_v49, %v758_v63  ;;  %v795_v44 = vpop.permute.xlu0 %794 }
 0x23c   : > { %v763_v15 = vmul.f32 %v759_v3, %v759_v3  ;;  %v764_v18 = vmul.f32 %v760_v4, %v760_v4  ;;  %v765_v20 = vmul.f32 %v761_v10, %v761_v10  ;;  %v766_v25 = vmul.f32 %v762_v14, %v762_v14 }
 0x23e   : > { %v767_v23 = vadd.f32 %v764_v18, %v763_v15 }
 0x240   : > { %v768_v26 = vadd.f32 %v767_v23, %v765_v20 }
 0x242   : > { %v769_v28 = vadd.f32 %v768_v26, %v766_v25 }
 0x244   : > { %770 = vadd.xlane.f32.xlu1 %v769_v28 }
 0x255   : > { %789 = vperm.xlu1 %8420, %v476_v29  }
 0x259   : > { %808 = vperm.xlu1 %8420, %v479_v12  }
 0x25d   : > { %803 = vperm.xlu1 %8420, %v478_v30  }
 0x2cd   : > { %v771_v31 = vpop.xlane.xlu1 %770 }
 0x2ce   : > { %v772_v9 = vrot.slane %v771_v31, 4 }
 0x2d0   : > { %v773_v32 = vadd.f32 %v772_v9, %v771_v31 }
 0x2d1   : > { %v790_v41 = vpop.permute.xlu1 %789 }
 0x2d2   : > { %v774_v33 = vrot.slane %v773_v32, 2 }
 0x2d4   : > { %v775_v34 = vadd.f32 %v774_v33, %v773_v32  ;;  %v844_v32 = vld [vmem:[%s14297_s5 + $0x8] sm:$0xff] }
 0x2d5   : > { %v809_v42 = vpop.permute.xlu1 %808  ;;  %7387 = vmatprep.mubr.msk.f32.mxu1 %vm979_vm10, %v844_v32 }
 0x2d6   : > { %v776_v36 = vrot.slane %v775_v34, 1 }
 0x2d8   : > { %v777_v37 = vadd.f32 %v776_v36, %v775_v34 }
 0x2d9   : > { %v804_v54 = vpop.permute.xlu1 %803 }
 0x2da   : > { %8382 = vpush %v777_v37 }
 0x30b   : > { %s8383_s15 = spop %8382 }
 0x30c   : > { %v779_v38 = vstv %s8383_s15  ;;  %s9316_s15 = smov 92  }
 0x30d   : > { %v780_v39 = vmul.f32 0.00024414063, %v779_v38 }
 0x30f   : > { %v781_v40 = vadd.f32 1e-05, %v780_v39 }
 0x311   : > { %8422 = vrsqrt.f32 %v781_v40 }
 0x31e   : > { %v8423_v43 = vpop.eup %8422 }
 0x31f   : > { %v783_v45 = vmul.f32 %v8423_v43, %v759_v3  ;;  %v784_v46 = vmul.f32 %v8423_v43, %v760_v4  ;;  %v785_v47 = vmul.f32 %v8423_v43, %v761_v10  ;;  %v786_v48 = vmul.f32 %v8423_v43, %v762_v14 }
 0x321   : > { %v797_v49 = vmul.f32 %v790_v41, %v783_v45  ;;  %v799_v50 = vmul.f32 %v795_v44, %v785_v47  ;;  %v800_v51 = vmul.f32 %v795_v44, %v786_v48  ;;  %v798_v55 = vmul.f32 %v790_v41, %v784_v46 }
 0x323   : > { %v811_v56 = vadd.f32 %v804_v54, %v797_v49  ;;  %v813_v57 = vadd.f32 %v809_v42, %v799_v50  ;;  %v814_v58 = vadd.f32 %v809_v42, %v800_v51  ;;  %v812_v62 = vadd.f32 %v804_v54, %v798_v55 }
 0x325   : > { %v7383_v59 = vmul.f32 -1.442695, %v811_v56  ;;  %v7385_v60 = vmul.f32 -1.442695, %v813_v57  ;;  %v7386_v61 = vmul.f32 -1.442695, %v814_v58 }
 0x326   : > { %v7384_v63 = vmul.f32 -1.442695, %v812_v62 }
 0x327   : > { %8424 = vpow2.f32 %v7383_v59 }
 0x328   : > { %8426 = vpow2.f32 %v7385_v60 }
 0x329   : > { %8428 = vpow2.f32 %v7386_v61 }
 0x32a   : > { %8430 = vpow2.f32 %v7384_v63 }
 0x334   : > { %v8425_v3 = vpop.eup %8424 }
 0x335   : > { %v8427_v4 = vpop.eup %8426  ;;  %v827_v10 = vadd.f32 1.0, %v8425_v3 }
 0x336   : > { %v8429_v14 = vpop.eup %8428  ;;  %v829_v15 = vadd.f32 1.0, %v8427_v4 }
 0x337   : > { %v830_v18 = vadd.f32 1.0, %v8429_v14  ;;  %v8431_v20 = vpop.eup %8430 }
 0x338   : > { %8432 = vrcp.f32 %v829_v15  ;;  %v828_v23 = vadd.f32 1.0, %v8431_v20 }
 0x339   : > { %8434 = vrcp.f32 %v827_v10 }
 0x33a   : > { %8436 = vrcp.f32 %v830_v18 }
 0x33b   : > { %8438 = vrcp.f32 %v828_v23 }
 0x345   : > { %v8433_v25 = vpop.eup %8432 }
 0x346   : > { %v8435_v26 = vpop.eup %8434  ;;  %v9613_v28 = vmul.f32 %v8433_v25, %v813_v57 }
 0x347   : > { %v8437_v29 = vpop.eup %8436  ;;  %v9619_v12 = vmul.f32 %v8435_v26, %v811_v56 }
 0x348   : > { %933 = vrot.lane.b32.xlu0 %v9613_v28, %s9302_s22  ;;  %949 = vrot.lane.b32.xlu1 %v9613_v28, %s9300_s20  ;;  %v9621_v30 = vmul.f32 %v8437_v29, %v814_v58  ;;  %v8439_v31 = vpop.eup %8438 }
 0x349   : > { %v9631_v9 = vmul.f32 %v8439_v31, %v812_v62 }
 0x34c   : > { %931 = vrot.lane.b32.xlu0 %v9619_v12, %s9302_s22  ;;  %953 = vrot.lane.b32.xlu1 %v9621_v30, %s9300_s20 }
 0x350   : > { %917 = vrot.lane.b32.xlu0 %v9613_v28, %s9301_s21  ;;  %947 = vrot.lane.b32.xlu1 %v9619_v12, %s9300_s20 }
 0x354   : > { %915 = vrot.lane.b32.xlu0 %v9619_v12, %s9301_s21  ;;  %951 = vrot.lane.b32.xlu1 %v9631_v9, %s9300_s20 }
 0x358   : > { %901 = vrot.lane.b32.xlu0 %v9613_v28, %s9303_s23  ;;  %937 = vrot.lane.b32.xlu1 %v9621_v30, %s9302_s22 }
 0x35c   : > { %899 = vrot.lane.b32.xlu0 %v9619_v12, %s9303_s23  ;;  %935 = vrot.lane.b32.xlu1 %v9631_v9, %s9302_s22  ;;  %s14619_s22 = smov 17  }
 0x360   : > { %885 = vrot.lane.b32.xlu0 %v9613_v28, %s9306_s25  ;;  %921 = vrot.lane.b32.xlu1 %v9621_v30, %s9301_s21 }
 0x364   : > { %883 = vrot.lane.b32.xlu0 %v9619_v12, %s9306_s25  ;;  %919 = vrot.lane.b32.xlu1 %v9631_v9, %s9301_s21  ;;  %s14620_s21 = smov 111  }
 0x368   : > { %869 = vrot.lane.b32.xlu0 %v9613_v28, %s14618_s16  ;;  %905 = vrot.lane.b32.xlu1 %v9621_v30, %s9303_s23 }
 0x36c   : > { %867 = vrot.lane.b32.xlu0 %v9619_v12, %s14618_s16  ;;  %903 = vrot.lane.b32.xlu1 %v9631_v9, %s9303_s23 }
 0x370   : > { %853 = vrot.lane.b32.xlu0 %v9613_v28, %s14619_s22  ;;  %889 = vrot.lane.b32.xlu1 %v9621_v30, %s9306_s25 }
 0x374   : > { %851 = vrot.lane.b32.xlu0 %v9619_v12, %s14619_s22  ;;  %887 = vrot.lane.b32.xlu1 %v9631_v9, %s9306_s25  ;;  %s9309_s25 = smov 96  }
 0x378   : > { %965 = vrot.lane.b32.xlu0 %v9613_v28, %s14620_s21  ;;  %873 = vrot.lane.b32.xlu1 %v9621_v30, %s14618_s16 }
 0x37c   : > { %963 = vrot.lane.b32.xlu0 %v9619_v12, %s14620_s21  ;;  %871 = vrot.lane.b32.xlu1 %v9631_v9, %s14618_s16  ;;  %s9317_s16 = smov 88  }
 0x380   : > { %857 = vrot.lane.b32.xlu1 %v9621_v30, %s14619_s22 }
 0x384   : > { %855 = vrot.lane.b32.xlu1 %v9631_v9, %s14619_s22  ;;  %s9318_s22 = smov 84  }
 0x388   : > { %969 = vrot.lane.b32.xlu1 %v9621_v30, %s14620_s21 }
 0x38c   : > { %967 = vrot.lane.b32.xlu1 %v9631_v9, %s14620_s21  ;;  %s9319_s21 = smov 4  }
 0x3ba   : > { %v934_v33 = vpop.permute.xlu0 %933  ;;  %v950_v34 = vpop.permute.xlu1 %949 }
 0x3be   : > { %v932_v36 = vpop.permute.xlu0 %931  ;;  %v954_v37 = vpop.permute.xlu1 %953 }
 0x3bf   : > { %v958_v38 = vsel %vm591_vm3, %v954_v37, %v950_v34  ;;  %v956_v39 = vsel %vm591_vm3, %v950_v34, %v954_v37 }
 0x3c0   : > { %v962_v40 = vmul.f32 %v958_v38, %v9495_v22  ;;  %v961_v41 = vmul.f32 %v956_v39, %v9492_v21 }
 0x3c2   : > { %v918_v42 = vpop.permute.xlu0 %917  ;;  %986 = vmatprep.subr.mxu1 %v962_v40  ;;  %v948_v43 = vpop.permute.xlu1 %947 }
 0x3c3   : > { %987 = vmatpush1.msra.mxu1 %v961_v41 }
 0x3c6   : > { %v916_v44 = vpop.permute.xlu0 %915  ;;  %v952_v45 = vpop.permute.xlu1 %951 }
 0x3c7   : > { %v955_v46 = vsel %vm591_vm3, %v948_v43, %v952_v45  ;;  %v957_v47 = vsel %vm591_vm3, %v952_v45, %v948_v43 }
 0x3c8   : > { %v960_v48 = vmul.f32 %v957_v47, %v9495_v22  ;;  %v959_v49 = vmul.f32 %v955_v46, %v9492_v21 }
 0x3ca   : > { %v902_v50 = vpop.permute.xlu0 %901  ;;  %988 = vmatprep.subr.mxu1 %v960_v48  ;;  %v938_v51 = vpop.permute.xlu1 %937 }
 0x3cb   : > { %v940_v54 = vsel %vm574_vm4, %v934_v33, %v938_v51  ;;  %v942_v55 = vsel %vm574_vm4, %v938_v51, %v934_v33  ;;  %989 = vmatpush1.msra.mxu1 %v959_v49 }
 0x3cc   : > { %v946_v56 = vmul.f32 %v942_v55, %v9519_v35  ;;  %v945_v57 = vmul.f32 %v940_v54, %v9504_v27 }
 0x3ce   : > { %v900_v58 = vpop.permute.xlu0 %899  ;;  %990 = vmatprep.subr.mxu1 %v946_v56  ;;  %v936_v59 = vpop.permute.xlu1 %935 }
 0x3cf   : > { %v939_v21 = vsel %vm574_vm4, %v932_v36, %v936_v59  ;;  %v941_v22 = vsel %vm574_vm4, %v936_v59, %v932_v36  ;;  %991 = vmatpush1.msra.mxu1 %v945_v57 }
 0x3d0   : > { %v944_v60 = vmul.f32 %v941_v22, %v9519_v35  ;;  %v943_v61 = vmul.f32 %v939_v21, %v9504_v27 }
 0x3d2   : > { %992 = vmatprep.subr.mxu1 %v944_v60  ;;  %v922_v62 = vpop.permute.xlu1 %921  ;;  %v886_v4 = vpop.permute.xlu0 %885 }
 0x3d3   : > { %v924_v63 = vsel %vm557_vm2, %v918_v42, %v922_v62  ;;  %v926_v3 = vsel %vm557_vm2, %v922_v62, %v918_v42  ;;  %993 = vmatpush1.msra.mxu1 %v943_v61 }
 0x3d4   : > { %v930_v10 = vmul.f32 %v926_v3, %v9487_v19  ;;  %v929_v14 = vmul.f32 %v924_v63, %v9499_v24 }
 0x3d6   : > { %994 = vmatprep.subr.mxu1 %v930_v10  ;;  %v920_v15 = vpop.permute.xlu1 %919  ;;  %v884_v23 = vpop.permute.xlu0 %883 }
 0x3d7   : > { %v923_v35 = vsel %vm557_vm2, %v916_v44, %v920_v15  ;;  %v925_v27 = vsel %vm557_vm2, %v920_v15, %v916_v44  ;;  %995 = vmatpush1.msra.mxu1 %v929_v14 }
 0x3d8   : > { %v928_v18 = vmul.f32 %v925_v27, %v9487_v19  ;;  %v927_v20 = vmul.f32 %v923_v35, %v9499_v24 }
 0x3da   : > { %996 = vmatprep.subr.mxu1 %v928_v18  ;;  %v906_v25 = vpop.permute.xlu1 %905  ;;  %v870_v34 = vpop.permute.xlu0 %869  ;;  %v843_v18 = vld [vmem:[%s14297_s5] sm:$0xff] }
 0x3db   : > { %v908_v26 = vsel %vm540_vm5, %v902_v50, %v906_v25  ;;  %997 = vmatpush1.msra.mxu1 %v927_v20  ;;  %v910_v29 = vsel %vm540_vm5, %v906_v25, %v902_v50  ;;  %v846_v20 = vld [vmem:[%s14297_s5 + $0x18] sm:$0xff] }
 0x3dc   : > { %998 = vmatprep.subr.mxu1 %v9621_v30  ;;  %v914_v19 = vmul.f32 %v908_v26, %v9536_v53  ;;  %v913_v33 = vmul.f32 %v910_v29, %v9533_v52 }
 0x3dd   : > { %999 = vmatpush1.msra.mxu1 %v9613_v28 }
 0x3de   : > { %1000 = vmatprep.subr.mxu1 %v9631_v9  ;;  %v904_v31 = vpop.permute.xlu1 %903  ;;  %v868_v39 = vpop.permute.xlu0 %867 }
 0x3df   : > { %v907_v24 = vsel %vm540_vm5, %v900_v58, %v904_v31  ;;  %v909_v32 = vsel %vm540_vm5, %v904_v31, %v900_v58  ;;  %1001 = vmatpush1.msra.mxu1 %v9619_v12 }
 0x3e0   : > { %1002 = vmatprep.subr.mxu1 %v914_v19  ;;  %v912_v30 = vmul.f32 %v907_v24, %v9536_v53  ;;  %v911_v28 = vmul.f32 %v909_v32, %v9533_v52  ;;  %v847_v19 = vld [vmem:[%s14298_s6] sm:$0xff] }
 0x3e1   : > { %1003 = vmatpush1.msra.mxu1 %v913_v33  ;;  %v849_v24 = vld [vmem:[%s14299_s7] sm:$0xff] }
 0x3e2   : > { %1004 = vmatprep.subr.mxu1 %v912_v30  ;;  %v890_v9 = vpop.permute.xlu1 %889  ;;  %v854_v46 = vpop.permute.xlu0 %853 }
 0x3e3   : > { %v892_v36 = vsel %vm523_vm7, %v886_v4, %v890_v9  ;;  %v894_v37 = vsel %vm523_vm7, %v890_v9, %v886_v4  ;;  %1005 = vmatpush1.msra.mxu1 %v911_v28 }
 0x3e4   : > { %v898_v12 = vmul.f32 %v892_v36, %v9563_v8  ;;  %v897_v38 = vmul.f32 %v894_v37, %v9560_v0 }
 0x3e6   : > { %1006 = vmatprep.subr.mxu1 %v898_v12  ;;  %v888_v40 = vpop.permute.xlu1 %887  ;;  %v852_v54 = vpop.permute.xlu0 %851 }
 0x3e7   : > { %v891_v52 = vsel %vm523_vm7, %v884_v23, %v888_v40  ;;  %v893_v53 = vsel %vm523_vm7, %v888_v40, %v884_v23  ;;  %1007 = vmatpush1.msra.mxu1 %v897_v38 }
 0x3e8   : > { %v896_v41 = vmul.f32 %v891_v52, %v9563_v8  ;;  %v895_v42 = vmul.f32 %v893_v53, %v9560_v0 }
 0x3ea   : > { %1008 = vmatprep.subr.mxu1 %v896_v41  ;;  %v874_v43 = vpop.permute.xlu1 %873  ;;  %v966_v22 = vpop.permute.xlu0 %965 }
 0x3eb   : > { %v876_v44 = vsel %vm506_vm6, %v870_v34, %v874_v43  ;;  %v878_v45 = vsel %vm506_vm6, %v874_v43, %v870_v34  ;;  %1009 = vmatpush1.msra.mxu1 %v895_v42 }
 0x3ec   : > { %v882_v47 = vmul.f32 %v876_v44, %v9556_v7  ;;  %v881_v48 = vmul.f32 %v878_v45, %v9553_v6 }
 0x3ee   : > { %1010 = vmatprep.subr.mxu1 %v882_v47  ;;  %v872_v49 = vpop.permute.xlu1 %871  ;;  %v964_v14 = vpop.permute.xlu0 %963  ;;  %v848_v47 = vld [vmem:[%s14298_s6 + $0x8] sm:$0xff] }
 0x3ef   : > { %v875_v8 = vsel %vm506_vm6, %v868_v39, %v872_v49  ;;  %v877_v0 = vsel %vm506_vm6, %v872_v49, %v868_v39  ;;  %1011 = vmatpush1.msra.mxu1 %v881_v48  ;;  %v850_v48 = vld [vmem:[%s14299_s7 + $0x8] sm:$0xff] }
 0x3f0   : > { %v880_v50 = vmul.f32 %v875_v8, %v9556_v7  ;;  %v879_v51 = vmul.f32 %v877_v0, %v9553_v6 }
 0x3f2   : > { %1012 = vmatprep.subr.mxu1 %v880_v50  ;;  %v858_v55 = vpop.permute.xlu1 %857 }
 0x3f3   : > { %v860_v56 = vsel %vm489_vm8, %v854_v46, %v858_v55  ;;  %v862_v57 = vsel %vm489_vm8, %v858_v55, %v854_v46  ;;  %1013 = vmatpush1.msra.mxu1 %v879_v51 }
 0x3f4   : > { %v866_v58 = vmul.f32 %v860_v56, %v9574_v17  ;;  %v865_v59 = vmul.f32 %v862_v57, %v9571_v16 }
 0x3f6   : > { %1014 = vmatprep.subr.mxu1 %v866_v58  ;;  %v856_v21 = vpop.permute.xlu1 %855 }
 0x3f7   : > { %v859_v7 = vsel %vm489_vm8, %v852_v54, %v856_v21  ;;  %v861_v6 = vsel %vm489_vm8, %v856_v21, %v852_v54  ;;  %1015 = vmatpush1.msra.mxu1 %v865_v59 }
 0x3f8   : > { %v864_v60 = vmul.f32 %v859_v7, %v9574_v17  ;;  %v863_v61 = vmul.f32 %v861_v6, %v9571_v16 }
 0x3fa   : > { %1016 = vmatprep.subr.mxu1 %v864_v60  ;;  %v970_v62 = vpop.permute.xlu1 %969 }
 0x3fb   : > { %v972_v63 = vsel %vm608_vm0, %v966_v22, %v970_v62  ;;  %v974_v3 = vsel %vm608_vm0, %v970_v62, %v966_v22  ;;  %1017 = vmatpush1.msra.mxu1 %v863_v61 }
 0x3fc   : > { %v978_v4 = vmul.f32 %v9468_v11, %v974_v3  ;;  %v977_v10 = vmul.f32 %v9478_v13, %v972_v63 }
 0x3fe   : > { %1046 = vmatprep.subr.mxu1 %v978_v4  ;;  %v968_v15 = vpop.permute.xlu1 %967 }
 0x3ff   : > { %v971_v17 = vsel %vm608_vm0, %v964_v14, %v968_v15  ;;  %v973_v16 = vsel %vm608_vm0, %v968_v15, %v964_v14  ;;  %1047 = vmatpush2.msra.mxu1 %v977_v10 }
 0x400   : > { %v976_v35 = vmul.f32 %v9468_v11, %v973_v16  ;;  %v975_v27 = vmul.f32 %v9478_v13, %v971_v17 }
 0x402   : > { %1048 = vmatprep.subr.mxu1 %v976_v35 }
 0x403   : > { %1049 = vmatpush2.msra.mxu1 %v975_v27 }
 0x404   : > { %1051 = vmatmul.mubr.f32.vlgmr.msra.gmra.mxu1 %v843_v18 }
 0x405   : > { %7388 = vmatprep.mubr.msk.f32.mxu1 %vm979_vm10, %v846_v20 }
 0x408   : > { %1057 = vmatmul.mubr.f32.gmra.mxu1 %v845_v5 }
 0x4c4   : > { %v1052_v11 = vpop.f32.mrf.mxu1 }
 0x4c6   : > { %v1054_v13 = vpop.f32.mrf.mxu1 }
 0x4c7   : > { %v1063_v23 = vadd.f32 %v1054_v13, %v1052_v11 }
 0x4c8   : > { %v1058_v25 = vpop.f32.mrf.mxu1 }
 0x4c9   : > { %v1064_v26 = vadd.f32 %v1063_v23, %v1058_v25 }
 0x4ca   : > { %v1060_v29 = vpop.f32.mrf.mxu1 }
 0x4cb   : > { %v1065_v31 = vadd.f32 %v1064_v26, %v1060_v29 }
 0x4cd   : > { %1066 = vadd.xlane.f32.xlu0 %v1065_v31 }
 0x4e3   : > { %1107 = vperm.xlu0 %8419, %v847_v19  }
 0x4e7   : > { %1121 = vperm.xlu0 %8419, %v849_v24  }
 0x556   : > { %v1067_v32 = vpop.xlane.xlu0 %1066 }
 0x557   : > { %v1068_v33 = vrot.slane %v1067_v32, 4 }
 0x559   : > { %v1069_v34 = vadd.f32 %v1068_v33, %v1067_v32 }
 0x55b   : > { %v1070_v30 = vrot.slane %v1069_v34, 2 }
 0x55d   : > { %v1071_v28 = vadd.f32 %v1070_v30, %v1069_v34 }
 0x55e   : > { %v1108_v59 = vpop.permute.xlu0 %1107 }
 0x55f   : > { %v1072_v9 = vrot.slane %v1071_v28, 1 }
 0x561   : > { %v1073_v36 = vadd.f32 %v1072_v9, %v1071_v28 }
 0x562   : > { %v1122_v10 = vpop.permute.xlu0 %1121 }
 0x563   : > { %8384 = vpush %v1073_v36 }
 0x594   : > { %s8385_s23 = spop %8384 }
 0x595   : > { %v1075_v37 = vstv %s8385_s23  ;;  %s9320_s23 = smov 8  }
 0x596   : > { %v1076_v12 = vmul.f32 0.00024414063, %v1075_v37 }
 0x598   : > { %v1077_v38 = vsub.f32 %v1052_v11, %v1076_v12  ;;  %v1078_v39 = vsub.f32 %v1054_v13, %v1076_v12  ;;  %v1079_v40 = vsub.f32 %v1058_v25, %v1076_v12  ;;  %v1080_v52 = vsub.f32 %v1060_v29, %v1076_v12 }
 0x59a   : > { %v1081_v53 = vmul.f32 %v1077_v38, %v1077_v38  ;;  %v1082_v41 = vmul.f32 %v1078_v39, %v1078_v39  ;;  %v1083_v42 = vmul.f32 %v1079_v40, %v1079_v40  ;;  %v1084_v44 = vmul.f32 %v1080_v52, %v1080_v52 }
 0x59c   : > { %v1085_v43 = vadd.f32 %v1082_v41, %v1081_v53 }
 0x59e   : > { %v1086_v45 = vadd.f32 %v1085_v43, %v1083_v42 }
 0x5a0   : > { %v1087_v46 = vadd.f32 %v1086_v45, %v1084_v44 }
 0x5a2   : > { %1088 = vadd.xlane.f32.xlu1 %v1087_v46 }
 0x5b3   : > { %1112 = vperm.xlu1 %8420, %v848_v47  }
 0x5b7   : > { %1126 = vperm.xlu1 %8420, %v850_v48  }
 0x62b   : > { %v1089_v49 = vpop.xlane.xlu1 %1088 }
 0x62c   : > { %v1090_v8 = vrot.slane %v1089_v49, 4 }
 0x62e   : > { %v1091_v0 = vadd.f32 %v1090_v8, %v1089_v49 }
 0x62f   : > { %v1113_v21 = vpop.permute.xlu1 %1112 }
 0x630   : > { %v1092_v50 = vrot.slane %v1091_v0, 2 }
 0x632   : > { %v1093_v51 = vadd.f32 %v1092_v50, %v1091_v0 }
 0x633   : > { %v1127_v14 = vpop.permute.xlu1 %1126 }
 0x634   : > { %v1094_v54 = vrot.slane %v1093_v51, 1 }
 0x636   : > { %v1095_v55 = vadd.f32 %v1094_v54, %v1093_v51 }
 0x638   : > { %8386 = vpush %v1095_v55 }
 0x669   : > { %s8387_s26 = spop %8386 }
 0x66a   : > { %v1097_v56 = vstv %s8387_s26  ;;  %s9313_s26 = smov 120  }
 0x66b   : > { %v1098_v57 = vmul.f32 0.00024414063, %v1097_v56 }
 0x66d   : > { %v1099_v58 = vadd.f32 1e-05, %v1098_v57 }
 0x66f   : > { %8440 = vrsqrt.f32 %v1099_v58 }
 0x67c   : > { %v8441_v7 = vpop.eup %8440 }
 0x67d   : > { %v1102_v6 = vmul.f32 %v8441_v7, %v1078_v39  ;;  %v1101_v22 = vmul.f32 %v8441_v7, %v1077_v38  ;;  %v1104_v60 = vmul.f32 %v8441_v7, %v1080_v52  ;;  %v1103_v61 = vmul.f32 %v8441_v7, %v1079_v40 }
 0x67f   : > { %v1116_v62 = vmul.f32 %v1108_v59, %v1102_v6  ;;  %v1115_v63 = vmul.f32 %v1108_v59, %v1101_v22  ;;  %v1118_v3 = vmul.f32 %v1113_v21, %v1104_v60  ;;  %v1117_v4 = vmul.f32 %v1113_v21, %v1103_v61 }
 0x681   : > { %v1130_v15 = vadd.f32 %v1122_v10, %v1116_v62  ;;  %v1129_v17 = vadd.f32 %v1122_v10, %v1115_v63  ;;  %v1132_v16 = vadd.f32 %v1127_v14, %v1118_v3  ;;  %v1131_v35 = vadd.f32 %v1127_v14, %v1117_v4 }
 0x683   : > { %v7390_v27 = vmul.f32 -1.442695, %v1130_v15  ;;  %v7389_v18 = vmul.f32 -1.442695, %v1129_v17  ;;  %v7392_v20 = vmul.f32 -1.442695, %v1132_v16 }
 0x684   : > { %v7391_v5 = vmul.f32 -1.442695, %v1131_v35 }
 0x685   : > { %8442 = vpow2.f32 %v7390_v27 }
 0x686   : > { %8444 = vpow2.f32 %v7389_v18 }
 0x687   : > { %8446 = vpow2.f32 %v7392_v20 }
 0x688   : > { %8448 = vpow2.f32 %v7391_v5 }
 0x692   : > { %v8443_v11 = vpop.eup %8442 }
 0x693   : > { %v8445_v13 = vpop.eup %8444  ;;  %v1146_v23 = vadd.f32 1.0, %v8443_v11 }
 0x694   : > { %v8447_v25 = vpop.eup %8446  ;;  %v1145_v26 = vadd.f32 1.0, %v8445_v13 }
 0x695   : > { %v8449_v29 = vpop.eup %8448  ;;  %8450 = vrcp.f32 %v1146_v23  ;;  %v1148_v31 = vadd.f32 1.0, %v8447_v25 }
 0x696   : > { %8452 = vrcp.f32 %v1145_v26  ;;  %v1147_v19 = vadd.f32 1.0, %v8449_v29 }
 0x697   : > { %8454 = vrcp.f32 %v1148_v31 }
 0x698   : > { %8456 = vrcp.f32 %v1147_v19 }
 0x6a2   : > { %v8451_v24 = vpop.eup %8450 }
 0x6a3   : > { %v8453_v32 = vpop.eup %8452  ;;  %v1158_v33 = vmul.f32 %v8451_v24, %v1130_v15 }
 0x6a4   : > { %v8455_v34 = vpop.eup %8454  ;;  %v1157_v30 = vmul.f32 %v8453_v32, %v1129_v17 }
 0x6a5   : > { %v8457_v28 = vpop.eup %8456  ;;  %1193 = vxpose.xlu1.b32.start [1/2] (short) %v1158_v33, 128  ;;  %v1160_v9 = vmul.f32 %v8455_v34, %v1132_v16 }
 0x6a6   : > { %1161 = vxpose.xlu0.b32.start [1/2] (short) %v1157_v30, 128  ;;  %v1159_v36 = vmul.f32 %v8457_v28, %v1131_v35 }
 0x6a9   : > { %1194 = vxpose.xlu1.b32.end [2/2] (short) %v1160_v9, 128 }
 0x6aa   : > { %1162 = vxpose.xlu0.b32.end [2/2] (short) %v1159_v36, 128 }
 0x721   : > { %v9811_v37 = vpop.trf.xlu1 }
 0x722   : > { %v9813_v12 = vpop.trf.xlu0  ;;  %v1273_v27 = vsel %vm979_vm10, %v9811_v37, 0.0 }
 0x723   : > { %v1225_v38 = vsel %vm979_vm10, %v9813_v12, 0.0 }
 0x724   : > { %1226 = vadd.xlane.f32.xlu0 %v1225_v38 }
 0x725   : > { %v9819_v40 = vpop.trf.xlu1 }
 0x726   : > { %v9817_v39 = vpop.trf.xlu0  ;;  %v1276_v11 = vsel %vm979_vm10, %v9819_v40, 0.0 }
 0x727   : > { %v1228_v52 = vsel %vm979_vm10, %v9817_v39, 0.0 }
 0x728   : > { %1229 = vadd.xlane.f32.xlu1 %v1228_v52 }
 0x729   : > { %v9827_v42 = vpop.trf.xlu1 }
 0x72a   : > { %v9823_v53 = vpop.trf.xlu0  ;;  %v1279_v5 = vsel %vm979_vm10, %v9827_v42, 0.0 }
 0x72b   : > { %v1231_v41 = vsel %vm979_vm10, %v9823_v53, 0.0 }
 0x72c   : > { %1232 = vadd.xlane.f32.xlu0 %v1231_v41 }
 0x72d   : > { %v9835_v46 = vpop.trf.xlu1 }
 0x72e   : > { %v9829_v43 = vpop.trf.xlu0  ;;  %v1282_v23 = vsel %vm979_vm10, %v9835_v46, 0.0 }
 0x72f   : > { %v1234_v44 = vsel %vm979_vm10, %v9829_v43, 0.0 }
 0x730   : > { %1235 = vadd.xlane.f32.xlu0 %v1234_v44 }
 0x731   : > { %v9843_v8 = vpop.trf.xlu1 }
 0x732   : > { %v9833_v45 = vpop.trf.xlu0  ;;  %v1285_v13 = vsel %vm979_vm10, %v9843_v8, 0.0 }
 0x733   : > { %v1237_v47 = vsel %vm979_vm10, %v9833_v45, 0.0 }
 0x734   : > { %1238 = vadd.xlane.f32.xlu1 %v1237_v47 }
 0x735   : > { %v9851_v54 = vpop.trf.xlu1 }
 0x736   : > { %v9839_v48 = vpop.trf.xlu0  ;;  %v1288_v29 = vsel %vm979_vm10, %v9851_v54, 0.0 }
 0x737   : > { %v1240_v49 = vsel %vm979_vm10, %v9839_v48, 0.0 }
 0x738   : > { %1241 = vadd.xlane.f32.xlu0 %v1240_v49 }
 0x739   : > { %v9859_v58 = vpop.trf.xlu1 }
 0x73a   : > { %v9845_v0 = vpop.trf.xlu0  ;;  %v1291_v26 = vsel %vm979_vm10, %v9859_v58, 0.0 }
 0x73b   : > { %v1243_v50 = vsel %vm979_vm10, %v9845_v0, 0.0 }
 0x73c   : > { %1244 = vadd.xlane.f32.xlu1 %v1243_v50 }
 0x73d   : > { %v9867_v6 = vpop.trf.xlu1 }
 0x73e   : > { %v9849_v51 = vpop.trf.xlu0  ;;  %v1294_v24 = vsel %vm979_vm10, %v9867_v6, 0.0 }
 0x73f   : > { %v1246_v55 = vsel %vm979_vm10, %v9849_v51, 0.0 }
 0x740   : > { %1247 = vadd.xlane.f32.xlu0 %v1246_v55 }
 0x741   : > { %v9875_v62 = vpop.trf.xlu1 }
 0x742   : > { %v9855_v56 = vpop.trf.xlu0  ;;  %v1297_v19 = vsel %vm979_vm10, %v9875_v62, 0.0 }
 0x743   : > { %v1249_v57 = vsel %vm979_vm10, %v9855_v56, 0.0 }
 0x744   : > { %1250 = vadd.xlane.f32.xlu1 %v1249_v57 }
 0x745   : > { %v9883_v10 = vpop.trf.xlu1 }
 0x746   : > { %v9861_v59 = vpop.trf.xlu0  ;;  %v1300_v33 = vsel %vm979_vm10, %v9883_v10, 0.0 }
 0x747   : > { %v1252_v21 = vsel %vm979_vm10, %v9861_v59, 0.0 }
 0x748   : > { %1253 = vadd.xlane.f32.xlu0 %v1252_v21 }
 0x749   : > { %v9891_v16 = vpop.trf.xlu1 }
 0x74a   : > { %v9865_v7 = vpop.trf.xlu0  ;;  %v1303_v32 = vsel %vm979_vm10, %v9891_v16, 0.0 }
 0x74b   : > { %v1255_v22 = vsel %vm979_vm10, %v9865_v7, 0.0 }
 0x74c   : > { %1256 = vadd.xlane.f32.xlu1 %v1255_v22 }
 0x74d   : > { %v9899_v20 = vpop.trf.xlu1 }
 0x74e   : > { %v9871_v60 = vpop.trf.xlu0  ;;  %v1306_v28 = vsel %vm979_vm10, %v9899_v20, 0.0 }
 0x74f   : > { %v1258_v61 = vsel %vm979_vm10, %v9871_v60, 0.0 }
 0x750   : > { %1259 = vadd.xlane.f32.xlu0 %v1258_v61 }
 0x751   : > { %v9909_v25 = vpop.trf.xlu1 }
 0x752   : > { %v9877_v63 = vpop.trf.xlu0  ;;  %v1309_v30 = vsel %vm979_vm10, %v9909_v25, 0.0 }
 0x753   : > { %v1261_v3 = vsel %vm979_vm10, %v9877_v63, 0.0 }
 0x754   : > { %1262 = vadd.xlane.f32.xlu1 %v1261_v3 }
 0x755   : > { %v9915_v31 = vpop.trf.xlu1 }
 0x756   : > { %v9881_v4 = vpop.trf.xlu0  ;;  %v1312_v38 = vsel %vm979_vm10, %v9915_v31, 0.0 }
 0x757   : > { %v1264_v14 = vsel %vm979_vm10, %v9881_v4, 0.0 }
 0x758   : > { %1265 = vadd.xlane.f32.xlu0 %v1264_v14 }
 0x759   : > { %v9925_v34 = vpop.trf.xlu1 }
 0x75a   : > { %v9887_v15 = vpop.trf.xlu0  ;;  %v1315_v9 = vsel %vm979_vm10, %v9925_v34, 0.0 }
 0x75b   : > { %v1267_v17 = vsel %vm979_vm10, %v9887_v15, 0.0 }
 0x75c   : > { %1268 = vadd.xlane.f32.xlu1 %v1267_v17 }
 0x75d   : > { %v9933_v36 = vpop.trf.xlu1 }
 0x75e   : > { %v9893_v35 = vpop.trf.xlu0  ;;  %v1318_v52 = vsel %vm979_vm10, %v9933_v36, 0.0 }
 0x75f   : > { %v1270_v18 = vsel %vm979_vm10, %v9893_v35, 0.0 }
 0x760   : > { %1274 = vadd.xlane.f32.xlu1 %v1273_v27  ;;  %1271 = vadd.xlane.f32.xlu0 %v1270_v18 }
 0x764   : > { %1280 = vadd.xlane.f32.xlu1 %v1279_v5  ;;  %1277 = vadd.xlane.f32.xlu0 %v1276_v11 }
 0x768   : > { %1286 = vadd.xlane.f32.xlu1 %v1285_v13  ;;  %1283 = vadd.xlane.f32.xlu0 %v1282_v23 }
 0x76c   : > { %1292 = vadd.xlane.f32.xlu1 %v1291_v26  ;;  %1289 = vadd.xlane.f32.xlu0 %v1288_v29 }
 0x770   : > { %1298 = vadd.xlane.f32.xlu1 %v1297_v19  ;;  %1295 = vadd.xlane.f32.xlu0 %v1294_v24 }
 0x774   : > { %1304 = vadd.xlane.f32.xlu1 %v1303_v32  ;;  %1301 = vadd.xlane.f32.xlu0 %v1300_v33 }
 0x778   : > { %1310 = vadd.xlane.f32.xlu1 %v1309_v30  ;;  %1307 = vadd.xlane.f32.xlu0 %v1306_v28 }
 0x77c   : > { %1316 = vadd.xlane.f32.xlu1 %v1315_v9  ;;  %1313 = vadd.xlane.f32.xlu0 %v1312_v38 }
 0x780   : > { %1319 = vadd.xlane.f32.xlu0 %v1318_v52 }
 0x7ad   : > { %v1227_v41 = vpop.xlane.xlu0 %1226 }
 0x7ae   : > { %v1322_v44 = vmul.f32 0.0625, %v1227_v41 }
 0x7b0   : > { %v9940_v47 = vsub.f32 %v9813_v12, %v1322_v44 }
 0x7b1   : > { %v1230_v49 = vpop.xlane.xlu1 %1229 }
 0x7b2   : > { %v1323_v50 = vmul.f32 0.0625, %v1230_v49  ;;  %v1386_v55 = vmul.f32 %v9940_v47, %v9940_v47 }
 0x7b4   : > { %v9945_v57 = vsub.f32 %v9817_v39, %v1323_v50  ;;  %v1418_v21 = vsel %vm979_vm10, %v1386_v55, 0.0 }
 0x7b5   : > { %1419 = vadd.xlane.f32.xlu1 %v1418_v21  ;;  %v1233_v22 = vpop.xlane.xlu0 %1232 }
 0x7b6   : > { %v1324_v61 = vmul.f32 0.0625, %v1233_v22  ;;  %v1387_v3 = vmul.f32 %v9945_v57, %v9945_v57 }
 0x7b8   : > { %v9951_v14 = vsub.f32 %v9823_v53, %v1324_v61  ;;  %v1421_v12 = vsel %vm979_vm10, %v1387_v3, 0.0 }
 0x7b9   : > { %1422 = vadd.xlane.f32.xlu0 %v1421_v12  ;;  %v1236_v17 = vpop.xlane.xlu0 %1235 }
 0x7ba   : > { %v1325_v27 = vmul.f32 0.0625, %v1236_v17  ;;  %v1388_v39 = vmul.f32 %v9951_v14, %v9951_v14 }
 0x7bc   : > { %v9957_v18 = vsub.f32 %v9829_v43, %v1325_v27  ;;  %v1424_v5 = vsel %vm979_vm10, %v1388_v39, 0.0 }
 0x7bd   : > { %v1239_v11 = vpop.xlane.xlu1 %1238  ;;  %1425 = vadd.xlane.f32.xlu1 %v1424_v5 }
 0x7be   : > { %v1326_v13 = vmul.f32 0.0625, %v1239_v11  ;;  %v1389_v53 = vmul.f32 %v9957_v18, %v9957_v18  ;;  %v1721_v11 = vld [vmem:[%s14302_s10 + $0x8] sm:$0xff] }
 0x7bf   : > { %8240 = vmatprep.subr.mxu0 %v1721_v11 }
 0x7c0   : > { %v9963_v23 = vsub.f32 %v9833_v45, %v1326_v13  ;;  %v1427_v26 = vsel %vm979_vm10, %v1389_v53, 0.0  ;;  %8241 = vmatpush3.msra.mxu0 %v1721_v11 }
 0x7c1   : > { %1428 = vadd.xlane.f32.xlu0 %v1427_v26  ;;  %v1242_v29 = vpop.xlane.xlu0 %1241  ;;  %v1720_v26 = vld [vmem:[%s14302_s10] sm:$0xff] }
 0x7c2   : > { %v1327_v19 = vmul.f32 0.0625, %v1242_v29  ;;  %v1390_v43 = vmul.f32 %v9963_v23, %v9963_v23  ;;  %8242 = vmatprep.subr.mxu0 %v1720_v26 }
 0x7c3   : > { %8243 = vmatpush3.msra.mxu0 %v1720_v26 }
 0x7c4   : > { %v9969_v24 = vsub.f32 %v9839_v48, %v1327_v19  ;;  %v1430_v32 = vsel %vm979_vm10, %v1390_v43, 0.0 }
 0x7c5   : > { %v1245_v33 = vpop.xlane.xlu1 %1244  ;;  %1431 = vadd.xlane.f32.xlu1 %v1430_v32 }
 0x7c6   : > { %v1328_v30 = vmul.f32 0.0625, %v1245_v33  ;;  %v1391_v45 = vmul.f32 %v9969_v24, %v9969_v24 }
 0x7c8   : > { %v9975_v28 = vsub.f32 %v9845_v0, %v1328_v30  ;;  %v1433_v9 = vsel %vm979_vm10, %v1391_v45, 0.0 }
 0x7c9   : > { %1434 = vadd.xlane.f32.xlu0 %v1433_v9  ;;  %v1248_v38 = vpop.xlane.xlu0 %1247 }
 0x7ca   : > { %v1329_v52 = vmul.f32 0.0625, %v1248_v38  ;;  %v1392_v48 = vmul.f32 %v9975_v28, %v9975_v28 }
 0x7cc   : > { %v9981_v41 = vsub.f32 %v9849_v51, %v1329_v52  ;;  %v1436_v44 = vsel %vm979_vm10, %v1392_v48, 0.0 }
 0x7cd   : > { %v1251_v49 = vpop.xlane.xlu1 %1250  ;;  %1437 = vadd.xlane.f32.xlu1 %v1436_v44 }
 0x7ce   : > { %v1330_v50 = vmul.f32 0.0625, %v1251_v49  ;;  %v1393_v0 = vmul.f32 %v9981_v41, %v9981_v41 }
 0x7d0   : > { %v9987_v55 = vsub.f32 %v9855_v56, %v1330_v50  ;;  %v1439_v21 = vsel %vm979_vm10, %v1393_v0, 0.0 }
 0x7d1   : > { %1440 = vadd.xlane.f32.xlu0 %v1439_v21  ;;  %v1254_v22 = vpop.xlane.xlu0 %1253 }
 0x7d2   : > { %v1331_v61 = vmul.f32 0.0625, %v1254_v22  ;;  %v1394_v51 = vmul.f32 %v9987_v55, %v9987_v55 }
 0x7d4   : > { %v9993_v3 = vsub.f32 %v9861_v59, %v1331_v61  ;;  %v1442_v12 = vsel %vm979_vm10, %v1394_v51, 0.0 }
 0x7d5   : > { %v1257_v17 = vpop.xlane.xlu1 %1256  ;;  %1443 = vadd.xlane.f32.xlu1 %v1442_v12 }
 0x7d6   : > { %v1332_v27 = vmul.f32 0.0625, %v1257_v17  ;;  %v1395_v56 = vmul.f32 %v9993_v3, %v9993_v3 }
 0x7d8   : > { %v9999_v39 = vsub.f32 %v9865_v7, %v1332_v27  ;;  %v1445_v5 = vsel %vm979_vm10, %v1395_v56, 0.0 }
 0x7d9   : > { %1446 = vadd.xlane.f32.xlu0 %v1445_v5  ;;  %v1260_v59 = vpop.xlane.xlu0 %1259 }
 0x7da   : > { %v1333_v13 = vmul.f32 0.0625, %v1260_v59  ;;  %v1396_v53 = vmul.f32 %v9999_v39, %v9999_v39 }
 0x7dc   : > { %v10011_v7 = vsub.f32 %v9871_v60, %v1333_v13  ;;  %v1448_v29 = vsel %vm979_vm10, %v1396_v53, 0.0 }
 0x7dd   : > { %v1263_v19 = vpop.xlane.xlu1 %1262  ;;  %1449 = vadd.xlane.f32.xlu1 %v1448_v29 }
 0x7de   : > { %v1334_v43 = vmul.f32 0.0625, %v1263_v19  ;;  %v1397_v32 = vmul.f32 %v10011_v7, %v10011_v7 }
 0x7e0   : > { %v10017_v33 = vsub.f32 %v9877_v63, %v1334_v43  ;;  %v1451_v30 = vsel %vm979_vm10, %v1397_v32, 0.0 }
 0x7e1   : > { %1452 = vadd.xlane.f32.xlu0 %v1451_v30  ;;  %v1266_v45 = vpop.xlane.xlu0 %1265 }
 0x7e2   : > { %v1335_v9 = vmul.f32 0.0625, %v1266_v45  ;;  %v1398_v60 = vmul.f32 %v10017_v33, %v10017_v33 }
 0x7e4   : > { %v10023_v38 = vsub.f32 %v9881_v4, %v1335_v9  ;;  %v1454_v52 = vsel %vm979_vm10, %v1398_v60, 0.0 }
 0x7e5   : > { %v1269_v48 = vpop.xlane.xlu1 %1268  ;;  %1455 = vadd.xlane.f32.xlu1 %v1454_v52 }
 0x7e6   : > { %v1336_v44 = vmul.f32 0.0625, %v1269_v48  ;;  %v1399_v63 = vmul.f32 %v10023_v38, %v10023_v38 }
 0x7e8   : > { %v10029_v49 = vsub.f32 %v9887_v15, %v1336_v44  ;;  %v1457_v50 = vsel %vm979_vm10, %v1399_v63, 0.0 }
 0x7e9   : > { %v1275_v0 = vpop.xlane.xlu1 %1274  ;;  %1458 = vadd.xlane.f32.xlu0 %v1457_v50  ;;  %v1272_v21 = vpop.xlane.xlu0 %1271 }
 0x7ea   : > { %v1338_v22 = vmul.f32 0.0625, %v1275_v0  ;;  %v1337_v61 = vmul.f32 0.0625, %v1272_v21  ;;  %v1400_v4 = vmul.f32 %v10029_v49, %v10029_v49 }
 0x7ec   : > { %v10035_v51 = vsub.f32 %v9811_v37, %v1338_v22  ;;  %v10038_v12 = vsub.f32 %v9893_v35, %v1337_v61  ;;  %v1460_v17 = vsel %vm979_vm10, %v1400_v4, 0.0 }
 0x7ed   : > { %v1281_v15 = vpop.xlane.xlu1 %1280  ;;  %1461 = vadd.xlane.f32.xlu1 %v1460_v17  ;;  %v1278_v27 = vpop.xlane.xlu0 %1277 }
 0x7ee   : > { %v1340_v56 = vmul.f32 0.0625, %v1281_v15  ;;  %v1339_v5 = vmul.f32 0.0625, %v1278_v27  ;;  %v1402_v11 = vmul.f32 %v10035_v51, %v10035_v51  ;;  %v1401_v59 = vmul.f32 %v10038_v12, %v10038_v12 }
 0x7f0   : > { %v10046_v13 = vsub.f32 %v9827_v42, %v1340_v56  ;;  %v10049_v37 = vsub.f32 %v9819_v40, %v1339_v5  ;;  %v1466_v35 = vsel %vm979_vm10, %v1402_v11, 0.0  ;;  %v1463_v53 = vsel %vm979_vm10, %v1401_v59, 0.0 }
 0x7f1   : > { %v1287_v26 = vpop.xlane.xlu1 %1286  ;;  %1467 = vadd.xlane.f32.xlu1 %v1466_v35  ;;  %1464 = vadd.xlane.f32.xlu0 %v1463_v53  ;;  %v1284_v29 = vpop.xlane.xlu0 %1283 }
 0x7f2   : > { %v1342_v19 = vmul.f32 0.0625, %v1287_v26  ;;  %v1341_v43 = vmul.f32 0.0625, %v1284_v29  ;;  %v1404_v32 = vmul.f32 %v10046_v13, %v10046_v13  ;;  %v1403_v42 = vmul.f32 %v10049_v37, %v10049_v37 }
 0x7f4   : > { %v10058_v30 = vsub.f32 %v9843_v8, %v1342_v19  ;;  %v10061_v40 = vsub.f32 %v9835_v46, %v1341_v43  ;;  %v1472_v45 = vsel %vm979_vm10, %v1404_v32, 0.0  ;;  %v1469_v9 = vsel %vm979_vm10, %v1403_v42, 0.0 }
 0x7f5   : > { %v1293_v60 = vpop.xlane.xlu1 %1292  ;;  %1473 = vadd.xlane.f32.xlu1 %v1472_v45  ;;  %1470 = vadd.xlane.f32.xlu0 %v1469_v9  ;;  %v1290_v52 = vpop.xlane.xlu0 %1289 }
 0x7f6   : > { %v1344_v48 = vmul.f32 0.0625, %v1293_v60  ;;  %v1343_v44 = vmul.f32 0.0625, %v1290_v52  ;;  %v1406_v63 = vmul.f32 %v10058_v30, %v10058_v30  ;;  %v1405_v8 = vmul.f32 %v10061_v40, %v10061_v40 }
 0x7f8   : > { %v10070_v50 = vsub.f32 %v9859_v58, %v1344_v48  ;;  %v10073_v46 = vsub.f32 %v9851_v54, %v1343_v44  ;;  %v1478_v0 = vsel %vm979_vm10, %v1406_v63, 0.0  ;;  %v1475_v21 = vsel %vm979_vm10, %v1405_v8, 0.0 }
 0x7f9   : > { %v1299_v22 = vpop.xlane.xlu1 %1298  ;;  %1479 = vadd.xlane.f32.xlu1 %v1478_v0  ;;  %1476 = vadd.xlane.f32.xlu0 %v1475_v21  ;;  %v1296_v61 = vpop.xlane.xlu0 %1295 }
 0x7fa   : > { %v1346_v4 = vmul.f32 0.0625, %v1299_v22  ;;  %v1345_v17 = vmul.f32 0.0625, %v1296_v61  ;;  %v1408_v15 = vmul.f32 %v10070_v50, %v10070_v50  ;;  %v1407_v58 = vmul.f32 %v10073_v46, %v10073_v46 }
 0x7fc   : > { %v10082_v27 = vsub.f32 %v9875_v62, %v1346_v4  ;;  %v10085_v54 = vsub.f32 %v9867_v6, %v1345_v17  ;;  %v1484_v56 = vsel %vm979_vm10, %v1408_v15, 0.0  ;;  %v1481_v5 = vsel %vm979_vm10, %v1407_v58, 0.0 }
 0x7fd   : > { %v1305_v11 = vpop.xlane.xlu1 %1304  ;;  %1485 = vadd.xlane.f32.xlu1 %v1484_v56  ;;  %1482 = vadd.xlane.f32.xlu0 %v1481_v5  ;;  %v1302_v59 = vpop.xlane.xlu0 %1301 }
 0x7fe   : > { %v1348_v35 = vmul.f32 0.0625, %v1305_v11  ;;  %v1347_v53 = vmul.f32 0.0625, %v1302_v59  ;;  %v1410_v26 = vmul.f32 %v10082_v27, %v10082_v27  ;;  %v1409_v62 = vmul.f32 %v10085_v54, %v10085_v54 }
 0x800   : > { %v10094_v29 = vsub.f32 %v9891_v16, %v1348_v35  ;;  %v10097_v6 = vsub.f32 %v9883_v10, %v1347_v53  ;;  %v1490_v19 = vsel %vm979_vm10, %v1410_v26, 0.0  ;;  %v1487_v43 = vsel %vm979_vm10, %v1409_v62, 0.0 }
 0x801   : > { %v1311_v32 = vpop.xlane.xlu1 %1310  ;;  %1491 = vadd.xlane.f32.xlu1 %v1490_v19  ;;  %1488 = vadd.xlane.f32.xlu0 %v1487_v43  ;;  %v1308_v42 = vpop.xlane.xlu0 %1307 }
 0x802   : > { %v1350_v45 = vmul.f32 0.0625, %v1311_v32  ;;  %v1349_v9 = vmul.f32 0.0625, %v1308_v42  ;;  %v1412_v60 = vmul.f32 %v10094_v29, %v10094_v29  ;;  %v1411_v16 = vmul.f32 %v10097_v6, %v10097_v6 }
 0x804   : > { %v10106_v52 = vsub.f32 %v9909_v25, %v1350_v45  ;;  %v10109_v10 = vsub.f32 %v9899_v20, %v1349_v9  ;;  %v1496_v48 = vsel %vm979_vm10, %v1412_v60, 0.0  ;;  %v1493_v44 = vsel %vm979_vm10, %v1411_v16, 0.0 }
 0x805   : > { %v1317_v63 = vpop.xlane.xlu1 %1316  ;;  %1497 = vadd.xlane.f32.xlu1 %v1496_v48  ;;  %1494 = vadd.xlane.f32.xlu0 %v1493_v44  ;;  %v1314_v8 = vpop.xlane.xlu0 %1313 }
 0x806   : > { %v1352_v0 = vmul.f32 0.0625, %v1317_v63  ;;  %v1351_v21 = vmul.f32 0.0625, %v1314_v8  ;;  %v1414_v22 = vmul.f32 %v10106_v52, %v10106_v52  ;;  %v1413_v25 = vmul.f32 %v10109_v10, %v10109_v10  ;;  %v10140_v8 = vld [vmem:[%s14300_s8] ss:$0 sm:$0xff] }
 0x808   : > { %v10118_v61 = vsub.f32 %v9925_v34, %v1352_v0  ;;  %v10121_v20 = vsub.f32 %v9915_v31, %v1351_v21  ;;  %v1502_v4 = vsel %vm979_vm10, %v1414_v22, 0.0  ;;  %v1499_v17 = vsel %vm979_vm10, %v1413_v25, 0.0  ;;  %v10146_v25 = vld [vmem:[%s14301_s9] ss:$0 sm:$0xff] }
 0x809   : > { %1503 = vadd.xlane.f32.xlu1 %v1502_v4  ;;  %1500 = vadd.xlane.f32.xlu0 %v1499_v17  ;;  %v1320_v15 = vpop.xlane.xlu0 %1319 }
 0x80a   : > { %v1353_v58 = vmul.f32 0.0625, %v1320_v15  ;;  %v1416_v56 = vmul.f32 %v10118_v61, %v10118_v61  ;;  %v1415_v5 = vmul.f32 %v10121_v20, %v10121_v20 }
 0x80c   : > { %v10130_v34 = vsub.f32 %v9933_v36, %v1353_v58  ;;  %v1508_v31 = vsel %vm979_vm10, %v1416_v56, 0.0  ;;  %v1505_v11 = vsel %vm979_vm10, %v1415_v5, 0.0 }
 0x80d   : > { %1509 = vadd.xlane.f32.xlu1 %v1508_v31  ;;  %1506 = vadd.xlane.f32.xlu0 %v1505_v11 }
 0x80e   : > { %v1417_v59 = vmul.f32 %v10130_v34, %v10130_v34 }
 0x810   : > { %v1511_v35 = vsel %vm979_vm10, %v1417_v59, 0.0 }
 0x811   : > { %1512 = vadd.xlane.f32.xlu0 %v1511_v35 }
 0x83e   : > { %v1420_v53 = vpop.xlane.xlu1 %1419 }
 0x83f   : > { %v1514_v26 = vmul.f32 0.0625, %v1420_v53 }
 0x841   : > { %v1546_v62 = vadd.f32 1e-05, %v1514_v26 }
 0x842   : > { %v1423_v19 = vpop.xlane.xlu0 %1422 }
 0x843   : > { %8458 = vrsqrt.f32 %v1546_v62  ;;  %v1515_v43 = vmul.f32 0.0625, %v1423_v19 }
 0x845   : > { %v1547_v36 = vadd.f32 1e-05, %v1515_v43 }
 0x846   : > { %v1426_v32 = vpop.xlane.xlu1 %1425 }
 0x847   : > { %8460 = vrsqrt.f32 %v1547_v36  ;;  %v1516_v42 = vmul.f32 0.0625, %v1426_v32 }
 0x849   : > { %v1548_v45 = vadd.f32 1e-05, %v1516_v42 }
 0x84a   : > { %v1429_v9 = vpop.xlane.xlu0 %1428 }
 0x84b   : > { %8462 = vrsqrt.f32 %v1548_v45  ;;  %v1517_v60 = vmul.f32 0.0625, %v1429_v9 }
 0x84d   : > { %v1549_v16 = vadd.f32 1e-05, %v1517_v60 }
 0x84e   : > { %v1432_v48 = vpop.xlane.xlu1 %1431 }
 0x84f   : > { %8464 = vrsqrt.f32 %v1549_v16  ;;  %v1518_v44 = vmul.f32 0.0625, %v1432_v48 }
 0x850   : > { %v8459_v63 = vpop.eup %8458 }
 0x851   : > { %v1550_v0 = vadd.f32 1e-05, %v1518_v44  ;;  %v1610_v21 = vmul.f32 %v8459_v63, %v9940_v47 }
 0x852   : > { %v1435_v22 = vpop.xlane.xlu0 %1434 }
 0x853   : > { %8466 = vrsqrt.f32 %v1550_v0  ;;  %v1519_v4 = vmul.f32 0.0625, %v1435_v22  ;;  %v1649_v17 = vmul.f32 %v10140_v8, %v1610_v21 }
 0x854   : > { %v8461_v15 = vpop.eup %8460 }
 0x855   : > { %v1611_v58 = vmul.f32 %v8461_v15, %v9945_v57  ;;  %v1551_v56 = vadd.f32 1e-05, %v1519_v4  ;;  %v1688_v5 = vadd.f32 %v10146_v25, %v1649_v17 }
 0x856   : > { %v1438_v31 = vpop.xlane.xlu1 %1437 }
 0x857   : > { %v1650_v11 = vmul.f32 %v10140_v8, %v1611_v58  ;;  %8468 = vrsqrt.f32 %v1551_v56  ;;  %v1520_v47 = vmul.f32 0.0625, %v1438_v31  ;;  %8244 = vmatprep.mubr.msk.f32.mxu0 %vm979_vm10, %v1688_v5 }
 0x858   : > { %v8463_v59 = vpop.eup %8462 }
 0x859   : > { %v1552_v35 = vadd.f32 1e-05, %v1520_v47  ;;  %v1689_v53 = vadd.f32 %v10146_v25, %v1650_v11  ;;  %v1612_v26 = vmul.f32 %v8463_v59, %v9951_v14 }
 0x85a   : > { %v1441_v62 = vpop.xlane.xlu0 %1440 }
 0x85b   : > { %8470 = vrsqrt.f32 %v1552_v35  ;;  %v1521_v19 = vmul.f32 0.0625, %v1441_v62  ;;  %8245 = vmatmul.mubr.msk.f32.vlgmr.msra.gmra.mxu0 %vm979_vm10, %v1689_v53  ;;  %v1651_v57 = vmul.f32 %v10140_v8, %v1612_v26 }
 0x85c   : > { %v8465_v43 = vpop.eup %8464 }
 0x85d   : > { %v1553_v36 = vadd.f32 1e-05, %v1521_v19  ;;  %v1690_v32 = vadd.f32 %v10146_v25, %v1651_v57  ;;  %v1613_v42 = vmul.f32 %v8465_v43, %v9957_v18 }
 0x85e   : > { %v1444_v45 = vpop.xlane.xlu1 %1443 }
 0x85f   : > { %8472 = vrsqrt.f32 %v1553_v36  ;;  %v1522_v9 = vmul.f32 0.0625, %v1444_v45  ;;  %8247 = vmatprep.mubr.msk.f32.mxu0 %vm979_vm10, %v1690_v32  ;;  %v1652_v14 = vmul.f32 %v10140_v8, %v1613_v42 }
 0x860   : > { %v8467_v60 = vpop.eup %8466 }
 0x861   : > { %v1554_v16 = vadd.f32 1e-05, %v1522_v9  ;;  %v1691_v48 = vadd.f32 %v10146_v25, %v1652_v14  ;;  %v1614_v44 = vmul.f32 %v8467_v60, %v9963_v23 }
 0x862   : > { %v1447_v63 = vpop.xlane.xlu0 %1446 }
 0x863   : > { %8474 = vrsqrt.f32 %v1554_v16  ;;  %v1523_v0 = vmul.f32 0.0625, %v1447_v63  ;;  %8248 = vmatmul.mubr.msk.f32.gmra.mxu0 %vm979_vm10, %v1691_v48  ;;  %v1653_v18 = vmul.f32 %v10140_v8, %v1614_v44 }
 0x864   : > { %v8469_v21 = vpop.eup %8468 }
 0x865   : > { %v1555_v22 = vadd.f32 1e-05, %v1523_v0  ;;  %v1692_v4 = vadd.f32 %v10146_v25, %v1653_v18  ;;  %v1615_v17 = vmul.f32 %v8469_v21, %v9969_v24 }
 0x866   : > { %v1450_v15 = vpop.xlane.xlu1 %1449 }
 0x867   : > { %8476 = vrsqrt.f32 %v1555_v22  ;;  %v1524_v58 = vmul.f32 0.0625, %v1450_v15  ;;  %8250 = vmatprep.mubr.msk.f32.mxu0 %vm979_vm10, %v1692_v4  ;;  %v1654_v23 = vmul.f32 %v10140_v8, %v1615_v17 }
 0x868   : > { %v8471_v56 = vpop.eup %8470 }
 0x869   : > { %v1556_v5 = vadd.f32 1e-05, %v1524_v58  ;;  %v1693_v31 = vadd.f32 %v10146_v25, %v1654_v23  ;;  %v1616_v11 = vmul.f32 %v8471_v56, %v9975_v28 }
 0x86a   : > { %v1453_v47 = vpop.xlane.xlu0 %1452 }
 0x86b   : > { %8478 = vrsqrt.f32 %v1556_v5  ;;  %v1525_v59 = vmul.f32 0.0625, %v1453_v47  ;;  %8251 = vmatmul.mubr.msk.f32.gmra.mxu0 %vm979_vm10, %v1693_v31  ;;  %v1655_v24 = vmul.f32 %v10140_v8, %v1616_v11 }
 0x86c   : > { %v8473_v35 = vpop.eup %8472 }
 0x86d   : > { %v1557_v53 = vadd.f32 1e-05, %v1525_v59  ;;  %v1694_v26 = vadd.f32 %v10146_v25, %v1655_v24  ;;  %v1617_v62 = vmul.f32 %v8473_v35, %v9981_v41 }
 0x86e   : > { %v1456_v19 = vpop.xlane.xlu1 %1455 }
 0x86f   : > { %8480 = vrsqrt.f32 %v1557_v53  ;;  %v1526_v57 = vmul.f32 0.0625, %v1456_v19  ;;  %8253 = vmatprep.mubr.msk.f32.mxu0 %vm979_vm10, %v1694_v26  ;;  %v1656_v28 = vmul.f32 %v10140_v8, %v1617_v62 }
 0x870   : > { %v8475_v43 = vpop.eup %8474 }
 0x871   : > { %v1558_v36 = vadd.f32 1e-05, %v1526_v57  ;;  %v1695_v32 = vadd.f32 %v10146_v25, %v1656_v28  ;;  %v1618_v42 = vmul.f32 %v8475_v43, %v9987_v55 }
 0x872   : > { %v1459_v45 = vpop.xlane.xlu0 %1458 }
 0x873   : > { %8482 = vrsqrt.f32 %v1558_v36  ;;  %v1527_v9 = vmul.f32 0.0625, %v1459_v45  ;;  %8254 = vmatmul.mubr.msk.f32.gmra.mxu0 %vm979_vm10, %v1695_v32  ;;  %v1657_v41 = vmul.f32 %v10140_v8, %v1618_v42 }
 0x874   : > { %v8477_v14 = vpop.eup %8476 }
 0x875   : > { %v1559_v60 = vadd.f32 1e-05, %v1527_v9  ;;  %v1696_v16 = vadd.f32 %v10146_v25, %v1657_v41  ;;  %v1619_v48 = vmul.f32 %v8477_v14, %v9993_v3 }
 0x876   : > { %v1462_v44 = vpop.xlane.xlu1 %1461 }
 0x877   : > { %8484 = vrsqrt.f32 %v1559_v60  ;;  %v1528_v63 = vmul.f32 0.0625, %v1462_v44  ;;  %8256 = vmatprep.mubr.msk.f32.mxu0 %vm979_vm10, %v1696_v16  ;;  %v1658_v55 = vmul.f32 %v10140_v8, %v1619_v48 }
 0x878   : > { %v8479_v0 = vpop.eup %8478 }
 0x879   : > { %v1560_v18 = vadd.f32 1e-05, %v1528_v63  ;;  %v1697_v21 = vadd.f32 %v10146_v25, %v1658_v55  ;;  %v1620_v22 = vmul.f32 %v8479_v0, %v9999_v39 }
 0x87a   : > { %v1468_v4 = vpop.xlane.xlu1 %1467  ;;  %v1465_v17 = vpop.xlane.xlu0 %1464 }
 0x87b   : > { %8486 = vrsqrt.f32 %v1560_v18  ;;  %v1530_v15 = vmul.f32 0.0625, %v1468_v4  ;;  %v1529_v58 = vmul.f32 0.0625, %v1465_v17  ;;  %8257 = vmatmul.mubr.msk.f32.gmra.mxu0 %vm979_vm10, %v1697_v21  ;;  %v1659_v3 = vmul.f32 %v10140_v8, %v1620_v22 }
 0x87c   : > { %v8481_v23 = vpop.eup %8480 }
 0x87d   : > { %v1562_v56 = vadd.f32 1e-05, %v1530_v15  ;;  %v1561_v5 = vadd.f32 1e-05, %v1529_v58  ;;  %v1698_v31 = vadd.f32 %v10146_v25, %v1659_v3  ;;  %v1621_v11 = vmul.f32 %v8481_v23, %v10011_v7 }
 0x87e   : > { %v1474_v47 = vpop.xlane.xlu1 %1473  ;;  %v1471_v59 = vpop.xlane.xlu0 %1470 }
 0x87f   : > { %8488 = vrsqrt.f32 %v1562_v56  ;;  %v1532_v39 = vmul.f32 0.0625, %v1474_v47  ;;  %v1531_v24 = vmul.f32 0.0625, %v1471_v59  ;;  %8259 = vmatprep.mubr.msk.f32.mxu0 %vm979_vm10, %v1698_v31  ;;  %v1660_v35 = vmul.f32 %v10140_v8, %v1621_v11 }
 0x880   : > { %v8483_v53 = vpop.eup %8482  ;;  %8490 = vrsqrt.f32 %v1561_v5 }
 0x881   : > { %v1564_v26 = vadd.f32 1e-05, %v1532_v39  ;;  %v1563_v62 = vadd.f32 1e-05, %v1531_v24  ;;  %v1699_v19 = vadd.f32 %v10146_v25, %v1660_v35  ;;  %v1622_v57 = vmul.f32 %v8483_v53, %v10017_v33 }
 0x882   : > { %v1480_v28 = vpop.xlane.xlu1 %1479  ;;  %v1477_v43 = vpop.xlane.xlu0 %1476 }
 0x883   : > { %8492 = vrsqrt.f32 %v1564_v26  ;;  %v1534_v7 = vmul.f32 0.0625, %v1480_v28  ;;  %v1533_v36 = vmul.f32 0.0625, %v1477_v43  ;;  %8260 = vmatmul.mubr.msk.f32.gmra.mxu0 %vm979_vm10, %v1699_v19  ;;  %v1661_v32 = vmul.f32 %v10140_v8, %v1622_v57 }
 0x884   : > { %v8485_v42 = vpop.eup %8484  ;;  %8494 = vrsqrt.f32 %v1563_v62 }
 0x885   : > { %v1566_v45 = vadd.f32 1e-05, %v1534_v7  ;;  %v1565_v9 = vadd.f32 1e-05, %v1533_v36  ;;  %v1700_v41 = vadd.f32 %v10146_v25, %v1661_v32  ;;  %v1623_v14 = vmul.f32 %v8485_v42, %v10023_v38 }
 0x886   : > { %v1486_v60 = vpop.xlane.xlu1 %1485  ;;  %v1483_v16 = vpop.xlane.xlu0 %1482 }
 0x887   : > { %8496 = vrsqrt.f32 %v1566_v45  ;;  %v1536_v33 = vmul.f32 0.0625, %v1486_v60  ;;  %v1535_v48 = vmul.f32 0.0625, %v1483_v16  ;;  %8262 = vmatprep.mubr.msk.f32.mxu0 %vm979_vm10, %v1700_v41  ;;  %v1662_v44 = vmul.f32 %v10140_v8, %v1623_v14 }
 0x888   : > { %v8487_v63 = vpop.eup %8486  ;;  %8498 = vrsqrt.f32 %v1565_v9 }
 0x889   : > { %v1568_v55 = vadd.f32 1e-05, %v1536_v33  ;;  %v1567_v0 = vadd.f32 1e-05, %v1535_v48  ;;  %v1701_v18 = vadd.f32 %v10146_v25, %v1662_v44  ;;  %v1624_v21 = vmul.f32 %v8487_v63, %v10029_v49 }
 0x88a   : > { %v1492_v22 = vpop.xlane.xlu1 %1491  ;;  %v1489_v4 = vpop.xlane.xlu0 %1488 }
 0x88b   : > { %8500 = vrsqrt.f32 %v1568_v55  ;;  %v1538_v38 = vmul.f32 0.0625, %v1492_v22  ;;  %v1537_v17 = vmul.f32 0.0625, %v1489_v4  ;;  %8263 = vmatmul.mubr.msk.f32.gmra.mxu0 %vm979_vm10, %v1701_v18  ;;  %v1663_v15 = vmul.f32 %v10140_v8, %v1624_v21 }
 0x88c   : > { %v8489_v58 = vpop.eup %8488  ;;  %8502 = vrsqrt.f32 %v1567_v0 }
 0x88d   : > { %v8491_v3 = vpop.eup %8490  ;;  %v1570_v23 = vadd.f32 1e-05, %v1538_v38  ;;  %v1569_v56 = vadd.f32 1e-05, %v1537_v17  ;;  %v1702_v5 = vadd.f32 %v10146_v25, %v1663_v15  ;;  %v1626_v31 = vmul.f32 %v8489_v58, %v10035_v51 }
 0x88e   : > { %v1498_v11 = vpop.xlane.xlu1 %1497  ;;  %v1495_v49 = vpop.xlane.xlu0 %1494  ;;  %v1625_v47 = vmul.f32 %v8491_v3, %v10038_v12 }
 0x88f   : > { %8504 = vrsqrt.f32 %v1570_v23  ;;  %v1540_v59 = vmul.f32 0.0625, %v1498_v11  ;;  %v1539_v39 = vmul.f32 0.0625, %v1495_v49  ;;  %8265 = vmatprep.mubr.msk.f32.mxu0 %vm979_vm10, %v1702_v5  ;;  %v1665_v24 = vmul.f32 %v10140_v8, %v1626_v31 }
 0x890   : > { %v8493_v35 = vpop.eup %8492  ;;  %8506 = vrsqrt.f32 %v1569_v56  ;;  %v1664_v53 = vmul.f32 %v10140_v8, %v1625_v47 }
 0x891   : > { %v8495_v26 = vpop.eup %8494  ;;  %v1572_v62 = vadd.f32 1e-05, %v1540_v59  ;;  %v1571_v19 = vadd.f32 1e-05, %v1539_v39  ;;  %v1704_v51 = vadd.f32 %v10146_v25, %v1665_v24  ;;  %v1628_v57 = vmul.f32 %v8493_v35, %v10046_v13 }
 0x892   : > { %v1504_v28 = vpop.xlane.xlu1 %1503  ;;  %v1501_v12 = vpop.xlane.xlu0 %1500  ;;  %v1703_v43 = vadd.f32 %v10146_v25, %v1664_v53  ;;  %v1627_v7 = vmul.f32 %v8495_v26, %v10049_v37 }
 0x893   : > { %8508 = vrsqrt.f32 %v1572_v62  ;;  %v1542_v36 = vmul.f32 0.0625, %v1504_v28  ;;  %v1541_v32 = vmul.f32 0.0625, %v1501_v12  ;;  %v1667_v42 = vmul.f32 %v10140_v8, %v1628_v57 }
 0x894   : > { %v8497_v45 = vpop.eup %8496  ;;  %8510 = vrsqrt.f32 %v1571_v19  ;;  %8266 = vmatmul.mubr.msk.f32.gmra.mxu0 %vm979_vm10, %v1703_v43  ;;  %v1666_v9 = vmul.f32 %v10140_v8, %v1627_v7 }
 0x895   : > { %v8499_v41 = vpop.eup %8498  ;;  %v1574_v14 = vadd.f32 1e-05, %v1542_v36  ;;  %v1573_v13 = vadd.f32 1e-05, %v1541_v32  ;;  %8268 = vmatprep.mubr.msk.f32.mxu0 %vm979_vm10, %v1704_v51  ;;  %v1706_v60 = vadd.f32 %v10146_v25, %v1667_v42  ;;  %v1630_v37 = vmul.f32 %v8497_v45, %v10058_v30 }
 0x896   : > { %v1510_v16 = vpop.xlane.xlu1 %1509  ;;  %v1507_v33 = vpop.xlane.xlu0 %1506  ;;  %v1705_v48 = vadd.f32 %v10146_v25, %v1666_v9  ;;  %v1629_v44 = vmul.f32 %v8499_v41, %v10061_v40 }
 0x897   : > { %8512 = vrsqrt.f32 %v1574_v14  ;;  %v1544_v63 = vmul.f32 0.0625, %v1510_v16  ;;  %v1543_v55 = vmul.f32 0.0625, %v1507_v33  ;;  %v1669_v0 = vmul.f32 %v10140_v8, %v1630_v37 }
 0x898   : > { %v8501_v18 = vpop.eup %8500  ;;  %8514 = vrsqrt.f32 %v1573_v13  ;;  %8269 = vmatmul.mubr.msk.f32.gmra.mxu0 %vm979_vm10, %v1705_v48  ;;  %v1668_v21 = vmul.f32 %v10140_v8, %v1629_v44 }
 0x899   : > { %v8503_v22 = vpop.eup %8502  ;;  %v1576_v4 = vadd.f32 1e-05, %v1544_v63  ;;  %v1575_v30 = vadd.f32 1e-05, %v1543_v55  ;;  %8271 = vmatprep.mubr.msk.f32.mxu0 %vm979_vm10, %v1706_v60  ;;  %v1708_v38 = vadd.f32 %v10146_v25, %v1669_v0  ;;  %v1632_v40 = vmul.f32 %v8501_v18, %v10070_v50 }
 0x89a   : > { %v1513_v17 = vpop.xlane.xlu0 %1512  ;;  %v1707_v15 = vadd.f32 %v10146_v25, %v1668_v21  ;;  %v1631_v58 = vmul.f32 %v8503_v22, %v10073_v46 }
 0x89b   : > { %8516 = vrsqrt.f32 %v1576_v4  ;;  %v1545_v3 = vmul.f32 0.0625, %v1513_v17  ;;  %v1671_v23 = vmul.f32 %v10140_v8, %v1632_v40 }
 0x89c   : > { %v8505_v56 = vpop.eup %8504  ;;  %8518 = vrsqrt.f32 %v1575_v30  ;;  %8272 = vmatmul.mubr.msk.f32.gmra.mxu0 %vm979_vm10, %v1707_v15  ;;  %v1670_v5 = vmul.f32 %v10140_v8, %v1631_v58 }
 0x89d   : > { %v8507_v31 = vpop.eup %8506  ;;  %v1577_v11 = vadd.f32 1e-05, %v1545_v3  ;;  %8274 = vmatprep.mubr.msk.f32.mxu0 %vm979_vm10, %v1708_v38  ;;  %v1710_v50 = vadd.f32 %v10146_v25, %v1671_v23  ;;  %v1634_v49 = vmul.f32 %v8505_v56, %v10082_v27 }
 0x89e   : > { %v1709_v46 = vadd.f32 %v10146_v25, %v1670_v5  ;;  %v1633_v47 = vmul.f32 %v8507_v31, %v10085_v54 }
 0x89f   : > { %8520 = vrsqrt.f32 %v1577_v11  ;;  %v1673_v59 = vmul.f32 %v10140_v8, %v1634_v49 }
 0x8a0   : > { %v8509_v39 = vpop.eup %8508  ;;  %8275 = vmatmul.mubr.msk.f32.gmra.mxu0 %vm979_vm10, %v1709_v46  ;;  %v1672_v24 = vmul.f32 %v10140_v8, %v1633_v47 }
 0x8a1   : > { %v8511_v35 = vpop.eup %8510  ;;  %8277 = vmatprep.mubr.msk.f32.mxu0 %vm979_vm10, %v1710_v50  ;;  %v1712_v53 = vadd.f32 %v10146_v25, %v1673_v59  ;;  %v1636_v26 = vmul.f32 %v8509_v39, %v10094_v29 }
 0x8a2   : > { %v1711_v27 = vadd.f32 %v10146_v25, %v1672_v24  ;;  %v1635_v62 = vmul.f32 %v8511_v35, %v10097_v6 }
 0x8a3   : > { %v1675_v54 = vmul.f32 %v10140_v8, %v1636_v26 }
 0x8a4   : > { %v8513_v19 = vpop.eup %8512  ;;  %8278 = vmatmul.mubr.msk.f32.gmra.mxu0 %vm979_vm10, %v1711_v27  ;;  %v1674_v51 = vmul.f32 %v10140_v8, %v1635_v62 }
 0x8a5   : > { %v8515_v57 = vpop.eup %8514  ;;  %8280 = vmatprep.mubr.msk.f32.mxu0 %vm979_vm10, %v1712_v53  ;;  %v1714_v28 = vadd.f32 %v10146_v25, %v1675_v54  ;;  %v1638_v12 = vmul.f32 %v8513_v19, %v10106_v52 }
 0x8a6   : > { %v1713_v29 = vadd.f32 %v10146_v25, %v1674_v51  ;;  %v1637_v43 = vmul.f32 %v8515_v57, %v10109_v10 }
 0x8a7   : > { %v1677_v6 = vmul.f32 %v10140_v8, %v1638_v12 }
 0x8a8   : > { %v8517_v7 = vpop.eup %8516  ;;  %8281 = vmatmul.mubr.msk.f32.gmra.mxu0 %vm979_vm10, %v1713_v29  ;;  %v1676_v36 = vmul.f32 %v10140_v8, %v1637_v43 }
 0x8a9   : > { %v8519_v32 = vpop.eup %8518  ;;  %8283 = vmatprep.mubr.msk.f32.mxu0 %vm979_vm10, %v1714_v28  ;;  %v1716_v42 = vadd.f32 %v10146_v25, %v1677_v6  ;;  %v1640_v45 = vmul.f32 %v8517_v7, %v10118_v61 }
 0x8aa   : > { %v1715_v52 = vadd.f32 %v10146_v25, %v1676_v36  ;;  %v1639_v9 = vmul.f32 %v8519_v32, %v10121_v20 }
 0x8ab   : > { %v1679_v10 = vmul.f32 %v10140_v8, %v1640_v45 }
 0x8ac   : > { %v8521_v41 = vpop.eup %8520  ;;  %8284 = vmatmul.mubr.msk.f32.gmra.mxu0 %vm979_vm10, %v1715_v52  ;;  %v1678_v14 = vmul.f32 %v10140_v8, %v1639_v9 }
 0x8ad   : > { %8286 = vmatprep.mubr.msk.f32.mxu0 %vm979_vm10, %v1716_v42  ;;  %v1718_v13 = vadd.f32 %v10146_v25, %v1679_v10  ;;  %v1641_v60 = vmul.f32 %v8521_v41, %v10130_v34 }
 0x8ae   : > { %v1717_v37 = vadd.f32 %v10146_v25, %v1678_v14 }
 0x8af   : > { %v1680_v61 = vmul.f32 %v10140_v8, %v1641_v60 }
 0x8b0   : > { %8287 = vmatmul.mubr.msk.f32.gmra.mxu0 %vm979_vm10, %v1717_v37 }
 0x8b1   : > { %8289 = vmatprep.mubr.msk.f32.mxu0 %vm979_vm10, %v1718_v13  ;;  %v1719_v20 = vadd.f32 %v10146_v25, %v1680_v61 }
 0x8b4   : > { %8290 = vmatmul.mubr.msk.f32.gmra.mxu0 %vm979_vm10, %v1719_v20 }
 0x91b   : > { %v8246_v16 = vpop.f32.mrf.mxu0 }
 0x91d   : > { %v1884_v33 = vpop.f32.mrf.mxu0 }
 0x91e   : > { %v10275_v48 = vpack.c.bf16 %v8246_v16, %v1884_v33 }
 0x920   : > { %14621 = vst [vmem:[#allocation3_spill] sm:$0xff] %v10275_v48  ;;  %7582 = vmatprep.mubr.msk.bf16.mxu0 %vm2107_vm11, %v10275_v48 }
 0x923   : > { %v8249_v34 = vpop.f32.mrf.mxu0 }
 0x925   : > { %v1894_v44 = vpop.f32.mrf.mxu0 }
 0x926   : > { %v10331_v6 = vpack.c.bf16 %v8249_v34, %v1894_v44 }
 0x928   : > { %14635 = vst [vmem:[#allocation17_spill] sm:$0xff] %v10331_v6 }
 0x92b   : > { %v8252_v63 = vpop.f32.mrf.mxu0 }
 0x92d   : > { %v1904_v8 = vpop.f32.mrf.mxu0 }
 0x92e   : > { %v10279_v55 = vpack.c.bf16 %v8252_v63, %v1904_v8 }
 0x930   : > { %14622 = vst [vmem:[#allocation4_spill] sm:$0xff] %v10279_v55 }
 0x933   : > { %v8255_v0 = vpop.f32.mrf.mxu0 }
 0x935   : > { %v1914_v18 = vpop.f32.mrf.mxu0 }
 0x936   : > { %v10317_v12 = vpack.c.bf16 %v8255_v0, %v1914_v18 }
 0x938   : > { %14632 = vst [vmem:[#allocation14_spill] sm:$0xff] %v10317_v12 }
 0x93b   : > { %v8258_v21 = vpop.f32.mrf.mxu0 }
 0x93d   : > { %v1924_v25 = vpop.f32.mrf.mxu0 }
 0x93e   : > { %v10309_v57 = vpack.c.bf16 %v8258_v21, %v1924_v25 }
 0x940   : > { %14630 = vst [vmem:[#allocation12_spill] sm:$0xff] %v10309_v57 }
 0x943   : > { %v8261_v22 = vpop.f32.mrf.mxu0 }
 0x945   : > { %v1934_v4 = vpop.f32.mrf.mxu0 }
 0x946   : > { %v10301_v19 = vpack.c.bf16 %v8261_v22, %v1934_v4 }
 0x948   : > { %14628 = vst [vmem:[#allocation10_spill] sm:$0xff] %v10301_v19 }
 0x94b   : > { %v8264_v30 = vpop.f32.mrf.mxu0 }
 0x94d   : > { %v1944_v38 = vpop.f32.mrf.mxu0 }
 0x94e   : > { %v10285_v23 = vpack.c.bf16 %v8264_v30, %v1944_v38 }
 0x950   : > { %14624 = vst [vmem:[#allocation6_spill] sm:$0xff] %v10285_v23 }
 0x954   : > { %v8267_v40 = vpop.f32.mrf.mxu0 }
 0x956   : > { %v1954_v17 = vpop.f32.mrf.mxu0 }
 0x957   : > { %v10281_v15 = vpack.c.bf16 %v8267_v40, %v1954_v17 }
 0x958   : > { %v8270_v58 = vpop.f32.mrf.mxu0 }
 0x959   : > { %14623 = vst [vmem:[#allocation5_spill] sm:$0xff] %v10281_v15  ;;  %2089 = vrot.lane.b32.xlu1 %v10281_v15, %s9300_s20 }
 0x95a   : > { %v1964_v3 = vpop.f32.mrf.mxu0 }
 0x95b   : > { %v10333_v7 = vpack.c.bf16 %v8270_v58, %v1964_v3 }
 0x95c   : > { %v8273_v56 = vpop.f32.mrf.mxu0 }
 0x95d   : > { %2087 = vrot.lane.b32.xlu1 %v10285_v23, %s9300_s20  ;;  %14636 = vst [vmem:[#allocation18_spill] sm:$0xff] %v10333_v7 }
 0x95e   : > { %v1974_v5 = vpop.f32.mrf.mxu0 }
 0x95f   : > { %v10325_v43 = vpack.c.bf16 %v8273_v56, %v1974_v5 }
 0x960   : > { %v8276_v31 = vpop.f32.mrf.mxu0 }
 0x961   : > { %14634 = vst [vmem:[#allocation16_spill] sm:$0xff] %v10325_v43 }
 0x962   : > { %v1984_v11 = vpop.f32.mrf.mxu0 }
 0x963   : > { %v10319_v29 = vpack.c.bf16 %v8276_v31, %v1984_v11 }
 0x964   : > { %v8279_v50 = vpop.f32.mrf.mxu0 }
 0x965   : > { %14633 = vst [vmem:[#allocation15_spill] sm:$0xff] %v10319_v29 }
 0x966   : > { %v1994_v49 = vpop.f32.mrf.mxu0 }
 0x967   : > { %v10311_v28 = vpack.c.bf16 %v8279_v50, %v1994_v49 }
 0x968   : > { %v8282_v46 = vpop.f32.mrf.mxu0 }
 0x969   : > { %14631 = vst [vmem:[#allocation13_spill] sm:$0xff] %v10311_v28 }
 0x96a   : > { %v2004_v47 = vpop.f32.mrf.mxu0 }
 0x96b   : > { %v10303_v51 = vpack.c.bf16 %v8282_v46, %v2004_v47 }
 0x96c   : > { %v8285_v59 = vpop.f32.mrf.mxu0 }
 0x96d   : > { %14629 = vst [vmem:[#allocation11_spill] sm:$0xff] %v10303_v51 }
 0x96e   : > { %v2014_v39 = vpop.f32.mrf.mxu0 }
 0x96f   : > { %v10293_v62 = vpack.c.bf16 %v8285_v59, %v2014_v39 }
 0x970   : > { %v8288_v24 = vpop.f32.mrf.mxu0 }
 0x971   : > { %14626 = vst [vmem:[#allocation8_spill] sm:$0xff] %v10293_v62 }
 0x972   : > { %v2024_v35 = vpop.f32.mrf.mxu0 }
 0x973   : > { %v10289_v53 = vpack.c.bf16 %v8288_v24, %v2024_v35 }
 0x974   : > { %v8291_v26 = vpop.f32.mrf.mxu0 }
 0x975   : > { %14625 = vst [vmem:[#allocation7_spill] sm:$0xff] %v10289_v53  ;;  %2103 = vrot.lane.b32.xlu1 %v10289_v53, %s9300_s20 }
 0x976   : > { %v2034_v27 = vpop.f32.mrf.mxu0 }
 0x977   : > { %v10295_v54 = vpack.c.bf16 %v8291_v26, %v2034_v27 }
 0x979   : > { %14627 = vst [vmem:[#allocation9_spill] sm:$0xff] %v10295_v54  ;;  %2101 = vrot.lane.b32.xlu1 %v10293_v62, %s9300_s20  ;;  %2105 = vrot.lane.b32.xlu0 %v10295_v54, %s9300_s20 }
 0x97d   : > { %2099 = vrot.lane.b32.xlu1 %v10303_v51, %s9300_s20  ;;  %2085 = vrot.lane.b32.xlu0 %v10301_v19, %s9300_s20 }
 0x981   : > { %2097 = vrot.lane.b32.xlu1 %v10311_v28, %s9300_s20  ;;  %2083 = vrot.lane.b32.xlu0 %v10309_v57, %s9300_s20 }
 0x985   : > { %2095 = vrot.lane.b32.xlu1 %v10319_v29, %s9300_s20  ;;  %2081 = vrot.lane.b32.xlu0 %v10317_v12, %s9300_s20 }
 0x989   : > { %2093 = vrot.lane.b32.xlu1 %v10325_v43, %s9300_s20  ;;  %2079 = vrot.lane.b32.xlu0 %v10279_v55, %s9300_s20 }
 0x98d   : > { %2091 = vrot.lane.b32.xlu1 %v10333_v7, %s9300_s20  ;;  %2077 = vrot.lane.b32.xlu0 %v10331_v6, %s9300_s20 }
 0x991   : > { %2937 = vrot.lane.b32.xlu1 %v10289_v53, %s9309_s25  ;;  %2075 = vrot.lane.b32.xlu0 %v10275_v48, %s9300_s20  ;;  %s9310_s20 = smov 108  }
 0x995   : > { %2921 = vrot.lane.b32.xlu1 %v10285_v23, %s9309_s25  ;;  %2923 = vrot.lane.b32.xlu0 %v10281_v15, %s9309_s25 }
 0x999   : > { %2935 = vrot.lane.b32.xlu1 %v10293_v62, %s9309_s25  ;;  %2919 = vrot.lane.b32.xlu0 %v10301_v19, %s9309_s25 }
 0x99d   : > { %2933 = vrot.lane.b32.xlu1 %v10303_v51, %s9309_s25  ;;  %2915 = vrot.lane.b32.xlu0 %v10317_v12, %s9309_s25 }
 0x9a1   : > { %2917 = vrot.lane.b32.xlu1 %v10309_v57, %s9309_s25  ;;  %2911 = vrot.lane.b32.xlu0 %v10331_v6, %s9309_s25 }
 0x9a5   : > { %2931 = vrot.lane.b32.xlu1 %v10311_v28, %s9309_s25  ;;  %3178 = vrot.lane.b32.xlu0 %v10289_v53, %s9310_s20 }
 0x9a9   : > { %2929 = vrot.lane.b32.xlu1 %v10319_v29, %s9309_s25  ;;  %3176 = vrot.lane.b32.xlu0 %v10293_v62, %s9310_s20 }
 0x9ad   : > { %2913 = vrot.lane.b32.xlu1 %v10279_v55, %s9309_s25  ;;  %3174 = vrot.lane.b32.xlu0 %v10303_v51, %s9310_s20 }
 0x9b1   : > { %2927 = vrot.lane.b32.xlu1 %v10325_v43, %s9309_s25  ;;  %3172 = vrot.lane.b32.xlu0 %v10311_v28, %s9310_s20 }
 0x9b5   : > { %2925 = vrot.lane.b32.xlu1 %v10333_v7, %s9309_s25  ;;  %3152 = vrot.lane.b32.xlu0 %v10331_v6, %s9310_s20 }
 0x9b9   : > { %2909 = vrot.lane.b32.xlu1 %v10275_v48, %s9309_s25  ;;  %3150 = vrot.lane.b32.xlu0 %v10275_v48, %s9310_s20 }
 0x9bd   : > { %3164 = vrot.lane.b32.xlu1 %v10281_v15, %s9310_s20  ;;  %3118 = vrot.lane.b32.xlu0 %v10275_v48, %s9311_s19 }
 0x9c1   : > { %3162 = vrot.lane.b32.xlu1 %v10285_v23, %s9310_s20  ;;  %3180 = vrot.lane.b32.xlu0 %v10295_v54, %s9310_s20 }
 0x9c5   : > { %3160 = vrot.lane.b32.xlu1 %v10301_v19, %s9310_s20 }
 0x9c9   : > { %3158 = vrot.lane.b32.xlu1 %v10309_v57, %s9310_s20 }
 0x9cb   : > { %v2090_v36 = vpop.permute.xlu1 %2089 }
 0x9cc   : > { %v2178_v9 = vsel %vm2107_vm11, %v2090_v36, 0 }
 0x9cd   : > { %3156 = vrot.lane.b32.xlu1 %v10317_v12, %s9310_s20 }
 0x9cf   : > { %v2088_v32 = vpop.permute.xlu1 %2087 }
 0x9d0   : > { %v2175_v14 = vsel %vm2107_vm11, %v2088_v32, 0 }
 0x9d1   : > { %3154 = vrot.lane.b32.xlu1 %v10279_v55, %s9310_s20 }
 0x9d5   : > { %3170 = vrot.lane.b32.xlu1 %v10319_v29, %s9310_s20 }
 0x9d9   : > { %3168 = vrot.lane.b32.xlu1 %v10325_v43, %s9310_s20 }
 0x9dd   : > { %3166 = vrot.lane.b32.xlu1 %v10333_v7, %s9310_s20 }
 0x9e1   : > { %3120 = vrot.lane.b32.xlu1 %v10331_v6, %s9311_s19 }
 0x9e5   : > { %2939 = vrot.lane.b32.xlu1 %v10295_v54, %s9309_s25 }
 0x9e7   : > { %v2104_v42 = vpop.permute.xlu1 %2103 }
 0x9eb   : > { %v2102_v45 = vpop.permute.xlu1 %2101  ;;  %v2106_v52 = vpop.permute.xlu0 %2105 }
 0x9ec   : > { %8348 = vmatprep.subr.msk.bf16.mxu0 %vm2107_vm11, %v2106_v52 }
 0x9ed   : > { %7567 = vmatpush3.bf16.xpose.msra.mxu0 %v2178_v9 }
 0x9ee   : > { %8349 = vmatprep.subr.msk.bf16.mxu0 %vm2107_vm11, %v2104_v42 }
 0x9ef   : > { %v2100_v10 = vpop.permute.xlu1 %2099  ;;  %v2086_v60 = vpop.permute.xlu0 %2085 }
 0x9f0   : > { %v2172_v61 = vsel %vm2107_vm11, %v2086_v60, 0 }
 0x9f3   : > { %v2098_v41 = vpop.permute.xlu1 %2097  ;;  %v2084_v16 = vpop.permute.xlu0 %2083 }
 0x9f4   : > { %v2169_v34 = vsel %vm2107_vm11, %v2084_v16, 0 }
 0x9f5   : > { %7569 = vmatpush3.bf16.xpose.msra.mxu0 %v2175_v14 }
 0x9f6   : > { %8350 = vmatprep.subr.msk.bf16.mxu0 %vm2107_vm11, %v2102_v45 }
 0x9f7   : > { %v2096_v13 = vpop.permute.xlu1 %2095  ;;  %v2082_v63 = vpop.permute.xlu0 %2081 }
 0x9f8   : > { %v2166_v0 = vsel %vm2107_vm11, %v2082_v63, 0 }
 0x9fb   : > { %v2094_v37 = vpop.permute.xlu1 %2093  ;;  %v2080_v21 = vpop.permute.xlu0 %2079 }
 0x9fc   : > { %v2163_v22 = vsel %vm2107_vm11, %v2080_v21, 0 }
 0x9fd   : > { %7571 = vmatpush3.bf16.xpose.msra.mxu0 %v2172_v61 }
 0x9fe   : > { %8351 = vmatprep.subr.msk.bf16.mxu0 %vm2107_vm11, %v2100_v10 }
 0x9ff   : > { %v2092_v20 = vpop.permute.xlu1 %2091  ;;  %v2078_v30 = vpop.permute.xlu0 %2077 }
 0xa00   : > { %v2160_v40 = vsel %vm2107_vm11, %v2078_v30, 0 }
 0xa03   : > { %v2938_v33 = vpop.permute.xlu1 %2937  ;;  %v2076_v58 = vpop.permute.xlu0 %2075 }
 0xa04   : > { %v2157_v56 = vsel %vm2107_vm11, %v2076_v58, 0 }
 0xa05   : > { %7573 = vmatpush3.bf16.xpose.msra.mxu0 %v2169_v34 }
 0xa06   : > { %8352 = vmatprep.subr.msk.bf16.mxu0 %vm2107_vm11, %v2098_v41 }
 0xa07   : > { %v2922_v44 = vpop.permute.xlu1 %2921  ;;  %v2924_v50 = vpop.permute.xlu0 %2923 }
 0xa0b   : > { %v2936_v8 = vpop.permute.xlu1 %2935  ;;  %v2920_v47 = vpop.permute.xlu0 %2919 }
 0xa0d   : > { %7575 = vmatpush3.bf16.xpose.msra.mxu0 %v2166_v0 }
 0xa0e   : > { %8353 = vmatprep.subr.msk.bf16.mxu0 %vm2107_vm11, %v2096_v13 }
 0xa0f   : > { %v2934_v18 = vpop.permute.xlu1 %2933  ;;  %v2916_v39 = vpop.permute.xlu0 %2915 }
 0xa13   : > { %v2918_v25 = vpop.permute.xlu1 %2917  ;;  %v2912_v26 = vpop.permute.xlu0 %2911 }
 0xa15   : > { %7577 = vmatpush3.bf16.xpose.msra.mxu0 %v2163_v22 }
 0xa16   : > { %8354 = vmatprep.subr.msk.bf16.mxu0 %vm2107_vm11, %v2094_v37 }
 0xa17   : > { %v2932_v4 = vpop.permute.xlu1 %2931  ;;  %v10439_v36 = vpop.permute.xlu0 %3178 }
 0xa18   : > { %14644 = vst [vmem:[#allocation26_spill] sm:$0xff] %v10439_v36 }
 0xa1b   : > { %v2930_v38 = vpop.permute.xlu1 %2929  ;;  %v10449_v45 = vpop.permute.xlu0 %3176 }
 0xa1c   : > { %14647 = vst [vmem:[#allocation29_spill] sm:$0xff] %v10449_v45 }
 0xa1d   : > { %7579 = vmatpush3.bf16.xpose.msra.mxu0 %v2160_v40 }
 0xa1e   : > { %8355 = vmatprep.subr.msk.bf16.mxu0 %vm2107_vm11, %v2092_v20 }
 0xa1f   : > { %v2914_v17 = vpop.permute.xlu1 %2913  ;;  %v10457_v9 = vpop.permute.xlu0 %3174 }
 0xa20   : > { %14649 = vst [vmem:[#allocation31_spill] sm:$0xff] %v10457_v9 }
 0xa23   : > { %v2928_v3 = vpop.permute.xlu1 %2927  ;;  %v10461_v41 = vpop.permute.xlu0 %3172 }
 0xa24   : > { %14650 = vst [vmem:[#allocation32_spill] sm:$0xff] %v10461_v41 }
 0xa25   : > { %7581 = vmatpush3.bf16.xpose.msra.mxu0 %v2157_v56 }
 0xa27   : > { %v2926_v5 = vpop.permute.xlu1 %2925  ;;  %v10465_v14 = vpop.permute.xlu0 %3152 }
 0xa28   : > { %14651 = vst [vmem:[#allocation33_spill] sm:$0xff] %v10465_v14 }
 0xa2b   : > { %v2910_v31 = vpop.permute.xlu1 %2909  ;;  %v10471_v13 = vpop.permute.xlu0 %3150 }
 0xa2c   : > { %7583 = vmatmul.mubr.msk.bf16.vlgmr.msra.gmra.mxu0 %vm2107_vm11, %v10275_v48  ;;  %14652 = vst [vmem:[#allocation34_spill] sm:$0xff] %v10471_v13 }
 0xa2d   : > { %7584 = vmatprep.mubr.msk.bf16.mxu0 %vm2107_vm11, %v10331_v6 }
 0xa2f   : > { %v10413_v11 = vpop.permute.xlu1 %3164  ;;  %v10477_v60 = vpop.permute.xlu0 %3118 }
 0xa30   : > { %14637 = vst [vmem:[#allocation19_spill] sm:$0xff] %v10413_v11  ;;  %14653 = vst [vmem:[#allocation35_spill] sm:$0xff] %v10477_v60 }
 0xa33   : > { %v10415_v49 = vpop.permute.xlu1 %3162  ;;  %v3181_v37 = vpop.permute.xlu0 %3180 }
 0xa34   : > { %14638 = vst [vmem:[#allocation20_spill] sm:$0xff] %v10415_v49  ;;  %7585 = vmatmul.mubr.msk.bf16.gmra.mxu0 %vm2107_vm11, %v10331_v6 }
 0xa35   : > { %7586 = vmatprep.mubr.msk.bf16.mxu0 %vm2107_vm11, %v10279_v55 }
 0xa37   : > { %v10421_v46 = vpop.permute.xlu1 %3160 }
 0xa38   : > { %14639 = vst [vmem:[#allocation21_spill] sm:$0xff] %v10421_v46 }
 0xa3b   : > { %v10423_v59 = vpop.permute.xlu1 %3158 }
 0xa3c   : > { %14640 = vst [vmem:[#allocation22_spill] sm:$0xff] %v10423_v59  ;;  %7587 = vmatmul.mubr.msk.bf16.gmra.mxu0 %vm2107_vm11, %v10279_v55 }
 0xa3d   : > { %7588 = vmatprep.mubr.msk.bf16.mxu0 %vm2107_vm11, %v10317_v12 }
 0xa3f   : > { %v10429_v24 = vpop.permute.xlu1 %3156 }
 0xa40   : > { %14641 = vst [vmem:[#allocation23_spill] sm:$0xff] %v10429_v24 }
 0xa43   : > { %v10431_v35 = vpop.permute.xlu1 %3154 }
 0xa44   : > { %14642 = vst [vmem:[#allocation24_spill] sm:$0xff] %v10431_v35  ;;  %7589 = vmatmul.mubr.msk.bf16.gmra.mxu0 %vm2107_vm11, %v10317_v12 }
 0xa45   : > { %7590 = vmatprep.mubr.msk.bf16.mxu0 %vm2107_vm11, %v10309_v57 }
 0xa47   : > { %v10437_v27 = vpop.permute.xlu1 %3170 }
 0xa48   : > { %14643 = vst [vmem:[#allocation25_spill] sm:$0xff] %v10437_v27 }
 0xa4b   : > { %v10441_v32 = vpop.permute.xlu1 %3168 }
 0xa4c   : > { %14645 = vst [vmem:[#allocation27_spill] sm:$0xff] %v10441_v32  ;;  %7591 = vmatmul.mubr.msk.bf16.gmra.mxu0 %vm2107_vm11, %v10309_v57 }
 0xa4d   : > { %7592 = vmatprep.mubr.msk.bf16.mxu0 %vm2107_vm11, %v10301_v19 }
 0xa4f   : > { %v10447_v42 = vpop.permute.xlu1 %3166 }
 0xa50   : > { %14646 = vst [vmem:[#allocation28_spill] sm:$0xff] %v10447_v42 }
 0xa53   : > { %v10451_v52 = vpop.permute.xlu1 %3120 }
 0xa54   : > { %14648 = vst [vmem:[#allocation30_spill] sm:$0xff] %v10451_v52  ;;  %7593 = vmatmul.mubr.msk.bf16.gmra.mxu0 %vm2107_vm11, %v10301_v19 }
 0xa55   : > { %7594 = vmatprep.mubr.msk.bf16.mxu0 %vm2107_vm11, %v10285_v23 }
 0xa57   : > { %v2940_v10 = vpop.permute.xlu1 %2939 }
 0xa58   : > { %7614 = vmatprep.subr.bf16.mxu1 %v2940_v10 }
 0xa59   : > { %7615 = vmatpush3.bf16.msra.mxu1 %v2924_v50 }
 0xa5a   : > { %7616 = vmatprep.subr.bf16.mxu1 %v2938_v33 }
 0xa5c   : > { %7595 = vmatmul.mubr.msk.bf16.gmra.mxu0 %vm2107_vm11, %v10285_v23 }
 0xa5d   : > { %7596 = vmatprep.mubr.msk.bf16.mxu0 %vm2107_vm11, %v10281_v15  ;;  %7617 = vmatpush3.bf16.msra.mxu1 %v2922_v44 }
 0xa5e   : > { %7618 = vmatprep.subr.bf16.mxu1 %v2936_v8 }
 0xa61   : > { %7619 = vmatpush3.bf16.msra.mxu1 %v2920_v47 }
 0xa62   : > { %7620 = vmatprep.subr.bf16.mxu1 %v2934_v18 }
 0xa64   : > { %7597 = vmatmul.mubr.msk.bf16.gmra.mxu0 %vm2107_vm11, %v10281_v15 }
 0xa65   : > { %7598 = vmatprep.mubr.msk.bf16.mxu0 %vm2107_vm11, %v10333_v7  ;;  %7621 = vmatpush3.bf16.msra.mxu1 %v2918_v25 }
 0xa66   : > { %7622 = vmatprep.subr.bf16.mxu1 %v2932_v4 }
 0xa69   : > { %7623 = vmatpush3.bf16.msra.mxu1 %v2916_v39 }
 0xa6a   : > { %7624 = vmatprep.subr.bf16.mxu1 %v2930_v38 }
 0xa6c   : > { %7599 = vmatmul.mubr.msk.bf16.gmra.mxu0 %vm2107_vm11, %v10333_v7 }
 0xa6d   : > { %7600 = vmatprep.mubr.msk.bf16.mxu0 %vm2107_vm11, %v10325_v43  ;;  %7625 = vmatpush3.bf16.msra.mxu1 %v2914_v17 }
 0xa6e   : > { %7626 = vmatprep.subr.bf16.mxu1 %v2928_v3 }
 0xa71   : > { %7627 = vmatpush3.bf16.msra.mxu1 %v2912_v26 }
 0xa72   : > { %7628 = vmatprep.subr.bf16.mxu1 %v2926_v5 }
 0xa74   : > { %7601 = vmatmul.mubr.msk.bf16.gmra.mxu0 %vm2107_vm11, %v10325_v43 }
 0xa75   : > { %7602 = vmatprep.mubr.msk.bf16.mxu0 %vm2107_vm11, %v10319_v29  ;;  %7629 = vmatpush3.bf16.msra.mxu1 %v2910_v31 }
 0xa76   : > { %8356 = vmatprep.subr.msk.bf16.mxu1 %vm2107_vm11, %v3181_v37 }
 0xa7c   : > { %7603 = vmatmul.mubr.msk.bf16.gmra.mxu0 %vm2107_vm11, %v10319_v29 }
 0xa7d   : > { %7604 = vmatprep.mubr.msk.bf16.mxu0 %vm2107_vm11, %v10311_v28 }
 0xa84   : > { %7605 = vmatmul.mubr.msk.bf16.gmra.mxu0 %vm2107_vm11, %v10311_v28 }
 0xa85   : > { %7606 = vmatprep.mubr.msk.bf16.mxu0 %vm2107_vm11, %v10303_v51 }
 0xa8c   : > { %7607 = vmatmul.mubr.msk.bf16.gmra.mxu0 %vm2107_vm11, %v10303_v51 }
 0xa8d   : > { %7608 = vmatprep.mubr.msk.bf16.mxu0 %vm2107_vm11, %v10293_v62 }
 0xa94   : > { %7609 = vmatmul.mubr.msk.bf16.gmra.mxu0 %vm2107_vm11, %v10293_v62 }
 0xa95   : > { %7610 = vmatprep.mubr.msk.bf16.mxu0 %vm2107_vm11, %v10289_v53 }
 0xa9c   : > { %7611 = vmatmul.mubr.msk.bf16.gmra.mxu0 %vm2107_vm11, %v10289_v53 }
 0xa9d   : > { %7612 = vmatprep.mubr.msk.bf16.mxu0 %vm2107_vm11, %v10295_v54 }
 0xaa4   : > { %7613 = vmatmul.mubr.msk.bf16.gmra.mxu0 %vm2107_vm11, %v10295_v54 }
 0xaec   : > { %v10506_v61 = vpop.f32.mrf.mxu0 }
 0xaee   : > { %v10508_v20 = vpop.f32.mrf.mxu0 }
 0xaef   : > { %v2397_v16 = vmax.f32 %v10506_v61, %v10508_v20 }
 0xaf0   : > { %v10512_v33 = vpop.f32.mrf.mxu0 }
 0xaf1   : > { %2398 = vmax.xlane.f32.xlu0 %v2397_v16 }
 0xaf2   : > { %v10514_v34 = vpop.f32.mrf.mxu0 }
 0xaf3   : > { %v2400_v44 = vmax.f32 %v10512_v33, %v10514_v34 }
 0xaf4   : > { %v10518_v63 = vpop.f32.mrf.mxu0 }
 0xaf5   : > { %2401 = vmax.xlane.f32.xlu1 %v2400_v44 }
 0xaf6   : > { %v10520_v8 = vpop.f32.mrf.mxu0 }
 0xaf7   : > { %v2403_v0 = vmax.f32 %v10518_v63, %v10520_v8 }
 0xaf8   : > { %v10524_v18 = vpop.f32.mrf.mxu0 }
 0xaf9   : > { %2404 = vmax.xlane.f32.xlu0 %v2403_v0 }
 0xafa   : > { %v10526_v21 = vpop.f32.mrf.mxu0 }
 0xafb   : > { %v2406_v25 = vmax.f32 %v10524_v18, %v10526_v21 }
 0xafc   : > { %v10530_v22 = vpop.f32.mrf.mxu0 }
 0xafd   : > { %2407 = vmax.xlane.f32.xlu0 %v2406_v25 }
 0xafe   : > { %v10532_v4 = vpop.f32.mrf.mxu0 }
 0xaff   : > { %v2409_v30 = vmax.f32 %v10530_v22, %v10532_v4 }
 0xb00   : > { %v10536_v38 = vpop.f32.mrf.mxu0 }
 0xb01   : > { %2410 = vmax.xlane.f32.xlu1 %v2409_v30 }
 0xb02   : > { %v10538_v40 = vpop.f32.mrf.mxu0 }
 0xb03   : > { %v2412_v17 = vmax.f32 %v10536_v38, %v10538_v40 }
 0xb04   : > { %v10542_v58 = vpop.f32.mrf.mxu0 }
 0xb05   : > { %2413 = vmax.xlane.f32.xlu0 %v2412_v17 }
 0xb06   : > { %v10544_v3 = vpop.f32.mrf.mxu0 }
 0xb07   : > { %v2415_v56 = vmax.f32 %v10542_v58, %v10544_v3 }
 0xb08   : > { %v10548_v5 = vpop.f32.mrf.mxu0 }
 0xb09   : > { %2416 = vmax.xlane.f32.xlu1 %v2415_v56 }
 0xb0a   : > { %v10550_v31 = vpop.f32.mrf.mxu0 }
 0xb0b   : > { %v2418_v50 = vmax.f32 %v10548_v5, %v10550_v31 }
 0xb0c   : > { %v10554_v47 = vpop.f32.mrf.mxu0 }
 0xb0d   : > { %2419 = vmax.xlane.f32.xlu0 %v2418_v50 }
 0xb0e   : > { %v10556_v39 = vpop.f32.mrf.mxu0 }
 0xb0f   : > { %v2421_v26 = vmax.f32 %v10554_v47, %v10556_v39 }
 0xb10   : > { %v10560_v10 = vpop.f32.mrf.mxu0 }
 0xb11   : > { %2422 = vmax.xlane.f32.xlu1 %v2421_v26 }
 0xb12   : > { %v10562_v37 = vpop.f32.mrf.mxu0 }
 0xb13   : > { %v2424_v16 = vmax.f32 %v10560_v10, %v10562_v37 }
 0xb14   : > { %v10566_v44 = vpop.f32.mrf.mxu0 }
 0xb15   : > { %2425 = vmax.xlane.f32.xlu0 %v2424_v16 }
 0xb16   : > { %v10568_v0 = vpop.f32.mrf.mxu0 }
 0xb17   : > { %v2427_v14 = vmax.f32 %v10566_v44, %v10568_v0 }
 0xb18   : > { %v10570_v25 = vpop.f32.mrf.mxu0 }
 0xb1a   : > { %v10572_v30 = vpop.f32.mrf.mxu0 }
 0xb1b   : > { %v2430_v32 = vmax.f32 %v10570_v25, %v10572_v30 }
 0xb1c   : > { %v10574_v17 = vpop.f32.mrf.mxu0 }
 0xb1e   : > { %v10576_v56 = vpop.f32.mrf.mxu0 }
 0xb1f   : > { %v2433_v23 = vmax.f32 %v10574_v17, %v10576_v56 }
 0xb20   : > { %v10578_v50 = vpop.f32.mrf.mxu0 }
 0xb22   : > { %3124 = vrot.lane.b32.xlu1 %v10317_v12, %s9311_s19  ;;  %v10582_v26 = vpop.f32.mrf.mxu0 }
 0xb23   : > { %v2436_v27 = vmax.f32 %v10578_v50, %v10582_v26 }
 0xb24   : > { %v10584_v2 = vpop.f32.mrf.mxu0 }
 0xb26   : > { %v10586_v16 = vpop.f32.mrf.mxu0 }
 0xb28   : > { %v10588_v1 = vpop.f32.mrf.mxu0 }
 0xb2a   : > { %v10590_v52 = vpop.f32.mrf.mxu0 }
 0xb2b   : > { %3122 = vrot.lane.b32.xlu0 %v10279_v55, %s9311_s19  ;;  %v2442_v41 = vmax.f32 %v10588_v1, %v10590_v52 }
 0xb2c   : > { %v10594_v60 = vpop.f32.mrf.mxu0 }
 0xb2e   : > { %v10596_v48 = vpop.f32.mrf.mxu0 }
 0xb30   : > { %v10598_v6 = vpop.f32.mrf.mxu0 }
 0xb32   : > { %v10600_v62 = vpop.f32.mrf.mxu0 }
 0xb33   : > { %v2448_v9 = vmax.f32 %v10598_v6, %v10600_v62 }
 0xb34   : > { %v10602_v12 = vpop.f32.mrf.mxu0 }
 0xb36   : > { %v10604_v29 = vpop.f32.mrf.mxu0 }
 0xb38   : > { %v10606_v13 = vpop.f32.mrf.mxu0 }
 0xb3a   : > { %v10608_v51 = vpop.f32.mrf.mxu0 }
 0xb3b   : > { %v2454_v45 = vmax.f32 %v10606_v13, %v10608_v51 }
 0xb3c   : > { %v10610_v28 = vpop.f32.mrf.mxu0 }
 0xb3e   : > { %v10612_v42 = vpop.f32.mrf.mxu0 }
 0xb40   : > { %v10614_v55 = vpop.f32.mrf.mxu0 }
 0xb42   : > { %v10616_v54 = vpop.f32.mrf.mxu0 }
 0xb43   : > { %14654 = vst [vmem:[#allocation36_spill] sm:$0xff] %v10616_v54  ;;  %v2460_v36 = vmax.f32 %v10614_v55, %v10616_v54 }
 0xb44   : > { %v10620_v7 = vpop.f32.mrf.mxu0 }
 0xb46   : > { %2428 = vmax.xlane.f32.xlu1 %v2427_v14  ;;  %v10622_v53 = vpop.f32.mrf.mxu0  ;;  %v2439_v14 = vmax.f32 %v10584_v2, %v10586_v16 }
 0xb48   : > { %v10628_v35 = vpop.f32.mrf.mxu0 }
 0xb49   : > { %14655 = vst [vmem:[#allocation37_spill] sm:$0xff] %v10628_v35 }
 0xb4a   : > { %2431 = vmax.xlane.f32.xlu0 %v2430_v32  ;;  %2434 = vmax.xlane.f32.xlu1 %v2433_v23  ;;  %v10630_v43 = vpop.f32.mrf.mxu0  ;;  %v2445_v23 = vmax.f32 %v10594_v60, %v10596_v48 }
 0xb4b   : > { %14656 = vst [vmem:[#allocation38_spill] sm:$0xff] %v10630_v43  ;;  %v2466_v57 = vmax.f32 %v10628_v35, %v10630_v43 }
 0xb4c   : > { %v10636_v24 = vpop.f32.mrf.mxu0 }
 0xb4e   : > { %2437 = vmax.xlane.f32.xlu0 %v2436_v27  ;;  %2440 = vmax.xlane.f32.xlu1 %v2439_v14  ;;  %v10638_v15 = vpop.f32.mrf.mxu0  ;;  %v2451_v27 = vmax.f32 %v10602_v12, %v10604_v29 }
 0xb50   : > { %v10644_v32 = vpop.f32.mrf.mxu0 }
 0xb51   : > { %14657 = vst [vmem:[#allocation39_spill] sm:$0xff] %v10644_v32 }
 0xb52   : > { %2443 = vmax.xlane.f32.xlu0 %v2442_v41  ;;  %2446 = vmax.xlane.f32.xlu1 %v2445_v23  ;;  %v10646_v59 = vpop.f32.mrf.mxu0  ;;  %v2457_v41 = vmax.f32 %v10610_v28, %v10612_v42 }
 0xb53   : > { %14658 = vst [vmem:[#allocation40_spill] sm:$0xff] %v10646_v59  ;;  %v2472_v54 = vmax.f32 %v10644_v32, %v10646_v59 }
 0xb54   : > { %v10652_v14 = vpop.f32.mrf.mxu0 }
 0xb56   : > { %2449 = vmax.xlane.f32.xlu0 %v2448_v9  ;;  %2452 = vmax.xlane.f32.xlu1 %v2451_v27  ;;  %v10654_v46 = vpop.f32.mrf.mxu0  ;;  %v2463_v9 = vmax.f32 %v10620_v7, %v10622_v53 }
 0xb58   : > { %v10660_v23 = vpop.f32.mrf.mxu0 }
 0xb59   : > { %14659 = vst [vmem:[#allocation41_spill] sm:$0xff] %v10660_v23 }
 0xb5a   : > { %2455 = vmax.xlane.f32.xlu0 %v2454_v45  ;;  %2458 = vmax.xlane.f32.xlu1 %v2457_v41  ;;  %v10662_v49 = vpop.f32.mrf.mxu0  ;;  %v2469_v45 = vmax.f32 %v10636_v24, %v10638_v15 }
 0xb5b   : > { %14660 = vst [vmem:[#allocation42_spill] sm:$0xff] %v10662_v49  ;;  %v2478_v35 = vmax.f32 %v10660_v23, %v10662_v49 }
 0xb5c   : > { %v10668_v27 = vpop.f32.mrf.mxu0 }
 0xb5d   : > { %14661 = vst [vmem:[#allocation43_spill] sm:$0xff] %v10668_v27 }
 0xb5e   : > { %2461 = vmax.xlane.f32.xlu0 %v2460_v36  ;;  %2464 = vmax.xlane.f32.xlu1 %v2463_v9  ;;  %v10670_v11 = vpop.f32.mrf.mxu0  ;;  %v2475_v36 = vmax.f32 %v10652_v14, %v10654_v46 }
 0xb5f   : > { %14662 = vst [vmem:[#allocation44_spill] sm:$0xff] %v10670_v11 }
 0xb60   : > { %v10676_v41 = vpop.f32.mrf.mxu0 }
 0xb62   : > { %2467 = vmax.xlane.f32.xlu0 %v2466_v57  ;;  %2470 = vmax.xlane.f32.xlu1 %v2469_v45  ;;  %v10678_v19 = vpop.f32.mrf.mxu0  ;;  %v2481_v57 = vmax.f32 %v10668_v27, %v10670_v11 }
 0xb63   : > { %14663 = vst [vmem:[#allocation45_spill] sm:$0xff] %v10678_v19  ;;  %v2484_v59 = vmax.f32 %v10676_v41, %v10678_v19 }
 0xb64   : > { %v10684_v9 = vpop.f32.mrf.mxu0 }
 0xb65   : > { %14664 = vst [vmem:[#allocation46_spill] sm:$0xff] %v10684_v9 }
 0xb66   : > { %2473 = vmax.xlane.f32.xlu0 %v2472_v54  ;;  %2476 = vmax.xlane.f32.xlu1 %v2475_v36  ;;  %v10686_v43 = vpop.f32.mrf.mxu0 }
 0xb67   : > { %14665 = vst [vmem:[#allocation47_spill] sm:$0xff] %v10686_v43  ;;  %v2487_v32 = vmax.f32 %v10684_v9, %v10686_v43 }
 0xb68   : > { %v10692_v45 = vpop.f32.mrf.mxu0 }
 0xb6a   : > { %2479 = vmax.xlane.f32.xlu0 %v2478_v35  ;;  %2482 = vmax.xlane.f32.xlu1 %v2481_v57  ;;  %v10698_v54 = vpop.f32.mrf.mxu0 }
 0xb6b   : > { %14666 = vst [vmem:[#allocation48_spill] sm:$0xff] %v10698_v54  ;;  %v2490_v36 = vmax.f32 %v10692_v45, %v10698_v54 }
 0xb6e   : > { %2485 = vmax.xlane.f32.xlu0 %v2484_v59  ;;  %2488 = vmax.xlane.f32.xlu1 %v2487_v32 }
 0xb72   : > { %2491 = vmax.xlane.f32.xlu0 %v2490_v36 }
 0xb7a   : > { %v2399_v49 = vpop.xlane.xlu0 %2398 }
 0xb7b   : > { %v2493_v23 = vsub.f32 %v10506_v61, %v2399_v49  ;;  %v2494_v35 = vsub.f32 %v10508_v20, %v2399_v49 }
 0xb7d   : > { %v2557_v57 = vmul.f32 1.442695, %v2493_v23  ;;  %v2559_v11 = vmul.f32 1.442695, %v2494_v35 }
 0xb7e   : > { %v2402_v27 = vpop.xlane.xlu1 %2401 }
 0xb7f   : > { %8522 = vpow2.f32 %v2557_v57  ;;  %v2495_v19 = vsub.f32 %v10512_v33, %v2402_v27  ;;  %v2496_v43 = vsub.f32 %v10514_v34, %v2402_v27 }
 0xb80   : > { %8524 = vpow2.f32 %v2559_v11 }
 0xb81   : > { %v2561_v59 = vmul.f32 1.442695, %v2495_v19  ;;  %v2563_v32 = vmul.f32 1.442695, %v2496_v43 }
 0xb82   : > { %v2405_v9 = vpop.xlane.xlu0 %2404 }
 0xb83   : > { %8526 = vpow2.f32 %v2561_v59  ;;  %v2497_v36 = vsub.f32 %v10518_v63, %v2405_v9  ;;  %v2498_v54 = vsub.f32 %v10520_v8, %v2405_v9 }
 0xb84   : > { %8528 = vpow2.f32 %v2563_v32 }
 0xb85   : > { %v2565_v61 = vmul.f32 1.442695, %v2497_v36  ;;  %v2567_v49 = vmul.f32 1.442695, %v2498_v54 }
 0xb86   : > { %v2408_v20 = vpop.xlane.xlu0 %2407 }
 0xb87   : > { %8530 = vpow2.f32 %v2565_v61  ;;  %v2499_v23 = vsub.f32 %v10524_v18, %v2408_v20  ;;  %v2500_v33 = vsub.f32 %v10526_v21, %v2408_v20 }
 0xb88   : > { %8532 = vpow2.f32 %v2567_v49 }
 0xb89   : > { %v2569_v34 = vmul.f32 1.442695, %v2499_v23  ;;  %v2571_v11 = vmul.f32 1.442695, %v2500_v33 }
 0xb8a   : > { %v2411_v19 = vpop.xlane.xlu1 %2410 }
 0xb8b   : > { %8534 = vpow2.f32 %v2569_v34  ;;  %v2501_v43 = vsub.f32 %v10530_v22, %v2411_v19  ;;  %v2502_v63 = vsub.f32 %v10532_v4, %v2411_v19 }
 0xb8c   : > { %v10712_v27 = vpop.eup %8522  ;;  %8536 = vpow2.f32 %v2571_v11 }
 0xb8d   : > { %v10714_v8 = vpop.eup %8524  ;;  %v2573_v9 = vmul.f32 1.442695, %v2501_v43  ;;  %v2575_v54 = vmul.f32 1.442695, %v2502_v63 }
 0xb8e   : > { %v2414_v35 = vpop.xlane.xlu0 %2413  ;;  %v2685_v18 = vadd.f32 %v10714_v8, %v10712_v27 }
 0xb8f   : > { %8538 = vpow2.f32 %v2573_v9  ;;  %v2503_v21 = vsub.f32 %v10536_v38, %v2414_v35  ;;  %v2504_v57 = vsub.f32 %v10538_v40, %v2414_v35 }
 0xb90   : > { %v10720_v59 = vpop.eup %8526  ;;  %8540 = vpow2.f32 %v2575_v54  ;;  %2686 = vadd.xlane.f32.xlu0 %v2685_v18 }
 0xb91   : > { %v10722_v22 = vpop.eup %8528  ;;  %v2577_v4 = vmul.f32 1.442695, %v2503_v21  ;;  %v2579_v32 = vmul.f32 1.442695, %v2504_v57 }
 0xb92   : > { %v2417_v36 = vpop.xlane.xlu1 %2416  ;;  %v2688_v61 = vadd.f32 %v10722_v22, %v10720_v59 }
 0xb93   : > { %8542 = vpow2.f32 %v2577_v4  ;;  %v2505_v49 = vsub.f32 %v10542_v58, %v2417_v36  ;;  %v2506_v20 = vsub.f32 %v10544_v3, %v2417_v36 }
 0xb94   : > { %v10728_v38 = vpop.eup %8530  ;;  %8544 = vpow2.f32 %v2579_v32  ;;  %2689 = vadd.xlane.f32.xlu0 %v2688_v61 }
 0xb95   : > { %v10730_v40 = vpop.eup %8532  ;;  %v2581_v23 = vmul.f32 1.442695, %v2505_v49  ;;  %v2583_v33 = vmul.f32 1.442695, %v2506_v20 }
 0xb96   : > { %v2420_v34 = vpop.xlane.xlu0 %2419  ;;  %v2691_v11 = vadd.f32 %v10730_v40, %v10728_v38 }
 0xb97   : > { %8546 = vpow2.f32 %v2581_v23  ;;  %v2507_v19 = vsub.f32 %v10548_v5, %v2420_v34  ;;  %v2508_v43 = vsub.f32 %v10550_v31, %v2420_v34 }
 0xb98   : > { %v10736_v58 = vpop.eup %8534  ;;  %8548 = vpow2.f32 %v2583_v33  ;;  %2692 = vadd.xlane.f32.xlu0 %v2691_v11 }
 0xb99   : > { %v10738_v3 = vpop.eup %8536  ;;  %v2585_v63 = vmul.f32 1.442695, %v2507_v19  ;;  %v2587_v9 = vmul.f32 1.442695, %v2508_v43 }
 0xb9a   : > { %v2423_v54 = vpop.xlane.xlu1 %2422  ;;  %v2694_v35 = vadd.f32 %v10738_v3, %v10736_v58 }
 0xb9b   : > { %8550 = vpow2.f32 %v2585_v63  ;;  %v2509_v18 = vsub.f32 %v10554_v47, %v2423_v54  ;;  %v2510_v21 = vsub.f32 %v10556_v39, %v2423_v54 }
 0xb9c   : > { %v10744_v5 = vpop.eup %8538  ;;  %8552 = vpow2.f32 %v2587_v9  ;;  %2695 = vadd.xlane.f32.xlu0 %v2694_v35 }
 0xb9d   : > { %v10746_v31 = vpop.eup %8540  ;;  %v2589_v57 = vmul.f32 1.442695, %v2509_v18  ;;  %v2591_v4 = vmul.f32 1.442695, %v2510_v21 }
 0xb9e   : > { %v2426_v32 = vpop.xlane.xlu0 %2425  ;;  %v2697_v36 = vadd.f32 %v10746_v31, %v10744_v5 }
 0xb9f   : > { %8554 = vpow2.f32 %v2589_v57  ;;  %v2511_v61 = vsub.f32 %v10560_v10, %v2426_v32  ;;  %v2512_v49 = vsub.f32 %v10562_v37, %v2426_v32  ;;  %v10782_v57 = vpop.permute.xlu1 %3124 }
 0xba0   : > { %v10752_v47 = vpop.eup %8542  ;;  %8556 = vpow2.f32 %v2591_v4  ;;  %2698 = vadd.xlane.f32.xlu0 %v2697_v36  ;;  %14669 = vst [vmem:[#allocation51_spill] sm:$0xff] %v10782_v57 }
 0xba1   : > { %v10754_v39 = vpop.eup %8544  ;;  %v2593_v20 = vmul.f32 1.442695, %v2511_v61  ;;  %v2595_v23 = vmul.f32 1.442695, %v2512_v49 }
 0xba2   : > { %v2700_v33 = vadd.f32 %v10754_v39, %v10752_v47  ;;  %v10784_v4 = vpop.permute.xlu0 %3122 }
 0xba3   : > { %8558 = vpow2.f32 %v2593_v20  ;;  %14670 = vst [vmem:[#allocation52_spill] sm:$0xff] %v10784_v4 }
 0xba4   : > { %v10758_v34 = vpop.eup %8546  ;;  %8560 = vpow2.f32 %v2595_v23  ;;  %2701 = vadd.xlane.f32.xlu0 %v2700_v33 }
 0xba5   : > { %v10760_v11 = vpop.eup %8548 }
 0xba6   : > { %v2703_v10 = vadd.f32 %v10760_v11, %v10758_v34 }
 0xba8   : > { %v10764_v37 = vpop.eup %8550  ;;  %2704 = vadd.xlane.f32.xlu0 %v2703_v10 }
 0xba9   : > { %v10766_v19 = vpop.eup %8552 }
 0xbaa   : > { %v2706_v43 = vadd.f32 %v10766_v19, %v10764_v37 }
 0xbac   : > { %v10770_v63 = vpop.eup %8554  ;;  %2707 = vadd.xlane.f32.xlu0 %v2706_v43 }
 0xbad   : > { %14667 = vst [vmem:[#allocation49_spill] sm:$0xff] %v10770_v63  ;;  %v10772_v9 = vpop.eup %8556 }
 0xbae   : > { %v2709_v54 = vadd.f32 %v10772_v9, %v10770_v63 }
 0xbb0   : > { %v10776_v35 = vpop.eup %8558  ;;  %2710 = vadd.xlane.f32.xlu1 %v2709_v54 }
 0xbb1   : > { %14668 = vst [vmem:[#allocation50_spill] sm:$0xff] %v10776_v35  ;;  %v10778_v18 = vpop.eup %8560 }
 0xbb2   : > { %v2712_v21 = vadd.f32 %v10778_v18, %v10776_v35 }
 0xbb4   : > { %2713 = vadd.xlane.f32.xlu0 %v2712_v21 }
 0xbcf   : > { %v2429_v32 = vpop.xlane.xlu1 %2428 }
 0xbd0   : > { %v2513_v36 = vsub.f32 %v10566_v44, %v2429_v32  ;;  %v2514_v61 = vsub.f32 %v10568_v0, %v2429_v32 }
 0xbd2   : > { %v2597_v49 = vmul.f32 1.442695, %v2513_v36  ;;  %v2599_v20 = vmul.f32 1.442695, %v2514_v61 }
 0xbd3   : > { %v2435_v23 = vpop.xlane.xlu1 %2434  ;;  %v2432_v33 = vpop.xlane.xlu0 %2431 }
 0xbd4   : > { %8562 = vpow2.f32 %v2597_v49  ;;  %v2517_v10 = vsub.f32 %v10574_v17, %v2435_v23  ;;  %v2518_v43 = vsub.f32 %v10576_v56, %v2435_v23  ;;  %v2515_v54 = vsub.f32 %v10570_v25, %v2432_v33 }
 0xbd5   : > { %8564 = vpow2.f32 %v2599_v20  ;;  %v2516_v21 = vsub.f32 %v10572_v30, %v2432_v33 }
 0xbd6   : > { %v2605_v57 = vmul.f32 1.442695, %v2517_v10  ;;  %v2607_v4 = vmul.f32 1.442695, %v2518_v43  ;;  %v2601_v35 = vmul.f32 1.442695, %v2515_v54 }
 0xbd7   : > { %v2603_v44 = vmul.f32 1.442695, %v2516_v21  ;;  %v2441_v63 = vpop.xlane.xlu1 %2440  ;;  %v2438_v0 = vpop.xlane.xlu0 %2437 }
 0xbd8   : > { %8566 = vpow2.f32 %v2605_v57  ;;  %v2521_v32 = vsub.f32 %v10584_v2, %v2441_v63  ;;  %v2522_v36 = vsub.f32 %v10586_v16, %v2441_v63  ;;  %v2519_v17 = vsub.f32 %v10578_v50, %v2438_v0 }
 0xbd9   : > { %8568 = vpow2.f32 %v2607_v4  ;;  %v2520_v56 = vsub.f32 %v10582_v26, %v2438_v0 }
 0xbda   : > { %8570 = vpow2.f32 %v2601_v35  ;;  %v2613_v25 = vmul.f32 1.442695, %v2521_v32  ;;  %v2615_v61 = vmul.f32 1.442695, %v2522_v36  ;;  %v2609_v30 = vmul.f32 1.442695, %v2519_v17 }
 0xbdb   : > { %8572 = vpow2.f32 %v2603_v44  ;;  %v2611_v49 = vmul.f32 1.442695, %v2520_v56  ;;  %v2447_v20 = vpop.xlane.xlu1 %2446  ;;  %v2444_v23 = vpop.xlane.xlu0 %2443 }
 0xbdc   : > { %8574 = vpow2.f32 %v2613_v25  ;;  %v2525_v57 = vsub.f32 %v10594_v60, %v2447_v20  ;;  %v2526_v2 = vsub.f32 %v10596_v48, %v2447_v20  ;;  %v2523_v16 = vsub.f32 %v10588_v1, %v2444_v23 }
 0xbdd   : > { %8576 = vpow2.f32 %v2615_v61  ;;  %v2524_v50 = vsub.f32 %v10590_v52, %v2444_v23 }
 0xbde   : > { %8578 = vpow2.f32 %v2609_v30  ;;  %v2621_v26 = vmul.f32 1.442695, %v2525_v57  ;;  %v2623_v63 = vmul.f32 1.442695, %v2526_v2  ;;  %v2617_v35 = vmul.f32 1.442695, %v2523_v16 }
 0xbdf   : > { %8580 = vpow2.f32 %v2611_v49  ;;  %v2619_v4 = vmul.f32 1.442695, %v2524_v50  ;;  %v2453_v33 = vpop.xlane.xlu1 %2452  ;;  %v2450_v10 = vpop.xlane.xlu0 %2449 }
 0xbe0   : > { %8582 = vpow2.f32 %v2621_v26  ;;  %v2529_v43 = vsub.f32 %v10602_v12, %v2453_v33  ;;  %v2530_v60 = vsub.f32 %v10604_v29, %v2453_v33  ;;  %v2527_v48 = vsub.f32 %v10598_v6, %v2450_v10 }
 0xbe1   : > { %v10803_v54 = vpop.eup %8562  ;;  %8584 = vpow2.f32 %v2623_v63  ;;  %v2528_v1 = vsub.f32 %v10600_v62, %v2450_v10  ;;  %v14671_v63 = vld [vmem:[#allocation36_spill] sm:$0xff] }
 0xbe2   : > { %v10806_v52 = vpop.eup %8564  ;;  %8586 = vpow2.f32 %v2617_v35  ;;  %v2629_v21 = vmul.f32 1.442695, %v2529_v43  ;;  %v2631_v44 = vmul.f32 1.442695, %v2530_v60  ;;  %v2625_v0 = vmul.f32 1.442695, %v2527_v48 }
 0xbe3   : > { %8588 = vpow2.f32 %v2619_v4  ;;  %v2627_v32 = vmul.f32 1.442695, %v2528_v1  ;;  %v2459_v36 = vpop.xlane.xlu1 %2458  ;;  %v2456_v17 = vpop.xlane.xlu0 %2455  ;;  %v2715_v12 = vadd.f32 %v10806_v52, %v10803_v54 }
 0xbe4   : > { %8590 = vpow2.f32 %v2629_v21  ;;  %v2533_v29 = vsub.f32 %v10610_v28, %v2459_v36  ;;  %v2534_v6 = vsub.f32 %v10612_v42, %v2459_v36  ;;  %v2531_v62 = vsub.f32 %v10606_v13, %v2456_v17 }
 0xbe5   : > { %v10813_v56 = vpop.eup %8566  ;;  %8592 = vpow2.f32 %v2631_v44  ;;  %v2532_v25 = vsub.f32 %v10608_v51, %v2456_v17  ;;  %2716 = vadd.xlane.f32.xlu1 %v2715_v12  ;;  %v14673_v12 = vld [vmem:[#allocation38_spill] sm:$0xff] }
 0xbe6   : > { %v10816_v61 = vpop.eup %8568  ;;  %8594 = vpow2.f32 %v2625_v0  ;;  %v2637_v30 = vmul.f32 1.442695, %v2533_v29  ;;  %v2639_v49 = vmul.f32 1.442695, %v2534_v6  ;;  %v2633_v20 = vmul.f32 1.442695, %v2531_v62 }
 0xbe7   : > { %v10818_v23 = vpop.eup %8570  ;;  %8596 = vpow2.f32 %v2627_v32  ;;  %v2635_v28 = vmul.f32 1.442695, %v2532_v25  ;;  %v2465_v57 = vpop.xlane.xlu1 %2464  ;;  %v2721_v13 = vadd.f32 %v10816_v61, %v10813_v56  ;;  %v14672_v32 = vld [vmem:[#allocation37_spill] sm:$0xff] }
 0xbe8   : > { %v2462_v42 = vpop.xlane.xlu0 %2461  ;;  %v10822_v2 = vpop.eup %8572  ;;  %8598 = vpow2.f32 %v2637_v30  ;;  %v2537_v51 = vsub.f32 %v10620_v7, %v2465_v57  ;;  %v2538_v16 = vsub.f32 %v10622_v53, %v2465_v57 }
 0xbe9   : > { %v2535_v50 = vsub.f32 %v10614_v55, %v2462_v42  ;;  %v10827_v26 = vpop.eup %8574  ;;  %8600 = vpow2.f32 %v2639_v49  ;;  %v2536_v35 = vsub.f32 %v14671_v63, %v2462_v42  ;;  %2722 = vadd.xlane.f32.xlu1 %v2721_v13  ;;  %v2718_v4 = vadd.f32 %v10822_v2, %v10818_v23 }
 0xbea   : > { %v10832_v33 = vpop.eup %8576  ;;  %8602 = vpow2.f32 %v2633_v20  ;;  %v2645_v10 = vmul.f32 1.442695, %v2537_v51  ;;  %v2647_v43 = vmul.f32 1.442695, %v2538_v16  ;;  %v14674_v16 = vld [vmem:[#allocation39_spill] sm:$0xff] }
 0xbeb   : > { %v2641_v60 = vmul.f32 1.442695, %v2535_v50  ;;  %v10834_v7 = vpop.eup %8578  ;;  %8604 = vpow2.f32 %v2635_v28  ;;  %v2643_v53 = vmul.f32 1.442695, %v2536_v35  ;;  %2719 = vadd.xlane.f32.xlu0 %v2718_v4  ;;  %v2471_v55 = vpop.xlane.xlu1 %2470  ;;  %v2727_v1 = vadd.f32 %v10832_v33, %v10827_v26  ;;  %v14675_v35 = vld [vmem:[#allocation40_spill] sm:$0xff] }
 0xbec   : > { %v2468_v48 = vpop.xlane.xlu0 %2467  ;;  %v10838_v21 = vpop.eup %8580  ;;  %8606 = vpow2.f32 %v2645_v10  ;;  %v2541_v44 = vsub.f32 %v10636_v24, %v2471_v55  ;;  %v2542_v0 = vsub.f32 %v10638_v15, %v2471_v55 }
 0xbed   : > { %v2539_v36 = vsub.f32 %v14672_v32, %v2468_v48  ;;  %v10843_v17 = vpop.eup %8582  ;;  %8608 = vpow2.f32 %v2647_v43  ;;  %v2540_v29 = vsub.f32 %v14673_v12, %v2468_v48  ;;  %2728 = vadd.xlane.f32.xlu1 %v2727_v1  ;;  %v2724_v6 = vadd.f32 %v10838_v21, %v10834_v7  ;;  %v14676_v32 = vld [vmem:[#allocation43_spill] sm:$0xff]  ;;  %v14677_v12 = vld [vmem:[#allocation44_spill] sm:$0xff] }
 0xbee   : > { %v10848_v62 = vpop.eup %8584  ;;  %8610 = vpow2.f32 %v2641_v60  ;;  %v2653_v25 = vmul.f32 1.442695, %v2541_v44  ;;  %v2655_v30 = vmul.f32 1.442695, %v2542_v0 }
 0xbef   : > { %v2649_v49 = vmul.f32 1.442695, %v2539_v36  ;;  %v10850_v24 = vpop.eup %8586  ;;  %8612 = vpow2.f32 %v2643_v53  ;;  %v2651_v15 = vmul.f32 1.442695, %v2540_v29  ;;  %2725 = vadd.xlane.f32.xlu0 %v2724_v6  ;;  %v2477_v20 = vpop.xlane.xlu1 %2476  ;;  %v2733_v57 = vadd.f32 %v10848_v62, %v10843_v17  ;;  %v14678_v6 = vld [vmem:[#allocation41_spill] sm:$0xff] }
 0xbf0   : > { %v2474_v28 = vpop.xlane.xlu0 %2473  ;;  %v10854_v42 = vpop.eup %8588  ;;  %8614 = vpow2.f32 %v2653_v25  ;;  %v2545_v13 = vsub.f32 %v10652_v14, %v2477_v20  ;;  %v2546_v51 = vsub.f32 %v10654_v46, %v2477_v20 }
 0xbf1   : > { %v2543_v50 = vsub.f32 %v14674_v16, %v2474_v28  ;;  %v10859_v63 = vpop.eup %8590  ;;  %8616 = vpow2.f32 %v2655_v30  ;;  %v2544_v4 = vsub.f32 %v14675_v35, %v2474_v28  ;;  %2734 = vadd.xlane.f32.xlu1 %v2733_v57  ;;  %v2730_v10 = vadd.f32 %v10854_v42, %v10850_v24 }
 0xbf2   : > { %v10864_v43 = vpop.eup %8592  ;;  %8618 = vpow2.f32 %v2649_v49  ;;  %v2661_v60 = vmul.f32 1.442695, %v2545_v13  ;;  %v2663_v53 = vmul.f32 1.442695, %v2546_v51  ;;  %v14679_v49 = vld [vmem:[#allocation42_spill] sm:$0xff] }
 0xbf3   : > { %v2657_v55 = vmul.f32 1.442695, %v2543_v50  ;;  %v10866_v14 = vpop.eup %8594  ;;  %8620 = vpow2.f32 %v2651_v15  ;;  %v2659_v46 = vmul.f32 1.442695, %v2544_v4  ;;  %2731 = vadd.xlane.f32.xlu0 %v2730_v10  ;;  %v2483_v48 = vpop.xlane.xlu1 %2482  ;;  %v2739_v44 = vadd.f32 %v10864_v43, %v10859_v63 }
 0xbf4   : > { %v2480_v1 = vpop.xlane.xlu0 %2479  ;;  %v10870_v0 = vpop.eup %8596  ;;  %8622 = vpow2.f32 %v2661_v60  ;;  %v2549_v36 = vsub.f32 %v14676_v32, %v2483_v48  ;;  %v2550_v29 = vsub.f32 %v14677_v12, %v2483_v48 }
 0xbf5   : > { %v2547_v25 = vsub.f32 %v14678_v6, %v2480_v1  ;;  %v10875_v30 = vpop.eup %8598  ;;  %8624 = vpow2.f32 %v2663_v53  ;;  %v2548_v15 = vsub.f32 %v14679_v49, %v2480_v1  ;;  %2740 = vadd.xlane.f32.xlu1 %v2739_v44  ;;  %v2736_v20 = vadd.f32 %v10870_v0, %v10866_v14 }
 0xbf6   : > { %v10880_v28 = vpop.eup %8600  ;;  %8626 = vpow2.f32 %v2657_v55  ;;  %v2669_v57 = vmul.f32 1.442695, %v2549_v36  ;;  %v2671_v13 = vmul.f32 1.442695, %v2550_v29  ;;  %v14681_v55 = vld [vmem:[#allocation45_spill] sm:$0xff] }
 0xbf7   : > { %v2665_v51 = vmul.f32 1.442695, %v2547_v25  ;;  %v10882_v16 = vpop.eup %8602  ;;  %8628 = vpow2.f32 %v2659_v46  ;;  %v2667_v50 = vmul.f32 1.442695, %v2548_v15  ;;  %2737 = vadd.xlane.f32.xlu0 %v2736_v20  ;;  %v2745_v4 = vadd.f32 %v10880_v28, %v10875_v30 }
 0xbf8   : > { %v2486_v35 = vpop.xlane.xlu0 %2485  ;;  %v10886_v10 = vpop.eup %8604  ;;  %8630 = vpow2.f32 %v2669_v57 }
 0xbf9   : > { %v2551_v60 = vsub.f32 %v10676_v41, %v2486_v35  ;;  %v10889_v53 = vpop.eup %8606  ;;  %8632 = vpow2.f32 %v2671_v13  ;;  %v2552_v48 = vsub.f32 %v14681_v55, %v2486_v35  ;;  %2746 = vadd.xlane.f32.xlu1 %v2745_v4  ;;  %v2742_v46 = vadd.f32 %v10886_v10, %v10882_v16 }
 0xbfa   : > { %14680 = vst [vmem:[#allocation36_spill] sm:$0xff] %v10889_v53  ;;  %v10894_v1 = vpop.eup %8608  ;;  %8634 = vpow2.f32 %v2665_v51 }
 0xbfb   : > { %v2673_v44 = vmul.f32 1.442695, %v2551_v60  ;;  %v10896_v32 = vpop.eup %8610  ;;  %8636 = vpow2.f32 %v2667_v50  ;;  %v2675_v36 = vmul.f32 1.442695, %v2552_v48  ;;  %2743 = vadd.xlane.f32.xlu0 %v2742_v46  ;;  %v2751_v41 = vadd.f32 %v10894_v1, %v10889_v53 }
 0xbfc   : > { %v10900_v12 = vpop.eup %8612 }
 0xbfd   : > { %v10902_v29 = vpop.eup %8614  ;;  %2752 = vadd.xlane.f32.xlu1 %v2751_v41  ;;  %v2748_v6 = vadd.f32 %v10900_v12, %v10896_v32  ;;  %8638 = vpow2.f32 %v2673_v44 }
 0xbfe   : > { %14682 = vst [vmem:[#allocation37_spill] sm:$0xff] %v10902_v29  ;;  %v10906_v25 = vpop.eup %8616  ;;  %8640 = vpow2.f32 %v2675_v36 }
 0xbff   : > { %14683 = vst [vmem:[#allocation38_spill] sm:$0xff] %v10906_v25  ;;  %v10908_v49 = vpop.eup %8618  ;;  %2749 = vadd.xlane.f32.xlu0 %v2748_v6  ;;  %v2757_v15 = vadd.f32 %v10906_v25, %v10902_v29  ;;  %v14697_v29 = vld [vmem:[#allocation47_spill] sm:$0xff] }
 0xc00   : > { %14684 = vst [vmem:[#allocation39_spill] sm:$0xff] %v10908_v49  ;;  %v10912_v20 = vpop.eup %8620 }
 0xc01   : > { %v10914_v57 = vpop.eup %8622  ;;  %2758 = vadd.xlane.f32.xlu1 %v2757_v15  ;;  %v2754_v13 = vadd.f32 %v10912_v20, %v10908_v49 }
 0xc02   : > { %14685 = vst [vmem:[#allocation40_spill] sm:$0xff] %v10914_v57  ;;  %v10918_v51 = vpop.eup %8624 }
 0xc03   : > { %14686 = vst [vmem:[#allocation43_spill] sm:$0xff] %v10918_v51  ;;  %v10920_v50 = vpop.eup %8626  ;;  %2755 = vadd.xlane.f32.xlu0 %v2754_v13  ;;  %v2763_v35 = vadd.f32 %v10918_v51, %v10914_v57  ;;  %v14695_v57 = vld [vmem:[#allocation10_spill] sm:$0xff] }
 0xc04   : > { %14687 = vst [vmem:[#allocation44_spill] sm:$0xff] %v10920_v50  ;;  %v10924_v4 = vpop.eup %8628 }
 0xc05   : > { %14688 = vst [vmem:[#allocation41_spill] sm:$0xff] %v10924_v4  ;;  %v10926_v60 = vpop.eup %8630  ;;  %2764 = vadd.xlane.f32.xlu1 %v2763_v35  ;;  %v2760_v55 = vadd.f32 %v10924_v4, %v10920_v50  ;;  %v2492_v35 = vpop.xlane.xlu0 %2491  ;;  %v14698_v50 = vld [vmem:[#allocation12_spill] sm:$0xff] }
 0xc06   : > { %14689 = vst [vmem:[#allocation42_spill] sm:$0xff] %v10926_v60  ;;  %v10930_v48 = vpop.eup %8632 }
 0xc07   : > { %14690 = vst [vmem:[#allocation45_spill] sm:$0xff] %v10930_v48  ;;  %v10932_v46 = vpop.eup %8634  ;;  %2761 = vadd.xlane.f32.xlu0 %v2760_v55  ;;  %v2769_v44 = vadd.f32 %v10930_v48, %v10926_v60  ;;  %v14696_v48 = vld [vmem:[#allocation46_spill] sm:$0xff] }
 0xc08   : > { %14691 = vst [vmem:[#allocation53_spill] sm:$0xff] %v10932_v46  ;;  %v10936_v36 = vpop.eup %8636 }
 0xc09   : > { %14692 = vst [vmem:[#allocation54_spill] sm:$0xff] %v10936_v36  ;;  %2770 = vadd.xlane.f32.xlu1 %v2769_v44  ;;  %v2766_v41 = vadd.f32 %v10936_v36, %v10932_v46  ;;  %v2489_v44 = vpop.xlane.xlu1 %2488 }
 0xc0a   : > { %v10940_v6 = vpop.eup %8638  ;;  %v2553_v46 = vsub.f32 %v14696_v48, %v2489_v44 }
 0xc0b   : > { %14693 = vst [vmem:[#allocation55_spill] sm:$0xff] %v10940_v6  ;;  %2767 = vadd.xlane.f32.xlu0 %v2766_v41  ;;  %v10942_v15 = vpop.eup %8640  ;;  %v2554_v41 = vsub.f32 %v14697_v29, %v2489_v44 }
 0xc0c   : > { %14694 = vst [vmem:[#allocation56_spill] sm:$0xff] %v10942_v15  ;;  %v2772_v13 = vadd.f32 %v10942_v15, %v10940_v6  ;;  %v2677_v36 = vmul.f32 1.442695, %v2553_v46 }
 0xc0d   : > { %v2679_v6 = vmul.f32 1.442695, %v2554_v41 }
 0xc0f   : > { %2773 = vadd.xlane.f32.xlu0 %v2772_v13 }
 0xc19   : > { %v2687_v55 = vpop.xlane.xlu0 %2686 }
 0xc1a   : > { %3128 = vrot.lane.b32.xlu1 %v14695_v57, %s9311_s19  ;;  %8642 = vrcp.f32 %v2687_v55  ;;  %v2555_v55 = vsub.f32 %v10692_v45, %v2492_v35 }
 0xc1c   : > { %v2681_v41 = vmul.f32 1.442695, %v2555_v55 }
 0xc1d   : > { %v2690_v60 = vpop.xlane.xlu0 %2689 }
 0xc1e   : > { %8644 = vrcp.f32 %v2690_v60  ;;  %v14699_v60 = vld [vmem:[#allocation48_spill] sm:$0xff] }
 0xc1f   : > { %v2556_v53 = vsub.f32 %v14699_v60, %v2492_v35 }
 0xc21   : > { %v2693_v51 = vpop.xlane.xlu0 %2692  ;;  %v2683_v4 = vmul.f32 1.442695, %v2556_v53 }
 0xc22   : > { %8646 = vrcp.f32 %v2693_v51 }
 0xc25   : > { %3126 = vrot.lane.b32.xlu0 %v14698_v50, %s9311_s19  ;;  %v2696_v13 = vpop.xlane.xlu0 %2695 }
 0xc26   : > { %8648 = vrcp.f32 %v2696_v13 }
 0xc27   : > { %v8643_v15 = vpop.eup %8642  ;;  %8650 = vpow2.f32 %v2677_v36 }
 0xc28   : > { %8652 = vpow2.f32 %v2679_v6  ;;  %v2783_v29 = vmul.f32 %v8643_v15, %v10714_v8  ;;  %v2782_v46 = vmul.f32 %v8643_v15, %v10712_v27  ;;  %v14700_v6 = vld [vmem:[#allocation19_spill] sm:$0xff]  ;;  %v14701_v27 = vld [vmem:[#allocation26_spill] sm:$0xff] }
 0xc29   : > { %v2699_v25 = vpop.xlane.xlu0 %2698  ;;  %v3252_v35 = vsel %vm2107_vm11, %v14700_v6, 0 }
 0xc2a   : > { %8654 = vrcp.f32 %v2699_v25 }
 0xc2b   : > { %v8645_v48 = vpop.eup %8644 }
 0xc2c   : > { %v2786_v51 = vmul.f32 %v8645_v48, %v10722_v22  ;;  %v2785_v44 = vmul.f32 %v8645_v48, %v10720_v59 }
 0xc2d   : > { %v2702_v13 = vpop.xlane.xlu0 %2701 }
 0xc2e   : > { %8656 = vrcp.f32 %v2702_v13  ;;  %v2878_v36 = vpack.c.bf16 %v2786_v51, %v2783_v29  ;;  %v2877_v45 = vpack.c.bf16 %v2785_v44, %v2782_v46  ;;  %v14702_v46 = vld [vmem:[#allocation20_spill] sm:$0xff] }
 0xc2f   : > { %v8647_v49 = vpop.eup %8646  ;;  %8658 = vpow2.f32 %v2681_v41 }
 0xc30   : > { %2989 = vmatprep.mubr.bf16.mxu1 %v2878_v36  ;;  %8660 = vpow2.f32 %v2683_v4  ;;  %v2789_v59 = vmul.f32 %v8647_v49, %v10730_v40  ;;  %v2788_v25 = vmul.f32 %v8647_v49, %v10728_v38  ;;  %v3249_v40 = vsel %vm2107_vm11, %v14702_v46, 0  ;;  %v14703_v38 = vld [vmem:[#allocation29_spill] sm:$0xff]  ;;  %v14706_v46 = vld [vmem:[#allocation22_spill] sm:$0xff] }
 0xc31   : > { %2990 = vmatmul.mubr.bf16.vlgmr.msra.gmra.mxu1 %v2877_v45  ;;  %v2705_v8 = vpop.xlane.xlu0 %2704 }
 0xc32   : > { %7727 = vmatpush3.bf16.xpose.msra.mxu1 %v3252_v35  ;;  %8662 = vrcp.f32 %v2705_v8 }
 0xc33   : > { %v8649_v22 = vpop.eup %8648  ;;  %8357 = vmatprep.subr.msk.bf16.mxu1 %vm2107_vm11, %v14701_v27 }
 0xc34   : > { %v2792_v53 = vmul.f32 %v8649_v22, %v10738_v3  ;;  %v2791_v15 = vmul.f32 %v8649_v22, %v10736_v58  ;;  %v10966_v60 = vpop.eup %8650 }
 0xc35   : > { %v2708_v55 = vpop.xlane.xlu0 %2707  ;;  %v10968_v29 = vpop.eup %8652 }
 0xc36   : > { %8664 = vrcp.f32 %v2708_v55  ;;  %v2880_v48 = vpack.c.bf16 %v2792_v53, %v2789_v59  ;;  %v2879_v4 = vpack.c.bf16 %v2791_v15, %v2788_v25  ;;  %v2775_v58 = vadd.f32 %v10968_v29, %v10966_v60  ;;  %v14704_v59 = vld [vmem:[#allocation21_spill] sm:$0xff] }
 0xc37   : > { %v8655_v51 = vpop.eup %8654 }
 0xc38   : > { %2997 = vmatprep.mubr.bf16.mxu1 %v2880_v48  ;;  %v2795_v49 = vmul.f32 %v8655_v51, %v10746_v31  ;;  %v2794_v13 = vmul.f32 %v8655_v51, %v10744_v5  ;;  %v3246_v31 = vsel %vm2107_vm11, %v14704_v59, 0  ;;  %v14716_v59 = vld [vmem:[#allocation27_spill] sm:$0xff] }
 0xc39   : > { %v2711_v44 = vpop.xlane.xlu1 %2710  ;;  %2998 = vmatmul.mubr.bf16.gmra.mxu1 %v2879_v4 }
 0xc3a   : > { %7729 = vmatpush3.bf16.xpose.msra.mxu1 %v3249_v40  ;;  %8666 = vrcp.f32 %v2711_v44  ;;  %v3243_v40 = vsel %vm2107_vm11, %v14706_v46, 0  ;;  %v14726_v46 = vld [vmem:[#allocation14_spill] sm:$0xff] }
 0xc3b   : > { %v8657_v3 = vpop.eup %8656  ;;  %8358 = vmatprep.subr.msk.bf16.mxu1 %vm2107_vm11, %v14703_v38 }
 0xc3c   : > { %v2798_v41 = vmul.f32 %v8657_v3, %v10754_v39  ;;  %v2797_v36 = vmul.f32 %v8657_v3, %v10752_v47  ;;  %v10980_v6 = vpop.eup %8658  ;;  %v14705_v39 = vld [vmem:[#allocation31_spill] sm:$0xff]  ;;  %v14707_v3 = vld [vmem:[#allocation32_spill] sm:$0xff] }
 0xc3d   : > { %v2714_v45 = vpop.xlane.xlu0 %2713  ;;  %v10982_v22 = vpop.eup %8660 }
 0xc3e   : > { %8668 = vrcp.f32 %v2714_v45  ;;  %2776 = vadd.xlane.f32.xlu1 %v2775_v58  ;;  %v2882_v35 = vpack.c.bf16 %v2798_v41, %v2795_v49  ;;  %v2881_v8 = vpack.c.bf16 %v2797_v36, %v2794_v13  ;;  %v2778_v5 = vadd.f32 %v10982_v22, %v10980_v6  ;;  %v14710_v13 = vld [vmem:[#allocation5_spill] sm:$0xff]  ;;  %v14711_v36 = vld [vmem:[#allocation23_spill] sm:$0xff] }
 0xc3f   : > { %v8663_v27 = vpop.eup %8662  ;;  %v3240_v45 = vsel %vm2107_vm11, %v14711_v36, 0 }
 0xc40   : > { %3005 = vmatprep.mubr.bf16.mxu1 %v2882_v35  ;;  %v2801_v53 = vmul.f32 %v8663_v27, %v10760_v11  ;;  %v2800_v15 = vmul.f32 %v8663_v27, %v10758_v34  ;;  %v14708_v34 = vld [vmem:[#allocation49_spill] sm:$0xff]  ;;  %v14715_v27 = vld [vmem:[#allocation6_spill] sm:$0xff] }
 0xc41   : > { %3006 = vmatmul.mubr.bf16.gmra.mxu1 %v2881_v8  ;;  %v14712_v35 = vld [vmem:[#allocation25_spill] sm:$0xff] }
 0xc42   : > { %7731 = vmatpush3.bf16.xpose.msra.mxu1 %v3246_v31  ;;  %v14717_v31 = vld [vmem:[#allocation7_spill] sm:$0xff] }
 0xc43   : > { %v8665_v47 = vpop.eup %8664  ;;  %8359 = vmatprep.subr.msk.bf16.mxu1 %vm2107_vm11, %v14705_v39 }
 0xc44   : > { %2779 = vadd.xlane.f32.xlu0 %v2778_v5  ;;  %v2804_v25 = vmul.f32 %v8665_v47, %v10766_v19  ;;  %v2803_v55 = vmul.f32 %v8665_v47, %v10764_v37  ;;  %v14709_v37 = vld [vmem:[#allocation50_spill] sm:$0xff]  ;;  %v14719_v47 = vld [vmem:[#allocation33_spill] sm:$0xff] }
 0xc45   : > { %v14718_v5 = vld [vmem:[#allocation18_spill] sm:$0xff]  ;;  %v3234_v39 = vsel %vm2107_vm11, %v14719_v47, 0 }
 0xc46   : > { %v2884_v48 = vpack.c.bf16 %v2804_v25, %v2801_v53  ;;  %v2883_v4 = vpack.c.bf16 %v2803_v55, %v2800_v15  ;;  %v14720_v53 = vld [vmem:[#allocation9_spill] sm:$0xff]  ;;  %v14721_v25 = vld [vmem:[#allocation28_spill] sm:$0xff]  ;;  %v14723_v55 = vld [vmem:[#allocation11_spill] sm:$0xff] }
 0xc47   : > { %v8667_v51 = vpop.eup %8666  ;;  %v14722_v15 = vld [vmem:[#allocation13_spill] sm:$0xff] }
 0xc48   : > { %3013 = vmatprep.mubr.bf16.mxu1 %v2884_v48  ;;  %v2807_v11 = vmul.f32 %v8667_v51, %v10772_v9  ;;  %v2806_v38 = vmul.f32 %v8667_v51, %v14708_v34  ;;  %v14713_v9 = vld [vmem:[#allocation16_spill] sm:$0xff]  ;;  %v14724_v48 = vld [vmem:[#allocation34_spill] sm:$0xff]  ;;  %v14725_v51 = vld [vmem:[#allocation15_spill] sm:$0xff] }
 0xc49   : > { %3014 = vmatmul.mubr.bf16.gmra.mxu1 %v2883_v4  ;;  %v3231_v4 = vsel %vm2107_vm11, %v14724_v48, 0 }
 0xc4a   : > { %7733 = vmatpush3.bf16.xpose.msra.mxu1 %v3243_v40  ;;  %v14727_v40 = vld [vmem:[#allocation8_spill] sm:$0xff] }
 0xc4b   : > { %v8669_v44 = vpop.eup %8668  ;;  %8360 = vmatprep.subr.msk.bf16.mxu1 %vm2107_vm11, %v14707_v3 }
 0xc4c   : > { %v2810_v19 = vmul.f32 %v8669_v44, %v10778_v18  ;;  %v2809_v58 = vmul.f32 %v8669_v44, %v14709_v37  ;;  %v14714_v18 = vld [vmem:[#allocation24_spill] sm:$0xff] }
 0xc4d   : > { %v3237_v8 = vsel %vm2107_vm11, %v14714_v18, 0 }
 0xc4e   : > { %v2886_v49 = vpack.c.bf16 %v2810_v19, %v2807_v11  ;;  %v2885_v41 = vpack.c.bf16 %v2809_v58, %v2806_v38  ;;  %v14728_v19 = vld [vmem:[#allocation17_spill] sm:$0xff]  ;;  %v14729_v58 = vld [vmem:[#allocation4_spill] sm:$0xff] }
 0xc4f   : > { %3132 = vrot.lane.b32.xlu1 %v14710_v13, %s9311_s19 }
 0xc50   : > { %3021 = vmatprep.mubr.bf16.mxu1 %v2886_v49 }
 0xc51   : > { %3022 = vmatmul.mubr.bf16.gmra.mxu1 %v2885_v41 }
 0xc52   : > { %7735 = vmatpush3.bf16.xpose.msra.mxu1 %v3240_v45 }
 0xc53   : > { %8361 = vmatprep.subr.msk.bf16.mxu1 %vm2107_vm11, %v14712_v35  ;;  %4238 = vrot.lane.b32.xlu1 %v14710_v13, %s9312_s24 }
 0xc57   : > { %3136 = vrot.lane.b32.xlu1 %v14713_v9, %s9311_s19 }
 0xc5a   : > { %3130 = vrot.lane.b32.xlu0 %v14715_v27, %s9311_s19  ;;  %7737 = vmatpush3.bf16.xpose.msra.mxu1 %v3237_v8 }
 0xc5b   : > { %8362 = vmatprep.subr.msk.bf16.mxu1 %vm2107_vm11, %v14716_v59  ;;  %4252 = vrot.lane.b32.xlu1 %v14717_v31, %s9312_s24 }
 0xc5e   : > { %3134 = vrot.lane.b32.xlu0 %v14718_v5, %s9311_s19 }
 0xc5f   : > { %4234 = vrot.lane.b32.xlu1 %v14695_v57, %s9312_s24 }
 0xc62   : > { %4254 = vrot.lane.b32.xlu0 %v14720_v53, %s9312_s24  ;;  %7739 = vmatpush3.bf16.xpose.msra.mxu1 %v3234_v39 }
 0xc63   : > { %8363 = vmatprep.subr.msk.bf16.mxu1 %vm2107_vm11, %v14721_v25  ;;  %3140 = vrot.lane.b32.xlu1 %v14722_v15, %s9311_s19 }
 0xc66   : > { %4236 = vrot.lane.b32.xlu0 %v14715_v27, %s9312_s24 }
 0xc67   : > { %4248 = vrot.lane.b32.xlu1 %v14723_v55, %s9312_s24 }
 0xc6a   : > { %3138 = vrot.lane.b32.xlu0 %v14725_v51, %s9311_s19  ;;  %7741 = vmatpush3.bf16.xpose.msra.mxu1 %v3231_v4 }
 0xc6b   : > { %4230 = vrot.lane.b32.xlu1 %v14726_v46, %s9312_s24 }
 0xc6e   : > { %4250 = vrot.lane.b32.xlu0 %v14727_v40, %s9312_s24  ;;  %v2717_v44 = vpop.xlane.xlu1 %2716 }
 0xc6f   : > { %3144 = vrot.lane.b32.xlu1 %v14727_v40, %s9311_s19  ;;  %8670 = vrcp.f32 %v2717_v44 }
 0xc72   : > { %4232 = vrot.lane.b32.xlu0 %v14698_v50, %s9312_s24  ;;  %v2723_v3 = vpop.xlane.xlu1 %2722 }
 0xc73   : > { %4244 = vrot.lane.b32.xlu1 %v14725_v51, %s9312_s24 }
 0xc74   : > { %v2720_v11 = vpop.xlane.xlu0 %2719 }
 0xc75   : > { %8672 = vrcp.f32 %v2720_v11  ;;  %v14730_v11 = vld [vmem:[#allocation3_spill] sm:$0xff] }
 0xc76   : > { %3142 = vrot.lane.b32.xlu0 %v14723_v55, %s9311_s19  ;;  %8674 = vrcp.f32 %v2723_v3  ;;  %v2729_v38 = vpop.xlane.xlu1 %2728 }
 0xc77   : > { %4226 = vrot.lane.b32.xlu1 %v14728_v19, %s9312_s24 }
 0xc78   : > { %v2726_v34 = vpop.xlane.xlu0 %2725 }
 0xc79   : > { %8676 = vrcp.f32 %v2726_v34 }
 0xc7a   : > { %4246 = vrot.lane.b32.xlu0 %v14722_v15, %s9312_s24  ;;  %8678 = vrcp.f32 %v2729_v38  ;;  %v2735_v45 = vpop.xlane.xlu1 %2734 }
 0xc7b   : > { %3148 = vrot.lane.b32.xlu1 %v14720_v53, %s9311_s19 }
 0xc7c   : > { %v2732_v37 = vpop.xlane.xlu0 %2731  ;;  %v8671_v49 = vpop.eup %8670 }
 0xc7d   : > { %8680 = vrcp.f32 %v2732_v37  ;;  %v2813_v35 = vmul.f32 %v8671_v49, %v10806_v52  ;;  %v2812_v8 = vmul.f32 %v8671_v49, %v10803_v54 }
 0xc7e   : > { %4228 = vrot.lane.b32.xlu0 %v14729_v58, %s9312_s24  ;;  %v2741_v3 = vpop.xlane.xlu1 %2740 }
 0xc7f   : > { %4240 = vrot.lane.b32.xlu1 %v14718_v5, %s9312_s24 }
 0xc80   : > { %v2738_v41 = vpop.xlane.xlu0 %2737 }
 0xc81   : > { %8682 = vrcp.f32 %v2738_v41 }
 0xc82   : > { %v8673_v36 = vpop.eup %8672  ;;  %3146 = vrot.lane.b32.xlu0 %v14717_v31, %s9311_s19  ;;  %8684 = vrcp.f32 %v2735_v45  ;;  %v2747_v45 = vpop.xlane.xlu1 %2746 }
 0xc83   : > { %4194 = vrot.lane.b32.xlu1 %v14728_v19, %s9313_s26  ;;  %v2816_v18 = vmul.f32 %v8673_v36, %v10822_v2  ;;  %v2815_v59 = vmul.f32 %v8673_v36, %v10818_v23  ;;  %v8675_v47 = vpop.eup %8674 }
 0xc84   : > { %v2819_v52 = vmul.f32 %v8675_v47, %v10816_v61  ;;  %v2744_v4 = vpop.xlane.xlu0 %2743 }
 0xc85   : > { %v2888_v39 = vpack.c.bf16 %v2816_v18, %v2813_v35  ;;  %v2887_v25 = vpack.c.bf16 %v2815_v59, %v2812_v8  ;;  %8686 = vrcp.f32 %v2744_v4 }
 0xc86   : > { %v8677_v48 = vpop.eup %8676  ;;  %4242 = vrot.lane.b32.xlu0 %v14713_v9, %s9312_s24  ;;  %8688 = vrcp.f32 %v2741_v3 }
 0xc87   : > { %3029 = vmatprep.mubr.bf16.mxu1 %v2888_v39  ;;  %4198 = vrot.lane.b32.xlu1 %v14726_v46, %s9313_s26  ;;  %v2822_v2 = vmul.f32 %v8677_v48, %v10838_v21  ;;  %v8679_v54 = vpop.eup %8678  ;;  %v2821_v34 = vmul.f32 %v8677_v48, %v10834_v7  ;;  %v2818_v21 = vmul.f32 %v8675_v47, %v10813_v56  ;;  %v2753_v39 = vpop.xlane.xlu1 %2752 }
 0xc88   : > { %3030 = vmatmul.mubr.bf16.gmra.mxu1 %v2887_v25  ;;  %v2825_v38 = vmul.f32 %v8679_v54, %v10832_v33  ;;  %v2750_v41 = vpop.xlane.xlu0 %2749 }
 0xc89   : > { %v2890_v23 = vpack.c.bf16 %v2822_v2, %v2819_v52  ;;  %v2889_v37 = vpack.c.bf16 %v2821_v34, %v2818_v21  ;;  %8690 = vrcp.f32 %v2750_v41 }
 0xc8a   : > { %v8681_v44 = vpop.eup %8680  ;;  %4224 = vrot.lane.b32.xlu0 %v14730_v11, %s9312_s24  ;;  %8692 = vrcp.f32 %v2747_v45  ;;  %s9321_s24 = smov 12  }
 0xc8b   : > { %3037 = vmatprep.mubr.bf16.mxu1 %v2890_v23  ;;  %4202 = vrot.lane.b32.xlu1 %v14695_v57, %s9313_s26  ;;  %v2828_v61 = vmul.f32 %v8681_v44, %v10854_v42  ;;  %v2827_v56 = vmul.f32 %v8681_v44, %v10850_v24  ;;  %v2824_v42 = vmul.f32 %v8679_v54, %v10827_v26  ;;  %v2759_v54 = vpop.xlane.xlu1 %2758 }
 0xc8c   : > { %v2756_v59 = vpop.xlane.xlu0 %2755 }
 0xc8d   : > { %v2892_v7 = vpack.c.bf16 %v2828_v61, %v2825_v38  ;;  %v2891_v18 = vpack.c.bf16 %v2827_v56, %v2824_v42  ;;  %8694 = vrcp.f32 %v2756_v59  ;;  %v14733_v56 = vld [vmem:[#allocation36_spill] sm:$0xff]  ;;  %v14734_v42 = vld [vmem:[#allocation38_spill] sm:$0xff] }
 0xc8e   : > { %4192 = vrot.lane.b32.xlu0 %v14730_v11, %s9313_s26  ;;  %v8683_v49 = vpop.eup %8682  ;;  %8696 = vrcp.f32 %v2753_v39 }
 0xc8f   : > { %4206 = vrot.lane.b32.xlu1 %v14710_v13, %s9313_s26  ;;  %v8685_v36 = vpop.eup %8684  ;;  %v2834_v33 = vmul.f32 %v8683_v49, %v10870_v0  ;;  %v2833_v26 = vmul.f32 %v8683_v49, %v10866_v14  ;;  %v2765_v21 = vpop.xlane.xlu1 %2764 }
 0xc90   : > { %3038 = vmatmul.mubr.bf16.gmra.mxu1 %v2889_v37  ;;  %v2831_v35 = vmul.f32 %v8685_v36, %v10848_v62  ;;  %v2830_v0 = vmul.f32 %v8685_v36, %v10843_v17  ;;  %v2762_v2 = vpop.xlane.xlu0 %2761 }
 0xc91   : > { %3045 = vmatprep.mubr.bf16.mxu1 %v2892_v7  ;;  %8698 = vrcp.f32 %v2762_v2 }
 0xc92   : > { %4196 = vrot.lane.b32.xlu0 %v14729_v58, %s9313_s26  ;;  %v2894_v24 = vpack.c.bf16 %v2834_v33, %v2831_v35  ;;  %v8687_v8 = vpop.eup %8686  ;;  %v2893_v48 = vpack.c.bf16 %v2833_v26, %v2830_v0  ;;  %8700 = vrcp.f32 %v2759_v54  ;;  %v14736_v26 = vld [vmem:[#allocation54_spill] sm:$0xff]  ;;  %v14737_v0 = vld [vmem:[#allocation37_spill] sm:$0xff] }
 0xc93   : > { %5312 = vrot.lane.b32.xlu1 %v14710_v13, %s9314_s27  ;;  %v8689_v47 = vpop.eup %8688  ;;  %v2840_v62 = vmul.f32 %v8687_v8, %v10886_v10  ;;  %v2839_v17 = vmul.f32 %v8687_v8, %v10882_v16  ;;  %v2771_v36 = vpop.xlane.xlu1 %2770 }
 0xc94   : > { %v2837_v25 = vmul.f32 %v8689_v47, %v10864_v43  ;;  %v2836_v10 = vmul.f32 %v8689_v47, %v10859_v63  ;;  %v2768_v34 = vpop.xlane.xlu0 %2767  ;;  %v14735_v47 = vld [vmem:[#allocation44_spill] sm:$0xff] }
 0xc95   : > { %8702 = vrcp.f32 %v2768_v34  ;;  %v14742_v34 = vld [vmem:[#allocation45_spill] sm:$0xff] }
 0xc96   : > { %4200 = vrot.lane.b32.xlu0 %v14698_v50, %s9313_s26  ;;  %v2896_v52 = vpack.c.bf16 %v2840_v62, %v2837_v25  ;;  %v8691_v14 = vpop.eup %8690  ;;  %v2895_v44 = vpack.c.bf16 %v2839_v17, %v2836_v10  ;;  %8704 = vrcp.f32 %v2765_v21  ;;  %v14739_v17 = vld [vmem:[#allocation53_spill] sm:$0xff] }
 0xc97   : > { %4210 = vrot.lane.b32.xlu1 %v14713_v9, %s9313_s26  ;;  %v8693_v4 = vpop.eup %8692  ;;  %v2846_v43 = vmul.f32 %v8691_v14, %v10900_v12  ;;  %v2845_v63 = vmul.f32 %v8691_v14, %v10896_v32  ;;  %v11163_v10 = vpop.permute.xlu1 %3128 }
 0xc98   : > { %3046 = vmatmul.mubr.bf16.gmra.mxu1 %v2891_v18  ;;  %v2843_v23 = vmul.f32 %v8693_v4, %v10880_v28  ;;  %v2842_v12 = vmul.f32 %v8693_v4, %v10875_v30  ;;  %v2774_v49 = vpop.xlane.xlu0 %2773  ;;  %v14731_v30 = vld [vmem:[#allocation39_spill] sm:$0xff] }
 0xc99   : > { %3053 = vmatprep.mubr.bf16.mxu1 %v2894_v24  ;;  %8706 = vrcp.f32 %v2774_v49 }
 0xc9a   : > { %4204 = vrot.lane.b32.xlu0 %v14715_v27, %s9313_s26  ;;  %v2898_v3 = vpack.c.bf16 %v2846_v43, %v2843_v23  ;;  %v8695_v16 = vpop.eup %8694  ;;  %v2897_v37 = vpack.c.bf16 %v2845_v63, %v2842_v12  ;;  %8708 = vrcp.f32 %v2771_v36  ;;  %v14740_v23 = vld [vmem:[#allocation56_spill] sm:$0xff] }
 0xc9b   : > { %5326 = vrot.lane.b32.xlu1 %v14717_v31, %s9314_s27  ;;  %v8697_v61 = vpop.eup %8696  ;;  %v2852_v28 = vmul.f32 %v8695_v16, %v10912_v20  ;;  %v2851_v20 = vmul.f32 %v8695_v16, %v14731_v30 }
 0xc9c   : > { %v2849_v38 = vmul.f32 %v8697_v61, %v10894_v1  ;;  %v14732_v1 = vld [vmem:[#allocation41_spill] sm:$0xff]  ;;  %v2848_v33 = vmul.f32 %v8697_v61, %v14733_v56  ;;  %v11174_v12 = vpop.permute.xlu0 %3126 }
 0xc9e   : > { %4208 = vrot.lane.b32.xlu0 %v14718_v5, %s9313_s26  ;;  %v2900_v7 = vpack.c.bf16 %v2852_v28, %v2849_v38  ;;  %v8699_v32 = vpop.eup %8698  ;;  %v2899_v18 = vpack.c.bf16 %v2851_v20, %v2848_v33  ;;  %v14743_v38 = vld [vmem:[#allocation55_spill] sm:$0xff] }
 0xc9f   : > { %5308 = vrot.lane.b32.xlu1 %v14695_v57, %s9314_s27  ;;  %v8701_v41 = vpop.eup %8700  ;;  %v2858_v45 = vmul.f32 %v8699_v32, %v14732_v1  ;;  %v2857_v39 = vmul.f32 %v8699_v32, %v14735_v47  ;;  %v14744_v32 = vld [vmem:[#allocation42_spill] sm:$0xff] }
 0xca0   : > { %3054 = vmatmul.mubr.bf16.gmra.mxu1 %v2893_v48  ;;  %v2855_v35 = vmul.f32 %v8701_v41, %v14734_v42  ;;  %v2854_v25 = vmul.f32 %v8701_v41, %v14737_v0  ;;  %v14738_v48 = vld [vmem:[#allocation43_spill] sm:$0xff] }
 0xca1   : > { %3061 = vmatprep.mubr.bf16.mxu1 %v2896_v52 }
 0xca2   : > { %5328 = vrot.lane.b32.xlu0 %v14720_v53, %s9314_s27  ;;  %v2902_v24 = vpack.c.bf16 %v2858_v45, %v2855_v35  ;;  %v8703_v8 = vpop.eup %8702  ;;  %v2901_v14 = vpack.c.bf16 %v2857_v39, %v2854_v25 }
 0xca3   : > { %4214 = vrot.lane.b32.xlu1 %v14722_v15, %s9313_s26  ;;  %v8705_v59 = vpop.eup %8704  ;;  %v2864_v62 = vmul.f32 %v8703_v8, %v14736_v26  ;;  %v2863_v43 = vmul.f32 %v8703_v8, %v14739_v17 }
 0xca4   : > { %v2861_v52 = vmul.f32 %v8705_v59, %v14738_v48 }
 0xca6   : > { %5310 = vrot.lane.b32.xlu0 %v14715_v27, %s9314_s27  ;;  %v2904_v2 = vpack.c.bf16 %v2864_v62, %v2861_v52  ;;  %v8707_v4 = vpop.eup %8706 }
 0xca7   : > { %5322 = vrot.lane.b32.xlu1 %v14723_v55, %s9314_s27  ;;  %v8709_v54 = vpop.eup %8708 }
 0xca8   : > { %3062 = vmatmul.mubr.bf16.gmra.mxu1 %v2895_v44  ;;  %v2870_v44 = vmul.f32 %v8707_v4, %v14740_v23  ;;  %v2867_v61 = vmul.f32 %v8709_v54, %v14742_v34  ;;  %v2866_v49 = vmul.f32 %v8709_v54, %v14744_v32 }
 0xca9   : > { %3069 = vmatprep.mubr.bf16.mxu1 %v2898_v3  ;;  %v14741_v3 = vld [vmem:[#allocation40_spill] sm:$0xff] }
 0xcaa   : > { %4212 = vrot.lane.b32.xlu0 %v14725_v51, %s9313_s26  ;;  %v2860_v16 = vmul.f32 %v8705_v59, %v14741_v3  ;;  %v2906_v28 = vpack.c.bf16 %v2870_v44, %v2867_v61  ;;  %v14747_v44 = vld [vmem:[#allocation52_spill] sm:$0xff] }
 0xcab   : > { %5304 = vrot.lane.b32.xlu1 %v14726_v46, %s9314_s27 }
 0xcac   : > { %v2903_v21 = vpack.c.bf16 %v2863_v43, %v2860_v16 }
 0xcae   : > { %5324 = vrot.lane.b32.xlu0 %v14727_v40, %s9314_s27 }
 0xcaf   : > { %4218 = vrot.lane.b32.xlu1 %v14727_v40, %s9313_s26 }
 0xcb0   : > { %3070 = vmatmul.mubr.bf16.gmra.mxu1 %v2897_v37  ;;  %v2869_v37 = vmul.f32 %v8707_v4, %v14743_v38 }
 0xcb1   : > { %3077 = vmatprep.mubr.bf16.mxu1 %v2900_v7 }
 0xcb2   : > { %5306 = vrot.lane.b32.xlu0 %v14698_v50, %s9314_s27  ;;  %v2905_v36 = vpack.c.bf16 %v2869_v37, %v2866_v49  ;;  %v14751_v49 = vld [vmem:[#allocation51_spill] sm:$0xff] }
 0xcb3   : > { %5318 = vrot.lane.b32.xlu1 %v14725_v51, %s9314_s27 }
 0xcb6   : > { %4216 = vrot.lane.b32.xlu0 %v14723_v55, %s9313_s26 }
 0xcb7   : > { %5300 = vrot.lane.b32.xlu1 %v14728_v19, %s9314_s27 }
 0xcb8   : > { %3078 = vmatmul.mubr.bf16.gmra.mxu1 %v2899_v18 }
 0xcb9   : > { %3085 = vmatprep.mubr.bf16.mxu1 %v2902_v24 }
 0xcba   : > { %5320 = vrot.lane.b32.xlu0 %v14722_v15, %s9314_s27 }
 0xcbb   : > { %4222 = vrot.lane.b32.xlu1 %v14720_v53, %s9313_s26 }
 0xcbe   : > { %5302 = vrot.lane.b32.xlu0 %v14729_v58, %s9314_s27 }
 0xcbf   : > { %5314 = vrot.lane.b32.xlu1 %v14718_v5, %s9314_s27 }
 0xcc0   : > { %3086 = vmatmul.mubr.bf16.gmra.mxu1 %v2901_v14  ;;  %v14746_v14 = vld [vmem:[#allocation30_spill] sm:$0xff] }
 0xcc1   : > { %3093 = vmatprep.mubr.bf16.mxu1 %v2904_v2 }
 0xcc2   : > { %4220 = vrot.lane.b32.xlu0 %v14717_v31, %s9313_s26 }
 0xcc3   : > { %5270 = vrot.lane.b32.xlu1 %v14729_v58, %s9315_s28 }
 0xcc6   : > { %5316 = vrot.lane.b32.xlu0 %v14713_v9, %s9314_s27 }
 0xcc7   : > { %5274 = vrot.lane.b32.xlu1 %v14698_v50, %s9315_s28  ;;  %v2777_v63 = vpop.xlane.xlu1 %2776 }
 0xcc8   : > { %3094 = vmatmul.mubr.bf16.gmra.mxu1 %v2903_v21  ;;  %8710 = vrcp.f32 %v2777_v63 }
 0xcc9   : > { %3101 = vmatprep.mubr.bf16.mxu1 %v2906_v28 }
 0xcca   : > { %5298 = vrot.lane.b32.xlu0 %v14730_v11, %s9314_s27 }
 0xccb   : > { %5278 = vrot.lane.b32.xlu1 %v14715_v27, %s9315_s28  ;;  %v11181_v7 = vpop.permute.xlu1 %3132 }
 0xccd   : > { %v2780_v41 = vpop.xlane.xlu0 %2779 }
 0xcce   : > { %8712 = vrcp.f32 %v2780_v41  ;;  %5266 = vrot.lane.b32.xlu0 %v14730_v11, %s9315_s28 }
 0xccf   : > { %5282 = vrot.lane.b32.xlu1 %v14718_v5, %s9315_s28  ;;  %v4239_v30 = vpop.permute.xlu1 %4238 }
 0xcd0   : > { %3102 = vmatmul.mubr.bf16.gmra.mxu1 %v2905_v36  ;;  %v4326_v48 = vsel %vm2107_vm11, %v4239_v30, 0 }
 0xcd1   : > { %v11188_v20 = vpop.permute.xlu0 %3130 }
 0xcd2   : > { %5268 = vrot.lane.b32.xlu0 %v14728_v19, %s9315_s28 }
 0xcd3   : > { %5286 = vrot.lane.b32.xlu1 %v14725_v51, %s9315_s28  ;;  %v11194_v1 = vpop.permute.xlu1 %3136 }
 0xcd5   : > { %v11196_v45 = vpop.permute.xlu0 %3134  ;;  %v8711_v33 = vpop.eup %8710 }
 0xcd6   : > { %5272 = vrot.lane.b32.xlu0 %v14726_v46, %s9315_s28  ;;  %v2873_v24 = vmul.f32 %v8711_v33, %v10968_v29  ;;  %v2872_v59 = vmul.f32 %v8711_v33, %v10966_v60  ;;  %v14745_v60 = vld [vmem:[#allocation35_spill] sm:$0xff] }
 0xcd7   : > { %4013 = vrot.lane.b32.xlu1 %v14720_v53, %s9316_s15  ;;  %v4253_v56 = vpop.permute.xlu1 %4252 }
 0xcd9   : > { %v4255_v42 = vpop.permute.xlu0 %4254 }
 0xcda   : > { %5276 = vrot.lane.b32.xlu0 %v14695_v57, %s9315_s28  ;;  %8364 = vmatprep.subr.msk.bf16.mxu1 %vm2107_vm11, %v4255_v42 }
 0xcdb   : > { %v8713_v35 = vpop.eup %8712  ;;  %5290 = vrot.lane.b32.xlu1 %v14723_v55, %s9315_s28  ;;  %v4235_v18 = vpop.permute.xlu1 %4234 }
 0xcdc   : > { %v2876_v8 = vmul.f32 %v8713_v35, %v10982_v22  ;;  %v2875_v47 = vmul.f32 %v8713_v35, %v10980_v6  ;;  %v4320_v38 = vsel %vm2107_vm11, %v4235_v18, 0 }
 0xcdd   : > { %v4237_v39 = vpop.permute.xlu0 %4236 }
 0xcde   : > { %5280 = vrot.lane.b32.xlu0 %v14710_v13, %s9315_s28  ;;  %v2908_v26 = vpack.c.bf16 %v2876_v8, %v2873_v24  ;;  %v2907_v62 = vpack.c.bf16 %v2875_v47, %v2872_v59  ;;  %v4323_v17 = vsel %vm2107_vm11, %v4237_v39, 0 }
 0xcdf   : > { %3993 = vrot.lane.b32.xlu1 %v14695_v57, %s9316_s15  ;;  %v11215_v0 = vpop.permute.xlu1 %3140 }
 0xce0   : > { %3109 = vmatprep.mubr.bf16.mxu1 %v2908_v26 }
 0xce1   : > { %3110 = vmatmul.mubr.bf16.gmra.mxu1 %v2907_v62  ;;  %v11217_v29 = vpop.permute.xlu0 %3138 }
 0xce2   : > { %5284 = vrot.lane.b32.xlu0 %v14713_v9, %s9315_s28  ;;  %7742 = vmatprep.mubr.msk.bf16.mxu1 %vm2107_vm11, %v14745_v60 }
 0xce3   : > { %3989 = vrot.lane.b32.xlu1 %v14726_v46, %s9316_s15  ;;  %v4249_v6 = vpop.permute.xlu1 %4248 }
 0xce5   : > { %v4251_v22 = vpop.permute.xlu0 %4250 }
 0xce6   : > { %5288 = vrot.lane.b32.xlu0 %v14722_v15, %s9315_s28 }
 0xce7   : > { %3985 = vrot.lane.b32.xlu1 %v14728_v19, %s9316_s15  ;;  %v11229_v25 = vpop.permute.xlu1 %4230 }
 0xce9   : > { %7743 = vmatmul.mubr.msk.bf16.vlgmr.msra.gmra.mxu1 %vm2107_vm11, %v14745_v60  ;;  %v4233_v52 = vpop.permute.xlu0 %4232 }
 0xcea   : > { %7887 = vmatpush3.bf16.xpose.msra.mxu1 %v4326_v48  ;;  %3997 = vrot.lane.b32.xlu0 %v14710_v13, %s9316_s15  ;;  %v4317_v18 = vsel %vm2107_vm11, %v4233_v52, 0 }
 0xceb   : > { %7744 = vmatprep.mubr.msk.bf16.mxu1 %vm2107_vm11, %v14746_v14  ;;  %8365 = vmatprep.subr.msk.bf16.mxu1 %vm2107_vm11, %v4253_v56  ;;  %v11239_v2 = vpop.permute.xlu1 %3144 }
 0xcec   : > { %3983 = vrot.lane.b32.xlu1 %v14730_v11, %s9316_s15 }
 0xced   : > { %v11243_v4 = vpop.permute.xlu0 %3142 }
 0xcee   : > { %4011 = vrot.lane.b32.xlu0 %v14717_v31, %s9316_s15 }
 0xcef   : > { %v11247_v54 = vpop.permute.xlu1 %4244 }
 0xcf0   : > { %5087 = vrot.lane.b32.xlu1 %v14720_v53, %s9317_s16 }
 0xcf1   : > { %7745 = vmatmul.mubr.msk.bf16.gmra.mxu1 %vm2107_vm11, %v14746_v14  ;;  %v4247_v43 = vpop.permute.xlu0 %4246  ;;  %v7630_v23 = vpop.f32.mrf.mxu1 }
 0xcf2   : > { %7889 = vmatpush3.bf16.xpose.msra.mxu1 %v4323_v17  ;;  %3995 = vrot.lane.b32.xlu0 %v14715_v27, %s9316_s15 }
 0xcf3   : > { %7746 = vmatprep.mubr.msk.bf16.mxu1 %vm2107_vm11, %v14747_v44  ;;  %8366 = vmatprep.subr.msk.bf16.mxu1 %vm2107_vm11, %v4251_v22  ;;  %v11259_v3 = vpop.permute.xlu1 %4226  ;;  %v7631_v16 = vpop.f32.mrf.mxu1  ;;  %v4314_v22 = vsel %vm2107_vm11, %v11229_v25, 0 }
 0xcf4   : > { %5085 = vrot.lane.b32.xlu1 %v14717_v31, %s9317_s16  ;;  %v11263_v34 = vadd.f32 %v7631_v16, %v7630_v23 }
 0xcf5   : > { %v4229_v61 = vpop.permute.xlu0 %4228  ;;  %v11265_v21 = vpop.f32.mrf.mxu1 }
 0xcf6   : > { %14748 = vst [vmem:[#allocation10_spill] sm:$0xff] %v11263_v34  ;;  %14749 = vst [vmem:[#allocation46_spill] sm:$0xff] %v11265_v21  ;;  %4009 = vrot.lane.b32.xlu0 %v14727_v40, %s9316_s15 }
 0xcf7   : > { %v11269_v63 = vpop.permute.xlu1 %3148  ;;  %v11271_v28 = vpop.f32.mrf.mxu1 }
 0xcf8   : > { %14750 = vst [vmem:[#allocation47_spill] sm:$0xff] %v11271_v28  ;;  %5069 = vrot.lane.b32.xlu1 %v14715_v27, %s9317_s16 }
 0xcf9   : > { %7747 = vmatmul.mubr.msk.bf16.gmra.mxu1 %vm2107_vm11, %v14747_v44  ;;  %v11278_v37 = vpop.permute.xlu0 %3146  ;;  %v7636_v32 = vpop.f32.mrf.mxu1 }
 0xcfa   : > { %7891 = vmatpush3.bf16.xpose.msra.mxu1 %v4320_v38  ;;  %5292 = vrot.lane.b32.xlu0 %v14727_v40, %s9315_s28 }
 0xcfb   : > { %7748 = vmatprep.mubr.msk.bf16.mxu1 %vm2107_vm11, %v14751_v49  ;;  %8367 = vmatprep.subr.msk.bf16.mxu1 %vm2107_vm11, %v4249_v6  ;;  %v11285_v41 = vpop.permute.xlu1 %4240  ;;  %v7637_v36 = vpop.f32.mrf.mxu1 }
 0xcfc   : > { %5083 = vrot.lane.b32.xlu1 %v14727_v40, %s9317_s16  ;;  %v11289_v30 = vadd.f32 %v7637_v36, %v7636_v32 }
 0xcfd   : > { %v4243_v56 = vpop.permute.xlu0 %4242  ;;  %v11291_v33 = vpop.f32.mrf.mxu1 }
 0xcfe   : > { %14752 = vst [vmem:[#allocation12_spill] sm:$0xff] %v11289_v30  ;;  %14753 = vst [vmem:[#allocation48_spill] sm:$0xff] %v11291_v33  ;;  %4007 = vrot.lane.b32.xlu0 %v14723_v55, %s9316_s15 }
 0xcff   : > { %v11295_v42 = vpop.permute.xlu1 %4194  ;;  %v11297_v35 = vpop.f32.mrf.mxu1 }
 0xd00   : > { %14754 = vst [vmem:[#allocation19_spill] sm:$0xff] %v11297_v35  ;;  %5081 = vrot.lane.b32.xlu1 %v14723_v55, %s9317_s16 }
 0xd01   : > { %7749 = vmatmul.mubr.msk.bf16.gmra.mxu1 %vm2107_vm11, %v14751_v49  ;;  %v11304_v24 = vpop.permute.xlu0 %4224  ;;  %v7642_v8 = vpop.f32.mrf.mxu1 }
 0xd02   : > { %7893 = vmatpush3.bf16.xpose.msra.mxu1 %v4317_v18  ;;  %3991 = vrot.lane.b32.xlu0 %v14698_v50, %s9316_s15 }
 0xd03   : > { %7750 = vmatprep.mubr.msk.bf16.mxu1 %vm2107_vm11, %v11174_v12  ;;  %8368 = vmatprep.subr.msk.bf16.mxu1 %vm2107_vm11, %v4247_v43  ;;  %v11311_v59 = vpop.permute.xlu1 %4198  ;;  %v7643_v47 = vpop.f32.mrf.mxu1 }
 0xd04   : > { %5065 = vrot.lane.b32.xlu1 %v14698_v50, %s9317_s16  ;;  %v11315_v39 = vadd.f32 %v7643_v47, %v7642_v8  ;;  %v4305_v47 = vsel %vm2107_vm11, %v11304_v24, 0 }
 0xd05   : > { %v11317_v26 = vpop.permute.xlu0 %4192  ;;  %v11319_v62 = vpop.f32.mrf.mxu1 }
 0xd06   : > { %14755 = vst [vmem:[#allocation26_spill] sm:$0xff] %v11315_v39  ;;  %14756 = vst [vmem:[#allocation20_spill] sm:$0xff] %v11319_v62  ;;  %4005 = vrot.lane.b32.xlu0 %v14722_v15, %s9316_s15 }
 0xd07   : > { %v11323_v60 = vpop.permute.xlu1 %4202  ;;  %v11325_v6 = vpop.f32.mrf.mxu1 }
 0xd08   : > { %14757 = vst [vmem:[#allocation29_spill] sm:$0xff] %v11325_v6  ;;  %5079 = vrot.lane.b32.xlu1 %v14722_v15, %s9317_s16 }
 0xd09   : > { %7751 = vmatmul.mubr.msk.bf16.gmra.mxu1 %vm2107_vm11, %v11174_v12  ;;  %v11333_v48 = vpop.permute.xlu0 %4196  ;;  %v7648_v52 = vpop.f32.mrf.mxu1 }
 0xd0a   : > { %7895 = vmatpush3.bf16.xpose.msra.mxu1 %v4314_v22  ;;  %5294 = vrot.lane.b32.xlu0 %v14717_v31, %s9315_s28 }
 0xd0b   : > { %7752 = vmatprep.mubr.msk.bf16.mxu1 %vm2107_vm11, %v11163_v10  ;;  %8369 = vmatprep.subr.msk.bf16.mxu1 %vm2107_vm11, %v11247_v54  ;;  %v11341_v14 = vpop.permute.xlu1 %4206  ;;  %v7649_v17 = vpop.f32.mrf.mxu1  ;;  %v4311_v54 = vsel %vm2107_vm11, %v4229_v61, 0 }
 0xd0c   : > { %5077 = vrot.lane.b32.xlu1 %v14725_v51, %s9317_s16  ;;  %v11345_v12 = vadd.f32 %v7649_v17, %v7648_v52 }
 0xd0d   : > { %v11347_v25 = vpop.permute.xlu0 %4200  ;;  %v11349_v43 = vpop.f32.mrf.mxu1 }
 0xd0e   : > { %14758 = vst [vmem:[#allocation21_spill] sm:$0xff] %v11345_v12  ;;  %14759 = vst [vmem:[#allocation31_spill] sm:$0xff] %v11349_v43  ;;  %4003 = vrot.lane.b32.xlu0 %v14725_v51, %s9316_s15 }
 0xd0f   : > { %v11353_v23 = vpop.permute.xlu1 %5312  ;;  %v11355_v44 = vpop.f32.mrf.mxu1 }
 0xd10   : > { %14760 = vst [vmem:[#allocation22_spill] sm:$0xff] %v11355_v44  ;;  %5061 = vrot.lane.b32.xlu1 %v14729_v58, %s9317_s16 }
 0xd11   : > { %7753 = vmatmul.mubr.msk.bf16.gmra.mxu1 %vm2107_vm11, %v11163_v10  ;;  %v11362_v16 = vpop.permute.xlu0 %4204  ;;  %v7654_v38 = vpop.f32.mrf.mxu1 }
 0xd12   : > { %7897 = vmatpush3.bf16.xpose.msra.mxu1 %v4311_v54  ;;  %3987 = vrot.lane.b32.xlu0 %v14729_v58, %s9316_s15 }
 0xd13   : > { %7754 = vmatprep.mubr.msk.bf16.mxu1 %vm2107_vm11, %v11188_v20  ;;  %8370 = vmatprep.subr.msk.bf16.mxu1 %vm2107_vm11, %v4243_v56  ;;  %v11369_v32 = vpop.permute.xlu1 %4210  ;;  %v7655_v49 = vpop.f32.mrf.mxu1  ;;  %v4308_v56 = vsel %vm2107_vm11, %v11259_v3, 0 }
 0xd14   : > { %5075 = vrot.lane.b32.xlu1 %v14713_v9, %s9317_s16  ;;  %v11373_v61 = vadd.f32 %v7655_v49, %v7654_v38 }
 0xd15   : > { %v11375_v10 = vpop.permute.xlu0 %4208 }
 0xd16   : > { %14761 = vst [vmem:[#allocation32_spill] sm:$0xff] %v11373_v61  ;;  %4001 = vrot.lane.b32.xlu0 %v14713_v9, %s9316_s15 }
 0xd17   : > { %v11379_v36 = vpop.permute.xlu1 %5326 }
 0xd18   : > { %5073 = vrot.lane.b32.xlu1 %v14718_v5, %s9317_s16 }
 0xd19   : > { %7755 = vmatmul.mubr.msk.bf16.gmra.mxu1 %vm2107_vm11, %v11188_v20  ;;  %v5329_v18 = vpop.permute.xlu0 %5328 }
 0xd1a   : > { %7899 = vmatpush3.bf16.xpose.msra.mxu1 %v4308_v56  ;;  %5296 = vrot.lane.b32.xlu0 %v14720_v53, %s9315_s28 }
 0xd1b   : > { %7756 = vmatprep.mubr.msk.bf16.mxu1 %vm2107_vm11, %v11181_v7  ;;  %8371 = vmatprep.subr.msk.bf16.mxu1 %vm2107_vm11, %v11285_v41  ;;  %v11393_v8 = vpop.permute.xlu1 %5308 }
 0xd1c   : > { %5057 = vrot.lane.b32.xlu1 %v14730_v11, %s9317_s16 }
 0xd1d   : > { %v11397_v3 = vpop.permute.xlu0 %5310 }
 0xd1e   : > { %3999 = vrot.lane.b32.xlu0 %v14718_v5, %s9316_s15 }
 0xd1f   : > { %v11401_v20 = vpop.permute.xlu1 %4214 }
 0xd20   : > { %6161 = vrot.lane.b32.xlu1 %v14720_v53, %s9318_s22 }
 0xd21   : > { %7757 = vmatmul.mubr.msk.bf16.gmra.mxu1 %vm2107_vm11, %v11181_v7  ;;  %v11409_v41 = vpop.permute.xlu0 %4212 }
 0xd22   : > { %7901 = vmatpush3.bf16.xpose.msra.mxu1 %v4305_v47  ;;  %7758 = vmatprep.mubr.msk.bf16.mxu1 %vm2107_vm11, %v11196_v45 }
 0xd23   : > { %5071 = vrot.lane.b32.xlu0 %v14710_v13, %s9317_s16  ;;  %8372 = vmatprep.subr.msk.bf16.mxu1 %vm2107_vm11, %v5329_v18  ;;  %v11416_v22 = vpop.permute.xlu1 %5322 }
 0xd24   : > { %6159 = vrot.lane.b32.xlu1 %v14717_v31, %s9318_s22 }
 0xd25   : > { %v11420_v53 = vpop.permute.xlu0 %5324 }
 0xd27   : > { %5067 = vrot.lane.b32.xlu0 %v14695_v57, %s9317_s16  ;;  %v11424_v7 = vpop.permute.xlu1 %5304 }
 0xd28   : > { %6143 = vrot.lane.b32.xlu1 %v14715_v27, %s9318_s22 }
 0xd29   : > { %7759 = vmatmul.mubr.msk.bf16.gmra.mxu1 %vm2107_vm11, %v11196_v45  ;;  %v11430_v24 = vpop.permute.xlu0 %5306 }
 0xd2a   : > { %7760 = vmatprep.mubr.msk.bf16.mxu1 %vm2107_vm11, %v11194_v1 }
 0xd2b   : > { %5063 = vrot.lane.b32.xlu0 %v14726_v46, %s9317_s16  ;;  %v11436_v31 = vpop.permute.xlu1 %4218 }
 0xd2c   : > { %6157 = vrot.lane.b32.xlu1 %v14727_v40, %s9318_s22 }
 0xd2d   : > { %v11440_v52 = vpop.permute.xlu0 %4216 }
 0xd2f   : > { %5059 = vrot.lane.b32.xlu0 %v14728_v19, %s9317_s16  ;;  %v11444_v27 = vpop.permute.xlu1 %5318 }
 0xd30   : > { %6155 = vrot.lane.b32.xlu1 %v14723_v55, %s9318_s22 }
 0xd31   : > { %7761 = vmatmul.mubr.msk.bf16.gmra.mxu1 %vm2107_vm11, %v11194_v1  ;;  %v11450_v45 = vpop.permute.xlu0 %5320 }
 0xd32   : > { %7762 = vmatprep.mubr.msk.bf16.mxu1 %vm2107_vm11, %v11217_v29 }
 0xd33   : > { %6145 = vrot.lane.b32.xlu0 %v14710_v13, %s9318_s22  ;;  %v11456_v40 = vpop.permute.xlu1 %5300 }
 0xd34   : > { %6139 = vrot.lane.b32.xlu1 %v14698_v50, %s9318_s22 }
 0xd35   : > { %v11460_v17 = vpop.permute.xlu0 %5302 }
 0xd37   : > { %6141 = vrot.lane.b32.xlu0 %v14695_v57, %s9318_s22  ;;  %v11464_v55 = vpop.permute.xlu1 %4222 }
 0xd38   : > { %6153 = vrot.lane.b32.xlu1 %v14722_v15, %s9318_s22 }
 0xd39   : > { %7763 = vmatmul.mubr.msk.bf16.gmra.mxu1 %vm2107_vm11, %v11217_v29  ;;  %v11470_v1 = vpop.permute.xlu0 %4220  ;;  %v11490_v29 = vpop.f32.mrf.mxu1 }
 0xd3a   : > { %7764 = vmatprep.mubr.msk.bf16.mxu1 %vm2107_vm11, %v11215_v0  ;;  %14762 = vst [vmem:[#allocation49_spill] sm:$0xff] %v11490_v29 }
 0xd3b   : > { %6137 = vrot.lane.b32.xlu0 %v14726_v46, %s9318_s22  ;;  %v11476_v50 = vpop.permute.xlu1 %5314  ;;  %v11500_v54 = vpop.f32.mrf.mxu1 }
 0xd3c   : > { %6151 = vrot.lane.b32.xlu1 %v14725_v51, %s9318_s22  ;;  %14763 = vst [vmem:[#allocation50_spill] sm:$0xff] %v11500_v54 }
 0xd3d   : > { %v11480_v57 = vpop.permute.xlu0 %5316 }
 0xd3f   : > { %v11482_v13 = vpop.permute.xlu1 %5270 }
 0xd40   : > { %6135 = vrot.lane.b32.xlu1 %v14729_v58, %s9318_s22 }
 0xd41   : > { %7765 = vmatmul.mubr.msk.bf16.gmra.mxu1 %vm2107_vm11, %v11215_v0  ;;  %v11488_v15 = vpop.permute.xlu0 %5298 }
 0xd42   : > { %7766 = vmatprep.mubr.msk.bf16.mxu1 %vm2107_vm11, %v11243_v4 }
 0xd43   : > { %v11494_v46 = vpop.permute.xlu1 %5274 }
 0xd44   : > { %6149 = vrot.lane.b32.xlu1 %v14713_v9, %s9318_s22 }
 0xd45   : > { %v11498_v51 = vpop.permute.xlu0 %5266 }
 0xd47   : > { %v11502_v58 = vpop.permute.xlu1 %5278 }
 0xd48   : > { %v7660_v38 = vpop.f32.mrf.mxu1 }
 0xd49   : > { %7767 = vmatmul.mubr.msk.bf16.gmra.mxu1 %vm2107_vm11, %v11243_v4  ;;  %v11506_v0 = vpop.permute.xlu0 %5268 }
 0xd4a   : > { %v7661_v49 = vpop.f32.mrf.mxu1  ;;  %7768 = vmatprep.mubr.msk.bf16.mxu1 %vm2107_vm11, %v11239_v2 }
 0xd4b   : > { %v11510_v56 = vadd.f32 %v7661_v49, %v7660_v38  ;;  %v11512_v18 = vpop.permute.xlu1 %5282 }
 0xd4c   : > { %v7663_v9 = vpop.f32.mrf.mxu1 }
 0xd4d   : > { %14764 = vst [vmem:[#allocation5_spill] sm:$0xff] %v11510_v56  ;;  %v11514_v47 = vpop.permute.xlu0 %5272 }
 0xd4e   : > { %v7664_v54 = vpop.f32.mrf.mxu1 }
 0xd4f   : > { %v11516_v29 = vadd.f32 %v7664_v54, %v7663_v9  ;;  %v11518_v61 = vpop.permute.xlu1 %5286 }
 0xd50   : > { %v7666_v44 = vpop.f32.mrf.mxu1 }
 0xd51   : > { %14765 = vst [vmem:[#allocation23_spill] sm:$0xff] %v11516_v29  ;;  %7769 = vmatmul.mubr.msk.bf16.gmra.mxu1 %vm2107_vm11, %v11239_v2  ;;  %v11522_v4 = vpop.permute.xlu0 %5276 }
 0xd52   : > { %v7667_v43 = vpop.f32.mrf.mxu1  ;;  %7770 = vmatprep.mubr.msk.bf16.mxu1 %vm2107_vm11, %v11278_v37 }
 0xd53   : > { %v11526_v38 = vadd.f32 %v7667_v43, %v7666_v44  ;;  %v4014_v49 = vpop.permute.xlu1 %4013 }
 0xd54   : > { %v7669_v12 = vpop.f32.mrf.mxu1  ;;  %7774 = vmatprep.subr.bf16.mxu0 %v4014_v49 }
 0xd55   : > { %14766 = vst [vmem:[#allocation25_spill] sm:$0xff] %v11526_v38  ;;  %v11528_v56 = vpop.permute.xlu0 %5280 }
 0xd56   : > { %v7670_v54 = vpop.f32.mrf.mxu1 }
 0xd57   : > { %v11530_v9 = vadd.f32 %v7670_v54, %v7669_v12 }
 0xd58   : > { %v7672_v29 = vpop.f32.mrf.mxu1 }
 0xd59   : > { %14767 = vst [vmem:[#allocation16_spill] sm:$0xff] %v11530_v9  ;;  %7771 = vmatmul.mubr.msk.bf16.gmra.mxu1 %vm2107_vm11, %v11278_v37  ;;  %v11534_v2 = vpop.permute.xlu0 %5284 }
 0xd5a   : > { %v7673_v6 = vpop.f32.mrf.mxu1  ;;  %7772 = vmatprep.mubr.msk.bf16.mxu1 %vm2107_vm11, %v11269_v63 }
 0xd5b   : > { %v11538_v43 = vadd.f32 %v7673_v6, %v7672_v29 }
 0xd5c   : > { %v7675_v44 = vpop.f32.mrf.mxu1 }
 0xd5d   : > { %14768 = vst [vmem:[#allocation24_spill] sm:$0xff] %v11538_v43  ;;  %v11540_v38 = vpop.permute.xlu0 %5288 }
 0xd5e   : > { %v7676_v49 = vpop.f32.mrf.mxu1 }
 0xd5f   : > { %v11542_v62 = vadd.f32 %v7676_v49, %v7675_v44  ;;  %v11552_v44 = vpop.permute.xlu1 %5290 }
 0xd60   : > { %v7678_v12 = vpop.f32.mrf.mxu1 }
 0xd61   : > { %14769 = vst [vmem:[#allocation6_spill] sm:$0xff] %v11542_v62  ;;  %7773 = vmatmul.mubr.msk.bf16.gmra.mxu1 %vm2107_vm11, %v11269_v63  ;;  %v3998_v54 = vpop.permute.xlu0 %3997  ;;  %v5400_v63 = vsel %vm2107_vm11, %v11353_v23, 0 }
 0xd62   : > { %v7679_v37 = vpop.f32.mrf.mxu1  ;;  %7775 = vmatpush3.bf16.msra.mxu0 %v3998_v54  ;;  %7902 = vmatprep.mubr.msk.bf16.mxu1 %vm2107_vm11, %v11317_v26 }
 0xd63   : > { %v11548_v9 = vadd.f32 %v7679_v37, %v7678_v12 }
 0xd64   : > { %v7681_v6 = vpop.f32.mrf.mxu1 }
 0xd65   : > { %14770 = vst [vmem:[#allocation27_spill] sm:$0xff] %v11548_v9  ;;  %v4012_v29 = vpop.permute.xlu0 %4011 }
 0xd66   : > { %v7682_v43 = vpop.f32.mrf.mxu1  ;;  %7776 = vmatprep.subr.bf16.mxu0 %v4012_v29 }
 0xd67   : > { %v11550_v39 = vadd.f32 %v7682_v43, %v7681_v6  ;;  %v3994_v6 = vpop.permute.xlu1 %3993 }
 0xd68   : > { %v7684_v49 = vpop.f32.mrf.mxu1 }
 0xd69   : > { %14771 = vst [vmem:[#allocation7_spill] sm:$0xff] %v11550_v39  ;;  %7903 = vmatmul.mubr.msk.bf16.vlgmr.msra.gmra.mxu1 %vm2107_vm11, %v11317_v26  ;;  %v3996_v54 = vpop.permute.xlu0 %3995 }
 0xd6a   : > { %8047 = vmatpush3.bf16.xpose.msra.mxu1 %v5400_v63  ;;  %v7685_v62 = vpop.f32.mrf.mxu1  ;;  %7777 = vmatpush3.bf16.msra.mxu0 %v3996_v54  ;;  %v5397_v63 = vsel %vm2107_vm11, %v11397_v3, 0 }
 0xd6b   : > { %v11558_v12 = vadd.f32 %v7685_v62, %v7684_v49  ;;  %7904 = vmatprep.mubr.msk.bf16.mxu1 %vm2107_vm11, %v11295_v42  ;;  %8373 = vmatprep.subr.msk.bf16.mxu1 %vm2107_vm11, %v11379_v36 }
 0xd6c   : > { %v7687_v43 = vpop.f32.mrf.mxu1 }
 0xd6d   : > { %14772 = vst [vmem:[#allocation33_spill] sm:$0xff] %v11558_v12  ;;  %v4010_v37 = vpop.permute.xlu0 %4009 }
 0xd6e   : > { %v7688_v29 = vpop.f32.mrf.mxu1  ;;  %7778 = vmatprep.subr.bf16.mxu0 %v4010_v37 }
 0xd6f   : > { %v11564_v23 = vadd.f32 %v7688_v29, %v7687_v43  ;;  %7779 = vmatpush3.bf16.msra.mxu0 %v3994_v6 }
 0xd70   : > { %v7690_v26 = vpop.f32.mrf.mxu1 }
 0xd71   : > { %14773 = vst [vmem:[#allocation9_spill] sm:$0xff] %v11564_v23  ;;  %7905 = vmatmul.mubr.msk.bf16.gmra.mxu1 %vm2107_vm11, %v11295_v42  ;;  %v11570_v62 = vpop.permute.xlu0 %5292  ;;  %v5394_v42 = vsel %vm2107_vm11, %v11393_v8, 0 }
 0xd72   : > { %8049 = vmatpush3.bf16.xpose.msra.mxu1 %v5397_v63  ;;  %v7691_v49 = vpop.f32.mrf.mxu1  ;;  %7906 = vmatprep.mubr.msk.bf16.mxu1 %vm2107_vm11, %v11333_v48 }
 0xd73   : > { %v11574_v36 = vadd.f32 %v7691_v49, %v7690_v26  ;;  %8374 = vmatprep.subr.msk.bf16.mxu1 %vm2107_vm11, %v11420_v53 }
 0xd74   : > { %v7693_v54 = vpop.f32.mrf.mxu1 }
 0xd75   : > { %14774 = vst [vmem:[#allocation28_spill] sm:$0xff] %v11574_v36  ;;  %v4008_v43 = vpop.permute.xlu0 %4007 }
 0xd76   : > { %v7694_v37 = vpop.f32.mrf.mxu1  ;;  %7780 = vmatprep.subr.bf16.mxu0 %v4008_v43 }
 0xd77   : > { %v11578_v3 = vadd.f32 %v7694_v37, %v7693_v54  ;;  %v3990_v54 = vpop.permute.xlu1 %3989  ;;  %v5391_v37 = vsel %vm2107_vm11, %v11430_v24, 0 }
 0xd78   : > { %v7696_v6 = vpop.f32.mrf.mxu1 }
 0xd79   : > { %14775 = vst [vmem:[#allocation13_spill] sm:$0xff] %v11578_v3  ;;  %7907 = vmatmul.mubr.msk.bf16.gmra.mxu1 %vm2107_vm11, %v11333_v48  ;;  %v3992_v29 = vpop.permute.xlu0 %3991 }
 0xd7a   : > { %8051 = vmatpush3.bf16.xpose.msra.mxu1 %v5394_v42  ;;  %v7697_v26 = vpop.f32.mrf.mxu1  ;;  %7781 = vmatpush3.bf16.msra.mxu0 %v3992_v29 }
 0xd7b   : > { %v11584_v63 = vadd.f32 %v7697_v26, %v7696_v6  ;;  %7908 = vmatprep.mubr.msk.bf16.mxu1 %vm2107_vm11, %v11311_v59  ;;  %8375 = vmatprep.subr.msk.bf16.mxu1 %vm2107_vm11, %v11416_v22 }
 0xd7c   : > { %v7699_v53 = vpop.f32.mrf.mxu1 }
 0xd7d   : > { %14776 = vst [vmem:[#allocation11_spill] sm:$0xff] %v11584_v63  ;;  %v4006_v49 = vpop.permute.xlu0 %4005 }
 0xd7e   : > { %v7700_v43 = vpop.f32.mrf.mxu1  ;;  %7782 = vmatprep.subr.bf16.mxu0 %v4006_v49 }
 0xd7f   : > { %v11590_v8 = vadd.f32 %v7700_v43, %v7699_v53  ;;  %7783 = vmatpush3.bf16.msra.mxu0 %v3990_v54 }
 0xd80   : > { %v7702_v48 = vpop.f32.mrf.mxu1 }
 0xd81   : > { %14777 = vst [vmem:[#allocation34_spill] sm:$0xff] %v11590_v8  ;;  %7909 = vmatmul.mubr.msk.bf16.gmra.mxu1 %vm2107_vm11, %v11311_v59  ;;  %v11596_v6 = vpop.permute.xlu0 %5294  ;;  %v5388_v59 = vsel %vm2107_vm11, %v11424_v7, 0 }
 0xd82   : > { %8053 = vmatpush3.bf16.xpose.msra.mxu1 %v5391_v37  ;;  %v7703_v42 = vpop.f32.mrf.mxu1  ;;  %7910 = vmatprep.mubr.msk.bf16.mxu1 %vm2107_vm11, %v11347_v25 }
 0xd83   : > { %v11600_v22 = vadd.f32 %v7703_v42, %v7702_v48  ;;  %8376 = vmatprep.subr.msk.bf16.mxu1 %vm2107_vm11, %v11450_v45  ;;  %v3986_v48 = vpop.permute.xlu1 %3985 }
 0xd84   : > { %v7705_v29 = vpop.f32.mrf.mxu1 }
 0xd85   : > { %14778 = vst [vmem:[#allocation15_spill] sm:$0xff] %v11600_v22  ;;  %v4004_v26 = vpop.permute.xlu0 %4003 }
 0xd86   : > { %v7706_v53 = vpop.f32.mrf.mxu1  ;;  %7784 = vmatprep.subr.bf16.mxu0 %v4004_v26  ;;  %v5385_v26 = vsel %vm2107_vm11, %v11460_v17, 0 }
 0xd87   : > { %v11604_v24 = vadd.f32 %v7706_v53, %v7705_v29  ;;  %v3984_v53 = vpop.permute.xlu1 %3983 }
 0xd88   : > { %v7708_v49 = vpop.f32.mrf.mxu1 }
 0xd89   : > { %14779 = vst [vmem:[#allocation14_spill] sm:$0xff] %v11604_v24  ;;  %7911 = vmatmul.mubr.msk.bf16.gmra.mxu1 %vm2107_vm11, %v11347_v25  ;;  %v3988_v54 = vpop.permute.xlu0 %3987 }
 0xd8a   : > { %8055 = vmatpush3.bf16.xpose.msra.mxu1 %v5388_v59  ;;  %v7709_v43 = vpop.f32.mrf.mxu1  ;;  %7785 = vmatpush3.bf16.msra.mxu0 %v3988_v54 }
 0xd8b   : > { %v11610_v37 = vadd.f32 %v7709_v43, %v7708_v49  ;;  %7912 = vmatprep.mubr.msk.bf16.mxu1 %vm2107_vm11, %v11323_v60  ;;  %8377 = vmatprep.subr.msk.bf16.mxu1 %vm2107_vm11, %v11444_v27  ;;  %v5088_v17 = vpop.permute.xlu1 %5087 }
 0xd8c   : > { %v7711_v45 = vpop.f32.mrf.mxu1 }
 0xd8d   : > { %14780 = vst [vmem:[#allocation8_spill] sm:$0xff] %v11610_v37  ;;  %v4002_v42 = vpop.permute.xlu0 %4001 }
 0xd8e   : > { %v7712_v29 = vpop.f32.mrf.mxu1  ;;  %7786 = vmatprep.subr.bf16.mxu0 %v4002_v42 }
 0xd8f   : > { %v11616_v7 = vadd.f32 %v7712_v29, %v7711_v45  ;;  %7787 = vmatpush3.bf16.msra.mxu0 %v3986_v48 }
 0xd90   : > { %v7714_v25 = vpop.f32.mrf.mxu1 }
 0xd91   : > { %14781 = vst [vmem:[#allocation4_spill] sm:$0xff] %v11616_v7  ;;  %7913 = vmatmul.mubr.msk.bf16.gmra.mxu1 %vm2107_vm11, %v11323_v60  ;;  %v11622_v49 = vpop.permute.xlu0 %5296  ;;  %v5382_v60 = vsel %vm2107_vm11, %v11456_v40, 0 }
 0xd92   : > { %8057 = vmatpush3.bf16.xpose.msra.mxu1 %v5385_v26  ;;  %v7715_v59 = vpop.f32.mrf.mxu1  ;;  %7914 = vmatprep.mubr.msk.bf16.mxu1 %vm2107_vm11, %v11362_v16 }
 0xd93   : > { %v11626_v27 = vadd.f32 %v7715_v59, %v7714_v25  ;;  %8378 = vmatprep.subr.msk.bf16.mxu1 %vm2107_vm11, %v11480_v57  ;;  %v5379_v57 = vsel %vm2107_vm11, %v11488_v15, 0 }
 0xd94   : > { %v7717_v54 = vpop.f32.mrf.mxu1 }
 0xd95   : > { %14782 = vst [vmem:[#allocation39_spill] sm:$0xff] %v11626_v27  ;;  %v4000_v43 = vpop.permute.xlu0 %3999 }
 0xd96   : > { %v7718_v48 = vpop.f32.mrf.mxu1  ;;  %7788 = vmatprep.subr.bf16.mxu0 %v4000_v43 }
 0xd97   : > { %v11630_v45 = vadd.f32 %v7718_v48, %v7717_v54  ;;  %7789 = vmatpush3.bf16.msra.mxu0 %v3984_v53 }
 0xd98   : > { %7934 = vmatprep.subr.bf16.mxu0 %v5088_v17 }
 0xd99   : > { %14783 = vst [vmem:[#allocation41_spill] sm:$0xff] %v11630_v45  ;;  %7915 = vmatmul.mubr.msk.bf16.gmra.mxu1 %vm2107_vm11, %v11362_v16 }
 0xd9a   : > { %8059 = vmatpush3.bf16.xpose.msra.mxu1 %v5382_v60  ;;  %7916 = vmatprep.mubr.msk.bf16.mxu1 %vm2107_vm11, %v11341_v14 }
 0xd9b   : > { %8379 = vmatprep.subr.msk.bf16.mxu1 %vm2107_vm11, %v11476_v50 }
 0xda1   : > { %v7720_v42 = vpop.f32.mrf.mxu1  ;;  %7917 = vmatmul.mubr.msk.bf16.gmra.mxu1 %vm2107_vm11, %v11341_v14 }
 0xda2   : > { %8061 = vmatpush3.bf16.xpose.msra.mxu1 %v5379_v57  ;;  %7918 = vmatprep.mubr.msk.bf16.mxu1 %vm2107_vm11, %v11375_v10 }
 0xda3   : > { %v7721_v40 = vpop.f32.mrf.mxu1 }
 0xda4   : > { %v11646_v16 = vadd.f32 %v7721_v40, %v7720_v42 }
 0xda5   : > { %v7723_v29 = vpop.f32.mrf.mxu1 }
 0xda6   : > { %14784 = vst [vmem:[#allocation36_spill] sm:$0xff] %v11646_v16 }
 0xda7   : > { %v7724_v25 = vpop.f32.mrf.mxu1 }
 0xda8   : > { %v11648_v26 = vadd.f32 %v7724_v25, %v7723_v29 }
 0xda9   : > { %v11650_v53 = vpop.f32.mrf.mxu1  ;;  %7919 = vmatmul.mubr.msk.bf16.gmra.mxu1 %vm2107_vm11, %v11375_v10 }
 0xdaa   : > { %14785 = vst [vmem:[#allocation38_spill] sm:$0xff] %v11648_v26  ;;  %7920 = vmatprep.mubr.msk.bf16.mxu1 %vm2107_vm11, %v11369_v32 }
 0xdab   : > { %v11656_v14 = vpop.f32.mrf.mxu1 }
 0xdac   : > { %v3471_v50 = vmax.f32 %v11650_v53, %v11656_v14 }
 0xdad   : > { %v11660_v15 = vpop.f32.mrf.mxu1 }
 0xdae   : > { %3472 = vmax.xlane.f32.xlu1 %v3471_v50 }
 0xdaf   : > { %v11662_v59 = vpop.f32.mrf.mxu1 }
 0xdb0   : > { %v3474_v54 = vmax.f32 %v11660_v15, %v11662_v59 }
 0xdb1   : > { %v11666_v43 = vpop.f32.mrf.mxu1  ;;  %7921 = vmatmul.mubr.msk.bf16.gmra.mxu1 %vm2107_vm11, %v11369_v32  ;;  %v11688_v32 = vpop.permute.xlu1 %5085 }
 0xdb2   : > { %3475 = vmax.xlane.f32.xlu0 %v3474_v54  ;;  %7922 = vmatprep.mubr.msk.bf16.mxu1 %vm2107_vm11, %v11409_v41  ;;  %14786 = vst [vmem:[#allocation44_spill] sm:$0xff] %v11688_v32 }
 0xdb3   : > { %v11672_v10 = vpop.f32.mrf.mxu1 }
 0xdb4   : > { %v3477_v48 = vmax.f32 %v11666_v43, %v11672_v10 }
 0xdb5   : > { %v11676_v17 = vpop.f32.mrf.mxu1 }
 0xdb6   : > { %3478 = vmax.xlane.f32.xlu1 %v3477_v48 }
 0xdb7   : > { %v11678_v60 = vpop.f32.mrf.mxu1 }
 0xdb8   : > { %v3480_v57 = vmax.f32 %v11676_v17, %v11678_v60 }
 0xdb9   : > { %v11682_v42 = vpop.f32.mrf.mxu1  ;;  %7923 = vmatmul.mubr.msk.bf16.gmra.mxu1 %vm2107_vm11, %v11409_v41  ;;  %v11700_v41 = vpop.permute.xlu1 %5069 }
 0xdba   : > { %3481 = vmax.xlane.f32.xlu1 %v3480_v57  ;;  %7924 = vmatprep.mubr.msk.bf16.mxu1 %vm2107_vm11, %v11401_v20  ;;  %14787 = vst [vmem:[#allocation54_spill] sm:$0xff] %v11700_v41 }
 0xdbb   : > { %v11690_v40 = vpop.f32.mrf.mxu1 }
 0xdbc   : > { %v3483_v29 = vmax.f32 %v11682_v42, %v11690_v40 }
 0xdbd   : > { %v11694_v25 = vpop.f32.mrf.mxu1  ;;  %v11714_v27 = vpop.permute.xlu1 %5083 }
 0xdbe   : > { %3484 = vmax.xlane.f32.xlu0 %v3483_v29  ;;  %14788 = vst [vmem:[#allocation37_spill] sm:$0xff] %v11714_v27 }
 0xdbf   : > { %v11696_v50 = vpop.f32.mrf.mxu1 }
 0xdc0   : > { %v3486_v54 = vmax.f32 %v11694_v25, %v11696_v50 }
 0xdc1   : > { %v11702_v48 = vpop.f32.mrf.mxu1  ;;  %7925 = vmatmul.mubr.msk.bf16.gmra.mxu1 %vm2107_vm11, %v11401_v20  ;;  %v11730_v7 = vpop.permute.xlu1 %5081 }
 0xdc2   : > { %3487 = vmax.xlane.f32.xlu1 %v3486_v54  ;;  %7926 = vmatprep.mubr.msk.bf16.mxu1 %vm2107_vm11, %v11440_v52  ;;  %14789 = vst [vmem:[#allocation43_spill] sm:$0xff] %v11730_v7 }
 0xdc3   : > { %v11708_v57 = vpop.f32.mrf.mxu1 }
 0xdc4   : > { %v3489_v29 = vmax.f32 %v11702_v48, %v11708_v57 }
 0xdc5   : > { %v11712_v45 = vpop.f32.mrf.mxu1 }
 0xdc6   : > { %3490 = vmax.xlane.f32.xlu1 %v3489_v29 }
 0xdc7   : > { %v11716_v16 = vpop.f32.mrf.mxu1 }
 0xdc8   : > { %v3492_v26 = vmax.f32 %v11712_v45, %v11716_v16 }
 0xdc9   : > { %v11720_v20 = vpop.f32.mrf.mxu1  ;;  %7927 = vmatmul.mubr.msk.bf16.gmra.mxu1 %vm2107_vm11, %v11440_v52 }
 0xdca   : > { %3493 = vmax.xlane.f32.xlu1 %v3492_v26  ;;  %7928 = vmatprep.mubr.msk.bf16.mxu1 %vm2107_vm11, %v11436_v31  ;;  %v11744_v26 = vpop.permute.xlu1 %5065 }
 0xdcb   : > { %v11726_v54 = vpop.f32.mrf.mxu1  ;;  %14790 = vst [vmem:[#allocation53_spill] sm:$0xff] %v11744_v26 }
 0xdcc   : > { %v3495_v29 = vmax.f32 %v11720_v20, %v11726_v54 }
 0xdcd   : > { %v11732_v24 = vpop.f32.mrf.mxu1 }
 0xdce   : > { %3496 = vmax.xlane.f32.xlu0 %v3495_v29 }
 0xdcf   : > { %v11734_v22 = vpop.f32.mrf.mxu1 }
 0xdd0   : > { %v3498_v8 = vmax.f32 %v11732_v24, %v11734_v22 }
 0xdd1   : > { %v11738_v52 = vpop.f32.mrf.mxu1  ;;  %7929 = vmatmul.mubr.msk.bf16.gmra.mxu1 %vm2107_vm11, %v11436_v31  ;;  %v11756_v31 = vpop.permute.xlu1 %5079 }
 0xdd2   : > { %3499 = vmax.xlane.f32.xlu1 %v3498_v8  ;;  %7930 = vmatprep.mubr.msk.bf16.mxu1 %vm2107_vm11, %v11470_v1  ;;  %14791 = vst [vmem:[#allocation56_spill] sm:$0xff] %v11756_v31 }
 0xdd3   : > { %v11746_v63 = vpop.f32.mrf.mxu1 }
 0xdd4   : > { %v3501_v29 = vmax.f32 %v11738_v52, %v11746_v63 }
 0xdd5   : > { %v11750_v37 = vpop.f32.mrf.mxu1  ;;  %v11770_v39 = vpop.permute.xlu1 %5077 }
 0xdd6   : > { %3502 = vmax.xlane.f32.xlu1 %v3501_v29  ;;  %14792 = vst [vmem:[#allocation40_spill] sm:$0xff] %v11770_v39 }
 0xdd7   : > { %v11752_v3 = vpop.f32.mrf.mxu1 }
 0xdd8   : > { %v3504_v36 = vmax.f32 %v11750_v37, %v11752_v3 }
 0xdd9   : > { %v11758_v8 = vpop.f32.mrf.mxu1  ;;  %7931 = vmatmul.mubr.msk.bf16.gmra.mxu1 %vm2107_vm11, %v11470_v1  ;;  %v11786_v33 = vpop.permute.xlu1 %5061 }
 0xdda   : > { %3505 = vmax.xlane.f32.xlu0 %v3504_v36  ;;  %7932 = vmatprep.mubr.msk.bf16.mxu1 %vm2107_vm11, %v11464_v55  ;;  %14793 = vst [vmem:[#allocation45_spill] sm:$0xff] %v11786_v33 }
 0xddb   : > { %v11764_v23 = vpop.f32.mrf.mxu1 }
 0xddc   : > { %v3507_v29 = vmax.f32 %v11758_v8, %v11764_v23 }
 0xddd   : > { %v11768_v12 = vpop.f32.mrf.mxu1 }
 0xdde   : > { %3508 = vmax.xlane.f32.xlu1 %v3507_v29 }
 0xddf   : > { %v11772_v9 = vpop.f32.mrf.mxu1 }
 0xde0   : > { %v3510_v35 = vmax.f32 %v11768_v12, %v11772_v9 }
 0xde1   : > { %v11776_v1 = vpop.f32.mrf.mxu1  ;;  %7933 = vmatmul.mubr.msk.bf16.gmra.mxu1 %vm2107_vm11, %v11464_v55 }
 0xde2   : > { %3511 = vmax.xlane.f32.xlu0 %v3510_v35  ;;  %8062 = vmatprep.mubr.msk.bf16.mxu1 %vm2107_vm11, %v11498_v51  ;;  %v11800_v35 = vpop.permute.xlu1 %5075 }
 0xde3   : > { %v11782_v36 = vpop.f32.mrf.mxu1  ;;  %14794 = vst [vmem:[#allocation55_spill] sm:$0xff] %v11800_v35 }
 0xde4   : > { %v3513_v29 = vmax.f32 %v11776_v1, %v11782_v36 }
 0xde5   : > { %v11788_v30 = vpop.f32.mrf.mxu1 }
 0xde6   : > { %3514 = vmax.xlane.f32.xlu1 %v3513_v29 }
 0xde7   : > { %v11790_v28 = vpop.f32.mrf.mxu1 }
 0xde8   : > { %v3516_v21 = vmax.f32 %v11788_v30, %v11790_v28 }
 0xde9   : > { %v11794_v55 = vpop.f32.mrf.mxu1  ;;  %8063 = vmatmul.mubr.msk.bf16.vlgmr.msra.gmra.mxu1 %vm2107_vm11, %v11498_v51  ;;  %v11812_v51 = vpop.permute.xlu1 %5073 }
 0xdea   : > { %3517 = vmax.xlane.f32.xlu0 %v3516_v21  ;;  %8064 = vmatprep.mubr.msk.bf16.mxu1 %vm2107_vm11, %v11506_v0  ;;  %14795 = vst [vmem:[#allocation42_spill] sm:$0xff] %v11812_v51 }
 0xdeb   : > { %v11802_v34 = vpop.f32.mrf.mxu1 }
 0xdec   : > { %v3519_v29 = vmax.f32 %v11794_v55, %v11802_v34 }
 0xded   : > { %v11806_v11 = vpop.f32.mrf.mxu1  ;;  %v11826_v39 = vpop.permute.xlu1 %5057 }
 0xdee   : > { %3520 = vmax.xlane.f32.xlu1 %v3519_v29  ;;  %14796 = vst [vmem:[#allocation35_spill] sm:$0xff] %v11826_v39 }
 0xdef   : > { %v11808_v19 = vpop.f32.mrf.mxu1 }
 0xdf0   : > { %v3522_v5 = vmax.f32 %v11806_v11, %v11808_v19 }
 0xdf1   : > { %v11814_v21 = vpop.f32.mrf.mxu1  ;;  %8065 = vmatmul.mubr.msk.bf16.gmra.mxu1 %vm2107_vm11, %v11506_v0  ;;  %v11842_v39 = vpop.permute.xlu1 %6161 }
 0xdf2   : > { %3523 = vmax.xlane.f32.xlu0 %v3522_v5  ;;  %8066 = vmatprep.mubr.msk.bf16.mxu1 %vm2107_vm11, %v11482_v13  ;;  %14797 = vst [vmem:[#allocation30_spill] sm:$0xff] %v11842_v39 }
 0xdf3   : > { %v11820_v35 = vpop.f32.mrf.mxu1 }
 0xdf4   : > { %v3525_v29 = vmax.f32 %v11814_v21, %v11820_v35 }
 0xdf5   : > { %v11824_v33 = vpop.f32.mrf.mxu1 }
 0xdf6   : > { %3526 = vmax.xlane.f32.xlu1 %v3525_v29 }
 0xdf7   : > { %v11828_v51 = vpop.f32.mrf.mxu1 }
 0xdf8   : > { %v3528_v31 = vmax.f32 %v11824_v33, %v11828_v51 }
 0xdf9   : > { %v11832_v0 = vpop.f32.mrf.mxu1  ;;  %8067 = vmatmul.mubr.msk.bf16.gmra.mxu1 %vm2107_vm11, %v11482_v13 }
 0xdfa   : > { %3529 = vmax.xlane.f32.xlu0 %v3528_v31  ;;  %8068 = vmatprep.mubr.msk.bf16.mxu1 %vm2107_vm11, %v11514_v47  ;;  %v11856_v31 = vpop.permute.xlu1 %6159 }
 0xdfb   : > { %v11838_v5 = vpop.f32.mrf.mxu1  ;;  %14799 = vst [vmem:[#allocation51_spill] sm:$0xff] %v11856_v31 }
 0xdfc   : > { %v3531_v29 = vmax.f32 %v11832_v0, %v11838_v5 }
 0xdfd   : > { %v11844_v26 = vpop.f32.mrf.mxu1 }
 0xdfe   : > { %3532 = vmax.xlane.f32.xlu1 %v3531_v29 }
 0xdff   : > { %v11846_v7 = vpop.f32.mrf.mxu1 }
 0xe00   : > { %14798 = vst [vmem:[#allocation52_spill] sm:$0xff] %v11846_v7  ;;  %v3534_v27 = vmax.f32 %v11844_v26, %v11846_v7 }
 0xe01   : > { %v11850_v13 = vpop.f32.mrf.mxu1  ;;  %8069 = vmatmul.mubr.msk.bf16.gmra.mxu1 %vm2107_vm11, %v11514_v47  ;;  %v11868_v47 = vpop.permute.xlu1 %6143 }
 0xe02   : > { %3535 = vmax.xlane.f32.xlu0 %v3534_v27  ;;  %8070 = vmatprep.mubr.msk.bf16.mxu1 %vm2107_vm11, %v11494_v46  ;;  %14803 = vst [vmem:[#allocation60_spill] sm:$0xff] %v11868_v47 }
 0xe03   : > { %v11858_v39 = vpop.f32.mrf.mxu1 }
 0xe04   : > { %14800 = vst [vmem:[#allocation57_spill] sm:$0xff] %v11858_v39  ;;  %v3537_v29 = vmax.f32 %v11850_v13, %v11858_v39 }
 0xe05   : > { %v11862_v41 = vpop.f32.mrf.mxu1 }
 0xe06   : > { %14801 = vst [vmem:[#allocation58_spill] sm:$0xff] %v11862_v41  ;;  %3538 = vmax.xlane.f32.xlu1 %v3537_v29 }
 0xe07   : > { %v11864_v32 = vpop.f32.mrf.mxu1 }
 0xe08   : > { %14802 = vst [vmem:[#allocation59_spill] sm:$0xff] %v11864_v32  ;;  %v3540_v7 = vmax.f32 %v11862_v41, %v11864_v32  ;;  %v11882_v32 = vpop.permute.xlu1 %6157 }
 0xe09   : > { %v11870_v27 = vpop.f32.mrf.mxu1  ;;  %8071 = vmatmul.mubr.msk.bf16.gmra.mxu1 %vm2107_vm11, %v11494_v46  ;;  %14807 = vst [vmem:[#allocation64_spill] sm:$0xff] %v11882_v32 }
 0xe0a   : > { %14804 = vst [vmem:[#allocation61_spill] sm:$0xff] %v11870_v27  ;;  %3541 = vmax.xlane.f32.xlu0 %v3540_v7  ;;  %8072 = vmatprep.mubr.msk.bf16.mxu1 %vm2107_vm11, %v11522_v4  ;;  %v11892_v7 = vpop.permute.xlu0 %5071 }
 0xe0b   : > { %v11876_v31 = vpop.f32.mrf.mxu1  ;;  %14809 = vst [vmem:[#allocation66_spill] sm:$0xff] %v11892_v7 }
 0xe0c   : > { %14805 = vst [vmem:[#allocation62_spill] sm:$0xff] %v11876_v31  ;;  %v3543_v29 = vmax.f32 %v11870_v27, %v11876_v31  ;;  %v11900_v32 = vpop.permute.xlu1 %6155 }
 0xe0d   : > { %v11880_v39 = vpop.f32.mrf.mxu1  ;;  %14811 = vst [vmem:[#allocation68_spill] sm:$0xff] %v11900_v32 }
 0xe0e   : > { %14806 = vst [vmem:[#allocation63_spill] sm:$0xff] %v11880_v39  ;;  %3544 = vmax.xlane.f32.xlu0 %v3543_v29 }
 0xe0f   : > { %v11884_v47 = vpop.f32.mrf.mxu1 }
 0xe10   : > { %14808 = vst [vmem:[#allocation65_spill] sm:$0xff] %v11884_v47  ;;  %v3546_v41 = vmax.f32 %v11880_v39, %v11884_v47  ;;  %v11906_v39 = vpop.permute.xlu0 %5067  ;;  %v11916_v32 = vpop.permute.xlu1 %6139 }
 0xe11   : > { %v11888_v46 = vpop.f32.mrf.mxu1  ;;  %8073 = vmatmul.mubr.msk.bf16.gmra.mxu1 %vm2107_vm11, %v11522_v4  ;;  %14814 = vst [vmem:[#allocation71_spill] sm:$0xff] %v11906_v39  ;;  %14815 = vst [vmem:[#allocation72_spill] sm:$0xff] %v11916_v32 }
 0xe12   : > { %3547 = vmax.xlane.f32.xlu1 %v3546_v41  ;;  %8074 = vmatprep.mubr.msk.bf16.mxu1 %vm2107_vm11, %v11502_v58 }
 0xe13   : > { %v11896_v31 = vpop.f32.mrf.mxu1 }
 0xe14   : > { %14810 = vst [vmem:[#allocation67_spill] sm:$0xff] %v11896_v31  ;;  %v3549_v29 = vmax.f32 %v11888_v46, %v11896_v31  ;;  %v11924_v31 = vpop.permute.xlu0 %5063 }
 0xe15   : > { %v11902_v27 = vpop.f32.mrf.mxu1  ;;  %14818 = vst [vmem:[#allocation75_spill] sm:$0xff] %v11924_v31 }
 0xe16   : > { %14812 = vst [vmem:[#allocation69_spill] sm:$0xff] %v11902_v27  ;;  %3550 = vmax.xlane.f32.xlu0 %v3549_v29 }
 0xe17   : > { %v11904_v47 = vpop.f32.mrf.mxu1 }
 0xe18   : > { %14813 = vst [vmem:[#allocation70_spill] sm:$0xff] %v11904_v47  ;;  %v3552_v4 = vmax.f32 %v11902_v27, %v11904_v47  ;;  %v11940_v31 = vpop.permute.xlu0 %5059 }
 0xe19   : > { %v11910_v41 = vpop.f32.mrf.mxu1  ;;  %8075 = vmatmul.mubr.msk.bf16.gmra.mxu1 %vm2107_vm11, %v11502_v58  ;;  %14822 = vst [vmem:[#allocation79_spill] sm:$0xff] %v11940_v31 }
 0xe1a   : > { %3553 = vmax.xlane.f32.xlu1 %v3552_v4  ;;  %8076 = vmatprep.mubr.msk.bf16.mxu1 %vm2107_vm11, %v11528_v56  ;;  %v11930_v4 = vpop.permute.xlu1 %6153 }
 0xe1b   : > { %v11918_v7 = vpop.f32.mrf.mxu1  ;;  %14820 = vst [vmem:[#allocation77_spill] sm:$0xff] %v11930_v4 }
 0xe1c   : > { %14816 = vst [vmem:[#allocation73_spill] sm:$0xff] %v11918_v7  ;;  %v3555_v29 = vmax.f32 %v11910_v41, %v11918_v7 }
 0xe1d   : > { %v11922_v39 = vpop.f32.mrf.mxu1 }
 0xe1e   : > { %14817 = vst [vmem:[#allocation74_spill] sm:$0xff] %v11922_v39  ;;  %3556 = vmax.xlane.f32.xlu1 %v3555_v29  ;;  %v11946_v4 = vpop.permute.xlu1 %6151 }
 0xe1f   : > { %v11926_v47 = vpop.f32.mrf.mxu1  ;;  %14824 = vst [vmem:[#allocation81_spill] sm:$0xff] %v11946_v4 }
 0xe20   : > { %14819 = vst [vmem:[#allocation76_spill] sm:$0xff] %v11926_v47  ;;  %v3558_v58 = vmax.f32 %v11922_v39, %v11926_v47  ;;  %v11956_v39 = vpop.permute.xlu0 %6145 }
 0xe21   : > { %v11932_v27 = vpop.f32.mrf.mxu1  ;;  %8077 = vmatmul.mubr.msk.bf16.gmra.mxu1 %vm2107_vm11, %v11528_v56  ;;  %14827 = vst [vmem:[#allocation84_spill] sm:$0xff] %v11956_v39 }
 0xe22   : > { %3559 = vmax.xlane.f32.xlu0 %v3558_v58  ;;  %8078 = vmatprep.mubr.msk.bf16.mxu1 %vm2107_vm11, %v11512_v18  ;;  %v11964_v4 = vpop.permute.xlu1 %6135 }
 0xe23   : > { %v11938_v32 = vpop.f32.mrf.mxu1  ;;  %14829 = vst [vmem:[#allocation86_spill] sm:$0xff] %v11964_v4 }
 0xe24   : > { %14821 = vst [vmem:[#allocation78_spill] sm:$0xff] %v11938_v32  ;;  %v3561_v29 = vmax.f32 %v11932_v27, %v11938_v32 }
 0xe25   : > { %v11944_v7 = vpop.f32.mrf.mxu1 }
 0xe26   : > { %14823 = vst [vmem:[#allocation80_spill] sm:$0xff] %v11944_v7  ;;  %3562 = vmax.xlane.f32.xlu0 %v3561_v29  ;;  %v11980_v4 = vpop.permute.xlu1 %6149 }
 0xe27   : > { %v11948_v47 = vpop.f32.mrf.mxu1  ;;  %14834 = vst [vmem:[#allocation91_spill] sm:$0xff] %v11980_v4 }
 0xe28   : > { %14825 = vst [vmem:[#allocation82_spill] sm:$0xff] %v11948_v47  ;;  %v3564_v56 = vmax.f32 %v11944_v7, %v11948_v47  ;;  %v11970_v7 = vpop.permute.xlu0 %6141 }
 0xe29   : > { %v11952_v58 = vpop.f32.mrf.mxu1  ;;  %8079 = vmatmul.mubr.msk.bf16.gmra.mxu1 %vm2107_vm11, %v11512_v18  ;;  %14832 = vst [vmem:[#allocation89_spill] sm:$0xff] %v11970_v7 }
 0xe2a   : > { %14826 = vst [vmem:[#allocation83_spill] sm:$0xff] %v11952_v58  ;;  %3565 = vmax.xlane.f32.xlu1 %v3564_v56  ;;  %8080 = vmatprep.mubr.msk.bf16.mxu1 %vm2107_vm11, %v11534_v2 }
 0xe2b   : > { %v11960_v31 = vpop.f32.mrf.mxu1 }
 0xe2c   : > { %14828 = vst [vmem:[#allocation85_spill] sm:$0xff] %v11960_v31  ;;  %v4545_v29 = vmax.f32 %v11952_v58, %v11960_v31  ;;  %v11988_v31 = vpop.permute.xlu0 %6137 }
 0xe2d   : > { %v11966_v32 = vpop.f32.mrf.mxu1  ;;  %14837 = vst [vmem:[#allocation94_spill] sm:$0xff] %v11988_v31 }
 0xe2e   : > { %14830 = vst [vmem:[#allocation87_spill] sm:$0xff] %v11966_v32  ;;  %4546 = vmax.xlane.f32.xlu1 %v4545_v29 }
 0xe2f   : > { %v11968_v47 = vpop.f32.mrf.mxu1 }
 0xe30   : > { %14831 = vst [vmem:[#allocation88_spill] sm:$0xff] %v11968_v47  ;;  %v4548_v18 = vmax.f32 %v11966_v32, %v11968_v47 }
 0xe31   : > { %v11974_v56 = vpop.f32.mrf.mxu1  ;;  %8081 = vmatmul.mubr.msk.bf16.gmra.mxu1 %vm2107_vm11, %v11534_v2 }
 0xe32   : > { %14833 = vst [vmem:[#allocation90_spill] sm:$0xff] %v11974_v56  ;;  %4549 = vmax.xlane.f32.xlu0 %v4548_v18  ;;  %8082 = vmatprep.mubr.msk.bf16.mxu1 %vm2107_vm11, %v11518_v61 }
 0xe33   : > { %v11982_v39 = vpop.f32.mrf.mxu1 }
 0xe34   : > { %14835 = vst [vmem:[#allocation92_spill] sm:$0xff] %v11982_v39  ;;  %v4551_v29 = vmax.f32 %v11974_v56, %v11982_v39 }
 0xe35   : > { %v11986_v7 = vpop.f32.mrf.mxu1 }
 0xe36   : > { %14836 = vst [vmem:[#allocation93_spill] sm:$0xff] %v11986_v7  ;;  %4552 = vmax.xlane.f32.xlu1 %v4551_v29 }
 0xe37   : > { %v3473_v47 = vpop.xlane.xlu1 %3472  ;;  %v11990_v32 = vpop.f32.mrf.mxu1 }
 0xe38   : > { %14838 = vst [vmem:[#allocation95_spill] sm:$0xff] %v11990_v32  ;;  %v3567_v2 = vsub.f32 %v11650_v53, %v3473_v47  ;;  %v3568_v18 = vsub.f32 %v11656_v14, %v3473_v47  ;;  %v4554_v4 = vmax.f32 %v11986_v7, %v11990_v32 }
 0xe39   : > { %v11996_v58 = vpop.f32.mrf.mxu1  ;;  %8083 = vmatmul.mubr.msk.bf16.gmra.mxu1 %vm2107_vm11, %v11518_v61 }
 0xe3a   : > { %v3631_v39 = vmul.f32 1.442695, %v3567_v2  ;;  %v3633_v56 = vmul.f32 1.442695, %v3568_v18  ;;  %4555 = vmax.xlane.f32.xlu0 %v4554_v4  ;;  %8084 = vmatprep.mubr.msk.bf16.mxu1 %vm2107_vm11, %v11540_v38 }
 0xe3b   : > { %v12002_v29 = vpop.f32.mrf.mxu1  ;;  %v3476_v31 = vpop.xlane.xlu0 %3475 }
 0xe3c   : > { %14839 = vst [vmem:[#allocation96_spill] sm:$0xff] %v12002_v29  ;;  %8714 = vpow2.f32 %v3631_v39  ;;  %v4557_v53 = vmax.f32 %v11996_v58, %v12002_v29  ;;  %v3569_v14 = vsub.f32 %v11660_v15, %v3476_v31  ;;  %v3570_v47 = vsub.f32 %v11662_v59, %v3476_v31 }
 0xe3d   : > { %8716 = vpow2.f32 %v3633_v56  ;;  %v12008_v32 = vpop.f32.mrf.mxu1 }
 0xe3e   : > { %v3635_v61 = vmul.f32 1.442695, %v3569_v14  ;;  %v3637_v2 = vmul.f32 1.442695, %v3570_v47  ;;  %4558 = vmax.xlane.f32.xlu1 %v4557_v53 }
 0xe3f   : > { %v3479_v4 = vpop.xlane.xlu1 %3478  ;;  %v12010_v18 = vpop.f32.mrf.mxu1 }
 0xe40   : > { %8718 = vpow2.f32 %v3635_v61  ;;  %v3571_v7 = vsub.f32 %v11666_v43, %v3479_v4  ;;  %v3572_v39 = vsub.f32 %v11672_v10, %v3479_v4  ;;  %v4560_v29 = vmax.f32 %v12008_v32, %v12010_v18 }
 0xe41   : > { %8720 = vpow2.f32 %v3637_v2  ;;  %v12016_v15 = vpop.f32.mrf.mxu1  ;;  %8085 = vmatmul.mubr.msk.bf16.gmra.mxu1 %vm2107_vm11, %v11540_v38 }
 0xe42   : > { %v3639_v59 = vmul.f32 1.442695, %v3571_v7  ;;  %v3641_v31 = vmul.f32 1.442695, %v3572_v39  ;;  %4561 = vmax.xlane.f32.xlu0 %v4560_v29  ;;  %8086 = vmatprep.mubr.msk.bf16.mxu1 %vm2107_vm11, %v11552_v44 }
 0xe43   : > { %v3482_v56 = vpop.xlane.xlu1 %3481  ;;  %v12022_v53 = vpop.f32.mrf.mxu1 }
 0xe44   : > { %8722 = vpow2.f32 %v3639_v59  ;;  %v3573_v43 = vsub.f32 %v11676_v17, %v3482_v56  ;;  %v3574_v10 = vsub.f32 %v11678_v60, %v3482_v56  ;;  %v4563_v14 = vmax.f32 %v12016_v15, %v12022_v53 }
 0xe45   : > { %8724 = vpow2.f32 %v3641_v31  ;;  %v12028_v47 = vpop.f32.mrf.mxu1 }
 0xe46   : > { %v3643_v38 = vmul.f32 1.442695, %v3573_v43  ;;  %4564 = vmax.xlane.f32.xlu1 %v4563_v14  ;;  %v3645_v7 = vmul.f32 1.442695, %v3574_v10 }
 0xe47   : > { %v12030_v29 = vpop.f32.mrf.mxu1  ;;  %v3485_v61 = vpop.xlane.xlu0 %3484 }
 0xe48   : > { %v4566_v2 = vmax.f32 %v12028_v47, %v12030_v29  ;;  %v3575_v4 = vsub.f32 %v11682_v42, %v3485_v61  ;;  %v3576_v17 = vsub.f32 %v11690_v40, %v3485_v61  ;;  %8726 = vpow2.f32 %v3643_v38 }
 0xe49   : > { %v12036_v60 = vpop.eup %8714  ;;  %v12038_v39 = vpop.f32.mrf.mxu1  ;;  %8087 = vmatmul.mubr.msk.bf16.gmra.mxu1 %vm2107_vm11, %v11552_v44  ;;  %8728 = vpow2.f32 %v3645_v7 }
 0xe4a   : > { %14840 = vst [vmem:[#allocation97_spill] sm:$0xff] %v12036_v60  ;;  %v12042_v59 = vpop.eup %8716  ;;  %v3647_v31 = vmul.f32 1.442695, %v3575_v4  ;;  %4567 = vmax.xlane.f32.xlu0 %v4566_v2  ;;  %8088 = vmatprep.mubr.msk.bf16.mxu1 %vm2107_vm11, %v11570_v62  ;;  %v3649_v56 = vmul.f32 1.442695, %v3576_v17 }
 0xe4b   : > { %14841 = vst [vmem:[#allocation98_spill] sm:$0xff] %v12042_v59  ;;  %v3488_v42 = vpop.xlane.xlu1 %3487  ;;  %v12046_v43 = vpop.f32.mrf.mxu1  ;;  %v3759_v40 = vadd.f32 %v12042_v59, %v12036_v60 }
 0xe4c   : > { %8730 = vpow2.f32 %v3647_v31  ;;  %v3577_v38 = vsub.f32 %v11694_v25, %v3488_v42  ;;  %v3578_v7 = vsub.f32 %v11696_v50, %v3488_v42  ;;  %v4569_v61 = vmax.f32 %v12038_v39, %v12046_v43 }
 0xe4d   : > { %v12050_v10 = vpop.eup %8718  ;;  %3760 = vadd.xlane.f32.xlu1 %v3759_v40  ;;  %v12052_v44 = vpop.f32.mrf.mxu1  ;;  %8732 = vpow2.f32 %v3649_v56 }
 0xe4e   : > { %14842 = vst [vmem:[#allocation99_spill] sm:$0xff] %v12050_v10  ;;  %v12054_v14 = vpop.eup %8720  ;;  %v3651_v25 = vmul.f32 1.442695, %v3577_v38  ;;  %v3653_v56 = vmul.f32 1.442695, %v3578_v7 }
 0xe4f   : > { %14843 = vst [vmem:[#allocation100_spill] sm:$0xff] %v12054_v14  ;;  %v3491_v2 = vpop.xlane.xlu1 %3490  ;;  %v12060_v4 = vpop.f32.mrf.mxu1  ;;  %v3762_v17 = vadd.f32 %v12054_v14, %v12050_v10 }
 0xe50   : > { %14844 = vst [vmem:[#allocation101_spill] sm:$0xff] %v12060_v4  ;;  %v3579_v50 = vsub.f32 %v11702_v48, %v3491_v2  ;;  %v3580_v42 = vsub.f32 %v11708_v57, %v3491_v2  ;;  %v4572_v10 = vmax.f32 %v12052_v44, %v12060_v4  ;;  %8734 = vpow2.f32 %v3651_v25 }
 0xe51   : > { %v12064_v40 = vpop.eup %8722  ;;  %4570 = vmax.xlane.f32.xlu1 %v4569_v61  ;;  %3763 = vadd.xlane.f32.xlu0 %v3762_v17  ;;  %v12066_v60 = vpop.f32.mrf.mxu1  ;;  %8736 = vpow2.f32 %v3653_v56 }
 0xe52   : > { %14845 = vst [vmem:[#allocation102_spill] sm:$0xff] %v12064_v40  ;;  %v12068_v31 = vpop.eup %8724  ;;  %8089 = vmatmul.mubr.msk.bf16.gmra.mxu1 %vm2107_vm11, %v11570_v62  ;;  %v3655_v62 = vmul.f32 1.442695, %v3579_v50  ;;  %v3657_v57 = vmul.f32 1.442695, %v3580_v42 }
 0xe53   : > { %14846 = vst [vmem:[#allocation103_spill] sm:$0xff] %v12068_v31  ;;  %8090 = vmatprep.mubr.msk.bf16.mxu1 %vm2107_vm11, %v11596_v6  ;;  %v12078_v61 = vpop.f32.mrf.mxu1  ;;  %v3765_v17 = vadd.f32 %v12068_v31, %v12064_v40  ;;  %v3494_v38 = vpop.xlane.xlu1 %3493 }
 0xe54   : > { %v4575_v2 = vmax.f32 %v12066_v60, %v12078_v61  ;;  %8738 = vpow2.f32 %v3655_v62  ;;  %v3581_v56 = vsub.f32 %v11712_v45, %v3494_v38 }
 0xe55   : > { %3766 = vadd.xlane.f32.xlu1 %v3765_v17  ;;  %4573 = vmax.xlane.f32.xlu0 %v4572_v10  ;;  %v12082_v48 = vpop.f32.mrf.mxu1  ;;  %v12084_v7 = vpop.eup %8726  ;;  %8740 = vpow2.f32 %v3657_v57 }
 0xe56   : > { %14847 = vst [vmem:[#allocation104_spill] sm:$0xff] %v12084_v7  ;;  %v12090_v4 = vpop.eup %8728 }
 0xe57   : > { %v12088_v14 = vpop.f32.mrf.mxu1  ;;  %v3497_v59 = vpop.xlane.xlu0 %3496  ;;  %v3768_v45 = vadd.f32 %v12090_v4, %v12084_v7 }
 0xe58   : > { %14848 = vst [vmem:[#allocation105_spill] sm:$0xff] %v12088_v14  ;;  %v4578_v10 = vmax.f32 %v12082_v48, %v12088_v14  ;;  %v3583_v17 = vsub.f32 %v11720_v20, %v3497_v59  ;;  %v3584_v25 = vsub.f32 %v11726_v54, %v3497_v59  ;;  %v3582_v14 = vsub.f32 %v11716_v16, %v3494_v38 }
 0xe59   : > { %4576 = vmax.xlane.f32.xlu1 %v4575_v2  ;;  %v12096_v50 = vpop.f32.mrf.mxu1  ;;  %v12101_v31 = vpop.eup %8730  ;;  %v3659_v16 = vmul.f32 1.442695, %v3581_v56 }
 0xe5a   : > { %v3663_v42 = vmul.f32 1.442695, %v3583_v17  ;;  %v3665_v40 = vmul.f32 1.442695, %v3584_v25  ;;  %8091 = vmatmul.mubr.msk.bf16.gmra.mxu1 %vm2107_vm11, %v11596_v6  ;;  %4579 = vmax.xlane.f32.xlu0 %v4578_v10  ;;  %14849 = vst [vmem:[#allocation106_spill] sm:$0xff] %v12101_v31  ;;  %v12110_v59 = vpop.eup %8732 }
 0xe5b   : > { %8092 = vmatprep.mubr.msk.bf16.mxu1 %vm2107_vm11, %v11622_v49  ;;  %v3500_v20 = vpop.xlane.xlu1 %3499  ;;  %v12106_v54 = vpop.f32.mrf.mxu1  ;;  %v3661_v10 = vmul.f32 1.442695, %v3582_v14  ;;  %v3771_v7 = vadd.f32 %v12110_v59, %v12101_v31 }
 0xe5c   : > { %8742 = vpow2.f32 %v3663_v42  ;;  %v3585_v6 = vsub.f32 %v11732_v24, %v3500_v20  ;;  %v3586_v62 = vsub.f32 %v11734_v22, %v3500_v20  ;;  %v4581_v56 = vmax.f32 %v12096_v50, %v12106_v54 }
 0xe5d   : > { %8744 = vpow2.f32 %v3665_v40  ;;  %3769 = vadd.xlane.f32.xlu1 %v3768_v45  ;;  %v12114_v57 = vpop.f32.mrf.mxu1  ;;  %v12127_v14 = vpop.eup %8734 }
 0xe5e   : > { %v3667_v38 = vmul.f32 1.442695, %v3585_v6  ;;  %v3669_v2 = vmul.f32 1.442695, %v3586_v62  ;;  %14850 = vst [vmem:[#allocation107_spill] sm:$0xff] %v12127_v14  ;;  %v12134_v45 = vpop.eup %8736 }
 0xe5f   : > { %v3503_v17 = vpop.xlane.xlu1 %3502  ;;  %v12116_v25 = vpop.f32.mrf.mxu1  ;;  %14851 = vst [vmem:[#allocation108_spill] sm:$0xff] %v12134_v45 }
 0xe60   : > { %8746 = vpow2.f32 %v3667_v38  ;;  %v4584_v24 = vmax.f32 %v12114_v57, %v12116_v25  ;;  %v3587_v40 = vsub.f32 %v11738_v52, %v3503_v17  ;;  %v3588_v42 = vsub.f32 %v11746_v63, %v3503_v17 }
 0xe61   : > { %8748 = vpow2.f32 %v3669_v2  ;;  %3772 = vadd.xlane.f32.xlu1 %v3771_v7  ;;  %v12122_v22 = vpop.f32.mrf.mxu1  ;;  %v12140_v2 = vpop.eup %8738  ;;  %v3774_v17 = vadd.f32 %v12134_v45, %v12127_v14 }
 0xe62   : > { %8750 = vpow2.f32 %v3659_v16  ;;  %8093 = vmatmul.mubr.msk.bf16.gmra.mxu1 %vm2107_vm11, %v11622_v49  ;;  %4585 = vmax.xlane.f32.xlu0 %v4584_v24  ;;  %v3671_v62 = vmul.f32 1.442695, %v3587_v40  ;;  %14852 = vst [vmem:[#allocation109_spill] sm:$0xff] %v12140_v2  ;;  %v12146_v31 = vpop.eup %8740 }
 0xe63   : > { %8752 = vpow2.f32 %v3661_v10  ;;  %v12132_v20 = vpop.f32.mrf.mxu1  ;;  %v3506_v7 = vpop.xlane.xlu0 %3505  ;;  %v3673_v10 = vmul.f32 1.442695, %v3588_v42 }
 0xe64   : > { %v3589_v6 = vsub.f32 %v11750_v37, %v3506_v7  ;;  %v3590_v52 = vsub.f32 %v11752_v3, %v3506_v7 }
 0xe65   : > { %4582 = vmax.xlane.f32.xlu1 %v4581_v56  ;;  %v12138_v49 = vpop.f32.mrf.mxu1 }
 0xe66   : > { %v3675_v16 = vmul.f32 1.442695, %v3589_v6  ;;  %v3677_v38 = vmul.f32 1.442695, %v3590_v52 }
 0xe67   : > { %v3509_v24 = vpop.xlane.xlu1 %3508  ;;  %v12142_v63 = vpop.f32.mrf.mxu1 }
 0xe68   : > { %8754 = vpow2.f32 %v3675_v16  ;;  %v4590_v3 = vmax.f32 %v12138_v49, %v12142_v63  ;;  %v3591_v42 = vsub.f32 %v11758_v8, %v3509_v24  ;;  %v3592_v7 = vsub.f32 %v11764_v23, %v3509_v24 }
 0xe69   : > { %v12150_v37 = vpop.eup %8742  ;;  %8756 = vpow2.f32 %v3677_v38  ;;  %3775 = vadd.xlane.f32.xlu1 %v3774_v17  ;;  %v12152_v40 = vpop.f32.mrf.mxu1  ;;  %v3777_v16 = vadd.f32 %v12146_v31, %v12140_v2 }
 0xe6a   : > { %14853 = vst [vmem:[#allocation110_spill] sm:$0xff] %v12150_v37  ;;  %v12154_v56 = vpop.eup %8744  ;;  %8758 = vpow2.f32 %v3671_v62  ;;  %4591 = vmax.xlane.f32.xlu0 %v4590_v3  ;;  %v3679_v23 = vmul.f32 1.442695, %v3591_v42 }
 0xe6b   : > { %14854 = vst [vmem:[#allocation111_spill] sm:$0xff] %v12154_v56  ;;  %8760 = vpow2.f32 %v3673_v10  ;;  %v12158_v6 = vpop.f32.mrf.mxu1  ;;  %v3512_v52 = vpop.xlane.xlu0 %3511  ;;  %v3783_v14 = vadd.f32 %v12154_v56, %v12150_v37 }
 0xe6c   : > { %v3593_v38 = vsub.f32 %v11768_v12, %v3512_v52  ;;  %v3594_v17 = vsub.f32 %v11772_v9, %v3512_v52  ;;  %v4587_v12 = vmax.f32 %v12122_v22, %v12132_v20  ;;  %v3681_v9 = vmul.f32 1.442695, %v3592_v7 }
 0xe6d   : > { %v12166_v62 = vpop.eup %8746  ;;  %3778 = vadd.xlane.f32.xlu1 %v3777_v16  ;;  %v12168_v8 = vpop.f32.mrf.mxu1 }
 0xe6e   : > { %14855 = vst [vmem:[#allocation112_spill] sm:$0xff] %v12166_v62  ;;  %v12170_v10 = vpop.eup %8748  ;;  %v3683_v24 = vmul.f32 1.442695, %v3593_v38  ;;  %v3685_v3 = vmul.f32 1.442695, %v3594_v17  ;;  %3784 = vadd.xlane.f32.xlu0 %v3783_v14 }
 0xe6f   : > { %14856 = vst [vmem:[#allocation113_spill] sm:$0xff] %v12170_v10  ;;  %v12172_v45 = vpop.eup %8750  ;;  %v3515_v52 = vpop.xlane.xlu1 %3514  ;;  %v3786_v16 = vadd.f32 %v12170_v10, %v12166_v62  ;;  %v4593_v10 = vmax.f32 %v12152_v40, %v12158_v6 }
 0xe70   : > { %14857 = vst [vmem:[#allocation114_spill] sm:$0xff] %v12172_v45  ;;  %v12176_v2 = vpop.f32.mrf.mxu1  ;;  %v12178_v37 = vpop.eup %8752  ;;  %8762 = vpow2.f32 %v3683_v24  ;;  %v3595_v14 = vsub.f32 %v11776_v1, %v3515_v52  ;;  %v3596_v7 = vsub.f32 %v11782_v36, %v3515_v52 }
 0xe71   : > { %14858 = vst [vmem:[#allocation115_spill] sm:$0xff] %v12178_v37  ;;  %8764 = vpow2.f32 %v3685_v3  ;;  %4588 = vmax.xlane.f32.xlu1 %v4587_v12  ;;  %v3780_v24 = vadd.f32 %v12178_v37, %v12172_v45  ;;  %v4596_v62 = vmax.f32 %v12168_v8, %v12176_v2 }
 0xe72   : > { %v12182_v42 = vpop.f32.mrf.mxu1  ;;  %8766 = vpow2.f32 %v3679_v23  ;;  %3787 = vadd.xlane.f32.xlu0 %v3786_v16  ;;  %v3687_v36 = vmul.f32 1.442695, %v3595_v14  ;;  %v3689_v45 = vmul.f32 1.442695, %v3596_v7 }
 0xe73   : > { %8768 = vpow2.f32 %v3681_v9  ;;  %v3518_v17 = vpop.xlane.xlu0 %3517 }
 0xe74   : > { %v12186_v38 = vpop.f32.mrf.mxu1  ;;  %v3597_v3 = vsub.f32 %v11788_v30, %v3518_v17  ;;  %v3598_v12 = vsub.f32 %v11790_v28, %v3518_v17 }
 0xe75   : > { %v12194_v23 = vpop.eup %8754  ;;  %3781 = vadd.xlane.f32.xlu1 %v3780_v24 }
 0xe76   : > { %14859 = vst [vmem:[#allocation116_spill] sm:$0xff] %v12194_v23  ;;  %v12196_v1 = vpop.f32.mrf.mxu1  ;;  %v12198_v9 = vpop.eup %8756  ;;  %v3691_v52 = vmul.f32 1.442695, %v3597_v3  ;;  %v3693_v16 = vmul.f32 1.442695, %v3598_v12  ;;  %4597 = vmax.xlane.f32.xlu0 %v4596_v62 }
 0xe77   : > { %14860 = vst [vmem:[#allocation117_spill] sm:$0xff] %v12198_v9  ;;  %v12200_v56 = vpop.eup %8758  ;;  %v3521_v30 = vpop.xlane.xlu1 %3520  ;;  %v3792_v17 = vadd.f32 %v12198_v9, %v12194_v23 }
 0xe78   : > { %14861 = vst [vmem:[#allocation118_spill] sm:$0xff] %v12200_v56  ;;  %v12204_v37 = vpop.f32.mrf.mxu1  ;;  %v12206_v28 = vpop.eup %8760  ;;  %8770 = vpow2.f32 %v3691_v52  ;;  %v3599_v62 = vsub.f32 %v11794_v55, %v3521_v30  ;;  %v3600_v7 = vsub.f32 %v11802_v34, %v3521_v30 }
 0xe79   : > { %14862 = vst [vmem:[#allocation119_spill] sm:$0xff] %v12206_v28  ;;  %8772 = vpow2.f32 %v3693_v16  ;;  %4594 = vmax.xlane.f32.xlu1 %v4593_v10  ;;  %v3789_v12 = vadd.f32 %v12206_v28, %v12200_v56  ;;  %v4602_v52 = vmax.f32 %v12196_v1, %v12204_v37  ;;  %v4599_v56 = vmax.f32 %v12182_v42, %v12186_v38 }
 0xe7a   : > { %v12210_v14 = vpop.f32.mrf.mxu1  ;;  %8774 = vpow2.f32 %v3687_v36  ;;  %3793 = vadd.xlane.f32.xlu0 %v3792_v17  ;;  %v3695_v34 = vmul.f32 1.442695, %v3599_v62  ;;  %v3697_v9 = vmul.f32 1.442695, %v3600_v7 }
 0xe7b   : > { %8776 = vpow2.f32 %v3689_v45  ;;  %v3524_v3 = vpop.xlane.xlu0 %3523 }
 0xe7c   : > { %v12214_v24 = vpop.f32.mrf.mxu1  ;;  %v3601_v10 = vsub.f32 %v11806_v11, %v3524_v3  ;;  %v3602_v16 = vsub.f32 %v11808_v19, %v3524_v3 }
 0xe7d   : > { %v12222_v36 = vpop.eup %8762  ;;  %3790 = vadd.xlane.f32.xlu1 %v3789_v12 }
 0xe7e   : > { %14863 = vst [vmem:[#allocation120_spill] sm:$0xff] %v12222_v36  ;;  %v12224_v55 = vpop.f32.mrf.mxu1  ;;  %v12226_v45 = vpop.eup %8764  ;;  %v3699_v30 = vmul.f32 1.442695, %v3601_v10  ;;  %v3701_v17 = vmul.f32 1.442695, %v3602_v16  ;;  %4603 = vmax.xlane.f32.xlu0 %v4602_v52 }
 0xe7f   : > { %14864 = vst [vmem:[#allocation121_spill] sm:$0xff] %v12226_v45  ;;  %v12228_v23 = vpop.eup %8766  ;;  %v3527_v11 = vpop.xlane.xlu1 %3526  ;;  %v3798_v3 = vadd.f32 %v12226_v45, %v12222_v36 }
 0xe80   : > { %14865 = vst [vmem:[#allocation122_spill] sm:$0xff] %v12228_v23  ;;  %v12232_v28 = vpop.f32.mrf.mxu1  ;;  %v12234_v19 = vpop.eup %8768  ;;  %8778 = vpow2.f32 %v3699_v30  ;;  %v3603_v12 = vsub.f32 %v11814_v21, %v3527_v11  ;;  %v3604_v7 = vsub.f32 %v11820_v35, %v3527_v11 }
 0xe81   : > { %14866 = vst [vmem:[#allocation123_spill] sm:$0xff] %v12234_v19  ;;  %8780 = vpow2.f32 %v3701_v17  ;;  %4600 = vmax.xlane.f32.xlu1 %v4599_v56  ;;  %v3795_v16 = vadd.f32 %v12234_v19, %v12228_v23  ;;  %v4608_v30 = vmax.f32 %v12224_v55, %v12232_v28  ;;  %v4605_v23 = vmax.f32 %v12210_v14, %v12214_v24 }
 0xe82   : > { %v12238_v62 = vpop.f32.mrf.mxu1  ;;  %8782 = vpow2.f32 %v3695_v34  ;;  %3799 = vadd.xlane.f32.xlu0 %v3798_v3  ;;  %v3703_v35 = vmul.f32 1.442695, %v3603_v12  ;;  %v3705_v45 = vmul.f32 1.442695, %v3604_v7 }
 0xe83   : > { %8784 = vpow2.f32 %v3697_v9  ;;  %v3530_v10 = vpop.xlane.xlu0 %3529 }
 0xe84   : > { %v12242_v52 = vpop.f32.mrf.mxu1  ;;  %v3605_v56 = vsub.f32 %v11824_v33, %v3530_v10  ;;  %v3606_v17 = vsub.f32 %v11828_v51, %v3530_v10 }
 0xe85   : > { %14867 = vst [vmem:[#allocation124_spill] sm:$0xff] %v12242_v52  ;;  %v12250_v34 = vpop.eup %8770  ;;  %3796 = vadd.xlane.f32.xlu1 %v3795_v16 }
 0xe86   : > { %14868 = vst [vmem:[#allocation125_spill] sm:$0xff] %v12250_v34  ;;  %v12252_v21 = vpop.f32.mrf.mxu1  ;;  %v12254_v9 = vpop.eup %8772  ;;  %v3707_v11 = vmul.f32 1.442695, %v3605_v56  ;;  %v3709_v3 = vmul.f32 1.442695, %v3606_v17  ;;  %4609 = vmax.xlane.f32.xlu0 %v4608_v30 }
 0xe87   : > { %14869 = vst [vmem:[#allocation126_spill] sm:$0xff] %v12252_v21  ;;  %14870 = vst [vmem:[#allocation127_spill] sm:$0xff] %v12254_v9  ;;  %v12256_v36 = vpop.eup %8774  ;;  %v3533_v33 = vpop.xlane.xlu1 %3532  ;;  %v3804_v10 = vadd.f32 %v12254_v9, %v12250_v34 }
 0xe88   : > { %14871 = vst [vmem:[#allocation128_spill] sm:$0xff] %v12256_v36  ;;  %v12260_v19 = vpop.f32.mrf.mxu1  ;;  %v12262_v51 = vpop.eup %8776  ;;  %8786 = vpow2.f32 %v3707_v11  ;;  %v3607_v16 = vsub.f32 %v11832_v0, %v3533_v33  ;;  %v3608_v7 = vsub.f32 %v11838_v5, %v3533_v33 }
 0xe89   : > { %14872 = vst [vmem:[#allocation129_spill] sm:$0xff] %v12260_v19  ;;  %14873 = vst [vmem:[#allocation130_spill] sm:$0xff] %v12262_v51  ;;  %8788 = vpow2.f32 %v3709_v3  ;;  %4606 = vmax.xlane.f32.xlu1 %v4605_v23  ;;  %v3801_v17 = vadd.f32 %v12262_v51, %v12256_v36  ;;  %v4614_v11 = vmax.f32 %v12252_v21, %v12260_v19  ;;  %v14876_v3 = vld [vmem:[#allocation52_spill] sm:$0xff] }
 0xe8a   : > { %v12266_v12 = vpop.f32.mrf.mxu1  ;;  %8790 = vpow2.f32 %v3703_v35  ;;  %3805 = vadd.xlane.f32.xlu0 %v3804_v10  ;;  %v3711_v5 = vmul.f32 1.442695, %v3607_v16  ;;  %v4611_v36 = vmax.f32 %v12238_v62, %v12242_v52  ;;  %v3713_v51 = vmul.f32 1.442695, %v3608_v7 }
 0xe8b   : > { %14874 = vst [vmem:[#allocation131_spill] sm:$0xff] %v12266_v12  ;;  %8792 = vpow2.f32 %v3705_v45  ;;  %v3536_v56 = vpop.xlane.xlu0 %3535 }
 0xe8c   : > { %v12270_v30 = vpop.f32.mrf.mxu1  ;;  %v3609_v23 = vsub.f32 %v11844_v26, %v3536_v56  ;;  %v3610_v34 = vsub.f32 %v14876_v3, %v3536_v56 }
 0xe8d   : > { %14875 = vst [vmem:[#allocation132_spill] sm:$0xff] %v12270_v30  ;;  %v12278_v35 = vpop.eup %8778  ;;  %3802 = vadd.xlane.f32.xlu1 %v3801_v17 }
 0xe8e   : > { %14877 = vst [vmem:[#allocation52_spill] sm:$0xff] %v12278_v35  ;;  %v12280_v0 = vpop.f32.mrf.mxu1  ;;  %v12282_v45 = vpop.eup %8780  ;;  %v3715_v33 = vmul.f32 1.442695, %v3609_v23  ;;  %v3717_v10 = vmul.f32 1.442695, %v3610_v34  ;;  %4615 = vmax.xlane.f32.xlu0 %v4614_v11  ;;  %v14884_v11 = vld [vmem:[#allocation57_spill] sm:$0xff] }
 0xe8f   : > { %14878 = vst [vmem:[#allocation133_spill] sm:$0xff] %v12280_v0  ;;  %14879 = vst [vmem:[#allocation134_spill] sm:$0xff] %v12282_v45  ;;  %v12284_v9 = vpop.eup %8782  ;;  %v3539_v26 = vpop.xlane.xlu1 %3538  ;;  %v3810_v17 = vadd.f32 %v12282_v45, %v12278_v35  ;;  %v14887_v45 = vld [vmem:[#allocation59_spill] sm:$0xff] }
 0xe90   : > { %14880 = vst [vmem:[#allocation135_spill] sm:$0xff] %v12284_v9  ;;  %v12288_v19 = vpop.f32.mrf.mxu1  ;;  %v12290_v56 = vpop.eup %8784  ;;  %8794 = vpow2.f32 %v3715_v33  ;;  %v3611_v34 = vsub.f32 %v11850_v13, %v3539_v26  ;;  %v3612_v7 = vsub.f32 %v14884_v11, %v3539_v26 }
 0xe91   : > { %14881 = vst [vmem:[#allocation136_spill] sm:$0xff] %v12288_v19  ;;  %14882 = vst [vmem:[#allocation137_spill] sm:$0xff] %v12290_v56  ;;  %8796 = vpow2.f32 %v3717_v10  ;;  %4612 = vmax.xlane.f32.xlu1 %v4611_v36  ;;  %v3807_v33 = vadd.f32 %v12290_v56, %v12284_v9  ;;  %v4620_v35 = vmax.f32 %v12280_v0, %v12288_v19  ;;  %v14886_v10 = vld [vmem:[#allocation58_spill] sm:$0xff] }
 0xe92   : > { %v12294_v16 = vpop.f32.mrf.mxu1  ;;  %8798 = vpow2.f32 %v3711_v5  ;;  %3811 = vadd.xlane.f32.xlu0 %v3810_v17  ;;  %v3719_v26 = vmul.f32 1.442695, %v3611_v34  ;;  %v4617_v9 = vmax.f32 %v12266_v12, %v12270_v30  ;;  %v3721_v56 = vmul.f32 1.442695, %v3612_v7 }
 0xe93   : > { %14883 = vst [vmem:[#allocation138_spill] sm:$0xff] %v12294_v16  ;;  %8800 = vpow2.f32 %v3713_v51  ;;  %v3542_v3 = vpop.xlane.xlu0 %3541 }
 0xe94   : > { %v12298_v23 = vpop.f32.mrf.mxu1  ;;  %v3613_v36 = vsub.f32 %v14886_v10, %v3542_v3  ;;  %v3614_v21 = vsub.f32 %v14887_v45, %v3542_v3 }
 0xe95   : > { %14885 = vst [vmem:[#allocation57_spill] sm:$0xff] %v12298_v23  ;;  %v12306_v5 = vpop.eup %8786  ;;  %3808 = vadd.xlane.f32.xlu1 %v3807_v33 }
 0xe96   : > { %14888 = vst [vmem:[#allocation58_spill] sm:$0xff] %v12306_v5  ;;  %v12308_v13 = vpop.f32.mrf.mxu1  ;;  %v12310_v51 = vpop.eup %8788  ;;  %v3723_v17 = vmul.f32 1.442695, %v3613_v36  ;;  %v3725_v11 = vmul.f32 1.442695, %v3614_v21  ;;  %4621 = vmax.xlane.f32.xlu0 %v4620_v35  ;;  %v14894_v21 = vld [vmem:[#allocation61_spill] sm:$0xff] }
 0xe97   : > { %14889 = vst [vmem:[#allocation59_spill] sm:$0xff] %v12310_v51  ;;  %v12312_v52 = vpop.eup %8790  ;;  %v3545_v45 = vpop.xlane.xlu0 %3544  ;;  %v3816_v33 = vadd.f32 %v12310_v51, %v12306_v5  ;;  %v14895_v36 = vld [vmem:[#allocation62_spill] sm:$0xff]  ;;  %v14898_v51 = vld [vmem:[#allocation65_spill] sm:$0xff] }
 0xe98   : > { %14890 = vst [vmem:[#allocation139_spill] sm:$0xff] %v12312_v52  ;;  %v12316_v10 = vpop.f32.mrf.mxu1  ;;  %v12318_v3 = vpop.eup %8792  ;;  %8802 = vpow2.f32 %v3723_v17  ;;  %v3615_v35 = vsub.f32 %v14894_v21, %v3545_v45  ;;  %v3616_v7 = vsub.f32 %v14895_v36, %v3545_v45 }
 0xe99   : > { %14891 = vst [vmem:[#allocation140_spill] sm:$0xff] %v12316_v10  ;;  %14892 = vst [vmem:[#allocation141_spill] sm:$0xff] %v12318_v3  ;;  %8804 = vpow2.f32 %v3725_v11  ;;  %4618 = vmax.xlane.f32.xlu1 %v4617_v9  ;;  %v3813_v17 = vadd.f32 %v12318_v3, %v12312_v52  ;;  %v4626_v5 = vmax.f32 %v12308_v13, %v12316_v10  ;;  %v14897_v11 = vld [vmem:[#allocation63_spill] sm:$0xff] }
 0xe9a   : > { %v12322_v34 = vpop.f32.mrf.mxu1  ;;  %8806 = vpow2.f32 %v3719_v26  ;;  %3817 = vadd.xlane.f32.xlu0 %v3816_v33  ;;  %v3727_v45 = vmul.f32 1.442695, %v3615_v35  ;;  %v4623_v52 = vmax.f32 %v12294_v16, %v12298_v23  ;;  %v3729_v3 = vmul.f32 1.442695, %v3616_v7 }
 0xe9b   : > { %14893 = vst [vmem:[#allocation142_spill] sm:$0xff] %v12322_v34  ;;  %8808 = vpow2.f32 %v3721_v56  ;;  %v3548_v30 = vpop.xlane.xlu1 %3547 }
 0xe9c   : > { %v12326_v12 = vpop.f32.mrf.mxu1  ;;  %v3617_v9 = vsub.f32 %v14897_v11, %v3548_v30  ;;  %v3618_v19 = vsub.f32 %v14898_v51, %v3548_v30 }
 0xe9d   : > { %14896 = vst [vmem:[#allocation61_spill] sm:$0xff] %v12326_v12  ;;  %v12334_v26 = vpop.eup %8794  ;;  %3814 = vadd.xlane.f32.xlu1 %v3813_v17 }
 0xe9e   : > { %14899 = vst [vmem:[#allocation62_spill] sm:$0xff] %v12334_v26  ;;  %v12336_v33 = vpop.f32.mrf.mxu1  ;;  %v12338_v56 = vpop.eup %8796  ;;  %v3731_v21 = vmul.f32 1.442695, %v3617_v9  ;;  %v3733_v36 = vmul.f32 1.442695, %v3618_v19  ;;  %4627 = vmax.xlane.f32.xlu0 %v4626_v5  ;;  %v14905_v5 = vld [vmem:[#allocation67_spill] sm:$0xff] }
 0xe9f   : > { %14900 = vst [vmem:[#allocation63_spill] sm:$0xff] %v12338_v56  ;;  %v12340_v0 = vpop.eup %8798  ;;  %v3551_v30 = vpop.xlane.xlu0 %3550  ;;  %v3822_v17 = vadd.f32 %v12338_v56, %v12334_v26  ;;  %v14908_v56 = vld [vmem:[#allocation70_spill] sm:$0xff] }
 0xea0   : > { %14901 = vst [vmem:[#allocation65_spill] sm:$0xff] %v12340_v0  ;;  %v12344_v11 = vpop.f32.mrf.mxu1  ;;  %v12346_v51 = vpop.eup %8800  ;;  %8810 = vpow2.f32 %v3731_v21  ;;  %v3619_v19 = vsub.f32 %v11888_v46, %v3551_v30  ;;  %v3620_v7 = vsub.f32 %v14905_v5, %v3551_v30 }
 0xea1   : > { %14902 = vst [vmem:[#allocation143_spill] sm:$0xff] %v12344_v11  ;;  %14903 = vst [vmem:[#allocation144_spill] sm:$0xff] %v12346_v51  ;;  %8812 = vpow2.f32 %v3733_v36  ;;  %4624 = vmax.xlane.f32.xlu1 %v4623_v52  ;;  %v3819_v21 = vadd.f32 %v12346_v51, %v12340_v0  ;;  %v4632_v26 = vmax.f32 %v12336_v33, %v12344_v11  ;;  %v14907_v36 = vld [vmem:[#allocation69_spill] sm:$0xff] }
 0xea2   : > { %v12350_v35 = vpop.f32.mrf.mxu1  ;;  %8814 = vpow2.f32 %v3727_v45  ;;  %3823 = vadd.xlane.f32.xlu0 %v3822_v17  ;;  %v3735_v30 = vmul.f32 1.442695, %v3619_v19  ;;  %v4629_v0 = vmax.f32 %v12322_v34, %v12326_v12  ;;  %v3737_v51 = vmul.f32 1.442695, %v3620_v7 }
 0xea3   : > { %14904 = vst [vmem:[#allocation145_spill] sm:$0xff] %v12350_v35  ;;  %8816 = vpow2.f32 %v3729_v3  ;;  %v3554_v9 = vpop.xlane.xlu1 %3553 }
 0xea4   : > { %v12354_v23 = vpop.f32.mrf.mxu1  ;;  %v3621_v52 = vsub.f32 %v14907_v36, %v3554_v9  ;;  %v3622_v16 = vsub.f32 %v14908_v56, %v3554_v9 }
 0xea5   : > { %14906 = vst [vmem:[#allocation67_spill] sm:$0xff] %v12354_v23  ;;  %v12362_v45 = vpop.eup %8802  ;;  %3820 = vadd.xlane.f32.xlu1 %v3819_v21 }
 0xea6   : > { %14909 = vst [vmem:[#allocation69_spill] sm:$0xff] %v12362_v45  ;;  %v12364_v46 = vpop.f32.mrf.mxu1  ;;  %v12366_v3 = vpop.eup %8804  ;;  %v3739_v17 = vmul.f32 1.442695, %v3621_v52  ;;  %v3741_v5 = vmul.f32 1.442695, %v3622_v16  ;;  %4633 = vmax.xlane.f32.xlu0 %v4632_v26  ;;  %v14916_v26 = vld [vmem:[#allocation73_spill] sm:$0xff] }
 0xea7   : > { %14910 = vst [vmem:[#allocation70_spill] sm:$0xff] %v12364_v46  ;;  %14911 = vst [vmem:[#allocation146_spill] sm:$0xff] %v12366_v3  ;;  %v12368_v10 = vpop.eup %8806  ;;  %v3557_v36 = vpop.xlane.xlu1 %3556  ;;  %v3828_v9 = vadd.f32 %v12366_v3, %v12362_v45  ;;  %v14919_v3 = vld [vmem:[#allocation76_spill] sm:$0xff] }
 0xea8   : > { %14912 = vst [vmem:[#allocation147_spill] sm:$0xff] %v12368_v10  ;;  %v12372_v11 = vpop.f32.mrf.mxu1  ;;  %v12374_v56 = vpop.eup %8808  ;;  %8818 = vpow2.f32 %v3739_v17  ;;  %v3623_v16 = vsub.f32 %v11910_v41, %v3557_v36  ;;  %v3624_v7 = vsub.f32 %v14916_v26, %v3557_v36 }
 0xea9   : > { %14913 = vst [vmem:[#allocation148_spill] sm:$0xff] %v12372_v11  ;;  %14914 = vst [vmem:[#allocation149_spill] sm:$0xff] %v12374_v56  ;;  %8820 = vpow2.f32 %v3741_v5  ;;  %4630 = vmax.xlane.f32.xlu1 %v4629_v0  ;;  %v3825_v17 = vadd.f32 %v12374_v56, %v12368_v10  ;;  %v4638_v45 = vmax.f32 %v12364_v46, %v12372_v11  ;;  %v14918_v5 = vld [vmem:[#allocation74_spill] sm:$0xff] }
 0xeaa   : > { %v12378_v19 = vpop.f32.mrf.mxu1  ;;  %8822 = vpow2.f32 %v3735_v30  ;;  %3829 = vadd.xlane.f32.xlu0 %v3828_v9  ;;  %v3743_v36 = vmul.f32 1.442695, %v3623_v16  ;;  %v4635_v11 = vmax.f32 %v12350_v35, %v12354_v23  ;;  %v3745_v46 = vmul.f32 1.442695, %v3624_v7 }
 0xeab   : > { %14915 = vst [vmem:[#allocation150_spill] sm:$0xff] %v12378_v19  ;;  %8824 = vpow2.f32 %v3737_v51  ;;  %v3560_v52 = vpop.xlane.xlu0 %3559 }
 0xeac   : > { %v12382_v21 = vpop.f32.mrf.mxu1  ;;  %v3625_v0 = vsub.f32 %v14918_v5, %v3560_v52  ;;  %v3626_v12 = vsub.f32 %v14919_v3, %v3560_v52 }
 0xead   : > { %14917 = vst [vmem:[#allocation73_spill] sm:$0xff] %v12382_v21  ;;  %v12390_v30 = vpop.eup %8810  ;;  %3826 = vadd.xlane.f32.xlu1 %v3825_v17 }
 0xeae   : > { %14920 = vst [vmem:[#allocation74_spill] sm:$0xff] %v12390_v30  ;;  %v12392_v41 = vpop.f32.mrf.mxu1  ;;  %v12394_v51 = vpop.eup %8812  ;;  %v3747_v9 = vmul.f32 1.442695, %v3625_v0  ;;  %v3749_v26 = vmul.f32 1.442695, %v3626_v12  ;;  %4639 = vmax.xlane.f32.xlu0 %v4638_v45  ;;  %v14927_v45 = vld [vmem:[#allocation78_spill] sm:$0xff] }
 0xeaf   : > { %14921 = vst [vmem:[#allocation76_spill] sm:$0xff] %v12392_v41  ;;  %14922 = vst [vmem:[#allocation151_spill] sm:$0xff] %v12394_v51  ;;  %v12396_v34 = vpop.eup %8814  ;;  %v3563_v3 = vpop.xlane.xlu0 %3562  ;;  %v3834_v17 = vadd.f32 %v12394_v51, %v12390_v30  ;;  %v14930_v30 = vld [vmem:[#allocation82_spill] sm:$0xff] }
 0xeb0   : > { %14923 = vst [vmem:[#allocation152_spill] sm:$0xff] %v12396_v34  ;;  %v12400_v5 = vpop.f32.mrf.mxu1  ;;  %v12402_v52 = vpop.eup %8816  ;;  %8826 = vpow2.f32 %v3747_v9  ;;  %v3627_v12 = vsub.f32 %v11932_v27, %v3563_v3  ;;  %v3628_v7 = vsub.f32 %v14927_v45, %v3563_v3 }
 0xeb1   : > { %14924 = vst [vmem:[#allocation153_spill] sm:$0xff] %v12400_v5  ;;  %14925 = vst [vmem:[#allocation154_spill] sm:$0xff] %v12402_v52  ;;  %8828 = vpow2.f32 %v3749_v26  ;;  %4636 = vmax.xlane.f32.xlu1 %v4635_v11  ;;  %v3831_v9 = vadd.f32 %v12402_v52, %v12396_v34  ;;  %v5622_v35 = vmax.f32 %v12392_v41, %v12400_v5  ;;  %v14929_v26 = vld [vmem:[#allocation80_spill] sm:$0xff]  ;;  %v14936_v52 = vld [vmem:[#allocation85_spill] sm:$0xff] }
 0xeb2   : > { %v12406_v16 = vpop.f32.mrf.mxu1  ;;  %8830 = vpow2.f32 %v3743_v36  ;;  %3835 = vadd.xlane.f32.xlu0 %v3834_v17  ;;  %v3751_v3 = vmul.f32 1.442695, %v3627_v12  ;;  %v5619_v5 = vmax.f32 %v12378_v19, %v12382_v21  ;;  %v3753_v41 = vmul.f32 1.442695, %v3628_v7 }
 0xeb3   : > { %14926 = vst [vmem:[#allocation155_spill] sm:$0xff] %v12406_v16  ;;  %8832 = vpow2.f32 %v3745_v46  ;;  %v3566_v0 = vpop.xlane.xlu1 %3565 }
 0xeb4   : > { %v12410_v23 = vpop.f32.mrf.mxu1  ;;  %v3629_v11 = vsub.f32 %v14929_v26, %v3566_v0  ;;  %v3630_v51 = vsub.f32 %v14930_v30, %v3566_v0  ;;  %v14935_v0 = vld [vmem:[#allocation83_spill] sm:$0xff] }
 0xeb5   : > { %14928 = vst [vmem:[#allocation78_spill] sm:$0xff] %v12410_v23  ;;  %v12418_v36 = vpop.eup %8818  ;;  %3832 = vadd.xlane.f32.xlu1 %v3831_v9 }
 0xeb6   : > { %14931 = vst [vmem:[#allocation80_spill] sm:$0xff] %v12418_v36  ;;  %v12420_v27 = vpop.f32.mrf.mxu1  ;;  %v12422_v46 = vpop.eup %8820  ;;  %v3755_v17 = vmul.f32 1.442695, %v3629_v11  ;;  %v3757_v45 = vmul.f32 1.442695, %v3630_v51  ;;  %5623 = vmax.xlane.f32.xlu0 %v5622_v35 }
 0xeb7   : > { %14932 = vst [vmem:[#allocation82_spill] sm:$0xff] %v12420_v27  ;;  %v12424_v10 = vpop.eup %8822  ;;  %v4547_v26 = vpop.xlane.xlu1 %4546  ;;  %v3840_v51 = vadd.f32 %v12422_v46, %v12418_v36 }
 0xeb8   : > { %14933 = vst [vmem:[#allocation156_spill] sm:$0xff] %v12424_v10  ;;  %v12428_v34 = vpop.f32.mrf.mxu1  ;;  %v12430_v30 = vpop.eup %8824  ;;  %8834 = vpow2.f32 %v3755_v17  ;;  %v4641_v9 = vsub.f32 %v14935_v0, %v4547_v26  ;;  %v4642_v56 = vsub.f32 %v14936_v52, %v4547_v26  ;;  %v14939_v26 = vld [vmem:[#allocation87_spill] sm:$0xff] }
 0xeb9   : > { %14934 = vst [vmem:[#allocation157_spill] sm:$0xff] %v12428_v34  ;;  %8836 = vpow2.f32 %v3757_v45  ;;  %5620 = vmax.xlane.f32.xlu1 %v5619_v5  ;;  %v3837_v17 = vadd.f32 %v12430_v30, %v12424_v10  ;;  %v5628_v52 = vmax.f32 %v12420_v27, %v12428_v34  ;;  %v14940_v45 = vld [vmem:[#allocation88_spill] sm:$0xff] }
 0xeba   : > { %v12436_v35 = vpop.f32.mrf.mxu1  ;;  %8838 = vpow2.f32 %v3751_v3  ;;  %3841 = vadd.xlane.f32.xlu0 %v3840_v51  ;;  %v4705_v12 = vmul.f32 1.442695, %v4641_v9  ;;  %v4707_v0 = vmul.f32 1.442695, %v4642_v56  ;;  %v5625_v56 = vmax.f32 %v12406_v16, %v12410_v23 }
 0xebb   : > { %14937 = vst [vmem:[#allocation83_spill] sm:$0xff] %v12436_v35  ;;  %8840 = vpow2.f32 %v3753_v41  ;;  %v4550_v11 = vpop.xlane.xlu0 %4549 }
 0xebc   : > { %v12438_v7 = vpop.f32.mrf.mxu1  ;;  %v4643_v21 = vsub.f32 %v14939_v26, %v4550_v11  ;;  %v4644_v5 = vsub.f32 %v14940_v45, %v4550_v11  ;;  %8842 = vpow2.f32 %v4705_v12  ;;  %v14950_v12 = vld [vmem:[#allocation92_spill] sm:$0xff] }
 0xebd   : > { %14938 = vst [vmem:[#allocation85_spill] sm:$0xff] %v12438_v7  ;;  %v12446_v19 = vpop.eup %8826  ;;  %3838 = vadd.xlane.f32.xlu1 %v3837_v17  ;;  %8844 = vpow2.f32 %v4707_v0 }
 0xebe   : > { %14941 = vst [vmem:[#allocation87_spill] sm:$0xff] %v12446_v19  ;;  %v12448_v3 = vpop.f32.mrf.mxu1  ;;  %v12450_v41 = vpop.eup %8828  ;;  %5629 = vmax.xlane.f32.xlu0 %v5628_v52  ;;  %v4709_v51 = vmul.f32 1.442695, %v4643_v21  ;;  %v4711_v11 = vmul.f32 1.442695, %v4644_v5  ;;  %v14948_v52 = vld [vmem:[#allocation90_spill] sm:$0xff] }
 0xebf   : > { %14942 = vst [vmem:[#allocation88_spill] sm:$0xff] %v12448_v3  ;;  %14943 = vst [vmem:[#allocation158_spill] sm:$0xff] %v12450_v41  ;;  %v12452_v9 = vpop.eup %8830  ;;  %v4553_v45 = vpop.xlane.xlu1 %4552  ;;  %v3846_v17 = vadd.f32 %v12450_v41, %v12446_v19  ;;  %v14956_v41 = vld [vmem:[#allocation95_spill] sm:$0xff] }
 0xec0   : > { %14944 = vst [vmem:[#allocation159_spill] sm:$0xff] %v12452_v9  ;;  %v12456_v34 = vpop.f32.mrf.mxu1  ;;  %v12458_v26 = vpop.eup %8832  ;;  %8846 = vpow2.f32 %v4709_v51  ;;  %v4645_v36 = vsub.f32 %v14948_v52, %v4553_v45  ;;  %v4646_v0 = vsub.f32 %v14950_v12, %v4553_v45  ;;  %v5631_v52 = vmax.f32 %v12436_v35, %v12438_v7 }
 0xec1   : > { %14945 = vst [vmem:[#allocation160_spill] sm:$0xff] %v12456_v34  ;;  %14946 = vst [vmem:[#allocation161_spill] sm:$0xff] %v12458_v26  ;;  %5626 = vmax.xlane.f32.xlu1 %v5625_v56  ;;  %v3843_v21 = vadd.f32 %v12458_v26, %v12452_v9  ;;  %8848 = vpow2.f32 %v4711_v11  ;;  %v5634_v5 = vmax.f32 %v12448_v3, %v12456_v34  ;;  %v14954_v9 = vld [vmem:[#allocation93_spill] sm:$0xff] }
 0xec2   : > { %v12462_v27 = vpop.f32.mrf.mxu1  ;;  %3847 = vadd.xlane.f32.xlu0 %v3846_v17  ;;  %v4713_v11 = vmul.f32 1.442695, %v4645_v36  ;;  %v4715_v3 = vmul.f32 1.442695, %v4646_v0 }
 0xec3   : > { %14947 = vst [vmem:[#allocation162_spill] sm:$0xff] %v12462_v27  ;;  %v4556_v16 = vpop.xlane.xlu0 %4555 }
 0xec4   : > { %v12465_v23 = vpop.f32.mrf.mxu1  ;;  %v4647_v45 = vsub.f32 %v14954_v9, %v4556_v16  ;;  %8850 = vpow2.f32 %v4713_v11 }
 0xec5   : > { %14949 = vst [vmem:[#allocation90_spill] sm:$0xff] %v12465_v23  ;;  %v12472_v19 = vpop.eup %8834  ;;  %3844 = vadd.xlane.f32.xlu1 %v3843_v21  ;;  %v4648_v21 = vsub.f32 %v14956_v41, %v4556_v16  ;;  %8852 = vpow2.f32 %v4715_v3 }
 0xec6   : > { %14951 = vst [vmem:[#allocation92_spill] sm:$0xff] %v12472_v19  ;;  %v12474_v56 = vpop.f32.mrf.mxu1  ;;  %v12476_v51 = vpop.eup %8836  ;;  %5635 = vmax.xlane.f32.xlu0 %v5634_v5  ;;  %v4717_v10 = vmul.f32 1.442695, %v4647_v45 }
 0xec7   : > { %14952 = vst [vmem:[#allocation163_spill] sm:$0xff] %v12474_v56  ;;  %v12478_v17 = vpop.eup %8838  ;;  %v3852_v26 = vadd.f32 %v12476_v51, %v12472_v19  ;;  %v4719_v0 = vmul.f32 1.442695, %v4648_v21  ;;  %v4559_v35 = vpop.xlane.xlu1 %4558  ;;  %v14963_v21 = vld [vmem:[#allocation96_spill] sm:$0xff] }
 0xec8   : > { %14953 = vst [vmem:[#allocation164_spill] sm:$0xff] %v12478_v17  ;;  %v12483_v12 = vpop.f32.mrf.mxu1  ;;  %v12485_v34 = vpop.eup %8840  ;;  %8854 = vpow2.f32 %v4717_v10  ;;  %v4649_v11 = vsub.f32 %v11996_v58, %v4559_v35 }
 0xec9   : > { %14955 = vst [vmem:[#allocation93_spill] sm:$0xff] %v12483_v12  ;;  %5632 = vmax.xlane.f32.xlu1 %v5631_v52  ;;  %v3849_v36 = vadd.f32 %v12485_v34, %v12478_v17  ;;  %v12496_v9 = vpop.eup %8842  ;;  %v5640_v16 = vmax.f32 %v12474_v56, %v12483_v12  ;;  %8856 = vpow2.f32 %v4719_v0  ;;  %v4650_v12 = vsub.f32 %v14963_v21, %v4559_v35 }
 0xeca   : > { %v12490_v5 = vpop.f32.mrf.mxu1  ;;  %3853 = vadd.xlane.f32.xlu0 %v3852_v26  ;;  %14959 = vst [vmem:[#allocation166_spill] sm:$0xff] %v12496_v9  ;;  %v12500_v41 = vpop.eup %8844  ;;  %v5637_v26 = vmax.f32 %v12462_v27, %v12465_v23  ;;  %v4721_v58 = vmul.f32 1.442695, %v4649_v11 }
 0xecb   : > { %14957 = vst [vmem:[#allocation95_spill] sm:$0xff] %v12490_v5  ;;  %14960 = vst [vmem:[#allocation167_spill] sm:$0xff] %v12500_v41  ;;  %v4562_v45 = vpop.xlane.xlu0 %4561  ;;  %v4723_v0 = vmul.f32 1.442695, %v4650_v12 }
 0xecc   : > { %v12492_v7 = vpop.f32.mrf.mxu1  ;;  %v4651_v10 = vsub.f32 %v12008_v32, %v4562_v45  ;;  %v4652_v35 = vsub.f32 %v12010_v18, %v4562_v45  ;;  %8858 = vpow2.f32 %v4721_v58 }
 0xecd   : > { %14958 = vst [vmem:[#allocation165_spill] sm:$0xff] %v12492_v7  ;;  %3850 = vadd.xlane.f32.xlu1 %v3849_v36  ;;  %v12509_v3 = vpop.eup %8846  ;;  %v4833_v36 = vadd.f32 %v12500_v41, %v12496_v9  ;;  %v5643_v27 = vmax.f32 %v12490_v5, %v12492_v7  ;;  %8860 = vpow2.f32 %v4723_v0 }
 0xece   : > { %v12502_v52 = vpop.f32.mrf.mxu1  ;;  %5641 = vmax.xlane.f32.xlu0 %v5640_v16  ;;  %v12514_v56 = vpop.eup %8848  ;;  %v4725_v9 = vmul.f32 1.442695, %v4651_v10  ;;  %v4727_v18 = vmul.f32 1.442695, %v4652_v35 }
 0xecf   : > { %14961 = vst [vmem:[#allocation168_spill] sm:$0xff] %v12502_v52  ;;  %v4565_v23 = vpop.xlane.xlu1 %4564  ;;  %v4836_v21 = vadd.f32 %v12514_v56, %v12509_v3 }
 0xed0   : > { %v12507_v19 = vpop.f32.mrf.mxu1  ;;  %v4653_v10 = vsub.f32 %v12016_v15, %v4565_v23 }
 0xed1   : > { %14962 = vst [vmem:[#allocation169_spill] sm:$0xff] %v12507_v19  ;;  %5638 = vmax.xlane.f32.xlu1 %v5637_v26  ;;  %v12532_v7 = vpop.eup %8850  ;;  %v5646_v12 = vmax.f32 %v12502_v52, %v12507_v19 }
 0xed2   : > { %v12516_v16 = vpop.f32.mrf.mxu1  ;;  %4834 = vadd.xlane.f32.xlu0 %v4833_v36  ;;  %14968 = vst [vmem:[#allocation173_spill] sm:$0xff] %v12532_v7 }
 0xed3   : > { %14964 = vst [vmem:[#allocation96_spill] sm:$0xff] %v12516_v16  ;;  %v4568_v41 = vpop.xlane.xlu0 %4567 }
 0xed4   : > { %v12521_v17 = vpop.f32.mrf.mxu1 }
 0xed5   : > { %14965 = vst [vmem:[#allocation170_spill] sm:$0xff] %v12521_v17  ;;  %5644 = vmax.xlane.f32.xlu1 %v5643_v27  ;;  %v5649_v11 = vmax.f32 %v12516_v16, %v12521_v17  ;;  %v12536_v27 = vpop.eup %8852  ;;  %v4654_v17 = vsub.f32 %v12022_v53, %v4565_v23  ;;  %v4656_v53 = vsub.f32 %v12030_v29, %v4568_v41 }
 0xed6   : > { %v12526_v26 = vpop.f32.mrf.mxu1  ;;  %v3761_v32 = vpop.xlane.xlu1 %3760  ;;  %4837 = vadd.xlane.f32.xlu0 %v4836_v21 }
 0xed7   : > { %14966 = vst [vmem:[#allocation171_spill] sm:$0xff] %v12526_v26  ;;  %8862 = vrcp.f32 %v3761_v32  ;;  %v12546_v19 = vpop.eup %8854  ;;  %v4655_v32 = vsub.f32 %v12028_v47, %v4568_v41 }
 0xed8   : > { %v12530_v36 = vpop.f32.mrf.mxu1  ;;  %8864 = vpow2.f32 %v4725_v9  ;;  %14971 = vst [vmem:[#allocation176_spill] sm:$0xff] %v12546_v19  ;;  %v4839_v9 = vadd.f32 %v12536_v27, %v12532_v7 }
 0xed9   : > { %14967 = vst [vmem:[#allocation172_spill] sm:$0xff] %v12530_v36  ;;  %5650 = vmax.xlane.f32.xlu1 %v5649_v11  ;;  %v12553_v11 = vpop.eup %8856 }
 0xeda   : > { %v12538_v45 = vpop.f32.mrf.mxu1  ;;  %v4571_v58 = vpop.xlane.xlu1 %4570  ;;  %5647 = vmax.xlane.f32.xlu0 %v5646_v12  ;;  %v4729_v12 = vmul.f32 1.442695, %v4653_v10 }
 0xedb   : > { %14969 = vst [vmem:[#allocation174_spill] sm:$0xff] %v12538_v45  ;;  %v3764_v21 = vpop.xlane.xlu0 %3763  ;;  %v4657_v0 = vsub.f32 %v12038_v39, %v4571_v58  ;;  %v4658_v35 = vsub.f32 %v12046_v43, %v4571_v58 }
 0xedc   : > { %8866 = vrcp.f32 %v3764_v21  ;;  %v12544_v16 = vpop.f32.mrf.mxu1  ;;  %v4733_v21 = vmul.f32 1.442695, %v4655_v32 }
 0xedd   : > { %14970 = vst [vmem:[#allocation175_spill] sm:$0xff] %v12544_v16  ;;  %8868 = vpow2.f32 %v4727_v18  ;;  %v5655_v15 = vmax.f32 %v12538_v45, %v12544_v16  ;;  %v4737_v39 = vmul.f32 1.442695, %v4657_v0  ;;  %v4739_v43 = vmul.f32 1.442695, %v4658_v35  ;;  %v12568_v0 = vpop.eup %8858 }
 0xede   : > { %v12556_v23 = vpop.f32.mrf.mxu1  ;;  %v3767_v58 = vpop.xlane.xlu1 %3766  ;;  %4840 = vadd.xlane.f32.xlu0 %v4839_v9  ;;  %v4731_v18 = vmul.f32 1.442695, %v4654_v17  ;;  %v4842_v16 = vadd.f32 %v12553_v11, %v12546_v19  ;;  %v4735_v45 = vmul.f32 1.442695, %v4656_v53  ;;  %14974 = vst [vmem:[#allocation179_spill] sm:$0xff] %v12568_v0  ;;  %v5652_v35 = vmax.f32 %v12526_v26, %v12530_v36  ;;  %v14980_v36 = vld [vmem:[#allocation97_spill] sm:$0xff] }
 0xedf   : > { %5656 = vmax.xlane.f32.xlu1 %v5655_v15  ;;  %8870 = vpow2.f32 %v4737_v39  ;;  %v4574_v32 = vpop.xlane.xlu0 %4573  ;;  %v12574_v9 = vpop.eup %8860 }
 0xee0   : > { %v12558_v47 = vpop.f32.mrf.mxu1  ;;  %8872 = vpow2.f32 %v4739_v43  ;;  %14975 = vst [vmem:[#allocation180_spill] sm:$0xff] %v12574_v9 }
 0xee1   : > { %8874 = vpow2.f32 %v4729_v12  ;;  %v4659_v12 = vsub.f32 %v12052_v44, %v4574_v32 }
 0xee2   : > { %v12562_v52 = vpop.f32.mrf.mxu1  ;;  %v4577_v29 = vpop.xlane.xlu1 %4576  ;;  %4843 = vadd.xlane.f32.xlu0 %v4842_v16  ;;  %8876 = vpow2.f32 %v4731_v18 }
 0xee3   : > { %14972 = vst [vmem:[#allocation177_spill] sm:$0xff] %v12562_v52  ;;  %v4661_v41 = vsub.f32 %v12066_v60, %v4577_v29  ;;  %v4662_v10 = vsub.f32 %v12078_v61, %v4577_v29  ;;  %8878 = vpow2.f32 %v4733_v21  ;;  %v14976_v29 = vld [vmem:[#allocation101_spill] sm:$0xff]  ;;  %v4580_v5 = vpop.xlane.xlu0 %4579 }
 0xee4   : > { %v12566_v17 = vpop.f32.mrf.mxu1  ;;  %8880 = vpow2.f32 %v4735_v45  ;;  %v8863_v61 = vpop.eup %8862  ;;  %v4845_v45 = vadd.f32 %v12574_v9, %v12568_v0 }
 0xee5   : > { %14973 = vst [vmem:[#allocation178_spill] sm:$0xff] %v12566_v17  ;;  %v5661_v15 = vmax.f32 %v12562_v52, %v12566_v17  ;;  %v4745_v16 = vmul.f32 1.442695, %v4661_v41  ;;  %v4747_v53 = vmul.f32 1.442695, %v4662_v10  ;;  %8882 = vrcp.f32 %v3767_v58  ;;  %v12578_v43 = vpop.eup %8864  ;;  %v14978_v10 = vld [vmem:[#allocation98_spill] sm:$0xff] }
 0xee6   : > { %v12576_v60 = vpop.f32.mrf.mxu1  ;;  %v3770_v39 = vpop.xlane.xlu1 %3769  ;;  %5653 = vmax.xlane.f32.xlu0 %v5652_v35  ;;  %v4660_v17 = vsub.f32 %v14976_v29, %v4574_v32  ;;  %v3857_v35 = vmul.f32 %v8863_v61, %v14978_v10  ;;  %v3856_v44 = vmul.f32 %v8863_v61, %v14980_v36  ;;  %v4741_v32 = vmul.f32 1.442695, %v4659_v12 }
 0xee7   : > { %5662 = vmax.xlane.f32.xlu1 %v5661_v15  ;;  %8884 = vpow2.f32 %v4745_v16  ;;  %v14979_v15 = vld [vmem:[#allocation100_spill] sm:$0xff]  ;;  %v14981_v16 = vld [vmem:[#allocation99_spill] sm:$0xff] }
 0xee8   : > { %v12581_v18 = vpop.f32.mrf.mxu1  ;;  %8886 = vpow2.f32 %v4747_v53  ;;  %v4743_v19 = vmul.f32 1.442695, %v4660_v17 }
 0xee9   : > { %v8867_v21 = vpop.eup %8866  ;;  %8888 = vrcp.f32 %v3770_v39 }
 0xeea   : > { %v12586_v41 = vpop.eup %8868  ;;  %v12588_v58 = vpop.f32.mrf.mxu1  ;;  %v3860_v52 = vmul.f32 %v8867_v21, %v14979_v15  ;;  %v3859_v26 = vmul.f32 %v8867_v21, %v14981_v16  ;;  %4846 = vadd.xlane.f32.xlu0 %v4845_v45  ;;  %8890 = vpow2.f32 %v4741_v32  ;;  %v14986_v45 = vld [vmem:[#allocation66_spill] sm:$0xff]  ;;  %v14987_v16 = vld [vmem:[#allocation105_spill] sm:$0xff]  ;;  %v14988_v32 = vld [vmem:[#allocation44_spill] sm:$0xff] }
 0xeeb   : > { %14977 = vst [vmem:[#allocation101_spill] sm:$0xff] %v12588_v58  ;;  %v3773_v7 = vpop.xlane.xlu1 %3772  ;;  %v4848_v10 = vadd.f32 %v12586_v41, %v12578_v43  ;;  %v4586_v61 = vpop.xlane.xlu0 %4585  ;;  %8892 = vpow2.f32 %v4743_v19 }
 0xeec   : > { %v12594_v53 = vpop.f32.mrf.mxu1  ;;  %v3952_v29 = vpack.c.bf16 %v3860_v52, %v3857_v35  ;;  %v3951_v0 = vpack.c.bf16 %v3859_v26, %v3856_v44  ;;  %v12596_v9 = vpop.eup %8870  ;;  %v4663_v26 = vsub.f32 %v12082_v48, %v4580_v5  ;;  %8894 = vrcp.f32 %v3773_v7  ;;  %v14995_v7 = vld [vmem:[#allocation37_spill] sm:$0xff] }
 0xeed   : > { %14982 = vst [vmem:[#allocation98_spill] sm:$0xff] %v12594_v53  ;;  %14983 = vst [vmem:[#allocation100_spill] sm:$0xff] %v12596_v9  ;;  %v12600_v15 = vpop.eup %8872  ;;  %v5667_v19 = vmax.f32 %v12588_v58, %v12594_v53  ;;  %v14998_v58 = vld [vmem:[#allocation43_spill] sm:$0xff] }
 0xeee   : > { %14984 = vst [vmem:[#allocation97_spill] sm:$0xff] %v12600_v15  ;;  %4063 = vmatprep.mubr.bf16.mxu0 %v3952_v29  ;;  %v12602_v36 = vpop.f32.mrf.mxu1  ;;  %v4857_v39 = vadd.f32 %v12600_v15, %v12596_v9  ;;  %4849 = vadd.xlane.f32.xlu0 %v4848_v10  ;;  %v12606_v52 = vpop.eup %8874  ;;  %v4664_v29 = vsub.f32 %v14987_v16, %v4580_v5  ;;  %v4749_v16 = vmul.f32 1.442695, %v4663_v26 }
 0xeef   : > { %v4583_v21 = vpop.xlane.xlu1 %4582  ;;  %4064 = vmatmul.mubr.bf16.vlgmr.msra.gmra.mxu0 %v3951_v0  ;;  %14985 = vst [vmem:[#allocation99_spill] sm:$0xff] %v12606_v52  ;;  %v12614_v44 = vpop.eup %8876  ;;  %v5658_v0 = vmax.f32 %v12556_v23, %v12558_v47  ;;  %v4668_v9 = vsub.f32 %v12116_v25, %v4586_v61 }
 0xef0   : > { %v4665_v17 = vsub.f32 %v12096_v50, %v4583_v21  ;;  %v4666_v12 = vsub.f32 %v12106_v54, %v4583_v21  ;;  %7935 = vmatpush3.bf16.msra.mxu0 %v14986_v45  ;;  %v12612_v35 = vpop.f32.mrf.mxu1  ;;  %4858 = vadd.xlane.f32.xlu1 %v4857_v39  ;;  %v12620_v48 = vpop.eup %8878  ;;  %v4667_v50 = vsub.f32 %v12114_v57, %v4586_v61  ;;  %v4751_v15 = vmul.f32 1.442695, %v4664_v29  ;;  %v14997_v29 = vld [vmem:[#allocation71_spill] sm:$0xff] }
 0xef1   : > { %7936 = vmatprep.subr.bf16.mxu0 %v14988_v32  ;;  %14989 = vst [vmem:[#allocation66_spill] sm:$0xff] %v12620_v48  ;;  %v12625_v45 = vpop.eup %8880  ;;  %v14992_v32 = vld [vmem:[#allocation54_spill] sm:$0xff]  ;;  %v4851_v25 = vadd.f32 %v12614_v44, %v12606_v52 }
 0xef2   : > { %v4753_v54 = vmul.f32 1.442695, %v4665_v17  ;;  %v4755_v10 = vmul.f32 1.442695, %v4666_v12  ;;  %v12623_v21 = vpop.f32.mrf.mxu1  ;;  %14991 = vst [vmem:[#allocation44_spill] sm:$0xff] %v12625_v45  ;;  %5659 = vmax.xlane.f32.xlu0 %v5658_v0  ;;  %v8883_v39 = vpop.eup %8882 }
 0xef3   : > { %14990 = vst [vmem:[#allocation105_spill] sm:$0xff] %v12623_v21  ;;  %v3776_v5 = vpop.xlane.xlu1 %3775  ;;  %v12633_v17 = vpop.xlane.xlu0 %4591  ;;  %v4757_v26 = vmul.f32 1.442695, %v4667_v50  ;;  %v14999_v50 = vld [vmem:[#allocation103_spill] sm:$0xff] }
 0xef4   : > { %8896 = vpow2.f32 %v4753_v54  ;;  %7937 = vmatpush3.bf16.msra.mxu0 %v14992_v32  ;;  %v12631_v57 = vpop.f32.mrf.mxu1  ;;  %v12635_v12 = vpop.eup %8884  ;;  %5668 = vmax.xlane.f32.xlu1 %v5667_v19  ;;  %v4759_v54 = vmul.f32 1.442695, %v4668_v9  ;;  %v4854_v9 = vadd.f32 %v12625_v45, %v12620_v48  ;;  %v15003_v45 = vld [vmem:[#allocation53_spill] sm:$0xff] }
 0xef5   : > { %14993 = vst [vmem:[#allocation54_spill] sm:$0xff] %v12631_v57  ;;  %14994 = vst [vmem:[#allocation181_spill] sm:$0xff] %v12635_v12  ;;  %8898 = vpow2.f32 %v4755_v10  ;;  %7938 = vmatprep.subr.bf16.mxu0 %v14995_v7  ;;  %v12640_v61 = vpop.eup %8886 }
 0xef6   : > { %14996 = vst [vmem:[#allocation37_spill] sm:$0xff] %v12640_v61  ;;  %8900 = vrcp.f32 %v3776_v5  ;;  %v12642_v0 = vpop.f32.mrf.mxu1  ;;  %v4863_v53 = vadd.f32 %v12640_v61, %v12635_v12  ;;  %4852 = vadd.xlane.f32.xlu0 %v4851_v25  ;;  %v8889_v7 = vpop.eup %8888  ;;  %v3863_v5 = vmul.f32 %v8883_v39, %v14999_v50  ;;  %v15002_v61 = vld [vmem:[#allocation104_spill] sm:$0xff] }
 0xef7   : > { %v3779_v32 = vpop.xlane.xlu1 %3778  ;;  %8902 = vpow2.f32 %v4749_v16  ;;  %v3785_v19 = vpop.xlane.xlu0 %3784  ;;  %v3866_v12 = vmul.f32 %v8889_v7, %v12090_v4  ;;  %v15001_v16 = vld [vmem:[#allocation102_spill] sm:$0xff]  ;;  %v3865_v52 = vmul.f32 %v8889_v7, %v15002_v61  ;;  %v5664_v7 = vmax.f32 %v12576_v60, %v12581_v18 }
 0xef8   : > { %7939 = vmatpush3.bf16.msra.mxu0 %v14997_v29  ;;  %v12647_v10 = vpop.f32.mrf.mxu1  ;;  %8904 = vpow2.f32 %v4751_v15  ;;  %4864 = vadd.xlane.f32.xlu1 %v4863_v53  ;;  %v3862_v29 = vmul.f32 %v8883_v39, %v15001_v16  ;;  %v5673_v53 = vmax.f32 %v12623_v21, %v12631_v57 }
 0xef9   : > { %7940 = vmatprep.subr.bf16.mxu0 %v14998_v58  ;;  %8906 = vpow2.f32 %v4757_v26  ;;  %v4671_v58 = vsub.f32 %v12138_v49, %v12633_v17  ;;  %v3954_v50 = vpack.c.bf16 %v3866_v12, %v3863_v5  ;;  %v4672_v49 = vsub.f32 %v12142_v63, %v12633_v17  ;;  %v15006_v12 = vld [vmem:[#allocation56_spill] sm:$0xff]  ;;  %v15008_v63 = vld [vmem:[#allocation75_spill] sm:$0xff] }
 0xefa   : > { %v12654_v25 = vpop.f32.mrf.mxu1  ;;  %8908 = vpow2.f32 %v4759_v54  ;;  %4855 = vadd.xlane.f32.xlu0 %v4854_v9  ;;  %v3953_v48 = vpack.c.bf16 %v3865_v52, %v3862_v29  ;;  %v12667_v54 = vpop.eup %8890 }
 0xefb   : > { %15000 = vst [vmem:[#allocation71_spill] sm:$0xff] %v12654_v25  ;;  %v4589_v15 = vpop.xlane.xlu1 %4588  ;;  %v3788_v61 = vpop.xlane.xlu0 %3787  ;;  %15005 = vst [vmem:[#allocation103_spill] sm:$0xff] %v12667_v54  ;;  %8910 = vrcp.f32 %v3779_v32  ;;  %4071 = vmatprep.mubr.bf16.mxu0 %v3954_v50  ;;  %v4765_v5 = vmul.f32 1.442695, %v4671_v58 }
 0xefc   : > { %v4669_v26 = vsub.f32 %v12122_v22, %v4589_v15  ;;  %v4670_v4 = vsub.f32 %v12132_v20, %v4589_v15  ;;  %7941 = vmatpush3.bf16.msra.mxu0 %v15003_v45  ;;  %v12665_v39 = vpop.f32.mrf.mxu1  ;;  %5674 = vmax.xlane.f32.xlu1 %v5673_v53  ;;  %v12674_v22 = vpop.eup %8892  ;;  %8912 = vrcp.f32 %v3785_v19  ;;  %v4767_v19 = vmul.f32 1.442695, %v4672_v49  ;;  %v15010_v53 = vld [vmem:[#allocation40_spill] sm:$0xff] }
 0xefd   : > { %15004 = vst [vmem:[#allocation43_spill] sm:$0xff] %v12665_v39  ;;  %7942 = vmatprep.subr.bf16.mxu0 %v15006_v12  ;;  %15007 = vst [vmem:[#allocation102_spill] sm:$0xff] %v12674_v22  ;;  %4072 = vmatmul.mubr.bf16.gmra.mxu0 %v3953_v48  ;;  %8914 = vrcp.f32 %v3788_v61  ;;  %v8895_v16 = vpop.eup %8894  ;;  %v4860_v58 = vadd.f32 %v12674_v22, %v12667_v54  ;;  %v15012_v12 = vld [vmem:[#allocation45_spill] sm:$0xff] }
 0xefe   : > { %v4761_v20 = vmul.f32 1.442695, %v4669_v26  ;;  %v4763_v52 = vmul.f32 1.442695, %v4670_v4  ;;  %v12676_v45 = vpop.f32.mrf.mxu1  ;;  %5665 = vmax.xlane.f32.xlu0 %v5664_v7  ;;  %v3869_v61 = vmul.f32 %v8895_v16, %v12110_v59 }
 0xeff   : > { %v3782_v9 = vpop.xlane.xlu1 %3781  ;;  %v4598_v32 = vpop.xlane.xlu0 %4597 }
 0xf00   : > { %8916 = vpow2.f32 %v4761_v20  ;;  %7943 = vmatpush3.bf16.msra.mxu0 %v15008_v63  ;;  %v12679_v17 = vpop.f32.mrf.mxu1  ;;  %v4675_v59 = vsub.f32 %v12168_v8, %v4598_v32 }
 0xf01   : > { %v12681_v29 = vpop.eup %8896  ;;  %8918 = vpow2.f32 %v4763_v52  ;;  %7944 = vmatprep.subr.bf16.mxu0 %v15010_v53  ;;  %v15014_v53 = vld [vmem:[#allocation107_spill] sm:$0xff] }
 0xf02   : > { %15009 = vst [vmem:[#allocation104_spill] sm:$0xff] %v12681_v29  ;;  %v12686_v48 = vpop.eup %8898  ;;  %8920 = vrcp.f32 %v3782_v9  ;;  %v12688_v15 = vpop.f32.mrf.mxu1  ;;  %4861 = vadd.xlane.f32.xlu0 %v4860_v58  ;;  %v15013_v9 = vld [vmem:[#allocation108_spill] sm:$0xff]  ;;  %v5670_v58 = vmax.f32 %v12602_v36, %v12612_v35 }
 0xf03   : > { %15011 = vst [vmem:[#allocation53_spill] sm:$0xff] %v12686_v48  ;;  %v8901_v50 = vpop.eup %8900  ;;  %8922 = vpow2.f32 %v4765_v5  ;;  %v4595_v26 = vpop.xlane.xlu1 %4594  ;;  %v4869_v4 = vadd.f32 %v12686_v48, %v12681_v29  ;;  %v4676_v29 = vsub.f32 %v12176_v2, %v4598_v32 }
 0xf04   : > { %v4673_v7 = vsub.f32 %v12152_v40, %v4595_v26  ;;  %v4674_v49 = vsub.f32 %v12158_v6, %v4595_v26  ;;  %7945 = vmatpush3.bf16.msra.mxu0 %v15012_v12  ;;  %v12696_v20 = vpop.f32.mrf.mxu1  ;;  %v3794_v52 = vpop.xlane.xlu0 %3793  ;;  %v3872_v63 = vmul.f32 %v8901_v50, %v15013_v9  ;;  %v3871_v5 = vmul.f32 %v8901_v50, %v15014_v53  ;;  %v15016_v40 = vld [vmem:[#allocation55_spill] sm:$0xff]  ;;  %v15017_v6 = vld [vmem:[#allocation106_spill] sm:$0xff] }
 0xf05   : > { %v12700_v57 = vpop.eup %8902  ;;  %8924 = vpow2.f32 %v4767_v19  ;;  %4870 = vadd.xlane.f32.xlu1 %v4869_v4  ;;  %7946 = vmatprep.subr.bf16.mxu0 %v15016_v40  ;;  %v3868_v26 = vmul.f32 %v8895_v16, %v15017_v6  ;;  %v5679_v19 = vmax.f32 %v12654_v25, %v12665_v39  ;;  %v15019_v16 = vld [vmem:[#allocation79_spill] sm:$0xff] }
 0xf06   : > { %15015 = vst [vmem:[#allocation56_spill] sm:$0xff] %v12700_v57  ;;  %v12707_v12 = vpop.eup %8904  ;;  %v4769_v9 = vmul.f32 1.442695, %v4673_v7  ;;  %v4771_v48 = vmul.f32 1.442695, %v4674_v49  ;;  %v3956_v50 = vpack.c.bf16 %v3872_v63, %v3869_v61  ;;  %v12710_v53 = vpop.f32.mrf.mxu1  ;;  %8926 = vrcp.f32 %v3794_v52  ;;  %5671 = vmax.xlane.f32.xlu0 %v5670_v58  ;;  %v15020_v63 = vld [vmem:[#allocation42_spill] sm:$0xff] }
 0xf07   : > { %15018 = vst [vmem:[#allocation75_spill] sm:$0xff] %v12707_v12  ;;  %v12712_v21 = vpop.eup %8906  ;;  %v3791_v8 = vpop.xlane.xlu1 %3790  ;;  %v3955_v4 = vpack.c.bf16 %v3871_v5, %v3868_v26  ;;  %v4773_v61 = vmul.f32 1.442695, %v4675_v59  ;;  %v4866_v7 = vadd.f32 %v12707_v12, %v12700_v57  ;;  %v4775_v52 = vmul.f32 1.442695, %v4676_v29 }
 0xf08   : > { %v12716_v40 = vpop.eup %8908  ;;  %8928 = vpow2.f32 %v4769_v9  ;;  %4079 = vmatprep.mubr.bf16.mxu0 %v3956_v50  ;;  %7947 = vmatpush3.bf16.msra.mxu0 %v15019_v16  ;;  %v12719_v2 = vpop.f32.mrf.mxu1  ;;  %v15021_v9 = vld [vmem:[#allocation35_spill] sm:$0xff]  ;;  %v15024_v16 = vld [vmem:[#allocation30_spill] sm:$0xff] }
 0xf09   : > { %v4604_v32 = vpop.xlane.xlu0 %4603  ;;  %8930 = vpow2.f32 %v4771_v48  ;;  %4080 = vmatmul.mubr.bf16.gmra.mxu0 %v3955_v4  ;;  %5680 = vmax.xlane.f32.xlu1 %v5679_v19  ;;  %v8911_v49 = vpop.eup %8910 }
 0xf0a   : > { %8932 = vrcp.f32 %v3791_v8  ;;  %7948 = vmatprep.subr.bf16.mxu0 %v15020_v63  ;;  %v12724_v5 = vpop.f32.mrf.mxu1  ;;  %v12726_v58 = vpop.eup %8912  ;;  %4867 = vadd.xlane.f32.xlu0 %v4866_v7  ;;  %v5676_v8 = vmax.f32 %v12642_v0, %v12647_v10  ;;  %v4679_v4 = vsub.f32 %v12196_v1, %v4604_v32  ;;  %v3875_v1 = vmul.f32 %v8911_v49, %v12146_v31 }
 0xf0b   : > { %v4601_v6 = vpop.xlane.xlu1 %4600  ;;  %v12728_v26 = vpop.eup %8914  ;;  %8934 = vpow2.f32 %v4773_v61  ;;  %v15026_v61 = vld [vmem:[#allocation109_spill] sm:$0xff]  ;;  %v4872_v31 = vadd.f32 %v12716_v40, %v12712_v21 }
 0xf0c   : > { %v4677_v48 = vsub.f32 %v12182_v42, %v4601_v6  ;;  %v4678_v59 = vsub.f32 %v12186_v38, %v4601_v6  ;;  %7949 = vmatpush3.bf16.msra.mxu0 %v15021_v9  ;;  %v12733_v50 = vpop.f32.mrf.mxu1  ;;  %8936 = vpow2.f32 %v4775_v52  ;;  %v4680_v42 = vsub.f32 %v12204_v37, %v4604_v32  ;;  %v15028_v32 = vld [vmem:[#allocation115_spill] sm:$0xff] }
 0xf0d   : > { %15022 = vst [vmem:[#allocation40_spill] sm:$0xff] %v12733_v50  ;;  %v3800_v29 = vpop.xlane.xlu0 %3799  ;;  %v12735_v19 = vpop.eup %8916  ;;  %8094 = vmatprep.subr.bf16.mxu0 %v15024_v16  ;;  %v3874_v16 = vmul.f32 %v8911_v49, %v15026_v61  ;;  %v4781_v22 = vmul.f32 1.442695, %v4679_v4  ;;  %v15031_v49 = vld [vmem:[#allocation111_spill] sm:$0xff] }
 0xf0e   : > { %15023 = vst [vmem:[#allocation45_spill] sm:$0xff] %v12735_v19  ;;  %v12741_v7 = vpop.eup %8918  ;;  %v4777_v38 = vmul.f32 1.442695, %v4677_v48  ;;  %v4779_v63 = vmul.f32 1.442695, %v4678_v59  ;;  %v12744_v6 = vpop.f32.mrf.mxu1  ;;  %8938 = vrcp.f32 %v3800_v29  ;;  %5677 = vmax.xlane.f32.xlu0 %v5676_v8  ;;  %v15029_v59 = vld [vmem:[#allocation114_spill] sm:$0xff]  ;;  %v3881_v8 = vmul.f32 %v12726_v58, %v15031_v49 }
 0xf0f   : > { %15025 = vst [vmem:[#allocation108_spill] sm:$0xff] %v12741_v7  ;;  %v8921_v9 = vpop.eup %8920  ;;  %v3797_v39 = vpop.xlane.xlu1 %3796  ;;  %v4875_v25 = vadd.f32 %v12741_v7, %v12735_v19  ;;  %v15030_v29 = vld [vmem:[#allocation113_spill] sm:$0xff]  ;;  %v4783_v61 = vmul.f32 1.442695, %v4680_v42 }
 0xf10   : > { %v12750_v57 = vpop.eup %8922  ;;  %8940 = vpow2.f32 %v4777_v38  ;;  %v12752_v52 = vpop.f32.mrf.mxu1  ;;  %v3878_v48 = vmul.f32 %v8921_v9, %v15028_v32  ;;  %v3877_v12 = vmul.f32 %v8921_v9, %v15029_v59  ;;  %v3884_v54 = vmul.f32 %v12728_v26, %v15030_v29 }
 0xf11   : > { %15027 = vst [vmem:[#allocation107_spill] sm:$0xff] %v12750_v57  ;;  %v4610_v37 = vpop.xlane.xlu0 %4609  ;;  %8942 = vpow2.f32 %v4779_v63  ;;  %4876 = vadd.xlane.f32.xlu1 %v4875_v25  ;;  %v5685_v9 = vmax.f32 %v12688_v15, %v12696_v20 }
 0xf12   : > { %v12762_v38 = vpop.eup %8924  ;;  %8944 = vrcp.f32 %v3797_v39  ;;  %v3958_v19 = vpack.c.bf16 %v3878_v48, %v3875_v1  ;;  %v3957_v32 = vpack.c.bf16 %v3877_v12, %v3874_v16  ;;  %v12766_v59 = vpop.f32.mrf.mxu1  ;;  %4873 = vadd.xlane.f32.xlu0 %v4872_v31  ;;  %v3960_v49 = vpack.c.bf16 %v3884_v54, %v3881_v8 }
 0xf13   : > { %15032 = vst [vmem:[#allocation55_spill] sm:$0xff] %v12762_v38  ;;  %v4607_v4 = vpop.xlane.xlu1 %4606  ;;  %v12768_v25 = vpop.eup %8926  ;;  %v5682_v39 = vmax.f32 %v12676_v45, %v12679_v17  ;;  %8946 = vpow2.f32 %v4781_v22  ;;  %v4683_v12 = vsub.f32 %v12224_v55, %v4610_v37  ;;  %v15036_v55 = vld [vmem:[#allocation112_spill] sm:$0xff] }
 0xf14   : > { %4087 = vmatprep.mubr.bf16.mxu0 %v3958_v19  ;;  %v4681_v63 = vsub.f32 %v12210_v14, %v4607_v4  ;;  %v4682_v29 = vsub.f32 %v12214_v24, %v4607_v4  ;;  %8948 = vpow2.f32 %v4783_v61  ;;  %v4684_v19 = vsub.f32 %v12232_v28, %v4610_v37  ;;  %v12780_v54 = vpop.f32.mrf.mxu1  ;;  %v15037_v61 = vld [vmem:[#allocation119_spill] sm:$0xff]  ;;  %v15038_v37 = vld [vmem:[#allocation110_spill] sm:$0xff] }
 0xf15   : > { %v3806_v7 = vpop.xlane.xlu0 %3805  ;;  %v12772_v42 = vpop.eup %8928  ;;  %4088 = vmatmul.mubr.bf16.gmra.mxu0 %v3957_v32  ;;  %5686 = vmax.xlane.f32.xlu1 %v5685_v9  ;;  %15035 = vst [vmem:[#allocation42_spill] sm:$0xff] %v12780_v54  ;;  %v3883_v31 = vmul.f32 %v12728_v26, %v15036_v55  ;;  %v4789_v28 = vmul.f32 1.442695, %v4683_v12  ;;  %v3880_v9 = vmul.f32 %v12726_v58, %v15038_v37  ;;  %v15042_v55 = vld [vmem:[#allocation124_spill] sm:$0xff] }
 0xf16   : > { %15033 = vst [vmem:[#allocation106_spill] sm:$0xff] %v12772_v42  ;;  %v12777_v1 = vpop.eup %8930  ;;  %v4785_v14 = vmul.f32 1.442695, %v4681_v63  ;;  %v4787_v16 = vmul.f32 1.442695, %v4682_v29  ;;  %4095 = vmatprep.mubr.bf16.mxu0 %v3960_v49  ;;  %8950 = vrcp.f32 %v3806_v7  ;;  %5683 = vmax.xlane.f32.xlu0 %v5682_v39  ;;  %v4878_v7 = vadd.f32 %v12762_v38, %v12750_v57  ;;  %v15040_v29 = vld [vmem:[#allocation117_spill] sm:$0xff]  ;;  %v12799_v12 = vpop.f32.mrf.mxu1 }
 0xf17   : > { %15034 = vst [vmem:[#allocation79_spill] sm:$0xff] %v12777_v1  ;;  %v8933_v24 = vpop.eup %8932  ;;  %v3803_v48 = vpop.xlane.xlu1 %3802  ;;  %v4881_v22 = vadd.f32 %v12777_v1, %v12772_v42  ;;  %v4791_v63 = vmul.f32 1.442695, %v4684_v19  ;;  %v3890_v26 = vmul.f32 %v12768_v25, %v15040_v29  ;;  %v5691_v39 = vmax.f32 %v12724_v5, %v12733_v50  ;;  %v15044_v42 = vld [vmem:[#allocation126_spill] sm:$0xff] }
 0xf18   : > { %8952 = vpow2.f32 %v4785_v14  ;;  %v3887_v32 = vmul.f32 %v8933_v24, %v15037_v61  ;;  %v12791_v4 = vpop.eup %8934  ;;  %v5688_v29 = vmax.f32 %v12710_v53, %v12719_v2 }
 0xf19   : > { %v4616_v8 = vpop.xlane.xlu0 %4615  ;;  %8954 = vpow2.f32 %v4787_v16  ;;  %4882 = vadd.xlane.f32.xlu1 %v4881_v22  ;;  %15039 = vst [vmem:[#allocation35_spill] sm:$0xff] %v12791_v4  ;;  %v12795_v49 = vpop.eup %8936  ;;  %v3959_v16 = vpack.c.bf16 %v3883_v31, %v3880_v9  ;;  %v15046_v9 = vld [vmem:[#allocation129_spill] sm:$0xff] }
 0xf1a   : > { %8956 = vrcp.f32 %v3803_v48  ;;  %15041 = vst [vmem:[#allocation30_spill] sm:$0xff] %v12795_v49  ;;  %4879 = vadd.xlane.f32.xlu0 %v4878_v7  ;;  %v3962_v48 = vpack.c.bf16 %v3890_v26, %v3887_v32  ;;  %v4687_v1 = vsub.f32 %v15044_v42, %v4616_v8  ;;  %v4688_v7 = vsub.f32 %v15046_v9, %v4616_v8  ;;  %v12813_v26 = vpop.f32.mrf.mxu1  ;;  %v15048_v42 = vld [vmem:[#allocation118_spill] sm:$0xff]  ;;  %v15050_v8 = vld [vmem:[#allocation116_spill] sm:$0xff] }
 0xf1b   : > { %v4613_v14 = vpop.xlane.xlu1 %4612  ;;  %v12801_v58 = vpop.eup %8938  ;;  %8958 = vpow2.f32 %v4789_v28  ;;  %15047 = vst [vmem:[#allocation114_spill] sm:$0xff] %v12813_v26 }
 0xf1c   : > { %v4685_v22 = vsub.f32 %v12238_v62, %v4613_v14  ;;  %v4686_v19 = vsub.f32 %v15042_v55, %v4613_v14  ;;  %8960 = vpow2.f32 %v4791_v63  ;;  %v15049_v55 = vld [vmem:[#allocation123_spill] sm:$0xff]  ;;  %v4797_v57 = vmul.f32 1.442695, %v4687_v1 }
 0xf1d   : > { %v3812_v61 = vpop.xlane.xlu0 %3811  ;;  %v12805_v37 = vpop.eup %8940  ;;  %4096 = vmatmul.mubr.bf16.gmra.mxu0 %v3959_v16  ;;  %5692 = vmax.xlane.f32.xlu1 %v5691_v39  ;;  %v3886_v16 = vmul.f32 %v8933_v24, %v15048_v42  ;;  %v5697_v1 = vmax.f32 %v12766_v59, %v12780_v54  ;;  %v5694_v54 = vmax.f32 %v12744_v6, %v12752_v52 }
 0xf1e   : > { %15043 = vst [vmem:[#allocation109_spill] sm:$0xff] %v12805_v37  ;;  %v12810_v31 = vpop.eup %8942  ;;  %v4793_v62 = vmul.f32 1.442695, %v4685_v22  ;;  %v4795_v50 = vmul.f32 1.442695, %v4686_v19  ;;  %4103 = vmatprep.mubr.bf16.mxu0 %v3962_v48  ;;  %8962 = vrcp.f32 %v3812_v61  ;;  %5689 = vmax.xlane.f32.xlu0 %v5688_v29  ;;  %v3889_v22 = vmul.f32 %v12768_v25, %v15050_v8  ;;  %v15052_v29 = vld [vmem:[#allocation121_spill] sm:$0xff] }
 0xf1f   : > { %15045 = vst [vmem:[#allocation115_spill] sm:$0xff] %v12810_v31  ;;  %v8945_v32 = vpop.eup %8944  ;;  %v3809_v14 = vpop.xlane.xlu1 %3808  ;;  %v4887_v28 = vadd.f32 %v12810_v31, %v12805_v37  ;;  %v4884_v19 = vadd.f32 %v12795_v49, %v12791_v4  ;;  %v4799_v61 = vmul.f32 1.442695, %v4688_v7  ;;  %v3896_v24 = vmul.f32 %v12801_v58, %v15052_v29  ;;  %v15056_v8 = vld [vmem:[#allocation136_spill] sm:$0xff] }
 0xf20   : > { %8964 = vpow2.f32 %v4793_v62  ;;  %v3893_v63 = vmul.f32 %v8945_v32, %v15049_v55  ;;  %v12823_v48 = vpop.eup %8946  ;;  %v15055_v62 = vld [vmem:[#allocation133_spill] sm:$0xff]  ;;  %v3961_v42 = vpack.c.bf16 %v3889_v22, %v3886_v16  ;;  %v15058_v31 = vld [vmem:[#allocation132_spill] sm:$0xff] }
 0xf21   : > { %v4622_v39 = vpop.xlane.xlu0 %4621  ;;  %8966 = vpow2.f32 %v4795_v50  ;;  %4888 = vadd.xlane.f32.xlu1 %v4887_v28  ;;  %15051 = vst [vmem:[#allocation113_spill] sm:$0xff] %v12823_v48  ;;  %v12827_v9 = vpop.eup %8948 }
 0xf22   : > { %8968 = vrcp.f32 %v3809_v14  ;;  %15053 = vst [vmem:[#allocation111_spill] sm:$0xff] %v12827_v9  ;;  %v12831_v50 = vpop.f32.mrf.mxu1  ;;  %v4691_v28 = vsub.f32 %v15055_v62, %v4622_v39  ;;  %4885 = vadd.xlane.f32.xlu0 %v4884_v19  ;;  %v4692_v7 = vsub.f32 %v15056_v8, %v4622_v39  ;;  %v15057_v14 = vld [vmem:[#allocation131_spill] sm:$0xff]  ;;  %v3964_v4 = vpack.c.bf16 %v3896_v24, %v3893_v63 }
 0xf23   : > { %15054 = vst [vmem:[#allocation112_spill] sm:$0xff] %v12831_v50  ;;  %v4619_v25 = vpop.xlane.xlu1 %4618  ;;  %v12834_v55 = vpop.eup %8950  ;;  %8970 = vpow2.f32 %v4797_v57 }
 0xf24   : > { %v4689_v37 = vsub.f32 %v15057_v14, %v4619_v25  ;;  %v4690_v29 = vsub.f32 %v15058_v31, %v4619_v25  ;;  %8972 = vpow2.f32 %v4799_v61  ;;  %v12845_v62 = vpop.f32.mrf.mxu1  ;;  %v4805_v31 = vmul.f32 1.442695, %v4691_v28  ;;  %v15062_v25 = vld [vmem:[#allocation122_spill] sm:$0xff]  ;;  %v15065_v14 = vld [vmem:[#allocation120_spill] sm:$0xff] }
 0xf25   : > { %v3818_v49 = vpop.xlane.xlu0 %3817  ;;  %v12839_v38 = vpop.eup %8952  ;;  %4104 = vmatmul.mubr.bf16.gmra.mxu0 %v3961_v42  ;;  %5698 = vmax.xlane.f32.xlu1 %v5697_v1  ;;  %15061 = vst [vmem:[#allocation117_spill] sm:$0xff] %v12845_v62  ;;  %v3892_v57 = vmul.f32 %v8945_v32, %v15062_v25  ;;  %v4807_v42 = vmul.f32 1.442695, %v4692_v7  ;;  %v15063_v61 = vld [vmem:[#allocation130_spill] sm:$0xff]  ;;  %v5703_v32 = vmax.f32 %v12831_v50, %v12845_v62  ;;  %v15067_v7 = vld [vmem:[#allocation127_spill] sm:$0xff] }
 0xf26   : > { %15059 = vst [vmem:[#allocation119_spill] sm:$0xff] %v12839_v38  ;;  %v12843_v16 = vpop.eup %8954  ;;  %v4801_v22 = vmul.f32 1.442695, %v4689_v37  ;;  %v4803_v19 = vmul.f32 1.442695, %v4690_v29  ;;  %4111 = vmatprep.mubr.bf16.mxu0 %v3964_v4  ;;  %8974 = vrcp.f32 %v3818_v49  ;;  %5695 = vmax.xlane.f32.xlu0 %v5694_v54  ;;  %v4890_v37 = vadd.f32 %v12827_v9, %v12823_v48  ;;  %v15064_v49 = vld [vmem:[#allocation140_spill] sm:$0xff] }
 0xf27   : > { %15060 = vst [vmem:[#allocation110_spill] sm:$0xff] %v12843_v16  ;;  %v8957_v39 = vpop.eup %8956  ;;  %v3815_v63 = vpop.xlane.xlu1 %3814  ;;  %v4893_v24 = vadd.f32 %v12843_v16, %v12839_v38  ;;  %v3895_v29 = vmul.f32 %v12801_v58, %v15065_v14  ;;  %v15069_v58 = vld [vmem:[#allocation138_spill] sm:$0xff]  ;;  %v15070_v14 = vld [vmem:[#allocation57_spill] sm:$0xff] }
 0xf28   : > { %8976 = vpow2.f32 %v4801_v22  ;;  %v3899_v4 = vmul.f32 %v8957_v39, %v15063_v61  ;;  %v12857_v54 = vpop.eup %8958  ;;  %v3902_v22 = vmul.f32 %v12834_v55, %v15067_v7  ;;  %v5700_v7 = vmax.f32 %v12799_v12, %v12813_v26  ;;  %v15126_v26 = vld [vmem:[#allocation159_spill] sm:$0xff] }
 0xf29   : > { %v4628_v1 = vpop.xlane.xlu0 %4627  ;;  %8978 = vpow2.f32 %v4803_v19  ;;  %4894 = vadd.xlane.f32.xlu1 %v4893_v24  ;;  %15066 = vst [vmem:[#allocation124_spill] sm:$0xff] %v12857_v54  ;;  %v12863_v25 = vpop.eup %8960  ;;  %v3963_v61 = vpack.c.bf16 %v3895_v29, %v3892_v57  ;;  %v15074_v29 = vld [vmem:[#allocation128_spill] sm:$0xff] }
 0xf2a   : > { %v4695_v28 = vsub.f32 %v12308_v13, %v4628_v1  ;;  %v4696_v8 = vsub.f32 %v15064_v49, %v4628_v1  ;;  %8980 = vrcp.f32 %v3815_v63  ;;  %15068 = vst [vmem:[#allocation126_spill] sm:$0xff] %v12863_v25  ;;  %4891 = vadd.xlane.f32.xlu0 %v4890_v37  ;;  %v3966_v16 = vpack.c.bf16 %v3902_v22, %v3899_v4  ;;  %v12875_v57 = vpop.f32.mrf.mxu1 }
 0xf2b   : > { %8982 = vpow2.f32 %v4805_v31  ;;  %v4625_v13 = vpop.xlane.xlu1 %4624  ;;  %v12865_v1 = vpop.eup %8962  ;;  %15073 = vst [vmem:[#allocation123_spill] sm:$0xff] %v12875_v57  ;;  %v3898_v22 = vmul.f32 %v8957_v39, %v15074_v29  ;;  %v15080_v39 = vld [vmem:[#allocation134_spill] sm:$0xff] }
 0xf2c   : > { %v4813_v19 = vmul.f32 1.442695, %v4695_v28  ;;  %v4815_v24 = vmul.f32 1.442695, %v4696_v8  ;;  %8984 = vpow2.f32 %v4807_v42  ;;  %v4693_v49 = vsub.f32 %v15069_v58, %v4625_v13  ;;  %v15077_v58 = vld [vmem:[#allocation125_spill] sm:$0xff] }
 0xf2d   : > { %v4694_v38 = vsub.f32 %v15070_v14, %v4625_v13  ;;  %v3824_v63 = vpop.xlane.xlu0 %3823  ;;  %v12869_v48 = vpop.eup %8964  ;;  %4112 = vmatmul.mubr.bf16.gmra.mxu0 %v3963_v61  ;;  %5704 = vmax.xlane.f32.xlu1 %v5703_v32  ;;  %v4896_v32 = vadd.f32 %v12863_v25, %v12857_v54  ;;  %v15075_v13 = vld [vmem:[#allocation137_spill] sm:$0xff] }
 0xf2e   : > { %15071 = vst [vmem:[#allocation129_spill] sm:$0xff] %v12869_v48  ;;  %8986 = vpow2.f32 %v4813_v19  ;;  %v12873_v31 = vpop.eup %8966  ;;  %v4809_v42 = vmul.f32 1.442695, %v4693_v49  ;;  %4119 = vmatprep.mubr.bf16.mxu0 %v3966_v16  ;;  %5701 = vmax.xlane.f32.xlu0 %v5700_v7  ;;  %v15076_v16 = vld [vmem:[#allocation143_spill] sm:$0xff]  ;;  %v3901_v49 = vmul.f32 %v12834_v55, %v15077_v58  ;;  %v3908_v7 = vmul.f32 %v12865_v1, %v15080_v39 }
 0xf2f   : > { %15072 = vst [vmem:[#allocation118_spill] sm:$0xff] %v12873_v31  ;;  %8988 = vpow2.f32 %v4815_v24  ;;  %v4811_v37 = vmul.f32 1.442695, %v4694_v38  ;;  %v8969_v28 = vpop.eup %8968  ;;  %v3821_v4 = vpop.xlane.xlu1 %3820  ;;  %v4899_v8 = vadd.f32 %v12873_v31, %v12869_v48  ;;  %v15083_v48 = vld [vmem:[#allocation61_spill] sm:$0xff] }
 0xf30   : > { %8990 = vrcp.f32 %v3824_v63  ;;  %v3905_v61 = vmul.f32 %v8969_v28, %v15075_v13  ;;  %v12887_v14 = vpop.eup %8970  ;;  %v12889_v63 = vpop.f32.mrf.mxu1  ;;  %v3965_v13 = vpack.c.bf16 %v3901_v49, %v3898_v22 }
 0xf31   : > { %8992 = vpow2.f32 %v4809_v42  ;;  %v4634_v19 = vpop.xlane.xlu0 %4633  ;;  %4900 = vadd.xlane.f32.xlu1 %v4899_v8  ;;  %15078 = vst [vmem:[#allocation116_spill] sm:$0xff] %v12887_v14  ;;  %15079 = vst [vmem:[#allocation121_spill] sm:$0xff] %v12889_v63  ;;  %v12893_v42 = vpop.eup %8972 }
 0xf32   : > { %8994 = vpow2.f32 %v4811_v37  ;;  %v4699_v38 = vsub.f32 %v12336_v33, %v4634_v19  ;;  %v4700_v24 = vsub.f32 %v15076_v16, %v4634_v19  ;;  %15081 = vst [vmem:[#allocation133_spill] sm:$0xff] %v12893_v42  ;;  %4897 = vadd.xlane.f32.xlu0 %v4896_v32  ;;  %v15082_v19 = vld [vmem:[#allocation142_spill] sm:$0xff]  ;;  %v3968_v58 = vpack.c.bf16 %v3908_v7, %v3905_v61  ;;  %v15086_v61 = vld [vmem:[#allocation135_spill] sm:$0xff] }
 0xf33   : > { %8996 = vrcp.f32 %v3821_v4  ;;  %v4631_v8 = vpop.xlane.xlu1 %4630  ;;  %v8975_v33 = vpop.eup %8974  ;;  %v5706_v4 = vmax.f32 %v12875_v57, %v12889_v63  ;;  %v3904_v49 = vmul.f32 %v8969_v28, %v15086_v61  ;;  %v15092_v28 = vld [vmem:[#allocation59_spill] sm:$0xff] }
 0xf34   : > { %v4821_v29 = vmul.f32 1.442695, %v4699_v38  ;;  %v4823_v37 = vmul.f32 1.442695, %v4700_v24  ;;  %v4697_v16 = vsub.f32 %v15082_v19, %v4631_v8  ;;  %v4698_v55 = vsub.f32 %v15083_v48, %v4631_v8  ;;  %v15088_v8 = vld [vmem:[#allocation141_spill] sm:$0xff]  ;;  %v15090_v19 = vld [vmem:[#allocation52_spill] sm:$0xff] }
 0xf35   : > { %v3830_v31 = vpop.xlane.xlu0 %3829  ;;  %v12897_v54 = vpop.eup %8976  ;;  %4120 = vmatmul.mubr.bf16.gmra.mxu0 %v3965_v13 }
 0xf36   : > { %15084 = vst [vmem:[#allocation136_spill] sm:$0xff] %v12897_v54  ;;  %8998 = vpow2.f32 %v4821_v29  ;;  %v12901_v39 = vpop.eup %8978  ;;  %v4817_v38 = vmul.f32 1.442695, %v4697_v16  ;;  %v4819_v22 = vmul.f32 1.442695, %v4698_v55  ;;  %4127 = vmatprep.mubr.bf16.mxu0 %v3968_v58  ;;  %5707 = vmax.xlane.f32.xlu0 %v5706_v4  ;;  %v4902_v16 = vadd.f32 %v12893_v42, %v12887_v14 }
 0xf37   : > { %15085 = vst [vmem:[#allocation131_spill] sm:$0xff] %v12901_v39  ;;  %9000 = vpow2.f32 %v4823_v37  ;;  %v8981_v32 = vpop.eup %8980  ;;  %v3827_v24 = vpop.xlane.xlu1 %3826  ;;  %v4905_v48 = vadd.f32 %v12901_v39, %v12897_v54  ;;  %v3914_v58 = vmul.f32 %v8975_v33, %v15092_v28 }
 0xf38   : > { %9002 = vrcp.f32 %v3830_v31  ;;  %v12906_v7 = vpop.eup %8982  ;;  %v3911_v13 = vmul.f32 %v8981_v32, %v15088_v8  ;;  %v3907_v31 = vmul.f32 %v12865_v1, %v15090_v19 }
 0xf39   : > { %15087 = vst [vmem:[#allocation132_spill] sm:$0xff] %v12906_v7  ;;  %9004 = vpow2.f32 %v4817_v38  ;;  %v12908_v29 = vpop.xlane.xlu0 %4639  ;;  %v12911_v37 = vpop.eup %8984  ;;  %4906 = vadd.xlane.f32.xlu1 %v4905_v48 }
 0xf3a   : > { %15089 = vst [vmem:[#allocation122_spill] sm:$0xff] %v12911_v37  ;;  %9006 = vpow2.f32 %v4819_v22  ;;  %v3967_v61 = vpack.c.bf16 %v3907_v31, %v3904_v49  ;;  %4903 = vadd.xlane.f32.xlu0 %v4902_v16  ;;  %v3970_v22 = vpack.c.bf16 %v3914_v58, %v3911_v13  ;;  %v4908_v1 = vadd.f32 %v12911_v37, %v12906_v7  ;;  %v15096_v49 = vld [vmem:[#allocation139_spill] sm:$0xff]  ;;  %v15097_v13 = vld [vmem:[#allocation144_spill] sm:$0xff] }
 0xf3b   : > { %v12917_v55 = vpop.eup %8986  ;;  %9008 = vrcp.f32 %v3827_v24  ;;  %v12922_v38 = vpop.xlane.xlu1 %4636  ;;  %v3910_v31 = vmul.f32 %v8981_v32, %v15096_v49  ;;  %v15100_v37 = vld [vmem:[#allocation63_spill] sm:$0xff] }
 0xf3c   : > { %15091 = vst [vmem:[#allocation130_spill] sm:$0xff] %v12917_v55  ;;  %v12920_v4 = vpop.eup %8988 }
 0xf3d   : > { %15093 = vst [vmem:[#allocation140_spill] sm:$0xff] %v12920_v4  ;;  %v8991_v8 = vpop.eup %8990  ;;  %v3836_v48 = vpop.xlane.xlu0 %3835  ;;  %4128 = vmatmul.mubr.bf16.gmra.mxu0 %v3967_v61  ;;  %v15098_v61 = vld [vmem:[#allocation58_spill] sm:$0xff]  ;;  %v4914_v7 = vadd.f32 %v12920_v4, %v12917_v55 }
 0xf3e   : > { %v12924_v54 = vpop.eup %8992  ;;  %4135 = vmatprep.mubr.bf16.mxu0 %v3970_v22  ;;  %4909 = vadd.xlane.f32.xlu0 %v4908_v1  ;;  %9010 = vrcp.f32 %v3836_v48  ;;  %v3913_v14 = vmul.f32 %v8975_v33, %v15098_v61  ;;  %v3920_v42 = vmul.f32 %v8991_v8, %v15100_v37 }
 0xf3f   : > { %15094 = vst [vmem:[#allocation120_spill] sm:$0xff] %v12924_v54  ;;  %v12928_v19 = vpop.eup %8994  ;;  %v3833_v28 = vpop.xlane.xlu1 %3832 }
 0xf40   : > { %15095 = vst [vmem:[#allocation127_spill] sm:$0xff] %v12928_v19  ;;  %v8997_v24 = vpop.eup %8996  ;;  %v4911_v39 = vadd.f32 %v12928_v19, %v12924_v54  ;;  %9012 = vrcp.f32 %v3833_v28  ;;  %v3969_v32 = vpack.c.bf16 %v3913_v14, %v3910_v31  ;;  %v15104_v14 = vld [vmem:[#allocation65_spill] sm:$0xff] }
 0xf41   : > { %v12933_v16 = vpop.xlane.xlu0 %5623  ;;  %v3917_v58 = vmul.f32 %v8997_v24, %v15097_v13 }
 0xf42   : > { %4912 = vadd.xlane.f32.xlu1 %v4911_v39  ;;  %4915 = vadd.xlane.f32.xlu0 %v4914_v7  ;;  %v3916_v7 = vmul.f32 %v8997_v24, %v15104_v14 }
 0xf43   : > { %v12939_v22 = vpop.eup %8998  ;;  %v12944_v1 = vpop.xlane.xlu1 %5620  ;;  %v3972_v13 = vpack.c.bf16 %v3920_v42, %v3917_v58  ;;  %v15105_v42 = vld [vmem:[#allocation149_spill] sm:$0xff] }
 0xf44   : > { %15099 = vst [vmem:[#allocation138_spill] sm:$0xff] %v12939_v22  ;;  %v12942_v54 = vpop.eup %9000 }
 0xf45   : > { %15101 = vst [vmem:[#allocation57_spill] sm:$0xff] %v12942_v54  ;;  %v9003_v49 = vpop.eup %9002  ;;  %v3842_v48 = vpop.xlane.xlu0 %3841  ;;  %4136 = vmatmul.mubr.bf16.gmra.mxu0 %v3969_v32  ;;  %v4920_v33 = vadd.f32 %v12942_v54, %v12939_v22  ;;  %v15106_v32 = vld [vmem:[#allocation62_spill] sm:$0xff] }
 0xf46   : > { %v12946_v39 = vpop.eup %9004  ;;  %4143 = vmatprep.mubr.bf16.mxu0 %v3972_v13  ;;  %9014 = vrcp.f32 %v3842_v48  ;;  %v3919_v19 = vmul.f32 %v8991_v8, %v15106_v32  ;;  %v15107_v22 = vld [vmem:[#allocation146_spill] sm:$0xff]  ;;  %v15110_v8 = vld [vmem:[#allocation69_spill] sm:$0xff] }
 0xf47   : > { %15102 = vst [vmem:[#allocation128_spill] sm:$0xff] %v12946_v39  ;;  %v12950_v61 = vpop.eup %9006  ;;  %v3839_v37 = vpop.xlane.xlu1 %3838  ;;  %4921 = vadd.xlane.f32.xlu0 %v4920_v33  ;;  %v3926_v54 = vmul.f32 %v9003_v49, %v15107_v22  ;;  %v15111_v22 = vld [vmem:[#allocation151_spill] sm:$0xff] }
 0xf48   : > { %15103 = vst [vmem:[#allocation137_spill] sm:$0xff] %v12950_v61  ;;  %v9009_v28 = vpop.eup %9008  ;;  %v4917_v55 = vadd.f32 %v12950_v61, %v12946_v39  ;;  %9016 = vrcp.f32 %v3839_v37  ;;  %v3971_v4 = vpack.c.bf16 %v3919_v19, %v3916_v7  ;;  %v15108_v39 = vld [vmem:[#allocation147_spill] sm:$0xff]  ;;  %v3925_v37 = vmul.f32 %v9003_v49, %v15110_v8  ;;  %v15113_v49 = vld [vmem:[#allocation74_spill] sm:$0xff] }
 0xf49   : > { %v12955_v31 = vpop.xlane.xlu0 %5629  ;;  %v3923_v58 = vmul.f32 %v9009_v28, %v15105_v42  ;;  %v3922_v61 = vmul.f32 %v9009_v28, %v15108_v39  ;;  %v15112_v28 = vld [vmem:[#allocation152_spill] sm:$0xff] }
 0xf4a   : > { %4918 = vadd.xlane.f32.xlu1 %v4917_v55  ;;  %v15109_v55 = vld [vmem:[#allocation154_spill] sm:$0xff] }
 0xf4b   : > { %v12960_v13 = vpop.xlane.xlu1 %5626  ;;  %v3974_v25 = vpack.c.bf16 %v3926_v54, %v3923_v58  ;;  %v9011_v33 = vpop.eup %9010  ;;  %v3973_v54 = vpack.c.bf16 %v3925_v37, %v3922_v61 }
 0xf4c   : > { %v3932_v32 = vmul.f32 %v9011_v33, %v15111_v22  ;;  %v15115_v22 = vld [vmem:[#allocation17_spill] sm:$0xff] }
 0xf4d   : > { %v3848_v9 = vpop.xlane.xlu0 %3847  ;;  %4144 = vmatmul.mubr.bf16.gmra.mxu0 %v3971_v4  ;;  %v9013_v24 = vpop.eup %9012 }
 0xf4e   : > { %4151 = vmatprep.mubr.bf16.mxu0 %v3974_v25  ;;  %v3929_v48 = vmul.f32 %v9013_v24, %v15109_v55  ;;  %9018 = vrcp.f32 %v3848_v9  ;;  %v3928_v62 = vmul.f32 %v9013_v24, %v15112_v28  ;;  %v15114_v55 = vld [vmem:[#allocation18_spill] sm:$0xff] }
 0xf4f   : > { %v3845_v14 = vpop.xlane.xlu1 %3844 }
 0xf50   : > { %9020 = vrcp.f32 %v3845_v14  ;;  %v3976_v4 = vpack.c.bf16 %v3932_v32, %v3929_v48  ;;  %v3931_v14 = vmul.f32 %v9011_v33, %v15113_v49  ;;  %v15117_v33 = vld [vmem:[#allocation70_spill] sm:$0xff] }
 0xf51   : > { %v12963_v42 = vpop.xlane.xlu0 %5635 }
 0xf52   : > { %v3975_v48 = vpack.c.bf16 %v3931_v14, %v3928_v62  ;;  %v15121_v14 = vld [vmem:[#allocation145_spill] sm:$0xff] }
 0xf53   : > { %v12968_v19 = vpop.xlane.xlu1 %5632  ;;  %v9015_v25 = vpop.eup %9014 }
 0xf54   : > { %v3938_v61 = vmul.f32 %v9015_v25, %v12422_v46  ;;  %v15119_v46 = vld [vmem:[#allocation148_spill] sm:$0xff] }
 0xf55   : > { %v3854_v7 = vpop.xlane.xlu0 %3853  ;;  %4152 = vmatmul.mubr.bf16.gmra.mxu0 %v3973_v54  ;;  %v9017_v58 = vpop.eup %9016  ;;  %v4704_v62 = vsub.f32 %v15119_v46, %v12908_v29  ;;  %v15125_v46 = vld [vmem:[#allocation73_spill] sm:$0xff] }
 0xf56   : > { %4159 = vmatprep.mubr.bf16.mxu0 %v3976_v4  ;;  %v3935_v9 = vmul.f32 %v9017_v58, %v12430_v30  ;;  %9022 = vrcp.f32 %v3854_v7  ;;  %v15116_v30 = vld [vmem:[#allocation156_spill] sm:$0xff]  ;;  %v4703_v4 = vsub.f32 %v15117_v33, %v12908_v29  ;;  %v15124_v33 = vld [vmem:[#allocation150_spill] sm:$0xff] }
 0xf57   : > { %v3851_v39 = vpop.xlane.xlu1 %3850  ;;  %v3934_v54 = vmul.f32 %v9017_v58, %v15116_v30 }
 0xf58   : > { %9024 = vrcp.f32 %v3851_v39  ;;  %v3978_v8 = vpack.c.bf16 %v3938_v61, %v3935_v9  ;;  %v15118_v39 = vld [vmem:[#allocation161_spill] sm:$0xff]  ;;  %v15120_v9 = vld [vmem:[#allocation80_spill] sm:$0xff]  ;;  %v4829_v30 = vmul.f32 1.442695, %v4703_v4 }
 0xf59   : > { %v12971_v50 = vpop.xlane.xlu0 %5641  ;;  %v3937_v49 = vmul.f32 %v9015_v25, %v15120_v9  ;;  %v4831_v25 = vmul.f32 1.442695, %v4704_v62  ;;  %v5716_v9 = vsub.f32 %v15125_v46, %v12944_v1  ;;  %v15127_v62 = vld [vmem:[#allocation76_spill] sm:$0xff] }
 0xf5b   : > { %6147 = vrot.lane.b32.xlu1 %v15114_v55, %s9318_s22  ;;  %v9019_v24 = vpop.eup %9018  ;;  %v4701_v55 = vsub.f32 %v15121_v14, %v12922_v38  ;;  %v12989_v61 = vpop.xlane.xlu1 %5638 }
 0xf5d   : > { %v4835_v37 = vpop.xlane.xlu0 %4834  ;;  %4160 = vmatmul.mubr.bf16.gmra.mxu0 %v3975_v48  ;;  %6133 = vrot.lane.b32.xlu0 %v15115_v22, %s9318_s22  ;;  %v9021_v32 = vpop.eup %9020  ;;  %v15122_v48 = vld [vmem:[#allocation158_spill] sm:$0xff] }
 0xf5e   : > { %4167 = vmatprep.mubr.bf16.mxu0 %v3978_v8  ;;  %9026 = vrcp.f32 %v4835_v37  ;;  %v3941_v28 = vmul.f32 %v9021_v32, %v15118_v39  ;;  %v3944_v58 = vmul.f32 %v9019_v24, %v15122_v48  ;;  %v15123_v8 = vld [vmem:[#allocation67_spill] sm:$0xff]  ;;  %v3977_v37 = vpack.c.bf16 %v3937_v49, %v3934_v54 }
 0xf5f   : > { %v4702_v22 = vsub.f32 %v15123_v8, %v12922_v38  ;;  %v5715_v39 = vsub.f32 %v15124_v33, %v12944_v1  ;;  %v3940_v38 = vmul.f32 %v9021_v32, %v15126_v26  ;;  %v13001_v4 = vpop.xlane.xlu1 %5644  ;;  %v5781_v1 = vmul.f32 1.442695, %v5716_v9  ;;  %v15128_v8 = vld [vmem:[#allocation87_spill] sm:$0xff] }
 0xf60   : > { %v3980_v63 = vpack.c.bf16 %v3944_v58, %v3941_v28  ;;  %v5717_v58 = vsub.f32 %v15127_v62, %v12933_v16 }
 0xf61   : > { %v4838_v7 = vpop.xlane.xlu0 %4837  ;;  %v4827_v57 = vmul.f32 1.442695, %v4702_v22  ;;  %v5779_v54 = vmul.f32 1.442695, %v5715_v39  ;;  %v15130_v39 = vld [vmem:[#allocation155_spill] sm:$0xff] }
 0xf62   : > { %9028 = vrcp.f32 %v4838_v7  ;;  %v4825_v7 = vmul.f32 1.442695, %v4701_v55 }
 0xf63   : > { %v9023_v14 = vpop.eup %9022  ;;  %9030 = vpow2.f32 %v4829_v30 }
 0xf64   : > { %9032 = vpow2.f32 %v4831_v25  ;;  %v3950_v26 = vmul.f32 %v9023_v14, %v12476_v51  ;;  %v5719_v25 = vsub.f32 %v15130_v39, %v12960_v13 }
 0xf65   : > { %v12996_v29 = vpop.xlane.xlu0 %5647  ;;  %4168 = vmatmul.mubr.bf16.gmra.mxu0 %v3977_v37  ;;  %v9025_v48 = vpop.eup %9024  ;;  %v3943_v37 = vmul.f32 %v9019_v24, %v15128_v8  ;;  %9034 = vpow2.f32 %v4825_v7  ;;  %v15131_v24 = vld [vmem:[#allocation78_spill] sm:$0xff] }
 0xf66   : > { %4175 = vmatprep.mubr.bf16.mxu0 %v3980_v63  ;;  %v3947_v28 = vmul.f32 %v9025_v48, %v12485_v34  ;;  %v15129_v63 = vld [vmem:[#allocation153_spill] sm:$0xff]  ;;  %9036 = vpow2.f32 %v4827_v57  ;;  %v5783_v34 = vmul.f32 1.442695, %v5717_v58  ;;  %v5720_v9 = vsub.f32 %v15131_v24, %v12960_v13  ;;  %v13014_v7 = vpop.xlane.xlu1 %5650  ;;  %v15132_v57 = vld [vmem:[#allocation82_spill] sm:$0xff]  ;;  %v15137_v24 = vld [vmem:[#allocation83_spill] sm:$0xff] }
 0xf67   : > { %v5718_v55 = vsub.f32 %v15129_v63, %v12933_v16  ;;  %v3979_v32 = vpack.c.bf16 %v3943_v37, %v3940_v38  ;;  %9038 = vpow2.f32 %v5779_v54  ;;  %v5721_v16 = vsub.f32 %v15132_v57, %v12955_v31  ;;  %v15133_v38 = vld [vmem:[#allocation164_spill] sm:$0xff] }
 0xf68   : > { %v3982_v22 = vpack.c.bf16 %v3950_v26, %v3947_v28  ;;  %9040 = vpow2.f32 %v5781_v1  ;;  %v3946_v54 = vmul.f32 %v9025_v48, %v15133_v38  ;;  %v15134_v28 = vld [vmem:[#allocation157_spill] sm:$0xff]  ;;  %v15135_v1 = vld [vmem:[#allocation167_spill] sm:$0xff]  ;;  %v5787_v37 = vmul.f32 1.442695, %v5719_v25 }
 0xf69   : > { %v4841_v49 = vpop.xlane.xlu0 %4840  ;;  %v5785_v46 = vmul.f32 1.442695, %v5718_v55  ;;  %v5722_v62 = vsub.f32 %v15134_v28, %v12955_v31  ;;  %v5789_v55 = vmul.f32 1.442695, %v5720_v9  ;;  %v5723_v57 = vsub.f32 %v15137_v24, %v12968_v19  ;;  %v15140_v28 = vld [vmem:[#allocation88_spill] sm:$0xff] }
 0xf6a   : > { %9042 = vrcp.f32 %v4841_v49  ;;  %v15136_v49 = vld [vmem:[#allocation92_spill] sm:$0xff]  ;;  %v13026_v26 = vpop.xlane.xlu1 %5656 }
 0xf6b   : > { %v9027_v33 = vpop.eup %9026  ;;  %v3949_v63 = vmul.f32 %v9023_v14, %v15136_v49  ;;  %v15138_v14 = vld [vmem:[#allocation85_spill] sm:$0xff] }
 0xf6c   : > { %v4931_v8 = vmul.f32 %v9027_v33, %v15135_v1  ;;  %v5795_v1 = vmul.f32 1.442695, %v5723_v57 }
 0xf6d   : > { %v4844_v30 = vpop.xlane.xlu0 %4843  ;;  %4176 = vmatmul.mubr.bf16.gmra.mxu0 %v3979_v32  ;;  %v3981_v48 = vpack.c.bf16 %v3949_v63, %v3946_v54 }
 0xf6e   : > { %4183 = vmatprep.mubr.bf16.mxu0 %v3982_v22  ;;  %9044 = vrcp.f32 %v4844_v30  ;;  %v5791_v22 = vmul.f32 1.442695, %v5721_v16  ;;  %v5793_v30 = vmul.f32 1.442695, %v5722_v62  ;;  %v5725_v62 = vsub.f32 %v15140_v28, %v12963_v42 }
 0xf6f   : > { %v9029_v51 = vpop.eup %9028  ;;  %9046 = vpow2.f32 %v5783_v34  ;;  %v5724_v34 = vsub.f32 %v15138_v14, %v12968_v19  ;;  %v15145_v14 = vld [vmem:[#allocation90_spill] sm:$0xff] }
 0xf70   : > { %v4934_v13 = vmul.f32 %v9029_v51, %v12514_v56  ;;  %9048 = vpow2.f32 %v5785_v46  ;;  %v13028_v31 = vpop.eup %9030  ;;  %v13036_v25 = vpop.xlane.xlu1 %5662  ;;  %v4933_v9 = vmul.f32 %v9029_v51, %v12509_v3  ;;  %v5799_v57 = vmul.f32 1.442695, %v5725_v62 }
 0xf71   : > { %v13021_v58 = vpop.xlane.xlu0 %5653  ;;  %9050 = vpow2.f32 %v5787_v37  ;;  %v13032_v56 = vpop.eup %9032  ;;  %v15142_v37 = vld [vmem:[#allocation160_spill] sm:$0xff]  ;;  %v5797_v63 = vmul.f32 1.442695, %v5724_v34  ;;  %v5728_v34 = vsub.f32 %v15145_v14, %v12989_v61  ;;  %v15150_v14 = vld [vmem:[#allocation173_spill] sm:$0xff] }
 0xf72   : > { %v5026_v32 = vpack.c.bf16 %v4934_v13, %v4931_v8  ;;  %9052 = vpow2.f32 %v5789_v55  ;;  %v13038_v46 = vpop.eup %9034  ;;  %v15141_v8 = vld [vmem:[#allocation166_spill] sm:$0xff]  ;;  %v5726_v49 = vsub.f32 %v15142_v37, %v12963_v42  ;;  %v4926_v51 = vadd.f32 %v13032_v56, %v13028_v31 }
 0xf73   : > { %9054 = vpow2.f32 %v5791_v22  ;;  %v13041_v16 = vpop.eup %9036  ;;  %v4930_v19 = vmul.f32 %v9027_v33, %v15141_v8  ;;  %v15144_v33 = vld [vmem:[#allocation162_spill] sm:$0xff]  ;;  %v15146_v8 = vld [vmem:[#allocation84_spill] sm:$0xff] }
 0xf74   : > { %9056 = vpow2.f32 %v5793_v30  ;;  %v13043_v54 = vpop.eup %9038  ;;  %v4923_v24 = vadd.f32 %v13041_v16, %v13038_v46 }
 0xf75   : > { %v4847_v39 = vpop.xlane.xlu0 %4846  ;;  %4184 = vmatmul.mubr.bf16.gmra.mxu0 %v3981_v48  ;;  %15139 = vst [vmem:[#allocation143_spill] sm:$0xff] %v13043_v54  ;;  %v13048_v13 = vpop.eup %9040  ;;  %v5025_v48 = vpack.c.bf16 %v4933_v9, %v4930_v19  ;;  %v5801_v9 = vmul.f32 1.442695, %v5726_v49 }
 0xf76   : > { %5137 = vmatprep.mubr.bf16.mxu0 %v5026_v32  ;;  %9058 = vrcp.f32 %v4847_v39  ;;  %v15143_v32 = vld [vmem:[#allocation163_spill] sm:$0xff]  ;;  %v5727_v39 = vsub.f32 %v15144_v33, %v12989_v61  ;;  %v5907_v37 = vadd.f32 %v13048_v13, %v13043_v54  ;;  %v15148_v61 = vld [vmem:[#allocation176_spill] sm:$0xff]  ;;  %v15149_v33 = vld [vmem:[#allocation93_spill] sm:$0xff] }
 0xf77   : > { %v9043_v55 = vpop.eup %9042  ;;  %v5729_v22 = vsub.f32 %v15143_v32, %v12971_v50 }
 0xf78   : > { %v4937_v19 = vmul.f32 %v9043_v55, %v12536_v27  ;;  %v5730_v27 = vsub.f32 %v15149_v33, %v12971_v50 }
 0xf79   : > { %v4850_v38 = vpop.xlane.xlu0 %4849  ;;  %v13052_v3 = vpop.xlane.xlu1 %4858 }
 0xf7a   : > { %9060 = vrcp.f32 %v4850_v38 }
 0xf7b   : > { %v9045_v30 = vpop.eup %9044  ;;  %9062 = vpow2.f32 %v5795_v1  ;;  %v5807_v1 = vmul.f32 1.442695, %v5729_v22  ;;  %v15152_v22 = vld [vmem:[#allocation60_spill] sm:$0xff] }
 0xf7c   : > { %4927 = vadd.xlane.f32.xlu0 %v4926_v51  ;;  %v4940_v38 = vmul.f32 %v9045_v30, %v12553_v11  ;;  %v13067_v28 = vpop.eup %9046  ;;  %9064 = vpow2.f32 %v5797_v63  ;;  %v15147_v51 = vld [vmem:[#allocation51_spill] sm:$0xff]  ;;  %v4939_v32 = vmul.f32 %v9045_v30, %v15148_v61  ;;  %v5803_v11 = vmul.f32 1.442695, %v5727_v39 }
 0xf7d   : > { %v13062_v42 = vpop.xlane.xlu0 %5659  ;;  %5138 = vmatmul.mubr.bf16.vlgmr.msra.gmra.mxu0 %v5025_v48  ;;  %v13073_v62 = vpop.eup %9048  ;;  %9066 = vpow2.f32 %v5799_v57 }
 0xf7e   : > { %8095 = vmatpush3.bf16.msra.mxu0 %v15146_v8  ;;  %v13077_v48 = vpop.xlane.xlu1 %5668  ;;  %v5028_v49 = vpack.c.bf16 %v4940_v38, %v4937_v19  ;;  %v4936_v8 = vmul.f32 %v9043_v55, %v15150_v14  ;;  %v13082_v54 = vpop.eup %9050  ;;  %9068 = vpow2.f32 %v5801_v9  ;;  %v5910_v30 = vadd.f32 %v13073_v62, %v13067_v28  ;;  %v15153_v38 = vld [vmem:[#allocation64_spill] sm:$0xff] }
 0xf7f   : > { %4924 = vadd.xlane.f32.xlu1 %v4923_v24  ;;  %8096 = vmatprep.subr.bf16.mxu0 %v15147_v51  ;;  %v5805_v24 = vmul.f32 1.442695, %v5728_v34  ;;  %15151 = vst [vmem:[#allocation125_spill] sm:$0xff] %v13082_v54  ;;  %v13087_v39 = vpop.eup %9052  ;;  %9070 = vpow2.f32 %v5807_v1  ;;  %v5809_v34 = vmul.f32 1.442695, %v5730_v27  ;;  %v15155_v1 = vld [vmem:[#allocation89_spill] sm:$0xff] }
 0xf80   : > { %5908 = vadd.xlane.f32.xlu0 %v5907_v37  ;;  %5145 = vmatprep.mubr.bf16.mxu0 %v5028_v49  ;;  %v5027_v57 = vpack.c.bf16 %v4939_v32, %v4936_v8  ;;  %v13090_v19 = vpop.eup %9054  ;;  %9072 = vpow2.f32 %v5803_v11  ;;  %v15154_v37 = vld [vmem:[#allocation95_spill] sm:$0xff]  ;;  %v5913_v32 = vadd.f32 %v13087_v39, %v13082_v54  ;;  %v15156_v49 = vld [vmem:[#allocation165_spill] sm:$0xff]  ;;  %v15157_v14 = vld [vmem:[#allocation68_spill] sm:$0xff] }
 0xf81   : > { %v4853_v63 = vpop.xlane.xlu0 %4852  ;;  %v13092_v55 = vpop.eup %9056  ;;  %9074 = vpow2.f32 %v5805_v24  ;;  %v5731_v51 = vsub.f32 %v15154_v37, %v13001_v4  ;;  %v5732_v33 = vsub.f32 %v15156_v49, %v13001_v4  ;;  %v15158_v24 = vld [vmem:[#allocation180_spill] sm:$0xff]  ;;  %v15167_v54 = vld [vmem:[#allocation171_spill] sm:$0xff] }
 0xf82   : > { %8097 = vmatpush3.bf16.msra.mxu0 %v15152_v22  ;;  %v13096_v61 = vpop.xlane.xlu1 %4864  ;;  %9076 = vrcp.f32 %v4853_v63  ;;  %v15159_v63 = vld [vmem:[#allocation179_spill] sm:$0xff]  ;;  %v5916_v4 = vadd.f32 %v13092_v55, %v13090_v19 }
 0xf83   : > { %8098 = vmatprep.subr.bf16.mxu0 %v15153_v38  ;;  %v9059_v9 = vpop.eup %9058 }
 0xf84   : > { %5911 = vadd.xlane.f32.xlu0 %v5910_v30  ;;  %v4943_v8 = vmul.f32 %v9059_v9, %v15158_v24  ;;  %v4942_v30 = vmul.f32 %v9059_v9, %v15159_v63 }
 0xf85   : > { %v4856_v50 = vpop.xlane.xlu0 %4855  ;;  %5146 = vmatmul.mubr.bf16.gmra.mxu0 %v5027_v57  ;;  %v15160_v57 = vld [vmem:[#allocation168_spill] sm:$0xff] }
 0xf86   : > { %8099 = vmatpush3.bf16.msra.mxu0 %v15155_v1  ;;  %9078 = vrcp.f32 %v4856_v50  ;;  %v5733_v37 = vsub.f32 %v15160_v57, %v12996_v29  ;;  %v5811_v50 = vmul.f32 1.442695, %v5731_v51  ;;  %v15166_v57 = vld [vmem:[#allocation77_spill] sm:$0xff]  ;;  %v5737_v51 = vsub.f32 %v15167_v54, %v13021_v58 }
 0xf87   : > { %v9061_v11 = vpop.eup %9060  ;;  %8100 = vmatprep.subr.bf16.mxu0 %v15157_v14  ;;  %9080 = vpow2.f32 %v5809_v34  ;;  %v15163_v14 = vld [vmem:[#allocation72_spill] sm:$0xff]  ;;  %v5813_v34 = vmul.f32 1.442695, %v5732_v33 }
 0xf88   : > { %5914 = vadd.xlane.f32.xlu0 %v5913_v32  ;;  %v4946_v22 = vmul.f32 %v9061_v11, %v12586_v41  ;;  %v4945_v38 = vmul.f32 %v9061_v11, %v12578_v43  ;;  %v13114_v1 = vpop.eup %9062  ;;  %v15162_v32 = vld [vmem:[#allocation169_spill] sm:$0xff]  ;;  %v13121_v43 = vpop.f32.mrf.mxu1  ;;  %v15165_v11 = vld [vmem:[#allocation96_spill] sm:$0xff]  ;;  %9082 = vrcp.f32 %v13052_v3 }
 0xf89   : > { %v13104_v27 = vpop.xlane.xlu0 %5665  ;;  %15161 = vst [vmem:[#allocation134_spill] sm:$0xff] %v13114_v1  ;;  %v5734_v49 = vsub.f32 %v15162_v32, %v12996_v29  ;;  %v13119_v9 = vpop.eup %9064  ;;  %v5735_v63 = vsub.f32 %v15165_v11, %v13014_v7  ;;  %9084 = vpow2.f32 %v5811_v50  ;;  %v5823_v50 = vmul.f32 1.442695, %v5737_v51  ;;  %v15176_v51 = vld [vmem:[#allocation86_spill] sm:$0xff] }
 0xf8a   : > { %8101 = vmatpush3.bf16.msra.mxu0 %v15163_v14  ;;  %v5030_v41 = vpack.c.bf16 %v4946_v22, %v4943_v8  ;;  %v5029_v24 = vpack.c.bf16 %v4945_v38, %v4942_v30  ;;  %15164 = vst [vmem:[#allocation142_spill] sm:$0xff] %v13119_v9  ;;  %v13129_v29 = vpop.xlane.xlu1 %5674  ;;  %v5815_v22 = vmul.f32 1.442695, %v5733_v37  ;;  %v15168_v30 = vld [vmem:[#allocation172_spill] sm:$0xff]  ;;  %v13133_v33 = vpop.eup %9066  ;;  %v15170_v14 = vld [vmem:[#allocation94_spill] sm:$0xff]  ;;  %v5919_v54 = vadd.f32 %v13119_v9, %v13114_v1  ;;  %v15172_v37 = vld [vmem:[#allocation81_spill] sm:$0xff] }
 0xf8b   : > { %8102 = vmatprep.subr.bf16.mxu0 %v15166_v57  ;;  %v5738_v38 = vsub.f32 %v15168_v30, %v13021_v58  ;;  %15169 = vst [vmem:[#allocation61_spill] sm:$0xff] %v13133_v33  ;;  %v5817_v32 = vmul.f32 1.442695, %v5734_v49  ;;  %v13138_v3 = vpop.eup %9068  ;;  %v13140_v11 = vpop.f32.mrf.mxu1  ;;  %9086 = vpow2.f32 %v5813_v34  ;;  %v15173_v58 = vld [vmem:[#allocation3_spill] sm:$0xff]  ;;  %v5741_v49 = vsub.f32 %v12556_v23, %v13062_v42 }
 0xf8c   : > { %5153 = vmatprep.mubr.bf16.mxu0 %v5030_v41  ;;  %5917 = vadd.xlane.f32.xlu0 %v5916_v4  ;;  %15171 = vst [vmem:[#allocation135_spill] sm:$0xff] %v13138_v3  ;;  %v5819_v4 = vmul.f32 1.442695, %v5735_v63  ;;  %v13145_v41 = vpop.eup %9070  ;;  %v5922_v23 = vadd.f32 %v13138_v3, %v13133_v33  ;;  %v15179_v33 = vld [vmem:[#allocation44_spill] sm:$0xff] }
 0xf8d   : > { %v4862_v8 = vpop.xlane.xlu0 %4861  ;;  %5154 = vmatmul.mubr.bf16.gmra.mxu0 %v5029_v24  ;;  %v13153_v30 = vpop.eup %9072  ;;  %v5825_v34 = vmul.f32 1.442695, %v5738_v38 }
 0xf8e   : > { %8103 = vmatpush3.bf16.msra.mxu0 %v15170_v14  ;;  %v13149_v24 = vpop.xlane.xlu1 %4870  ;;  %9088 = vrcp.f32 %v4862_v8  ;;  %15174 = vst [vmem:[#allocation141_spill] sm:$0xff] %v13153_v30  ;;  %v13155_v63 = vpop.eup %9074  ;;  %v5742_v14 = vsub.f32 %v12558_v47, %v13062_v42  ;;  %v15177_v8 = vld [vmem:[#allocation170_spill] sm:$0xff]  ;;  %v5745_v47 = vsub.f32 %v12576_v60, %v13104_v27 }
 0xf8f   : > { %8104 = vmatprep.subr.bf16.mxu0 %v15172_v37  ;;  %9090 = vpow2.f32 %v5815_v22  ;;  %15175 = vst [vmem:[#allocation52_spill] sm:$0xff] %v13155_v63  ;;  %v9077_v37 = vpop.eup %9076  ;;  %v13165_v38 = vpop.f32.mrf.mxu1 }
 0xf90   : > { %6131 = vrot.lane.b32.xlu1 %v15173_v58, %s9318_s22  ;;  %5920 = vadd.xlane.f32.xlu0 %v5919_v54  ;;  %9092 = vpow2.f32 %v5817_v32  ;;  %v5736_v54 = vsub.f32 %v15177_v8, %v13014_v7  ;;  %v15178_v58 = vld [vmem:[#allocation91_spill] sm:$0xff]  ;;  %v5831_v32 = vmul.f32 1.442695, %v5741_v49  ;;  %v5925_v7 = vadd.f32 %v13155_v63, %v13153_v30  ;;  %v15182_v30 = vld [vmem:[#allocation174_spill] sm:$0xff]  ;;  %s7531_s22 = sshll.u32 %s15393_s30, 5 }
 0xf91   : > { %v13151_v57 = vpop.xlane.xlu0 %5671  ;;  %9094 = vpow2.f32 %v5819_v4  ;;  %v5833_v8 = vmul.f32 1.442695, %v5742_v14  ;;  %v5739_v63 = vsub.f32 %v15182_v30, %v13026_v26  ;;  %v5839_v14 = vmul.f32 1.442695, %v5745_v47  ;;  %s467_s17 = scalar_lea.vmem %s14306_s14, %s7531_s22 }
 0xf92   : > { %8105 = vmatpush3.bf16.msra.mxu0 %v15176_v51  ;;  %9096 = vpow2.f32 %v5823_v50  ;;  %v4949_v51 = vmul.f32 %v9077_v37, %v12614_v44  ;;  %v5746_v50 = vsub.f32 %v12581_v18, %v13104_v27  ;;  %v13177_v49 = vpop.xlane.xlu1 %5680 }
 0xf93   : > { %8106 = vmatprep.subr.bf16.mxu0 %v15178_v58  ;;  %v9079_v22 = vpop.eup %9078  ;;  %9098 = vpow2.f32 %v5825_v34  ;;  %v15180_v58 = vld [vmem:[#allocation99_spill] sm:$0xff]  ;;  %v5821_v34 = vmul.f32 1.442695, %v5736_v54 }
 0xf94   : > { %5923 = vadd.xlane.f32.xlu0 %v5922_v23  ;;  %v4952_v1 = vmul.f32 %v9079_v22, %v15179_v33  ;;  %v13173_v4 = vpop.eup %9080  ;;  %v4948_v60 = vmul.f32 %v9077_v37, %v15180_v58  ;;  %v15181_v23 = vld [vmem:[#allocation66_spill] sm:$0xff]  ;;  %9100 = vrcp.f32 %v13096_v61  ;;  %v13182_v33 = vpop.f32.mrf.mxu1  ;;  %v5749_v37 = vsub.f32 %v12602_v36, %v13151_v57  ;;  %v15183_v36 = vld [vmem:[#allocation175_spill] sm:$0xff]  ;;  %v15185_v58 = vld [vmem:[#allocation100_spill] sm:$0xff] }
 0xf95   : > { %v4868_v42 = vpop.xlane.xlu0 %4867  ;;  %v4951_v3 = vmul.f32 %v9079_v22, %v15181_v23  ;;  %9102 = vpow2.f32 %v5831_v32  ;;  %v9083_v27 = vpop.eup %9082  ;;  %v5841_v54 = vmul.f32 1.442695, %v5746_v50  ;;  %v5750_v61 = vsub.f32 %v12612_v35, %v13151_v57  ;;  %v15184_v57 = vld [vmem:[#allocation97_spill] sm:$0xff] }
 0xf96   : > { %v5032_v44 = vpack.c.bf16 %v4952_v1, %v4949_v51  ;;  %9104 = vrcp.f32 %v4868_v42  ;;  %v5928_v30 = vadd.f32 %v13173_v4, %v13145_v41  ;;  %v13192_v22 = vpop.eup %9084  ;;  %v5740_v32 = vsub.f32 %v15183_v36, %v13026_v26  ;;  %v15188_v36 = vld [vmem:[#allocation177_spill] sm:$0xff] }
 0xf97   : > { %v5031_v9 = vpack.c.bf16 %v4951_v3, %v4948_v60  ;;  %9106 = vpow2.f32 %v5833_v8  ;;  %v5712_v3 = vmax.f32 %v13165_v38, %v13182_v33  ;;  %v5827_v42 = vmul.f32 1.442695, %v5739_v63 }
 0xf98   : > { %5926 = vadd.xlane.f32.xlu0 %v5925_v7  ;;  %5161 = vmatprep.mubr.bf16.mxu0 %v5032_v44  ;;  %9108 = vpow2.f32 %v5821_v34  ;;  %v13198_v47 = vpop.eup %9086  ;;  %v4955_v51 = vmul.f32 %v9083_v27, %v15184_v57  ;;  %v5847_v8 = vmul.f32 1.442695, %v5749_v37  ;;  %v4954_v60 = vmul.f32 %v9083_v27, %v15185_v58  ;;  %v15186_v34 = vld [vmem:[#allocation102_spill] sm:$0xff]  ;;  %v15187_v44 = vld [vmem:[#allocation103_spill] sm:$0xff] }
 0xf99   : > { %v5678_v18 = vpop.xlane.xlu0 %5677  ;;  %5162 = vmatmul.mubr.bf16.gmra.mxu0 %v5031_v9  ;;  %9110 = vpow2.f32 %v5839_v14  ;;  %v5849_v26 = vmul.f32 1.442695, %v5750_v61  ;;  %v5829_v57 = vmul.f32 1.442695, %v5740_v32 }
 0xf9a   : > { %v4877_v1 = vpop.xlane.xlu1 %4876  ;;  %v5753_v35 = vsub.f32 %v12642_v0, %v5678_v18  ;;  %9112 = vrcp.f32 %v13149_v24  ;;  %v5754_v50 = vsub.f32 %v12647_v10, %v5678_v18  ;;  %v5743_v24 = vsub.f32 %v15188_v36, %v13036_v25 }
 0xf9b   : > { %v9089_v7 = vpop.eup %9088  ;;  %9114 = vpow2.f32 %v5841_v54 }
 0xf9c   : > { %5929 = vadd.xlane.f32.xlu0 %v5928_v30  ;;  %v13205_v23 = vpop.eup %9090  ;;  %v4958_v0 = vmul.f32 %v9089_v7, %v15186_v34  ;;  %v4957_v14 = vmul.f32 %v9089_v7, %v15187_v44  ;;  %v5855_v10 = vmul.f32 1.442695, %v5753_v35  ;;  %v5857_v58 = vmul.f32 1.442695, %v5754_v50  ;;  %v15191_v44 = vld [vmem:[#allocation178_spill] sm:$0xff] }
 0xf9d   : > { %v4874_v9 = vpop.xlane.xlu0 %4873  ;;  %v13211_v30 = vpop.eup %9092 }
 0xf9e   : > { %v13207_v63 = vpop.xlane.xlu1 %5686  ;;  %9116 = vrcp.f32 %v4874_v9  ;;  %v13215_v37 = vpop.eup %9094  ;;  %v5034_v18 = vpack.c.bf16 %v4958_v0, %v4955_v51  ;;  %v5033_v27 = vpack.c.bf16 %v4957_v14, %v4954_v60  ;;  %v5744_v9 = vsub.f32 %v15191_v44, %v13036_v25  ;;  %v15196_v44 = vld [vmem:[#allocation181_spill] sm:$0xff] }
 0xf9f   : > { %9118 = vpow2.f32 %v5827_v42  ;;  %v13217_v61 = vpop.eup %9096  ;;  %v5835_v51 = vmul.f32 1.442695, %v5743_v24  ;;  %v15193_v24 = vld [vmem:[#allocation98_spill] sm:$0xff] }
 0xfa0   : > { %5713 = vmax.xlane.f32.xlu0 %v5712_v3  ;;  %15189 = vst [vmem:[#allocation59_spill] sm:$0xff] %v13217_v61  ;;  %9120 = vpow2.f32 %v5847_v8  ;;  %v13220_v34 = vpop.eup %9098  ;;  %5169 = vmatprep.mubr.bf16.mxu0 %v5034_v18  ;;  %v5934_v3 = vadd.f32 %v13211_v30, %v13205_v23  ;;  %v15192_v8 = vld [vmem:[#allocation101_spill] sm:$0xff] }
 0xfa1   : > { %v5684_v54 = vpop.xlane.xlu0 %5683  ;;  %15190 = vst [vmem:[#allocation139_spill] sm:$0xff] %v13220_v34  ;;  %9122 = vpow2.f32 %v5849_v26  ;;  %5170 = vmatmul.mubr.bf16.gmra.mxu0 %v5033_v27  ;;  %v9101_v32 = vpop.eup %9100  ;;  %v15194_v18 = vld [vmem:[#allocation37_spill] sm:$0xff] }
 0xfa2   : > { %v5757_v7 = vsub.f32 %v12676_v45, %v5684_v54  ;;  %v4883_v42 = vpop.xlane.xlu1 %4882  ;;  %v5758_v35 = vsub.f32 %v12679_v17, %v5684_v54  ;;  %9124 = vrcp.f32 %v4877_v1  ;;  %v5747_v45 = vsub.f32 %v15192_v8, %v13077_v48  ;;  %v13229_v60 = vpop.eup %9102  ;;  %v15195_v54 = vld [vmem:[#allocation75_spill] sm:$0xff] }
 0xfa3   : > { %9126 = vpow2.f32 %v5855_v10  ;;  %v9105_v26 = vpop.eup %9104  ;;  %v5837_v17 = vmul.f32 1.442695, %v5744_v9  ;;  %v5940_v1 = vadd.f32 %v13220_v34, %v13217_v61  ;;  %v5748_v10 = vsub.f32 %v15193_v24, %v13077_v48 }
 0xfa4   : > { %5935 = vadd.xlane.f32.xlu0 %v5934_v3  ;;  %9128 = vpow2.f32 %v5857_v58  ;;  %v5863_v25 = vmul.f32 1.442695, %v5757_v7  ;;  %v5865_v0 = vmul.f32 1.442695, %v5758_v35  ;;  %v13235_v36 = vpop.eup %9106  ;;  %v4961_v27 = vmul.f32 %v9101_v32, %v15194_v18  ;;  %v15197_v35 = vld [vmem:[#allocation56_spill] sm:$0xff] }
 0xfa5   : > { %v4880_v50 = vpop.xlane.xlu0 %4879  ;;  %9130 = vpow2.f32 %v5829_v57  ;;  %v4964_v58 = vmul.f32 %v9105_v26, %v15195_v54  ;;  %v13241_v7 = vpop.eup %9108  ;;  %v5843_v57 = vmul.f32 1.442695, %v5747_v45  ;;  %v4960_v9 = vmul.f32 %v9101_v32, %v15196_v44 }
 0xfa6   : > { %v13231_v14 = vpop.xlane.xlu1 %5692  ;;  %9132 = vpow2.f32 %v5835_v51  ;;  %v4963_v3 = vmul.f32 %v9105_v26, %v15197_v35  ;;  %v13245_v61 = vpop.eup %9110  ;;  %v15199_v51 = vld [vmem:[#allocation105_spill] sm:$0xff]  ;;  %v5946_v32 = vadd.f32 %v13235_v36, %v13229_v60 }
 0xfa7   : > { %9134 = vrcp.f32 %v4880_v50  ;;  %15198 = vst [vmem:[#allocation144_spill] sm:$0xff] %v13245_v61  ;;  %v5751_v34 = vsub.f32 %v15199_v51, %v13129_v29  ;;  %v5036_v48 = vpack.c.bf16 %v4964_v58, %v4961_v27  ;;  %v9113_v18 = vpop.eup %9112 }
 0xfa8   : > { %5941 = vadd.xlane.f32.xlu0 %v5940_v1  ;;  %9136 = vpow2.f32 %v5863_v25  ;;  %v5035_v45 = vpack.c.bf16 %v4963_v3, %v4960_v9  ;;  %v13255_v26 = vpop.eup %9114  ;;  %v15200_v1 = vld [vmem:[#allocation54_spill] sm:$0xff]  ;;  %v15202_v3 = vld [vmem:[#allocation53_spill] sm:$0xff] }
 0xfa9   : > { %v5690_v8 = vpop.xlane.xlu0 %5689  ;;  %9138 = vpow2.f32 %v5865_v0  ;;  %v5752_v44 = vsub.f32 %v15200_v1, %v13129_v29  ;;  %5177 = vmatprep.mubr.bf16.mxu0 %v5036_v48  ;;  %v15201_v0 = vld [vmem:[#allocation71_spill] sm:$0xff]  ;;  %v5952_v48 = vadd.f32 %v13255_v26, %v13245_v61 }
 0xfaa   : > { %v5761_v24 = vsub.f32 %v12710_v53, %v5690_v8  ;;  %v13250_v54 = vpop.xlane.xlu1 %4888  ;;  %v5762_v50 = vsub.f32 %v12719_v2, %v5690_v8  ;;  %9140 = vpow2.f32 %v5837_v17  ;;  %v5845_v53 = vmul.f32 1.442695, %v5748_v10  ;;  %5178 = vmatmul.mubr.bf16.gmra.mxu0 %v5035_v45 }
 0xfab   : > { %v9117_v27 = vpop.eup %9116  ;;  %9142 = vpow2.f32 %v5843_v57  ;;  %v5755_v58 = vsub.f32 %v15201_v0, %v13177_v49  ;;  %v4967_v17 = vmul.f32 %v9113_v18, %v15202_v3  ;;  %v5851_v57 = vmul.f32 1.442695, %v5751_v34 }
 0xfac   : > { %v5871_v25 = vmul.f32 1.442695, %v5761_v24  ;;  %v5873_v9 = vmul.f32 1.442695, %v5762_v50  ;;  %5947 = vadd.xlane.f32.xlu0 %v5946_v32  ;;  %v13261_v35 = vpop.eup %9118  ;;  %9144 = vrcp.f32 %v4883_v42  ;;  %v4970_v8 = vmul.f32 %v9117_v27, %v12716_v40  ;;  %v15204_v24 = vld [vmem:[#allocation104_spill] sm:$0xff]  ;;  %v15205_v32 = vld [vmem:[#allocation43_spill] sm:$0xff] }
 0xfad   : > { %v4886_v2 = vpop.xlane.xlu0 %4885  ;;  %v4969_v29 = vmul.f32 %v9117_v27, %v12712_v21  ;;  %v13266_v51 = vpop.eup %9120  ;;  %v4966_v45 = vmul.f32 %v9113_v18, %v15204_v24  ;;  %v5853_v42 = vmul.f32 1.442695, %v5752_v44  ;;  %v5756_v1 = vsub.f32 %v15205_v32, %v13177_v49 }
 0xfae   : > { %15203 = vst [vmem:[#allocation58_spill] sm:$0xff] %v13266_v51  ;;  %9146 = vpow2.f32 %v5871_v25  ;;  %v13268_v10 = vpop.xlane.xlu1 %5698  ;;  %v13273_v50 = vpop.eup %9122  ;;  %v5038_v21 = vpack.c.bf16 %v4970_v8, %v4967_v17  ;;  %v5859_v0 = vmul.f32 1.442695, %v5755_v58  ;;  %v5759_v34 = vsub.f32 %v12688_v15, %v13207_v63 }
 0xfaf   : > { %9148 = vpow2.f32 %v5873_v9  ;;  %v7790_v40 = vpop.f32.mrf.mxu0  ;;  %v9125_v27 = vpop.eup %9124  ;;  %v5037_v25 = vpack.c.bf16 %v4969_v29, %v4966_v45  ;;  %v5709_v18 = vmax.f32 %v13121_v43, %v13140_v11  ;;  %v5958_v17 = vadd.f32 %v13273_v50, %v13266_v51 }
 0xfb0   : > { %9150 = vrcp.f32 %v4886_v2  ;;  %5953 = vadd.xlane.f32.xlu0 %v5952_v48  ;;  %v13279_v61 = vpop.eup %9126  ;;  %5185 = vmatprep.mubr.bf16.mxu0 %v5038_v21  ;;  %v5931_v8 = vadd.f32 %v13198_v47, %v13192_v22  ;;  %v5861_v24 = vmul.f32 1.442695, %v5756_v1  ;;  %v5867_v45 = vmul.f32 1.442695, %v5759_v34 }
 0xfb1   : > { %v5696_v3 = vpop.xlane.xlu0 %5695  ;;  %15206 = vst [vmem:[#allocation63_spill] sm:$0xff] %v13279_v61  ;;  %9152 = vpow2.f32 %v5845_v53  ;;  %v7791_v49 = vpop.f32.mrf.mxu0  ;;  %v5763_v32 = vsub.f32 %v12724_v5, %v13231_v14  ;;  %v15211_v5 = vld [vmem:[#allocation55_spill] sm:$0xff] }
 0xfb2   : > { %v5765_v44 = vsub.f32 %v12744_v6, %v5696_v3  ;;  %v5766_v9 = vsub.f32 %v12752_v52, %v5696_v3  ;;  %v13285_v58 = vpop.eup %9128  ;;  %9154 = vpow2.f32 %v5851_v57  ;;  %v13287_v15 = vpop.xlane.xlu1 %4894  ;;  %v13289_v2 = vadd.f32 %v7791_v49, %v7790_v40  ;;  %5186 = vmatmul.mubr.bf16.gmra.mxu0 %v5037_v25  ;;  %v15212_v25 = vld [vmem:[#allocation107_spill] sm:$0xff] }
 0xfb3   : > { %15207 = vst [vmem:[#allocation65_spill] sm:$0xff] %v13285_v58  ;;  %v13295_v53 = vpop.eup %9130  ;;  %9156 = vpow2.f32 %v5853_v42  ;;  %v5760_v6 = vsub.f32 %v12696_v20, %v13207_v63  ;;  %v7793_v57 = vpop.f32.mrf.mxu0  ;;  %v15208_v20 = vld [vmem:[#allocation108_spill] sm:$0xff]  ;;  %v5964_v3 = vadd.f32 %v13285_v58, %v13279_v61 }
 0xfb4   : > { %v5879_v52 = vmul.f32 1.442695, %v5765_v44  ;;  %v5881_v29 = vmul.f32 1.442695, %v5766_v9  ;;  %5710 = vmax.xlane.f32.xlu1 %v5709_v18  ;;  %v13299_v48 = vpop.eup %9132  ;;  %9158 = vpow2.f32 %v5859_v0  ;;  %5959 = vadd.xlane.f32.xlu0 %v5958_v17  ;;  %v4973_v63 = vmul.f32 %v9125_v27, %v15208_v20  ;;  %v15209_v18 = vld [vmem:[#allocation45_spill] sm:$0xff]  ;;  %v15214_v17 = vld [vmem:[#allocation40_spill] sm:$0xff] }
 0xfb5   : > { %v4892_v40 = vpop.xlane.xlu0 %4891  ;;  %v9135_v21 = vpop.eup %9134  ;;  %9160 = vrcp.f32 %v13250_v54  ;;  %v4972_v49 = vmul.f32 %v9125_v27, %v15209_v18  ;;  %v5869_v54 = vmul.f32 1.442695, %v5760_v6  ;;  %v5764_v20 = vsub.f32 %v15214_v17, %v13231_v14  ;;  %v15216_v6 = vld [vmem:[#allocation114_spill] sm:$0xff] }
 0xfb6   : > { %v7794_v42 = vpop.f32.mrf.mxu0  ;;  %v13308_v0 = vpop.eup %9136  ;;  %9162 = vpow2.f32 %v5879_v52  ;;  %v4976_v34 = vmul.f32 %v9135_v21, %v15211_v5  ;;  %v4975_v44 = vmul.f32 %v9135_v21, %v15212_v25  ;;  %v5937_v27 = vadd.f32 %v13241_v7, %v13215_v37 }
 0xfb7   : > { %15210 = vst [vmem:[#allocation149_spill] sm:$0xff] %v13308_v0  ;;  %v13310_v1 = vadd.f32 %v7794_v42, %v7793_v57  ;;  %v13314_v9 = vpop.eup %9138  ;;  %9164 = vpow2.f32 %v5881_v29  ;;  %v5875_v52 = vmul.f32 1.442695, %v5763_v32  ;;  %v13322_v57 = vpop.xlane.xlu1 %5704  ;;  %v5767_v14 = vsub.f32 %v12766_v59, %v13268_v10 }
 0xfb8   : > { %15213 = vst [vmem:[#allocation62_spill] sm:$0xff] %v13314_v9  ;;  %5932 = vadd.xlane.f32.xlu1 %v5931_v8  ;;  %v13320_v18 = vpop.eup %9140  ;;  %9166 = vrcp.f32 %v4892_v40  ;;  %v5040_v42 = vpack.c.bf16 %v4976_v34, %v4973_v63  ;;  %5965 = vadd.xlane.f32.xlu0 %v5964_v3  ;;  %v5039_v21 = vpack.c.bf16 %v4975_v44, %v4972_v49  ;;  %v5877_v59 = vmul.f32 1.442695, %v5764_v20  ;;  %v15219_v44 = vld [vmem:[#allocation79_spill] sm:$0xff] }
 0xfb9   : > { %v5702_v5 = vpop.xlane.xlu0 %5701  ;;  %v13324_v25 = vpop.eup %9142  ;;  %9168 = vpow2.f32 %v5861_v24  ;;  %v5970_v32 = vadd.f32 %v13314_v9, %v13308_v0  ;;  %v5883_v34 = vmul.f32 1.442695, %v5767_v14 }
 0xfba   : > { %15215 = vst [vmem:[#allocation146_spill] sm:$0xff] %v13324_v25  ;;  %v5769_v8 = vsub.f32 %v12799_v12, %v5702_v5  ;;  %v5770_v29 = vsub.f32 %v15216_v6, %v5702_v5  ;;  %v9145_v17 = vpop.eup %9144  ;;  %9170 = vpow2.f32 %v5867_v45  ;;  %5193 = vmatprep.mubr.bf16.mxu0 %v5040_v42  ;;  %v5943_v45 = vadd.f32 %v13295_v53, %v13261_v35  ;;  %v15222_v6 = vld [vmem:[#allocation35_spill] sm:$0xff] }
 0xfbb   : > { %v13332_v40 = vpop.eup %9146  ;;  %9172 = vpow2.f32 %v5869_v54  ;;  %5194 = vmatmul.mubr.bf16.gmra.mxu0 %v5039_v21  ;;  %v4979_v42 = vmul.f32 %v9145_v17, %v15219_v44  ;;  %v15220_v54 = vld [vmem:[#allocation106_spill] sm:$0xff] }
 0xfbc   : > { %15217 = vst [vmem:[#allocation147_spill] sm:$0xff] %v13332_v40  ;;  %v5887_v63 = vmul.f32 1.442695, %v5769_v8  ;;  %v5889_v3 = vmul.f32 1.442695, %v5770_v29  ;;  %5938 = vadd.xlane.f32.xlu1 %v5937_v27  ;;  %v13334_v24 = vpop.eup %9148  ;;  %9174 = vpow2.f32 %v5875_v52  ;;  %5971 = vadd.xlane.f32.xlu0 %v5970_v32  ;;  %v4978_v5 = vmul.f32 %v9145_v17, %v15220_v54  ;;  %v4901_v27 = vpop.xlane.xlu1 %4900  ;;  %v15221_v52 = vld [vmem:[#allocation30_spill] sm:$0xff] }
 0xfbd   : > { %15218 = vst [vmem:[#allocation154_spill] sm:$0xff] %v13334_v24  ;;  %v4898_v12 = vpop.xlane.xlu0 %4897  ;;  %v9151_v49 = vpop.eup %9150  ;;  %9176 = vrcp.f32 %v13287_v15  ;;  %v5976_v21 = vadd.f32 %v13334_v24, %v13332_v40  ;;  %v15225_v17 = vld [vmem:[#allocation42_spill] sm:$0xff]  ;;  %v15228_v24 = vld [vmem:[#allocation121_spill] sm:$0xff] }
 0xfbe   : > { %v13341_v8 = vpop.eup %9152  ;;  %9178 = vpow2.f32 %v5887_v63  ;;  %v4982_v20 = vmul.f32 %v9151_v49, %v15221_v52  ;;  %v4981_v29 = vmul.f32 %v9151_v49, %v15222_v6  ;;  %v7796_v14 = vpop.f32.mrf.mxu0  ;;  %v5768_v44 = vsub.f32 %v15225_v17, %v13268_v10  ;;  %v15227_v49 = vld [vmem:[#allocation123_spill] sm:$0xff] }
 0xfbf   : > { %v13347_v32 = vpop.eup %9154  ;;  %9180 = vpow2.f32 %v5889_v3 }
 0xfc0   : > { %15223 = vst [vmem:[#allocation69_spill] sm:$0xff] %v13347_v32  ;;  %5944 = vadd.xlane.f32.xlu1 %v5943_v45  ;;  %v13349_v15 = vpop.eup %9156  ;;  %9182 = vrcp.f32 %v4898_v12  ;;  %v5042_v54 = vpack.c.bf16 %v4982_v20, %v4979_v42  ;;  %5977 = vadd.xlane.f32.xlu0 %v5976_v21  ;;  %v5041_v63 = vpack.c.bf16 %v4981_v29, %v4978_v5  ;;  %v7797_v40 = vpop.f32.mrf.mxu0  ;;  %v5885_v21 = vmul.f32 1.442695, %v5768_v44  ;;  %v15231_v29 = vld [vmem:[#allocation112_spill] sm:$0xff] }
 0xfc1   : > { %15224 = vst [vmem:[#allocation151_spill] sm:$0xff] %v13349_v15  ;;  %v5708_v52 = vpop.xlane.xlu0 %5707  ;;  %v13353_v0 = vpop.eup %9158  ;;  %9184 = vpow2.f32 %v5877_v59  ;;  %v5949_v45 = vadd.f32 %v13320_v18, %v13299_v48  ;;  %v13359_v61 = vadd.f32 %v7797_v40, %v7796_v14  ;;  %v5955_v20 = vadd.f32 %v13341_v8, %v13324_v25  ;;  %v15232_v40 = vld [vmem:[#allocation117_spill] sm:$0xff] }
 0xfc2   : > { %15226 = vst [vmem:[#allocation152_spill] sm:$0xff] %v13353_v0  ;;  %v5773_v6 = vsub.f32 %v15227_v49, %v5708_v52  ;;  %v5774_v3 = vsub.f32 %v15228_v24, %v5708_v52  ;;  %v9161_v9 = vpop.eup %9160  ;;  %9186 = vpow2.f32 %v5883_v34  ;;  %5201 = vmatprep.mubr.bf16.mxu0 %v5042_v54  ;;  %v4907_v10 = vpop.xlane.xlu1 %4906  ;;  %v5771_v34 = vsub.f32 %v15231_v29, %v13322_v57  ;;  %v15233_v49 = vld [vmem:[#allocation115_spill] sm:$0xff] }
 0xfc3   : > { %v13361_v12 = vpop.eup %9162  ;;  %9188 = vrcp.f32 %v4901_v27  ;;  %v7799_v42 = vpop.f32.mrf.mxu0  ;;  %v5772_v14 = vsub.f32 %v15232_v40, %v13322_v57  ;;  %5202 = vmatmul.mubr.bf16.gmra.mxu0 %v5041_v63  ;;  %v15236_v29 = vld [vmem:[#allocation111_spill] sm:$0xff] }
 0xfc4   : > { %15229 = vst [vmem:[#allocation74_spill] sm:$0xff] %v13361_v12  ;;  %v5895_v5 = vmul.f32 1.442695, %v5773_v6  ;;  %v5897_v59 = vmul.f32 1.442695, %v5774_v3  ;;  %5950 = vadd.xlane.f32.xlu1 %v5949_v45  ;;  %v13365_v24 = vpop.eup %9164  ;;  %9190 = vrcp.f32 %v4907_v10  ;;  %v4985_v6 = vmul.f32 %v9161_v9, %v15233_v49  ;;  %v15234_v3 = vld [vmem:[#allocation109_spill] sm:$0xff] }
 0xfc5   : > { %15230 = vst [vmem:[#allocation18_spill] sm:$0xff] %v13365_v24  ;;  %v4904_v17 = vpop.xlane.xlu0 %4903  ;;  %v9167_v27 = vpop.eup %9166  ;;  %v5982_v52 = vadd.f32 %v13365_v24, %v13361_v12  ;;  %v4984_v45 = vmul.f32 %v9161_v9, %v15234_v3  ;;  %v15237_v10 = vld [vmem:[#allocation113_spill] sm:$0xff]  ;;  %v5891_v49 = vmul.f32 1.442695, %v5771_v34 }
 0xfc6   : > { %v7800_v54 = vpop.f32.mrf.mxu0  ;;  %9192 = vpow2.f32 %v5895_v5  ;;  %v13375_v44 = vpop.eup %9168  ;;  %v4988_v57 = vmul.f32 %v9167_v27, %v15236_v29  ;;  %v4987_v63 = vmul.f32 %v9167_v27, %v15237_v10  ;;  %v5961_v27 = vadd.f32 %v13349_v15, %v13347_v32  ;;  %v15244_v10 = vld [vmem:[#allocation110_spill] sm:$0xff] }
 0xfc7   : > { %15235 = vst [vmem:[#allocation17_spill] sm:$0xff] %v13375_v44  ;;  %v13377_v58 = vadd.f32 %v7800_v54, %v7799_v42  ;;  %9194 = vpow2.f32 %v5897_v59  ;;  %v13381_v40 = vpop.eup %9170  ;;  %5983 = vadd.xlane.f32.xlu0 %v5982_v52  ;;  %v5893_v42 = vmul.f32 1.442695, %v5772_v14 }
 0xfc8   : > { %15238 = vst [vmem:[#allocation156_spill] sm:$0xff] %v13381_v40  ;;  %9196 = vrcp.f32 %v4904_v17  ;;  %5956 = vadd.xlane.f32.xlu1 %v5955_v20  ;;  %v13383_v5 = vpop.eup %9172  ;;  %v5044_v12 = vpack.c.bf16 %v4988_v57, %v4985_v6  ;;  %v5043_v9 = vpack.c.bf16 %v4987_v63, %v4984_v45  ;;  %v5967_v45 = vadd.f32 %v13375_v44, %v13353_v0 }
 0xfc9   : > { %15239 = vst [vmem:[#allocation70_spill] sm:$0xff] %v13383_v5  ;;  %9198 = vpow2.f32 %v5885_v21  ;;  %v4910_v3 = vpop.xlane.xlu0 %4909  ;;  %v13385_v24 = vpop.eup %9174 }
 0xfca   : > { %15240 = vst [vmem:[#allocation161_spill] sm:$0xff] %v13385_v24  ;;  %v7802_v59 = vpop.f32.mrf.mxu0  ;;  %9200 = vrcp.f32 %v4910_v3  ;;  %v9177_v54 = vpop.eup %9176  ;;  %5209 = vmatprep.mubr.bf16.mxu0 %v5044_v12  ;;  %v15245_v3 = vld [vmem:[#allocation126_spill] sm:$0xff] }
 0xfcb   : > { %v13389_v17 = vpop.eup %9178  ;;  %9202 = vpow2.f32 %v5891_v49  ;;  %5210 = vmatmul.mubr.bf16.gmra.mxu0 %v5043_v9  ;;  %v4913_v57 = vpop.xlane.xlu1 %4912  ;;  %v4991_v63 = vmul.f32 %v9177_v54, %v15244_v10  ;;  %v15247_v9 = vld [vmem:[#allocation124_spill] sm:$0xff]  ;;  %v5973_v10 = vadd.f32 %v13383_v5, %v13381_v40  ;;  %v15256_v5 = vld [vmem:[#allocation131_spill] sm:$0xff] }
 0xfcc   : > { %15241 = vst [vmem:[#allocation148_spill] sm:$0xff] %v13389_v17  ;;  %v7803_v20 = vpop.f32.mrf.mxu0  ;;  %5962 = vadd.xlane.f32.xlu1 %v5961_v27  ;;  %v13391_v52 = vpop.eup %9180  ;;  %9204 = vpow2.f32 %v5893_v42 }
 0xfcd   : > { %15242 = vst [vmem:[#allocation80_spill] sm:$0xff] %v13391_v52  ;;  %v13393_v21 = vadd.f32 %v7803_v20, %v7802_v59  ;;  %v4916_v34 = vpop.xlane.xlu0 %4915  ;;  %v9183_v6 = vpop.eup %9182  ;;  %v5988_v12 = vadd.f32 %v13391_v52, %v13389_v17  ;;  %v15246_v59 = vld [vmem:[#allocation119_spill] sm:$0xff] }
 0xfce   : > { %v7805_v14 = vpop.f32.mrf.mxu0  ;;  %v13399_v29 = vpop.eup %9184  ;;  %v4994_v49 = vmul.f32 %v9183_v6, %v15245_v3  ;;  %v4990_v27 = vmul.f32 %v9177_v54, %v15246_v59  ;;  %v4993_v20 = vmul.f32 %v9183_v6, %v15247_v9  ;;  %9206 = vrcp.f32 %v4916_v34  ;;  %v15254_v9 = vld [vmem:[#allocation116_spill] sm:$0xff] }
 0xfcf   : > { %15243 = vst [vmem:[#allocation145_spill] sm:$0xff] %v13399_v29  ;;  %v13405_v32 = vpop.eup %9186  ;;  %5989 = vadd.xlane.f32.xlu0 %v5988_v12  ;;  %9208 = vrcp.f32 %v4913_v57  ;;  %v5979_v57 = vadd.f32 %v13399_v29, %v13385_v24 }
 0xfd0   : > { %15248 = vst [vmem:[#allocation158_spill] sm:$0xff] %v13405_v32  ;;  %v7806_v42 = vpop.f32.mrf.mxu0  ;;  %5968 = vadd.xlane.f32.xlu1 %v5967_v45  ;;  %v9189_v0 = vpop.eup %9188  ;;  %v5046_v17 = vpack.c.bf16 %v4994_v49, %v4991_v63  ;;  %v5045_v52 = vpack.c.bf16 %v4993_v20, %v4990_v27  ;;  %v15252_v49 = vld [vmem:[#allocation118_spill] sm:$0xff] }
 0xfd1   : > { %v13407_v44 = vadd.f32 %v7806_v42, %v7805_v14  ;;  %v4922_v51 = vpop.xlane.xlu0 %4921  ;;  %v9191_v15 = vpop.eup %9190  ;;  %v4997_v59 = vmul.f32 %v9189_v0, %v15252_v49 }
 0xfd2   : > { %5217 = vmatprep.mubr.bf16.mxu0 %v5046_v17  ;;  %v15253_v17 = vld [vmem:[#allocation133_spill] sm:$0xff]  ;;  %9210 = vrcp.f32 %v4922_v51  ;;  %v5003_v24 = vmul.f32 %v9191_v15, %v15256_v5 }
 0xfd3   : > { %v13411_v54 = vpop.eup %9192  ;;  %v4919_v6 = vpop.xlane.xlu1 %4918  ;;  %5218 = vmatmul.mubr.bf16.gmra.mxu0 %v5045_v52 }
 0xfd4   : > { %15249 = vst [vmem:[#allocation67_spill] sm:$0xff] %v13411_v54  ;;  %v13413_v3 = vpop.eup %9194  ;;  %5974 = vadd.xlane.f32.xlu1 %v5973_v10  ;;  %v15255_v10 = vld [vmem:[#allocation129_spill] sm:$0xff]  ;;  %9212 = vrcp.f32 %v4919_v6 }
 0xfd5   : > { %15250 = vst [vmem:[#allocation150_spill] sm:$0xff] %v13413_v3  ;;  %v9197_v34 = vpop.eup %9196  ;;  %v6134_v45 = vpop.permute.xlu0 %6133  ;;  %v5994_v14 = vadd.f32 %v13413_v3, %v13411_v54  ;;  %v4996_v40 = vmul.f32 %v9189_v0, %v15255_v10 }
 0xfd6   : > { %v13417_v12 = vpop.eup %9198  ;;  %v7808_v63 = vpop.f32.mrf.mxu0  ;;  %8107 = vmatpush3.bf16.msra.mxu0 %v6134_v45  ;;  %v5000_v27 = vmul.f32 %v9197_v34, %v15253_v17  ;;  %v4999_v20 = vmul.f32 %v9197_v34, %v15254_v9  ;;  %v15257_v45 = vld [vmem:[#allocation122_spill] sm:$0xff]  ;;  %v15261_v9 = vld [vmem:[#allocation140_spill] sm:$0xff] }
 0xfd7   : > { %15251 = vst [vmem:[#allocation73_spill] sm:$0xff] %v13417_v12  ;;  %v9201_v42 = vpop.eup %9200  ;;  %v6148_v52 = vpop.permute.xlu1 %6147  ;;  %5995 = vadd.xlane.f32.xlu0 %v5994_v14  ;;  %v5985_v51 = vadd.f32 %v13417_v12, %v13405_v32 }
 0xfd8   : > { %v7809_v54 = vpop.f32.mrf.mxu0  ;;  %5980 = vadd.xlane.f32.xlu1 %v5979_v57  ;;  %8108 = vmatprep.subr.bf16.mxu0 %v6148_v52  ;;  %v5048_v3 = vpack.c.bf16 %v5000_v27, %v4997_v59  ;;  %v5006_v29 = vmul.f32 %v9201_v42, %v15257_v45  ;;  %v5047_v17 = vpack.c.bf16 %v4999_v20, %v4996_v40  ;;  %v13429_v25 = vpop.eup %9202  ;;  %v15262_v20 = vld [vmem:[#allocation136_spill] sm:$0xff]  ;;  %v15263_v45 = vld [vmem:[#allocation127_spill] sm:$0xff] }
 0xfd9   : > { %v13427_v49 = vadd.f32 %v7809_v54, %v7808_v63  ;;  %15258 = vst [vmem:[#allocation159_spill] sm:$0xff] %v13429_v25  ;;  %v13433_v6 = vpop.eup %9204  ;;  %v15260_v63 = vld [vmem:[#allocation132_spill] sm:$0xff]  ;;  %v5002_v52 = vmul.f32 %v9191_v15, %v15262_v20 }
 0xfda   : > { %v7811_v34 = vpop.f32.mrf.mxu0  ;;  %5225 = vmatprep.mubr.bf16.mxu0 %v5048_v3  ;;  %v5050_v0 = vpack.c.bf16 %v5006_v29, %v5003_v24  ;;  %15259 = vst [vmem:[#allocation76_spill] sm:$0xff] %v13433_v6  ;;  %v5991_v40 = vadd.f32 %v13433_v6, %v13429_v25  ;;  %v5005_v3 = vmul.f32 %v9201_v42, %v15260_v63  ;;  %v15267_v6 = vld [vmem:[#allocation57_spill] sm:$0xff] }
 0xfdb   : > { %v9207_v57 = vpop.eup %9206  ;;  %5226 = vmatmul.mubr.bf16.gmra.mxu0 %v5047_v17 }
 0xfdc   : > { %v7812_v14 = vpop.f32.mrf.mxu0  ;;  %5986 = vadd.xlane.f32.xlu1 %v5985_v51  ;;  %5233 = vmatprep.mubr.bf16.mxu0 %v5050_v0  ;;  %v9209_v54 = vpop.eup %9208  ;;  %v5012_v24 = vmul.f32 %v9207_v57, %v15261_v9  ;;  %v5049_v17 = vpack.c.bf16 %v5005_v3, %v5002_v52 }
 0xfdd   : > { %v13435_v59 = vadd.f32 %v7812_v14, %v7811_v34  ;;  %v5009_v34 = vmul.f32 %v9209_v54, %v15263_v45  ;;  %v15268_v45 = vld [vmem:[#allocation120_spill] sm:$0xff] }
 0xfde   : > { %v7814_v5 = vpop.f32.mrf.mxu0  ;;  %v5008_v3 = vmul.f32 %v9209_v54, %v15268_v45 }
 0xfdf   : > { %v9211_v51 = vpop.eup %9210  ;;  %v5052_v14 = vpack.c.bf16 %v5012_v24, %v5009_v34 }
 0xfe0   : > { %v7815_v27 = vpop.f32.mrf.mxu0  ;;  %5992 = vadd.xlane.f32.xlu1 %v5991_v40  ;;  %v15265_v40 = vld [vmem:[#allocation130_spill] sm:$0xff]  ;;  %v5018_v15 = vmul.f32 %v9211_v51, %v15267_v6 }
 0xfe1   : > { %v13441_v29 = vadd.f32 %v7815_v27, %v7814_v5  ;;  %v9213_v32 = vpop.eup %9212  ;;  %v5011_v63 = vmul.f32 %v9207_v57, %v15265_v40  ;;  %v15266_v5 = vld [vmem:[#allocation137_spill] sm:$0xff] }
 0xfe2   : > { %v7817_v10 = vpop.f32.mrf.mxu0  ;;  %v5015_v27 = vmul.f32 %v9213_v32, %v15266_v5 }
 0xfe3   : > { %5234 = vmatmul.mubr.bf16.gmra.mxu0 %v5049_v17  ;;  %v5051_v12 = vpack.c.bf16 %v5011_v63, %v5008_v3 }
 0xfe4   : > { %v7818_v0 = vpop.f32.mrf.mxu0  ;;  %5241 = vmatprep.mubr.bf16.mxu0 %v5052_v14  ;;  %v5054_v34 = vpack.c.bf16 %v5018_v15, %v5015_v27  ;;  %v15271_v14 = vld [vmem:[#allocation138_spill] sm:$0xff] }
 0xfe5   : > { %v13445_v25 = vadd.f32 %v7818_v0, %v7817_v10  ;;  %v15270_v0 = vld [vmem:[#allocation128_spill] sm:$0xff]  ;;  %v5017_v40 = vmul.f32 %v9211_v51, %v15271_v14 }
 0xfe6   : > { %v7820_v42 = vpop.f32.mrf.mxu0  ;;  %v5014_v57 = vmul.f32 %v9213_v32, %v15270_v0 }
 0xfe7   : > { %15264 = vst [vmem:[#allocation87_spill] sm:$0xff] %v13445_v25 }
 0xfe8   : > { %v7821_v9 = vpop.f32.mrf.mxu0 }
 0xfe9   : > { %v13450_v20 = vadd.f32 %v7821_v9, %v7820_v42  ;;  %v5053_v42 = vpack.c.bf16 %v5017_v40, %v5014_v57 }
 0xfea   : > { %v7823_v52 = vpop.f32.mrf.mxu0 }
 0xfeb   : > { %5242 = vmatmul.mubr.bf16.gmra.mxu0 %v5051_v12 }
 0xfec   : > { %v7824_v24 = vpop.f32.mrf.mxu0  ;;  %5249 = vmatprep.mubr.bf16.mxu0 %v5054_v34 }
 0xfed   : > { %v13453_v10 = vadd.f32 %v7824_v24, %v7823_v52 }
 0xfee   : > { %v7826_v17 = vpop.f32.mrf.mxu0 }
 0xfef   : > { %15269 = vst [vmem:[#allocation153_spill] sm:$0xff] %v13453_v10 }
 0xff0   : > { %v7827_v5 = vpop.f32.mrf.mxu0 }
 0xff1   : > { %v13457_v25 = vadd.f32 %v7827_v5, %v7826_v17 }
 0xff2   : > { %v7829_v6 = vpop.f32.mrf.mxu0 }
 0xff3   : > { %15272 = vst [vmem:[#allocation155_spill] sm:$0xff] %v13457_v25  ;;  %5250 = vmatmul.mubr.bf16.gmra.mxu0 %v5053_v42 }
 0xff4   : > { %v7830_v9 = vpop.f32.mrf.mxu0 }
 0xff5   : > { %v13459_v54 = vadd.f32 %v7830_v9, %v7829_v6 }
 0xff6   : > { %v7832_v63 = vpop.f32.mrf.mxu0 }
 0xff8   : > { %v7833_v27 = vpop.f32.mrf.mxu0 }
 0xff9   : > { %v13461_v15 = vadd.f32 %v7833_v27, %v7832_v63 }
 0xffa   : > { %v7835_v12 = vpop.f32.mrf.mxu0 }
 0xffb   : > { %15273 = vst [vmem:[#allocation78_spill] sm:$0xff] %v13461_v15 }
 0xffc   : > { %v7836_v45 = vpop.f32.mrf.mxu0 }
 0xffd   : > { %v13463_v3 = vadd.f32 %v7836_v45, %v7835_v12 }
 0xffe   : > { %v7838_v32 = vpop.f32.mrf.mxu0 }
0x1000   : > { %v7839_v52 = vpop.f32.mrf.mxu0 }
0x1001   : > { %v13465_v51 = vadd.f32 %v7839_v52, %v7838_v32 }
0x1002   : > { %v13467_v24 = vpop.f32.mrf.mxu0 }
0x1004   : > { %v13469_v34 = vpop.f32.mrf.mxu0 }
0x1005   : > { %v4928_v0 = vpop.xlane.xlu0 %4927 }
0x1006   : > { %v7844_v17 = vpop.f32.mrf.mxu0  ;;  %9214 = vrcp.f32 %v4928_v0 }
0x1008   : > { %v7845_v57 = vpop.f32.mrf.mxu0  ;;  %v4925_v14 = vpop.xlane.xlu1 %4924 }
0x1009   : > { %v13471_v40 = vadd.f32 %v7845_v57, %v7844_v17  ;;  %9216 = vrcp.f32 %v4925_v14  ;;  %v5909_v6 = vpop.xlane.xlu0 %5908 }
0x100a   : > { %v13473_v5 = vpop.f32.mrf.mxu0  ;;  %9218 = vrcp.f32 %v5909_v6 }
0x100c   : > { %v13475_v42 = vpop.f32.mrf.mxu0  ;;  %v6132_v9 = vpop.permute.xlu1 %6131 }
0x100d   : > { %8109 = vmatpush3.bf16.msra.mxu0 %v6132_v9  ;;  %v5912_v27 = vpop.xlane.xlu0 %5911 }
0x100e   : > { %v7850_v63 = vpop.f32.mrf.mxu0  ;;  %9220 = vrcp.f32 %v5912_v27 }
0x1010   : > { %v7851_v12 = vpop.f32.mrf.mxu0 }
0x1011   : > { %v13477_v45 = vadd.f32 %v7851_v12, %v7850_v63  ;;  %v5915_v52 = vpop.xlane.xlu0 %5914 }
0x1012   : > { %v13479_v32 = vpop.f32.mrf.mxu0  ;;  %9222 = vrcp.f32 %v5915_v52 }
0x1013   : > { %15274 = vst [vmem:[#allocation82_spill] sm:$0xff] %v13477_v45  ;;  %15275 = vst [vmem:[#allocation164_spill] sm:$0xff] %v13479_v32  ;;  %v9215_v17 = vpop.eup %9214 }
0x1014   : > { %v13481_v0 = vpop.f32.mrf.mxu0  ;;  %v5024_v57 = vmul.f32 %v9215_v17, %v13032_v56  ;;  %v5023_v14 = vmul.f32 %v9215_v17, %v13028_v31 }
0x1015   : > { %15276 = vst [vmem:[#allocation157_spill] sm:$0xff] %v13481_v0  ;;  %v5918_v9 = vpop.xlane.xlu0 %5917 }
0x1016   : > { %v9217_v15 = vpop.eup %9216  ;;  %v7856_v6 = vpop.f32.mrf.mxu0  ;;  %9224 = vrcp.f32 %v5918_v9 }
0x1017   : > { %v5021_v27 = vmul.f32 %v9217_v15, %v13041_v16  ;;  %v5020_v63 = vmul.f32 %v9217_v15, %v13038_v46  ;;  %v9219_v10 = vpop.eup %9218  ;;  %v15278_v15 = vld [vmem:[#allocation143_spill] sm:$0xff] }
0x1018   : > { %v7857_v12 = vpop.f32.mrf.mxu0  ;;  %v6005_v16 = vmul.f32 %v9219_v10, %v13048_v13 }
0x1019   : > { %v13487_v25 = vadd.f32 %v7857_v12, %v7856_v6  ;;  %v5056_v32 = vpack.c.bf16 %v5024_v57, %v5021_v27  ;;  %v5055_v45 = vpack.c.bf16 %v5023_v14, %v5020_v63  ;;  %v5921_v52 = vpop.xlane.xlu0 %5920  ;;  %v6004_v6 = vmul.f32 %v9219_v10, %v15278_v15 }
0x101a   : > { %v13489_v0 = vpop.f32.mrf.mxu0  ;;  %9226 = vrcp.f32 %v5921_v52 }
0x101b   : > { %5257 = vmatprep.mubr.bf16.mxu0 %v5056_v32  ;;  %v9221_v56 = vpop.eup %9220 }
0x101c   : > { %v13491_v31 = vpop.f32.mrf.mxu0  ;;  %5258 = vmatmul.mubr.bf16.gmra.mxu0 %v5055_v45  ;;  %v6007_v17 = vmul.f32 %v9221_v56, %v13067_v28  ;;  %v6008_v46 = vmul.f32 %v9221_v56, %v13073_v62 }
0x101d   : > { %15277 = vst [vmem:[#allocation167_spill] sm:$0xff] %v13491_v31  ;;  %v5924_v14 = vpop.xlane.xlu0 %5923 }
0x101e   : > { %v7862_v57 = vpop.f32.mrf.mxu0  ;;  %9228 = vrcp.f32 %v5924_v14  ;;  %v6100_v9 = vpack.c.bf16 %v6008_v46, %v6005_v16  ;;  %v6099_v63 = vpack.c.bf16 %v6007_v17, %v6004_v6  ;;  %v15280_v16 = vld [vmem:[#allocation125_spill] sm:$0xff] }
0x101f   : > { %v9223_v12 = vpop.eup %9222 }
0x1020   : > { %v7863_v27 = vpop.f32.mrf.mxu0  ;;  %6211 = vmatprep.mubr.bf16.mxu0 %v6100_v9  ;;  %v6011_v13 = vmul.f32 %v9223_v12, %v13087_v39  ;;  %v6010_v46 = vmul.f32 %v9223_v12, %v15280_v16  ;;  %v15285_v16 = vld [vmem:[#allocation134_spill] sm:$0xff] }
0x1021   : > { %v13497_v32 = vadd.f32 %v7863_v27, %v7862_v57  ;;  %v5927_v28 = vpop.xlane.xlu0 %5926 }
0x1022   : > { %v13499_v45 = vpop.f32.mrf.mxu0  ;;  %9230 = vrcp.f32 %v5927_v28 }
0x1023   : > { %v9225_v52 = vpop.eup %9224 }
0x1024   : > { %v13501_v31 = vpop.f32.mrf.mxu0  ;;  %6212 = vmatmul.mubr.bf16.vlgmr.msra.gmra.mxu0 %v6099_v63  ;;  %v6014_v62 = vmul.f32 %v9225_v52, %v13092_v55  ;;  %v6013_v10 = vmul.f32 %v9225_v52, %v13090_v19  ;;  %v15283_v52 = vld [vmem:[#allocation142_spill] sm:$0xff] }
0x1025   : > { %15279 = vst [vmem:[#allocation92_spill] sm:$0xff] %v13501_v31  ;;  %v5930_v17 = vpop.xlane.xlu0 %5929 }
0x1026   : > { %v13506_v56 = vpop.f32.mrf.mxu0  ;;  %9232 = vrcp.f32 %v5930_v17  ;;  %v6102_v15 = vpack.c.bf16 %v6014_v62, %v6011_v13  ;;  %v6101_v57 = vpack.c.bf16 %v6013_v10, %v6010_v46  ;;  %v15284_v62 = vld [vmem:[#allocation135_spill] sm:$0xff] }
0x1027   : > { %v9227_v14 = vpop.eup %9226 }
0x1028   : > { %v13509_v6 = vpop.f32.mrf.mxu0  ;;  %6219 = vmatprep.mubr.bf16.mxu0 %v6102_v15  ;;  %v6017_v13 = vmul.f32 %v9227_v14, %v15283_v52  ;;  %v6016_v46 = vmul.f32 %v9227_v14, %v15285_v16  ;;  %v15286_v15 = vld [vmem:[#allocation61_spill] sm:$0xff] }
0x1029   : > { %v5714_v27 = vpop.xlane.xlu0 %5713 }
0x102a   : > { %v13511_v9 = vpop.f32.mrf.mxu0  ;;  %v5777_v39 = vsub.f32 %v13165_v38, %v5714_v27  ;;  %v5778_v55 = vsub.f32 %v13182_v33, %v5714_v27 }
0x102b   : > { %15281 = vst [vmem:[#allocation83_spill] sm:$0xff] %v13511_v9  ;;  %v9229_v19 = vpop.eup %9228 }
0x102c   : > { %v13515_v63 = vpop.f32.mrf.mxu0  ;;  %6220 = vmatmul.mubr.bf16.gmra.mxu0 %v6101_v57  ;;  %v5903_v28 = vmul.f32 1.442695, %v5777_v39  ;;  %v5905_v12 = vmul.f32 1.442695, %v5778_v55  ;;  %v6020_v17 = vmul.f32 %v9229_v19, %v15284_v62  ;;  %v6019_v9 = vmul.f32 %v9229_v19, %v15286_v15  ;;  %v15290_v62 = vld [vmem:[#allocation52_spill] sm:$0xff] }
0x102d   : > { %15282 = vst [vmem:[#allocation85_spill] sm:$0xff] %v13515_v63 }
0x102e   : > { %v7874_v10 = vpop.f32.mrf.mxu0  ;;  %9234 = vpow2.f32 %v5903_v28  ;;  %v6104_v31 = vpack.c.bf16 %v6020_v17, %v6017_v13  ;;  %v6103_v33 = vpack.c.bf16 %v6019_v9, %v6016_v46  ;;  %v5936_v17 = vpop.xlane.xlu0 %5935 }
0x102f   : > { %9236 = vpow2.f32 %v5905_v12  ;;  %v9231_v57 = vpop.eup %9230  ;;  %v15291_v12 = vld [vmem:[#allocation141_spill] sm:$0xff] }
0x1030   : > { %v7875_v38 = vpop.f32.mrf.mxu0  ;;  %6227 = vmatprep.mubr.bf16.mxu0 %v6104_v31  ;;  %v6023_v63 = vmul.f32 %v9231_v57, %v15290_v62  ;;  %v6022_v13 = vmul.f32 %v9231_v57, %v15291_v12  ;;  %9238 = vrcp.f32 %v5936_v17 }
0x1031   : > { %v13521_v27 = vadd.f32 %v7875_v38, %v7874_v10 }
0x1032   : > { %v13523_v39 = vpop.f32.mrf.mxu0 }
0x1033   : > { %15287 = vst [vmem:[#allocation88_spill] sm:$0xff] %v13521_v27  ;;  %15288 = vst [vmem:[#allocation166_spill] sm:$0xff] %v13523_v39  ;;  %v9233_v55 = vpop.eup %9232 }
0x1034   : > { %v13525_v52 = vpop.f32.mrf.mxu0  ;;  %6228 = vmatmul.mubr.bf16.gmra.mxu0 %v6103_v33  ;;  %v6026_v14 = vmul.f32 %v9233_v55, %v13173_v4  ;;  %v6025_v19 = vmul.f32 %v9233_v55, %v13145_v41  ;;  %v5942_v33 = vpop.xlane.xlu0 %5941 }
0x1035   : > { %15289 = vst [vmem:[#allocation160_spill] sm:$0xff] %v13525_v52  ;;  %9240 = vrcp.f32 %v5942_v33 }
0x1036   : > { %v7880_v28 = vpop.f32.mrf.mxu0  ;;  %v6106_v9 = vpack.c.bf16 %v6026_v14, %v6023_v63  ;;  %v6105_v31 = vpack.c.bf16 %v6025_v19, %v6022_v13 }
0x1038   : > { %v7881_v10 = vpop.f32.mrf.mxu0  ;;  %6235 = vmatprep.mubr.bf16.mxu0 %v6106_v9  ;;  %v5948_v17 = vpop.xlane.xlu0 %5947 }
0x1039   : > { %v13531_v16 = vadd.f32 %v7881_v10, %v7880_v28 }
0x103a   : > { %v13533_v46 = vpop.f32.mrf.mxu0 }
0x103b   : > { %15292 = vst [vmem:[#allocation163_spill] sm:$0xff] %v13531_v16  ;;  %15293 = vst [vmem:[#allocation162_spill] sm:$0xff] %v13533_v46  ;;  %v13535_v15 = vpop.eup %9234 }
0x103c   : > { %15294 = vst [vmem:[#allocation90_spill] sm:$0xff] %v13535_v15  ;;  %v13537_v38 = vpop.f32.mrf.mxu0  ;;  %6236 = vmatmul.mubr.bf16.gmra.mxu0 %v6105_v31  ;;  %v13539_v4 = vpop.eup %9236 }
0x103d   : > { %15295 = vst [vmem:[#allocation84_spill] sm:$0xff] %v13537_v38  ;;  %15296 = vst [vmem:[#allocation51_spill] sm:$0xff] %v13539_v4  ;;  %v5711_v41 = vpop.xlane.xlu1 %5710  ;;  %v6000_v62 = vadd.f32 %v13539_v4, %v13535_v15 }
0x103e   : > { %v5775_v57 = vsub.f32 %v13121_v43, %v5711_v41  ;;  %v5776_v63 = vsub.f32 %v13140_v11, %v5711_v41  ;;  %v13543_v55 = vpop.f32.mrf.mxu0 }
0x103f   : > { %6001 = vadd.xlane.f32.xlu0 %v6000_v62 }
0x1040   : > { %v5899_v14 = vmul.f32 1.442695, %v5775_v57  ;;  %v5901_v19 = vmul.f32 1.442695, %v5776_v63  ;;  %v13547_v28 = vpop.f32.mrf.mxu0  ;;  %v9239_v57 = vpop.eup %9238 }
0x1041   : > { %v5933_v12 = vpop.xlane.xlu1 %5932  ;;  %v6031_v52 = vmul.f32 %v9239_v57, %v13205_v23 }
0x1042   : > { %9242 = vpow2.f32 %v5899_v14  ;;  %v13549_v13 = vpop.f32.mrf.mxu0  ;;  %v9241_v63 = vpop.eup %9240 }
0x1043   : > { %9244 = vpow2.f32 %v5901_v19 }
0x1044   : > { %9246 = vrcp.f32 %v5933_v12  ;;  %v13551_v43 = vpop.f32.mrf.mxu0 }
0x1045   : > { %v5939_v11 = vpop.xlane.xlu1 %5938 }
0x1046   : > { %9248 = vrcp.f32 %v5939_v11  ;;  %v13553_v9 = vpop.f32.mrf.mxu0  ;;  %v5954_v11 = vpop.xlane.xlu0 %5953 }
0x1048   : > { %v13555_v10 = vpop.f32.mrf.mxu0 }
0x1049   : > { %v5945_v31 = vpop.xlane.xlu1 %5944 }
0x104a   : > { %9250 = vrcp.f32 %v5945_v31  ;;  %v13557_v41 = vpop.f32.mrf.mxu0 }
0x104b   : > { %15297 = vst [vmem:[#allocation176_spill] sm:$0xff] %v13557_v41  ;;  %9252 = vrcp.f32 %v5948_v17  ;;  %v6032_v17 = vmul.f32 %v9239_v57, %v13211_v30 }
0x104c   : > { %v13559_v33 = vpop.f32.mrf.mxu0 }
0x104d   : > { %15298 = vst [vmem:[#allocation93_spill] sm:$0xff] %v13559_v33  ;;  %v5951_v19 = vpop.xlane.xlu1 %5950 }
0x104e   : > { %v13561_v62 = vpop.f32.mrf.mxu0  ;;  %9254 = vrcp.f32 %v5951_v19 }
0x104f   : > { %15299 = vst [vmem:[#allocation173_spill] sm:$0xff] %v13561_v62  ;;  %v13563_v14 = vpop.eup %9242  ;;  %9256 = vrcp.f32 %v5954_v11 }
0x1050   : > { %v13565_v12 = vpop.eup %9244  ;;  %v13567_v38 = vpop.f32.mrf.mxu0 }
0x1051   : > { %v9247_v16 = vpop.eup %9246  ;;  %15300 = vst [vmem:[#allocation60_spill] sm:$0xff] %v13567_v38  ;;  %v5997_v31 = vadd.f32 %v13565_v12, %v13563_v14  ;;  %v15301_v38 = vld [vmem:[#allocation139_spill] sm:$0xff]  ;;  %v5957_v30 = vpop.xlane.xlu1 %5956 }
0x1052   : > { %v6029_v46 = vmul.f32 %v9247_v16, %v13198_v47  ;;  %v6028_v27 = vmul.f32 %v9247_v16, %v13192_v22  ;;  %v6038_v33 = vmul.f32 %v9241_v63, %v15301_v38  ;;  %v13577_v41 = vpop.f32.mrf.mxu0  ;;  %v5960_v16 = vpop.xlane.xlu0 %5959  ;;  %9258 = vrcp.f32 %v5957_v30 }
0x1053   : > { %v9249_v39 = vpop.eup %9248  ;;  %5998 = vadd.xlane.f32.xlu1 %v5997_v31  ;;  %9260 = vrcp.f32 %v5960_v16 }
0x1054   : > { %v6108_v15 = vpack.c.bf16 %v6032_v17, %v6029_v46  ;;  %v6107_v4 = vpack.c.bf16 %v6031_v52, %v6028_v27  ;;  %v6035_v62 = vmul.f32 %v9249_v39, %v13241_v7  ;;  %v13581_v46 = vpop.f32.mrf.mxu0  ;;  %v6034_v7 = vmul.f32 %v9249_v39, %v13215_v37 }
0x1055   : > { %6372 = vrot.lane.b32.xlu0 %v13289_v2, %s9319_s21  ;;  %v15302_v2 = vld [vmem:[#allocation59_spill] sm:$0xff]  ;;  %v5963_v39 = vpop.xlane.xlu1 %5962 }
0x1056   : > { %6243 = vmatprep.mubr.bf16.mxu0 %v6108_v15  ;;  %v6110_v47 = vpack.c.bf16 %v6038_v33, %v6035_v62  ;;  %v6037_v15 = vmul.f32 %v9241_v63, %v15302_v2  ;;  %v5966_v62 = vpop.xlane.xlu0 %5965  ;;  %9262 = vrcp.f32 %v5963_v39 }
0x1057   : > { %v9251_v22 = vpop.eup %9250  ;;  %6244 = vmatmul.mubr.bf16.gmra.mxu0 %v6107_v4  ;;  %9264 = vrcp.f32 %v5966_v62 }
0x1058   : > { %6251 = vmatprep.mubr.bf16.mxu0 %v6110_v47  ;;  %v9253_v23 = vpop.eup %9252  ;;  %v6041_v27 = vmul.f32 %v9251_v22, %v13295_v53  ;;  %v6109_v33 = vpack.c.bf16 %v6037_v15, %v6034_v7  ;;  %v6040_v63 = vmul.f32 %v9251_v22, %v13261_v35 }
0x1059   : > { %6374 = vrot.lane.b32.xlu0 %v13310_v1, %s9319_s21  ;;  %v13587_v52 = vpop.f32.mrf.mxu0  ;;  %v6044_v38 = vmul.f32 %v9253_v23, %v13235_v36  ;;  %v5969_v22 = vpop.xlane.xlu1 %5968 }
0x105a   : > { %9266 = vrcp.f32 %v5969_v22  ;;  %v15308_v22 = vld [vmem:[#allocation69_spill] sm:$0xff] }
0x105b   : > { %v13591_v4 = vpop.f32.mrf.mxu0  ;;  %v6112_v57 = vpack.c.bf16 %v6044_v38, %v6041_v27  ;;  %v9255_v37 = vpop.eup %9254 }
0x105c   : > { %v9257_v53 = vpop.eup %9256  ;;  %v6047_v36 = vmul.f32 %v9255_v37, %v13320_v18 }
0x105d   : > { %6376 = vrot.lane.b32.xlu0 %v13359_v61, %s9319_s21  ;;  %v13595_v1 = vpop.f32.mrf.mxu0  ;;  %v6043_v61 = vmul.f32 %v9253_v23, %v13229_v60  ;;  %v6050_v31 = vmul.f32 %v9257_v53, %v13255_v26  ;;  %v6046_v26 = vmul.f32 %v9255_v37, %v13299_v48  ;;  %v15303_v23 = vld [vmem:[#allocation144_spill] sm:$0xff]  ;;  %v5975_v15 = vpop.xlane.xlu1 %5974 }
0x105e   : > { %v6049_v16 = vmul.f32 %v9257_v53, %v15303_v23  ;;  %v15306_v53 = vld [vmem:[#allocation58_spill] sm:$0xff] }
0x105f   : > { %6252 = vmatmul.mubr.bf16.gmra.mxu0 %v6109_v33  ;;  %v13597_v19 = vpop.f32.mrf.mxu0  ;;  %v6111_v17 = vpack.c.bf16 %v6043_v61, %v6040_v63  ;;  %v6114_v35 = vpack.c.bf16 %v6050_v31, %v6047_v36 }
0x1060   : > { %6259 = vmatprep.mubr.bf16.mxu0 %v6112_v57  ;;  %v6113_v27 = vpack.c.bf16 %v6049_v16, %v6046_v26  ;;  %v7843_v57 = vadd.f32 %v13469_v34, %v13467_v24  ;;  %v15310_v26 = vld [vmem:[#allocation17_spill] sm:$0xff]  ;;  %v15311_v16 = vld [vmem:[#allocation63_spill] sm:$0xff] }
0x1061   : > { %6378 = vrot.lane.b32.xlu0 %v13377_v58, %s9319_s21  ;;  %v13606_v11 = vpop.f32.mrf.mxu0  ;;  %v9259_v58 = vpop.eup %9258 }
0x1062   : > { %v9261_v18 = vpop.eup %9260 }
0x1063   : > { %v13609_v47 = vpop.f32.mrf.mxu0  ;;  %v9263_v2 = vpop.eup %9262  ;;  %v6055_v62 = vmul.f32 %v9261_v18, %v15306_v53 }
0x1064   : > { %6392 = vrot.lane.b32.xlu1 %v13450_v20, %s9319_s21  ;;  %v5972_v20 = vpop.xlane.xlu0 %5971 }
0x1065   : > { %6380 = vrot.lane.b32.xlu0 %v13393_v21, %s9319_s21  ;;  %v13615_v60 = vpop.f32.mrf.mxu0  ;;  %v6053_v21 = vmul.f32 %v9259_v58, %v13341_v8  ;;  %9268 = vrcp.f32 %v5972_v20  ;;  %v9265_v8 = vpop.eup %9264  ;;  %v7849_v20 = vadd.f32 %v13475_v42, %v13473_v5  ;;  %v15313_v5 = vld [vmem:[#allocation153_spill] sm:$0xff] }
0x1066   : > { %9270 = vrcp.f32 %v5975_v15 }
0x1067   : > { %6260 = vmatmul.mubr.bf16.gmra.mxu0 %v6111_v17  ;;  %v13618_v30 = vpop.f32.mrf.mxu0  ;;  %v9267_v24 = vpop.eup %9266 }
0x1068   : > { %6267 = vmatprep.mubr.bf16.mxu0 %v6114_v35  ;;  %6398 = vrot.lane.b32.xlu1 %v13459_v54, %s9319_s21  ;;  %v6056_v54 = vmul.f32 %v9261_v18, %v13273_v50  ;;  %v15304_v50 = vld [vmem:[#allocation146_spill] sm:$0xff]  ;;  %v6058_v18 = vmul.f32 %v9263_v2, %v15308_v22  ;;  %v15320_v22 = vld [vmem:[#allocation149_spill] sm:$0xff] }
0x1069   : > { %6382 = vrot.lane.b32.xlu0 %v13407_v44, %s9319_s21  ;;  %v6052_v33 = vmul.f32 %v9259_v58, %v15304_v50 }
0x106a   : > { %v13627_v7 = vpop.f32.mrf.mxu0  ;;  %v6116_v48 = vpack.c.bf16 %v6056_v54, %v6053_v21  ;;  %v6065_v21 = vmul.f32 %v9267_v24, %v15310_v26  ;;  %v6061_v54 = vmul.f32 %v9265_v8, %v15311_v16  ;;  %v15322_v16 = vld [vmem:[#allocation78_spill] sm:$0xff] }
0x106b   : > { %v6115_v61 = vpack.c.bf16 %v6055_v62, %v6052_v33  ;;  %v15316_v62 = vld [vmem:[#allocation164_spill] sm:$0xff] }
0x106c   : > { %6402 = vrot.lane.b32.xlu1 %v13463_v3, %s9319_s21  ;;  %v13631_v44 = vpop.f32.mrf.mxu0  ;;  %v5978_v3 = vpop.xlane.xlu0 %5977 }
0x106d   : > { %6384 = vrot.lane.b32.xlu0 %v13427_v49, %s9319_s21  ;;  %v15305_v49 = vld [vmem:[#allocation151_spill] sm:$0xff]  ;;  %9272 = vrcp.f32 %v5978_v3 }
0x106e   : > { %v13635_v38 = vpop.f32.mrf.mxu0  ;;  %v6059_v37 = vmul.f32 %v9263_v2, %v15305_v49  ;;  %v6117_v2 = vpack.c.bf16 %v6061_v54, %v6058_v18 }
0x106f   : > { %6268 = vmatmul.mubr.bf16.gmra.mxu0 %v6113_v27 }
0x1070   : > { %6275 = vmatprep.mubr.bf16.mxu0 %v6116_v48  ;;  %6404 = vrot.lane.b32.xlu1 %v13465_v51, %s9319_s21  ;;  %v13643_v39 = vpop.f32.mrf.mxu0  ;;  %v15307_v51 = vld [vmem:[#allocation65_spill] sm:$0xff]  ;;  %v5984_v35 = vpop.xlane.xlu0 %5983 }
0x1071   : > { %6386 = vrot.lane.b32.xlu0 %v13435_v59, %s9319_s21  ;;  %v6062_v63 = vmul.f32 %v9265_v8, %v15307_v51  ;;  %v5981_v59 = vpop.xlane.xlu1 %5980  ;;  %v15314_v8 = vld [vmem:[#allocation82_spill] sm:$0xff]  ;;  %v15317_v51 = vld [vmem:[#allocation157_spill] sm:$0xff] }
0x1072   : > { %v13648_v36 = vpop.f32.mrf.mxu0  ;;  %v9269_v17 = vpop.eup %9268  ;;  %9274 = vrcp.f32 %v5981_v59 }
0x1073   : > { %v6118_v31 = vpack.c.bf16 %v6062_v63, %v6059_v37  ;;  %9276 = vrcp.f32 %v5984_v35  ;;  %v9271_v42 = vpop.eup %9270  ;;  %v15315_v37 = vld [vmem:[#allocation152_spill] sm:$0xff]  ;;  %v7855_v63 = vadd.f32 %v15317_v51, %v15316_v62  ;;  %v6067_v18 = vmul.f32 %v9269_v17, %v15320_v22 }
0x1074   : > { %6406 = vrot.lane.b32.xlu1 %v7843_v57, %s9319_s21  ;;  %v13652_v34 = vpop.f32.mrf.mxu0  ;;  %v5990_v57 = vpop.xlane.xlu0 %5989  ;;  %v6064_v53 = vmul.f32 %v9267_v24, %v15315_v37 }
0x1075   : > { %6388 = vrot.lane.b32.xlu0 %v13441_v29, %s9319_s21  ;;  %v15309_v29 = vld [vmem:[#allocation87_spill] sm:$0xff]  ;;  %v5987_v3 = vpop.xlane.xlu1 %5986 }
0x1076   : > { %v13656_v58 = vpop.f32.mrf.mxu0  ;;  %9278 = vrcp.f32 %v5987_v3  ;;  %v6119_v24 = vpack.c.bf16 %v6067_v18, %v6064_v53  ;;  %v15323_v3 = vld [vmem:[#allocation156_spill] sm:$0xff]  ;;  %v15325_v53 = vld [vmem:[#allocation145_spill] sm:$0xff] }
0x1077   : > { %6276 = vmatmul.mubr.bf16.gmra.mxu0 %v6115_v61  ;;  %v15318_v61 = vld [vmem:[#allocation155_spill] sm:$0xff]  ;;  %9280 = vrcp.f32 %v5990_v57  ;;  %v15328_v18 = vld [vmem:[#allocation161_spill] sm:$0xff] }
0x1078   : > { %6283 = vmatprep.mubr.bf16.mxu0 %v6118_v31  ;;  %6408 = vrot.lane.b32.xlu1 %v13471_v40, %s9319_s21  ;;  %v13664_v23 = vpop.f32.mrf.mxu0  ;;  %v15312_v40 = vld [vmem:[#allocation62_spill] sm:$0xff]  ;;  %v15324_v57 = vld [vmem:[#allocation167_spill] sm:$0xff] }
0x1079   : > { %6390 = vrot.lane.b32.xlu0 %v15309_v29, %s9319_s21  ;;  %v6068_v27 = vmul.f32 %v9269_v17, %v15312_v40  ;;  %v15319_v31 = vld [vmem:[#allocation70_spill] sm:$0xff]  ;;  %v5993_v40 = vpop.xlane.xlu1 %5992  ;;  %v7870_v17 = vadd.f32 %v13509_v6, %v13506_v56  ;;  %v7861_v37 = vadd.f32 %v15324_v57, %v13489_v0  ;;  %v15326_v56 = vld [vmem:[#allocation147_spill] sm:$0xff] }
0x107a   : > { %v9273_v33 = vpop.eup %9272  ;;  %v6071_v59 = vmul.f32 %v9271_v42, %v15319_v31  ;;  %9282 = vrcp.f32 %v5993_v40 }
0x107b   : > { %v13669_v48 = vpop.f32.mrf.mxu0  ;;  %v6120_v15 = vpack.c.bf16 %v6068_v27, %v6065_v21  ;;  %v6073_v6 = vmul.f32 %v9273_v33, %v15326_v56  ;;  %v15336_v56 = vld [vmem:[#allocation93_spill] sm:$0xff] }
0x107c   : > { %6410 = vrot.lane.b32.xlu1 %v7849_v20, %s9319_s21  ;;  %v15321_v20 = vld [vmem:[#allocation154_spill] sm:$0xff] }
0x107d   : > { %6394 = vrot.lane.b32.xlu0 %v15313_v5, %s9319_s21  ;;  %v13673_v50 = vpop.f32.mrf.mxu0  ;;  %v6074_v29 = vmul.f32 %v9273_v33, %v15321_v20  ;;  %v7955_v33 = vadd.f32 %v13551_v43, %v13549_v13  ;;  %v7958_v43 = vadd.f32 %v13555_v10, %v13553_v9 }
0x107f   : > { %6284 = vmatmul.mubr.bf16.gmra.mxu0 %v6117_v2  ;;  %v13677_v49 = vpop.f32.mrf.mxu0  ;;  %v6122_v21 = vpack.c.bf16 %v6074_v29, %v6071_v59  ;;  %v9275_v54 = vpop.eup %9274  ;;  %v15329_v29 = vld [vmem:[#allocation92_spill] sm:$0xff] }
0x1080   : > { %6291 = vmatprep.mubr.bf16.mxu0 %v6120_v15  ;;  %6412 = vrot.lane.b32.xlu1 %v15314_v8, %s9319_s21  ;;  %v9277_v2 = vpop.eup %9276  ;;  %v5996_v15 = vpop.xlane.xlu0 %5995  ;;  %v6070_v8 = vmul.f32 %v9271_v42, %v15323_v3  ;;  %v6077_v62 = vmul.f32 %v9275_v54, %v15325_v53  ;;  %v6076_v20 = vmul.f32 %v9275_v54, %v15328_v18  ;;  %v15339_v18 = vld [vmem:[#allocation148_spill] sm:$0xff] }
0x1081   : > { %6396 = vrot.lane.b32.xlu0 %v15318_v61, %s9319_s21  ;;  %v13685_v35 = vpop.f32.mrf.mxu0  ;;  %9284 = vrcp.f32 %v5996_v15 }
0x1082   : > { %v6121_v0 = vpack.c.bf16 %v6073_v6, %v6070_v8  ;;  %v15333_v8 = vld [vmem:[#allocation83_spill] sm:$0xff] }
0x1083   : > { %v13690_v26 = vpop.f32.mrf.mxu0  ;;  %v9279_v59 = vpop.eup %9278 }
0x1084   : > { %6414 = vrot.lane.b32.xlu1 %v7855_v63, %s9319_s21  ;;  %v15327_v63 = vld [vmem:[#allocation18_spill] sm:$0xff] }
0x1085   : > { %6400 = vrot.lane.b32.xlu0 %v15322_v16, %s9319_s21  ;;  %v13694_v27 = vpop.f32.mrf.mxu0  ;;  %v6080_v42 = vmul.f32 %v9277_v2, %v15327_v63 }
0x1087   : > { %6292 = vmatmul.mubr.bf16.gmra.mxu0 %v6119_v24  ;;  %v13700_v5 = vpop.f32.mrf.mxu0  ;;  %v6124_v31 = vpack.c.bf16 %v6080_v42, %v6077_v62  ;;  %v7867_v24 = vadd.f32 %v15329_v29, %v13499_v45  ;;  %v15334_v45 = vld [vmem:[#allocation85_spill] sm:$0xff]  ;;  %v7982_v42 = vadd.f32 %v13631_v44, %v13627_v7  ;;  %v7985_v7 = vadd.f32 %v13643_v39, %v13635_v38  ;;  %v15344_v39 = vld [vmem:[#allocation67_spill] sm:$0xff] }
0x1088   : > { %6299 = vmatprep.mubr.bf16.mxu0 %v6122_v21  ;;  %6416 = vrot.lane.b32.xlu1 %v13487_v25, %s9319_s21  ;;  %v7952_v25 = vadd.f32 %v13547_v28, %v13543_v55  ;;  %v9281_v55 = vpop.eup %9280  ;;  %v15330_v21 = vld [vmem:[#allocation73_spill] sm:$0xff]  ;;  %v7873_v57 = vadd.f32 %v15334_v45, %v15333_v8  ;;  %v7991_v8 = vadd.f32 %v13664_v23, %v13656_v58 }
0x1089   : > { %6424 = vrot.lane.b32.xlu0 %v7870_v17, %s9319_s21  ;;  %v13707_v51 = vpop.f32.mrf.mxu0  ;;  %v6083_v16 = vmul.f32 %v9279_v59, %v15330_v21  ;;  %v15331_v17 = vld [vmem:[#allocation74_spill] sm:$0xff]  ;;  %v9283_v53 = vpop.eup %9282  ;;  %v15340_v29 = vld [vmem:[#allocation173_spill] sm:$0xff]  ;;  %v7973_v58 = vadd.f32 %v13597_v19, %v13595_v1  ;;  %v7979_v19 = vadd.f32 %v13618_v30, %v13615_v60 }
0x108a   : > { %v6079_v13 = vmul.f32 %v9277_v2, %v15331_v17  ;;  %v15335_v2 = vld [vmem:[#allocation176_spill] sm:$0xff] }
0x108b   : > { %v13714_v61 = vpop.f32.mrf.mxu0  ;;  %v7961_v9 = vadd.f32 %v15336_v56, %v15335_v2  ;;  %v7976_v2 = vadd.f32 %v13609_v47, %v13606_v11 }
0x108c   : > { %6418 = vrot.lane.b32.xlu1 %v7861_v37, %s9319_s21  ;;  %v6123_v54 = vpack.c.bf16 %v6079_v13, %v6076_v20  ;;  %v6085_v20 = vmul.f32 %v9281_v55, %v15339_v18 }
0x108d   : > { %6500 = vrot.lane.b32.xlu0 %v7952_v25, %s9320_s23  ;;  %v13717_v22 = vpop.f32.mrf.mxu0  ;;  %v15337_v25 = vld [vmem:[#allocation158_spill] sm:$0xff] }
0x108e   : > { %v9285_v10 = vpop.eup %9284  ;;  %v6082_v63 = vmul.f32 %v9279_v59, %v15337_v25  ;;  %v8006_v11 = vadd.f32 %v13717_v22, %v13714_v61  ;;  %v7994_v61 = vadd.f32 %v13673_v50, %v13669_v48 }
0x108f   : > { %6300 = vmatmul.mubr.bf16.gmra.mxu0 %v6121_v0  ;;  %v13723_v28 = vpop.f32.mrf.mxu0  ;;  %v15338_v0 = vld [vmem:[#allocation76_spill] sm:$0xff]  ;;  %v6091_v45 = vmul.f32 %v9285_v10, %v15344_v39  ;;  %v15353_v39 = vld [vmem:[#allocation29_spill] sm:$0xff] }
0x1090   : > { %6307 = vmatprep.mubr.bf16.mxu0 %v6124_v31  ;;  %6420 = vrot.lane.b32.xlu1 %v13497_v32, %s9319_s21  ;;  %v15332_v32 = vld [vmem:[#allocation80_spill] sm:$0xff]  ;;  %v6089_v31 = vmul.f32 %v9283_v53, %v15338_v0  ;;  %v6125_v59 = vpack.c.bf16 %v6085_v20, %v6082_v63  ;;  %v15345_v63 = vld [vmem:[#allocation10_spill] sm:$0xff] }
0x1091   : > { %6502 = vrot.lane.b32.xlu0 %v7955_v33, %s9320_s23  ;;  %v13730_v40 = vpop.f32.mrf.mxu0  ;;  %v6086_v15 = vmul.f32 %v9281_v55, %v15332_v32  ;;  %v7967_v55 = vadd.f32 %v13581_v46, %v13577_v41  ;;  %v15346_v0 = vld [vmem:[#allocation46_spill] sm:$0xff] }
0x1092   : > { %v8009_v60 = vadd.f32 %v13730_v40, %v13723_v28 }
0x1093   : > { %v13737_v3 = vpop.f32.mrf.mxu0  ;;  %v6126_v37 = vpack.c.bf16 %v6086_v15, %v6083_v16  ;;  %v15342_v16 = vld [vmem:[#allocation150_spill] sm:$0xff]  ;;  %v15343_v15 = vld [vmem:[#allocation159_spill] sm:$0xff] }
0x1094   : > { %6422 = vrot.lane.b32.xlu1 %v7867_v24, %s9319_s21  ;;  %v15341_v24 = vld [vmem:[#allocation60_spill] sm:$0xff]  ;;  %v6092_v17 = vmul.f32 %v9285_v10, %v15342_v16  ;;  %v15350_v16 = vld [vmem:[#allocation19_spill] sm:$0xff] }
0x1095   : > { %6504 = vrot.lane.b32.xlu0 %v7958_v43, %s9320_s23  ;;  %v13742_v62 = vpop.f32.mrf.mxu0  ;;  %v7964_v21 = vadd.f32 %v15341_v24, %v15340_v29  ;;  %v15348_v29 = vld [vmem:[#allocation12_spill] sm:$0xff] }
0x1096   : > { %v6128_v44 = vpack.c.bf16 %v6092_v17, %v6089_v31 }
0x1097   : > { %6308 = vmatmul.mubr.bf16.gmra.mxu0 %v6123_v54  ;;  %v13747_v6 = vpop.f32.mrf.mxu0  ;;  %v6088_v54 = vmul.f32 %v9283_v53, %v15343_v15 }
0x1098   : > { %6315 = vmatprep.mubr.bf16.mxu0 %v6126_v37  ;;  %6426 = vrot.lane.b32.xlu1 %v7873_v57, %s9319_s21  ;;  %v7970_v57 = vadd.f32 %v13591_v4, %v13587_v52  ;;  %v7997_v37 = vadd.f32 %v13685_v35, %v13677_v49  ;;  %v8000_v52 = vadd.f32 %v13694_v27, %v13690_v26 }
0x1099   : > { %6506 = vrot.lane.b32.xlu0 %v7961_v9, %s9320_s23  ;;  %v13754_v33 = vpop.f32.mrf.mxu0  ;;  %v6127_v46 = vpack.c.bf16 %v6091_v45, %v6088_v54  ;;  %v8003_v35 = vadd.f32 %v13707_v51, %v13700_v5  ;;  %v7988_v27 = vadd.f32 %v13652_v34, %v13648_v36  ;;  %v8012_v36 = vadd.f32 %v13742_v62, %v13737_v3 }
0x109a   : > { %v8015_v28 = vadd.f32 %v13754_v33, %v13747_v6  ;;  %v15347_v6 = vld [vmem:[#allocation47_spill] sm:$0xff] }
0x109b   : > { %v8016_v13 = vpop.f32.mrf.mxu0  ;;  %v7635_v31 = vadd.f32 %v15347_v6, %v15346_v0  ;;  %v15361_v6 = vld [vmem:[#allocation90_spill] sm:$0xff] }
0x109c   : > { %6520 = vrot.lane.b32.xlu1 %v7982_v42, %s9320_s23 }
0x109d   : > { %6508 = vrot.lane.b32.xlu0 %v7964_v21, %s9320_s23  ;;  %v8017_v43 = vpop.f32.mrf.mxu0  ;;  %v15349_v21 = vld [vmem:[#allocation48_spill] sm:$0xff] }
0x109e   : > { %v8018_v48 = vadd.f32 %v8017_v43, %v8016_v13  ;;  %v7641_v17 = vadd.f32 %v15350_v16, %v15349_v21 }
0x109f   : > { %6316 = vmatmul.mubr.bf16.gmra.mxu0 %v6125_v59  ;;  %v8019_v32 = vpop.f32.mrf.mxu0 }
0x10a0   : > { %6323 = vmatprep.mubr.bf16.mxu0 %v6128_v44  ;;  %6522 = vrot.lane.b32.xlu1 %v7985_v7, %s9320_s23 }
0x10a1   : > { %6510 = vrot.lane.b32.xlu0 %v7967_v55, %s9320_s23  ;;  %v8020_v38 = vpop.f32.mrf.mxu0 }
0x10a2   : > { %v8021_v50 = vadd.f32 %v8020_v38, %v8019_v32  ;;  %v15351_v32 = vld [vmem:[#allocation26_spill] sm:$0xff]  ;;  %v15352_v38 = vld [vmem:[#allocation20_spill] sm:$0xff] }
0x10a3   : > { %v8022_v41 = vpop.f32.mrf.mxu0  ;;  %v7647_v45 = vadd.f32 %v15353_v39, %v15352_v38  ;;  %v15366_v39 = vld [vmem:[#allocation7_spill] sm:$0xff] }
0x10a4   : > { %6526 = vrot.lane.b32.xlu1 %v7991_v8, %s9320_s23  ;;  %v6823_v8 = vld [vmem:[%s14303_s11 + $0x8] sm:$0xff] }
0x10a5   : > { %6512 = vrot.lane.b32.xlu0 %v7970_v57, %s9320_s23  ;;  %v8023_v53 = vpop.f32.mrf.mxu0  ;;  %8292 = vmatprep.subr.mxu0 %v6823_v8 }
0x10a6   : > { %v8024_v3 = vadd.f32 %v8023_v53, %v8022_v41  ;;  %8344 = vmatprep.subr.mxu1 %v6823_v8  ;;  %8293 = vmatpush3.msra.mxu0 %v6823_v8 }
0x10a7   : > { %6324 = vmatmul.mubr.bf16.gmra.mxu0 %v6127_v46  ;;  %v8025_v23 = vpop.f32.mrf.mxu0  ;;  %v15354_v46 = vld [vmem:[#allocation5_spill] sm:$0xff]  ;;  %8346 = vmatpush3.msra.mxu1 %v6823_v8 }
0x10a8   : > { %6530 = vrot.lane.b32.xlu1 %v7997_v37, %s9320_s23 }
0x10a9   : > { %6514 = vrot.lane.b32.xlu0 %v7973_v58, %s9320_s23  ;;  %v8026_v4 = vpop.f32.mrf.mxu0  ;;  %v6822_v58 = vld [vmem:[%s14303_s11] sm:$0xff] }
0x10aa   : > { %v8027_v25 = vadd.f32 %v8026_v4, %v8025_v23  ;;  %8294 = vmatprep.subr.mxu0 %v6822_v58  ;;  %8345 = vmatprep.subr.mxu1 %v6822_v58 }
0x10ab   : > { %v8028_v49 = vpop.f32.mrf.mxu0  ;;  %8295 = vmatpush3.msra.mxu0 %v6822_v58  ;;  %8347 = vmatpush3.msra.mxu1 %v6822_v58 }
0x10ac   : > { %6532 = vrot.lane.b32.xlu1 %v8000_v52, %s9320_s23 }
0x10ad   : > { %6516 = vrot.lane.b32.xlu0 %v7976_v2, %s9320_s23  ;;  %v8029_v1 = vpop.f32.mrf.mxu0 }
0x10ae   : > { %v13792_v56 = vadd.f32 %v8029_v1, %v8028_v49 }
0x10af   : > { %v8031_v26 = vpop.f32.mrf.mxu0 }
0x10b0   : > { %6534 = vrot.lane.b32.xlu1 %v8003_v35, %s9320_s23  ;;  %v15355_v35 = vld [vmem:[#allocation2_spill] sm:$0xff] }
0x10b1   : > { %6518 = vrot.lane.b32.xlu0 %v7979_v19, %s9320_s23  ;;  %v8032_v47 = vpop.f32.mrf.mxu0  ;;  %7524 = vmatprep.subr.msk.mxu0 %vm645_vm1, %v15355_v35 }
0x10b2   : > { %v13800_v5 = vadd.f32 %v8032_v47, %v8031_v26  ;;  %v15356_v26 = vld [vmem:[#allocation21_spill] sm:$0xff] }
0x10b3   : > { %v8034_v51 = vpop.f32.mrf.mxu0 }
0x10b4   : > { %6536 = vrot.lane.b32.xlu1 %v8006_v11, %s9320_s23 }
0x10b5   : > { %6524 = vrot.lane.b32.xlu0 %v7988_v27, %s9320_s23  ;;  %v8035_v30 = vpop.f32.mrf.mxu0 }
0x10b6   : > { %v13808_v22 = vadd.f32 %v8035_v30, %v8034_v51  ;;  %v15357_v51 = vld [vmem:[#allocation31_spill] sm:$0xff] }
0x10b7   : > { %v8037_v9 = vpop.f32.mrf.mxu0 }
0x10b8   : > { %6538 = vrot.lane.b32.xlu1 %v8009_v60, %s9320_s23  ;;  %v15358_v60 = vld [vmem:[#allocation22_spill] sm:$0xff] }
0x10b9   : > { %6528 = vrot.lane.b32.xlu0 %v7994_v61, %s9320_s23  ;;  %v8038_v34 = vpop.f32.mrf.mxu0  ;;  %v7653_v30 = vadd.f32 %v15358_v60, %v15357_v51 }
0x10ba   : > { %v13814_v10 = vadd.f32 %v8038_v34, %v8037_v9 }
0x10bc   : > { %6540 = vrot.lane.b32.xlu1 %v8012_v36, %s9320_s23  ;;  %v15359_v36 = vld [vmem:[#allocation6_spill] sm:$0xff] }
0x10c0   : > { %6542 = vrot.lane.b32.xlu1 %v8015_v28, %s9320_s23 }
0x10c4   : > { %6544 = vrot.lane.b32.xlu1 %v8018_v48, %s9320_s23 }
0x10c8   : > { %6546 = vrot.lane.b32.xlu1 %v8021_v50, %s9320_s23  ;;  %v6002_v40 = vpop.xlane.xlu0 %6001 }
0x10c9   : > { %9286 = vrcp.f32 %v6002_v40 }
0x10cc   : > { %6548 = vrot.lane.b32.xlu1 %v8024_v3, %s9320_s23  ;;  %v6373_v62 = vpop.permute.xlu0 %6372  ;;  %v15360_v3 = vld [vmem:[#allocation51_spill] sm:$0xff] }
0x10cd   : > { %v13825_v42 = vsel %vm2107_vm11, %v15345_v63, %v6373_v62 }
0x10d0   : > { %6550 = vrot.lane.b32.xlu1 %v8027_v25, %s9320_s23  ;;  %v6375_v33 = vpop.permute.xlu0 %6374 }
0x10d1   : > { %v13831_v18 = vsel %vm2107_vm11, %v7635_v31, %v6375_v33 }
0x10d4   : > { %v6377_v20 = vpop.permute.xlu0 %6376 }
0x10d5   : > { %v13835_v24 = vsel %vm2107_vm11, %v15348_v29, %v6377_v20  ;;  %v15362_v29 = vld [vmem:[#allocation27_spill] sm:$0xff] }
0x10d6   : > { %v9287_v47 = vpop.eup %9286 }
0x10d7   : > { %v6098_v62 = vmul.f32 %v9287_v47, %v15360_v3  ;;  %v6097_v31 = vmul.f32 %v9287_v47, %v15361_v6 }
0x10d8   : > { %v6379_v13 = vpop.permute.xlu0 %6378 }
0x10d9   : > { %v13840_v59 = vsel %vm2107_vm11, %v7641_v17, %v6379_v13 }
0x10dc   : > { %v5999_v7 = vpop.xlane.xlu1 %5998  ;;  %v8040_v44 = vpop.f32.mrf.mxu0 }
0x10dd   : > { %9288 = vrcp.f32 %v5999_v7  ;;  %v6381_v43 = vpop.permute.xlu0 %6380 }
0x10de   : > { %v8041_v55 = vpop.f32.mrf.mxu0  ;;  %v13844_v15 = vsel %vm2107_vm11, %v15351_v32, %v6381_v43 }
0x10df   : > { %v13846_v54 = vadd.f32 %v8041_v55, %v8040_v44  ;;  %v15363_v44 = vld [vmem:[#allocation32_spill] sm:$0xff]  ;;  %v15365_v55 = vld [vmem:[#allocation50_spill] sm:$0xff] }
0x10e0   : > { %v6393_v57 = vpop.permute.xlu1 %6392  ;;  %v8043_v41 = vpop.f32.mrf.mxu0 }
0x10e1   : > { %v13855_v37 = vsel %vm2107_vm11, %v15354_v46, %v6393_v57  ;;  %v6383_v53 = vpop.permute.xlu0 %6382 }
0x10e2   : > { %v8044_v23 = vpop.f32.mrf.mxu0  ;;  %v13861_v52 = vsel %vm2107_vm11, %v7647_v45, %v6383_v53 }
0x10e3   : > { %v13863_v4 = vadd.f32 %v8044_v23, %v8043_v41 }
0x10e4   : > { %v13865_v2 = vpop.permute.xlu1 %6398  ;;  %v8110_v49 = vpop.f32.mrf.mxu0 }
0x10e5   : > { %v6385_v1 = vpop.permute.xlu0 %6384 }
0x10e6   : > { %v8111_v19 = vpop.f32.mrf.mxu0  ;;  %v13871_v11 = vsel %vm2107_vm11, %v15356_v26, %v6385_v1  ;;  %v15368_v26 = vld [vmem:[#allocation23_spill] sm:$0xff] }
0x10e7   : > { %v8112_v27 = vadd.f32 %v8111_v19, %v8110_v49  ;;  %v15367_v49 = vld [vmem:[#allocation33_spill] sm:$0xff] }
0x10e8   : > { %v6403_v61 = vpop.permute.xlu1 %6402  ;;  %v8113_v9 = vpop.f32.mrf.mxu0 }
0x10e9   : > { %v13877_v34 = vsel %vm2107_vm11, %v15359_v36, %v6403_v61  ;;  %6628 = vrot.lane.b32.xlu0 %v8112_v27, %s9321_s24  ;;  %v6387_v28 = vpop.permute.xlu0 %6386 }
0x10ea   : > { %v9289_v48 = vpop.eup %9288  ;;  %v8114_v50 = vpop.f32.mrf.mxu0  ;;  %v13881_v40 = vsel %vm2107_vm11, %v7653_v30, %v6387_v28  ;;  %v15369_v30 = vld [vmem:[#allocation9_spill] sm:$0xff] }
0x10eb   : > { %v8115_v25 = vadd.f32 %v8114_v50, %v8113_v9  ;;  %v6095_v63 = vmul.f32 %v9289_v48, %v13565_v12  ;;  %v6094_v0 = vmul.f32 %v9289_v48, %v13563_v14  ;;  %v15364_v14 = vld [vmem:[#allocation49_spill] sm:$0xff] }
0x10ec   : > { %v6405_v33 = vpop.permute.xlu1 %6404  ;;  %v8116_v20 = vpop.f32.mrf.mxu0  ;;  %v7659_v32 = vadd.f32 %v15365_v55, %v15364_v14  ;;  %v15370_v28 = vld [vmem:[#allocation25_spill] sm:$0xff] }
0x10ed   : > { %v13889_v21 = vsel %vm2107_vm11, %v15362_v29, %v6405_v33  ;;  %6630 = vrot.lane.b32.xlu0 %v8115_v25, %s9321_s24  ;;  %v6130_v16 = vpack.c.bf16 %v6098_v62, %v6095_v63  ;;  %v6389_v17 = vpop.permute.xlu0 %6388  ;;  %v6129_v13 = vpack.c.bf16 %v6097_v31, %v6094_v0  ;;  %v15371_v25 = vld [vmem:[#allocation28_spill] sm:$0xff] }
0x10ee   : > { %v8117_v7 = vpop.f32.mrf.mxu0  ;;  %v13894_v43 = vsel %vm2107_vm11, %v15363_v44, %v6389_v17  ;;  %v15372_v31 = vld [vmem:[#allocation24_spill] sm:$0xff]  ;;  %v15373_v17 = vld [vmem:[#allocation13_spill] sm:$0xff] }
0x10ef   : > { %v8118_v12 = vadd.f32 %v8117_v7, %v8116_v20  ;;  %6331 = vmatprep.mubr.bf16.mxu0 %v6130_v16 }
0x10f0   : > { %v6407_v8 = vpop.permute.xlu1 %6406  ;;  %6332 = vmatmul.mubr.bf16.gmra.mxu0 %v6129_v13  ;;  %v8119_v38 = vpop.f32.mrf.mxu0 }
0x10f1   : > { %v13900_v45 = vsel %vm2107_vm11, %v15366_v39, %v6407_v8  ;;  %6632 = vrot.lane.b32.xlu0 %v8118_v12, %s9321_s24  ;;  %v6391_v57 = vpop.permute.xlu0 %6390  ;;  %v15374_v12 = vld [vmem:[#allocation8_spill] sm:$0xff]  ;;  %v15375_v8 = vld [vmem:[#allocation11_spill] sm:$0xff] }
0x10f2   : > { %v8120_v41 = vpop.f32.mrf.mxu0  ;;  %v13904_v46 = vsel %vm2107_vm11, %v7659_v32, %v6391_v57 }
0x10f3   : > { %v8121_v53 = vadd.f32 %v8120_v41, %v8119_v38  ;;  %v15376_v41 = vld [vmem:[#allocation34_spill] sm:$0xff] }
0x10f4   : > { %v6409_v58 = vpop.permute.xlu1 %6408  ;;  %v8122_v23 = vpop.f32.mrf.mxu0 }
0x10f5   : > { %v13908_v35 = vsel %vm2107_vm11, %v15367_v49, %v6409_v58  ;;  %6634 = vrot.lane.b32.xlu0 %v8121_v53, %s9321_s24  ;;  %v6395_v1 = vpop.permute.xlu0 %6394  ;;  %v15377_v49 = vld [vmem:[#allocation15_spill] sm:$0xff] }
0x10f6   : > { %v8123_v19 = vpop.f32.mrf.mxu0  ;;  %v13913_v47 = vsel %vm2107_vm11, %v15368_v26, %v6395_v1 }
0x10f7   : > { %v8124_v27 = vadd.f32 %v8123_v19, %v8122_v23 }
0x10f8   : > { %v6411_v51 = vpop.permute.xlu1 %6410  ;;  %v8125_v60 = vpop.f32.mrf.mxu0 }
0x10f9   : > { %v13917_v61 = vsel %vm2107_vm11, %v15369_v30, %v6411_v51  ;;  %6636 = vrot.lane.b32.xlu0 %v8124_v27, %s9321_s24  ;;  %v6397_v9 = vpop.permute.xlu0 %6396  ;;  %v15378_v27 = vld [vmem:[#allocation14_spill] sm:$0xff] }
0x10fa   : > { %v8126_v36 = vpop.f32.mrf.mxu0  ;;  %v13922_v48 = vsel %vm2107_vm11, %v15370_v28, %v6397_v9  ;;  %v15379_v9 = vld [vmem:[#allocation4_spill] sm:$0xff] }
0x10fb   : > { %v8127_v50 = vadd.f32 %v8126_v36, %v8125_v60 }
0x10fc   : > { %v6413_v3 = vpop.permute.xlu1 %6412  ;;  %v8128_v62 = vpop.f32.mrf.mxu0 }
0x10fd   : > { %v13926_v63 = vsel %vm2107_vm11, %v15371_v25, %v6413_v3  ;;  %6638 = vrot.lane.b32.xlu0 %v8127_v50, %s9321_s24  ;;  %v6401_v0 = vpop.permute.xlu0 %6400 }
0x10fe   : > { %v8129_v6 = vpop.f32.mrf.mxu0  ;;  %v13931_v33 = vsel %vm2107_vm11, %v15372_v31, %v6401_v0 }
0x10ff   : > { %v8130_v20 = vadd.f32 %v8129_v6, %v8128_v62 }
0x1100   : > { %v6415_v29 = vpop.permute.xlu1 %6414  ;;  %v8131_v16 = vpop.f32.mrf.mxu0 }
0x1101   : > { %v13935_v13 = vsel %vm2107_vm11, %v15373_v17, %v6415_v29  ;;  %6640 = vrot.lane.b32.xlu0 %v8130_v20, %s9321_s24  ;;  %v6425_v7 = vpop.permute.xlu0 %6424 }
0x1102   : > { %v8132_v44 = vpop.f32.mrf.mxu0  ;;  %v13940_v14 = vsel %vm2107_vm11, %v15374_v12, %v6425_v7 }
0x1103   : > { %v8133_v55 = vadd.f32 %v8132_v44, %v8131_v16 }
0x1104   : > { %v6417_v32 = vpop.permute.xlu1 %6416 }
0x1105   : > { %v13944_v38 = vsel %vm2107_vm11, %v15375_v8, %v6417_v32  ;;  %6642 = vrot.lane.b32.xlu0 %v8133_v55, %s9321_s24  ;;  %v13947_v39 = vpop.permute.xlu0 %6500 }
0x1108   : > { %v6419_v57 = vpop.permute.xlu1 %6418 }
0x1109   : > { %v13951_v53 = vsel %vm2107_vm11, %v15376_v41, %v6419_v57  ;;  %v13953_v58 = vpop.permute.xlu0 %6502 }
0x110c   : > { %v6421_v23 = vpop.permute.xlu1 %6420 }
0x110d   : > { %v13957_v1 = vsel %vm2107_vm11, %v15377_v49, %v6421_v23  ;;  %v13959_v19 = vpop.permute.xlu0 %6504 }
0x1110   : > { %v6423_v26 = vpop.permute.xlu1 %6422 }
0x1111   : > { %v13963_v51 = vsel %vm2107_vm11, %v15378_v27, %v6423_v26  ;;  %v13965_v60 = vpop.permute.xlu0 %6506 }
0x1114   : > { %v6427_v30 = vpop.permute.xlu1 %6426 }
0x1115   : > { %v13969_v36 = vsel %vm2107_vm11, %v15379_v9, %v6427_v30  ;;  %v13971_v28 = vpop.permute.xlu0 %6508 }
0x1117   : > { %v8134_v50 = vpop.f32.mrf.mxu0 }
0x1118   : > { %v13973_v3 = vpop.permute.xlu1 %6520 }
0x1119   : > { %v8135_v62 = vpop.f32.mrf.mxu0  ;;  %v13975_v25 = vpop.permute.xlu0 %6510 }
0x111a   : > { %v8136_v0 = vadd.f32 %v8135_v62, %v8134_v50 }
0x111b   : > { %v8137_v6 = vpop.f32.mrf.mxu0 }
0x111c   : > { %6644 = vrot.lane.b32.xlu0 %v8136_v0, %s9321_s24  ;;  %v13978_v31 = vpop.permute.xlu1 %6522 }
0x111d   : > { %v8138_v20 = vpop.f32.mrf.mxu0  ;;  %v13980_v29 = vpop.permute.xlu0 %6512 }
0x111e   : > { %v8139_v16 = vadd.f32 %v8138_v20, %v8137_v6 }
0x111f   : > { %v8140_v17 = vpop.f32.mrf.mxu0 }
0x1120   : > { %6646 = vrot.lane.b32.xlu0 %v8139_v16, %s9321_s24  ;;  %v13983_v7 = vpop.permute.xlu1 %6526 }
0x1121   : > { %v8141_v44 = vpop.f32.mrf.mxu0  ;;  %v13985_v12 = vpop.permute.xlu0 %6514 }
0x1122   : > { %v8142_v55 = vadd.f32 %v8141_v44, %v8140_v17 }
0x1123   : > { %v8143_v32 = vpop.f32.mrf.mxu0 }
0x1124   : > { %6648 = vrot.lane.b32.xlu0 %v8142_v55, %s9321_s24  ;;  %v6531_v8 = vpop.permute.xlu1 %6530 }
0x1125   : > { %v13990_v57 = vsel %vm6756_vm12, %v13877_v34, %v6531_v8  ;;  %v8144_v41 = vpop.f32.mrf.mxu0  ;;  %v6517_v23 = vpop.permute.xlu0 %6516 }
0x1126   : > { %v8145_v49 = vadd.f32 %v8144_v41, %v8143_v32  ;;  %v13994_v26 = vsel %vm6756_vm12, %v13894_v43, %v6517_v23 }
0x1127   : > { %v8146_v27 = vpop.f32.mrf.mxu0 }
0x1128   : > { %6650 = vrot.lane.b32.xlu1 %v8145_v49, %s9321_s24  ;;  %v6533_v30 = vpop.permute.xlu1 %6532 }
0x1129   : > { %v13999_v9 = vsel %vm6756_vm12, %v13889_v21, %v6533_v30  ;;  %v8147_v50 = vpop.f32.mrf.mxu0  ;;  %v6519_v62 = vpop.permute.xlu0 %6518  ;;  %v15380_v30 = vld [vmem:[#allocation166_spill] sm:$0xff] }
0x112a   : > { %v8148_v0 = vadd.f32 %v8147_v50, %v8146_v27  ;;  %v14003_v34 = vsel %vm6756_vm12, %v13904_v46, %v6519_v62  ;;  %v15381_v50 = vld [vmem:[#allocation160_spill] sm:$0xff] }
0x112b   : > { %v8149_v6 = vpop.f32.mrf.mxu0  ;;  %v7879_v62 = vadd.f32 %v15381_v50, %v15380_v30 }
0x112c   : > { %6652 = vrot.lane.b32.xlu0 %v8148_v0, %s9321_s24  ;;  %v6535_v43 = vpop.permute.xlu1 %6534 }
0x112d   : > { %v14008_v20 = vsel %vm6756_vm12, %v13900_v45, %v6535_v43  ;;  %v8150_v16 = vpop.f32.mrf.mxu0  ;;  %v6525_v17 = vpop.permute.xlu0 %6524 }
0x112e   : > { %v8151_v44 = vadd.f32 %v8150_v16, %v8149_v6  ;;  %v14012_v21 = vsel %vm6756_vm12, %v13922_v48, %v6525_v17 }
0x112f   : > { %v8152_v55 = vpop.f32.mrf.mxu0 }
0x1130   : > { %6654 = vrot.lane.b32.xlu1 %v8151_v44, %s9321_s24  ;;  %v6537_v46 = vpop.permute.xlu1 %6536 }
0x1131   : > { %v14017_v32 = vsel %vm6756_vm12, %v13908_v35, %v6537_v46  ;;  %v8153_v8 = vpop.f32.mrf.mxu0  ;;  %v6529_v41 = vpop.permute.xlu0 %6528 }
0x1132   : > { %v8154_v23 = vadd.f32 %v8153_v8, %v8152_v55  ;;  %v14021_v45 = vsel %vm6756_vm12, %v13931_v33, %v6529_v41  ;;  %v15384_v55 = vld [vmem:[#allocation84_spill] sm:$0xff] }
0x1133   : > { %v8155_v49 = vpop.f32.mrf.mxu0 }
0x1134   : > { %6554 = vrot.lane.b32.xlu1 %v13800_v5, %s9320_s23  ;;  %6656 = vrot.lane.b32.xlu0 %v8154_v23, %s9321_s24  ;;  %v6539_v48 = vpop.permute.xlu1 %6538 }
0x1135   : > { %v14028_v27 = vsel %vm6756_vm12, %v13917_v61, %v6539_v48  ;;  %v8156_v35 = vpop.f32.mrf.mxu0  ;;  %v15382_v61 = vld [vmem:[#allocation88_spill] sm:$0xff] }
0x1137   : > { %v8158_v0 = vpop.f32.mrf.mxu0 }
0x1138   : > { %6430 = vrot.lane.b32.xlu1 %v7879_v62, %s9319_s21  ;;  %6552 = vrot.lane.b32.xlu0 %v13792_v56, %s9320_s23  ;;  %v6541_v33 = vpop.permute.xlu1 %6540  ;;  %v15383_v56 = vld [vmem:[#allocation162_spill] sm:$0xff] }
0x1139   : > { %v14037_v5 = vsel %vm6756_vm12, %v13926_v63, %v6541_v33  ;;  %v8159_v6 = vpop.f32.mrf.mxu0  ;;  %v7885_v46 = vadd.f32 %v15384_v55, %v15383_v56 }
0x113b   : > { %v8161_v43 = vpop.f32.mrf.mxu0 }
0x113c   : > { %6558 = vrot.lane.b32.xlu1 %v13814_v10, %s9320_s23  ;;  %6428 = vrot.lane.b32.xlu0 %v15382_v61, %s9319_s21  ;;  %v6543_v16 = vpop.permute.xlu1 %6542  ;;  %v8160_v61 = vadd.f32 %v8159_v6, %v8158_v0  ;;  %v6757_v6 = vsel %vm6756_vm12, %v13825_v42, %v13947_v39 }
0x113d   : > { %v14045_v17 = vsel %vm6756_vm12, %v13935_v13, %v6543_v16  ;;  %v8162_v44 = vpop.f32.mrf.mxu0  ;;  %v15385_v13 = vld [vmem:[#allocation163_spill] sm:$0xff] }
0x113e   : > { %v8163_v56 = vadd.f32 %v8162_v44, %v8161_v43 }
0x113f   : > { %v8164_v8 = vpop.f32.mrf.mxu0 }
0x1140   : > { %6434 = vrot.lane.b32.xlu1 %v7885_v46, %s9319_s21  ;;  %6556 = vrot.lane.b32.xlu0 %v13808_v22, %s9320_s23  ;;  %v6545_v63 = vpop.permute.xlu1 %6544  ;;  %v8157_v22 = vadd.f32 %v8156_v35, %v8155_v49 }
0x1141   : > { %v14054_v10 = vsel %vm6756_vm12, %v13944_v38, %v6545_v63  ;;  %v8165_v41 = vpop.f32.mrf.mxu0 }
0x1142   : > { %v8166_v35 = vadd.f32 %v8165_v41, %v8164_v8 }
0x1143   : > { %v8167_v23 = vpop.f32.mrf.mxu0 }
0x1144   : > { %6562 = vrot.lane.b32.xlu1 %v13863_v4, %s9320_s23  ;;  %6432 = vrot.lane.b32.xlu0 %v15385_v13, %s9319_s21  ;;  %v6547_v48 = vpop.permute.xlu1 %6546 }
0x1145   : > { %v14062_v30 = vsel %vm6756_vm12, %v13951_v53, %v6547_v48  ;;  %v8168_v50 = vpop.f32.mrf.mxu0  ;;  %v6758_v48 = vsel %vm6756_vm12, %v13831_v18, %v13953_v58 }
0x1146   : > { %v8169_v63 = vadd.f32 %v8168_v50, %v8167_v23 }
0x1147   : > { %v8170_v62 = vpop.f32.mrf.mxu0 }
0x1148   : > { %6658 = vrot.lane.b32.xlu1 %v8157_v22, %s9321_s24  ;;  %6560 = vrot.lane.b32.xlu0 %v13846_v54, %s9320_s23  ;;  %v6549_v38 = vpop.permute.xlu1 %6548 }
0x1149   : > { %v14069_v4 = vsel %vm6756_vm12, %v13957_v1, %v6549_v38  ;;  %v8171_v33 = vpop.f32.mrf.mxu0 }
0x114a   : > { %v8172_v0 = vadd.f32 %v8171_v33, %v8170_v62  ;;  %v9290_v33 = vld [vmem:[%s9411_s18] sm:$0xff] }
0x114b   : > { %v8173_v16 = vpop.f32.mrf.mxu0 }
0x114c   : > { %6660 = vrot.lane.b32.xlu1 %v8160_v61, %s9321_s24  ;;  %v6759_v61 = vsel %vm6756_vm12, %v13835_v24, %v13959_v19 }
0x114d   : > { %v8174_v53 = vpop.f32.mrf.mxu0 }
0x114e   : > { %v8175_v23 = vadd.f32 %v8174_v53, %v8173_v16 }
0x114f   : > { %v8176_v55 = vpop.f32.mrf.mxu0 }
0x1150   : > { %6662 = vrot.lane.b32.xlu1 %v8163_v56, %s9321_s24 }
0x1151   : > { %v8177_v49 = vpop.f32.mrf.mxu0 }
0x1152   : > { %v8178_v62 = vadd.f32 %v8177_v49, %v8176_v55  ;;  %v6760_v55 = vsel %vm6756_vm12, %v13840_v59, %v13965_v60 }
0x1153   : > { %v8179_v46 = vpop.f32.mrf.mxu0 }
0x1154   : > { %6664 = vrot.lane.b32.xlu1 %v8166_v35, %s9321_s24 }
0x1155   : > { %v8180_v54 = vpop.f32.mrf.mxu0 }
0x1156   : > { %v8181_v56 = vadd.f32 %v8180_v54, %v8179_v46  ;;  %v6762_v54 = vsel %vm6756_vm12, %v13861_v52, %v13975_v25  ;;  %v6764_v25 = vsel %vm6756_vm12, %v13881_v40, %v13985_v12  ;;  %v15386_v40 = vmov 0.0  }
0x1157   : > { %v8182_v13 = vpop.f32.mrf.mxu0  ;;  %v6767_v12 = vsel %vm6756_vm12, %v13855_v37, %v13973_v3  ;;  %v15387_v3 = vld [vmem:[#allocation16_spill] sm:$0xff] }
0x1158   : > { %6666 = vrot.lane.b32.xlu1 %v8169_v63, %s9321_s24 }
0x1159   : > { %v8183_v1 = vpop.f32.mrf.mxu0 }
0x115a   : > { %v8184_v63 = vadd.f32 %v8183_v1, %v8182_v13 }
0x115b   : > { %v8185_v43 = vpop.f32.mrf.mxu0  ;;  %v6629_v44 = vpop.permute.xlu0 %6628 }
0x115c   : > { %6668 = vrot.lane.b32.xlu1 %v8172_v0, %s9321_s24  ;;  %v6790_v8 = vsel %vm6789_vm13, %v6757_v6, %v6629_v44  ;;  %v6761_v6 = vsel %vm6756_vm12, %v13844_v15, %v13971_v28  ;;  %v6763_v44 = vsel %vm6756_vm12, %v13871_v11, %v13980_v29 }
0x115d   : > { %v8186_v41 = vpop.f32.mrf.mxu0  ;;  %8296 = vmatprep.mubr.msk.f32.mxu0 %vm979_vm10, %v6790_v8 }
0x115e   : > { %v8187_v60 = vadd.f32 %v8186_v41, %v8185_v43 }
0x115f   : > { %v8188_v50 = vpop.f32.mrf.mxu0  ;;  %v6631_v22 = vpop.permute.xlu0 %6630 }
0x1160   : > { %6670 = vrot.lane.b32.xlu1 %v8175_v23, %s9321_s24  ;;  %v6791_v42 = vsel %vm6789_vm13, %v6758_v48, %v6631_v22 }
0x1161   : > { %v8189_v39 = vpop.f32.mrf.mxu0  ;;  %8297 = vmatmul.mubr.msk.f32.vlgmr.msra.gmra.mxu0 %vm979_vm10, %v6791_v42  ;;  %v14137_v42 = vpop.permute.xlu1 %6550 }
0x1162   : > { %v8190_v38 = vadd.f32 %v8189_v39, %v8188_v50  ;;  %7525 = vmatpush1.msk.msra.mxu0 %vm645_vm1, %v9290_v33 }
0x1163   : > { %v8191_v16 = vpop.f32.mrf.mxu0  ;;  %v6633_v18 = vpop.permute.xlu0 %6632 }
0x1164   : > { %6672 = vrot.lane.b32.xlu1 %v8178_v62, %s9321_s24  ;;  %6680 = vrot.lane.b32.xlu0 %v8190_v38, %s9321_s24  ;;  %v6792_v58 = vsel %vm6789_vm13, %v6759_v61, %v6633_v18  ;;  %v6737_v61 = vsel %vm2107_vm11, %v15387_v3, %v13865_v2 }
0x1165   : > { %v8192_v53 = vpop.f32.mrf.mxu0  ;;  %8299 = vmatprep.mubr.msk.f32.mxu0 %vm979_vm10, %v6792_v58 }
0x1166   : > { %v8193_v28 = vadd.f32 %v8192_v53, %v8191_v16  ;;  %v6770_v16 = vsel %vm6756_vm12, %v6737_v61, %v13983_v7  ;;  %v15391_v61 = vld [vmem:[#allocation41_spill] sm:$0xff] }
0x1167   : > { %v8194_v49 = vpop.f32.mrf.mxu0  ;;  %v6635_v35 = vpop.permute.xlu0 %6634 }
0x1168   : > { %6674 = vrot.lane.b32.xlu1 %v8181_v56, %s9321_s24  ;;  %v6793_v24 = vsel %vm6789_vm13, %v6760_v55, %v6635_v35 }
0x1169   : > { %v8195_v19 = vpop.f32.mrf.mxu0  ;;  %8300 = vmatmul.mubr.msk.f32.gmra.mxu0 %vm979_vm10, %v6793_v24  ;;  %v15388_v24 = vld [vmem:[#allocation38_spill] sm:$0xff] }
0x116a   : > { %v8196_v0 = vadd.f32 %v8195_v19, %v8194_v49 }
0x116b   : > { %v6637_v46 = vpop.permute.xlu0 %6636  ;;  %v8197_v13 = vpop.f32.mrf.mxu0 }
0x116c   : > { %6676 = vrot.lane.b32.xlu1 %v8184_v63, %s9321_s24  ;;  %6684 = vrot.lane.b32.xlu0 %v8196_v0, %s9321_s24  ;;  %v6794_v59 = vsel %vm6789_vm13, %v6761_v6, %v6637_v46 }
0x116d   : > { %8302 = vmatprep.mubr.msk.f32.mxu0 %vm979_vm10, %v6794_v59  ;;  %v8198_v8 = vpop.f32.mrf.mxu0 }
0x116e   : > { %v8199_v52 = vadd.f32 %v8198_v8, %v8197_v13 }
0x116f   : > { %v6639_v1 = vpop.permute.xlu0 %6638 }
0x1170   : > { %6678 = vrot.lane.b32.xlu1 %v8187_v60, %s9321_s24  ;;  %v6795_v15 = vsel %vm6789_vm13, %v6762_v54, %v6639_v1  ;;  %v15389_v60 = vld [vmem:[#allocation36_spill] sm:$0xff] }
0x1171   : > { %8303 = vmatmul.mubr.msk.f32.gmra.mxu0 %vm979_vm10, %v6795_v15 }
0x1173   : > { %v6641_v23 = vpop.permute.xlu0 %6640 }
0x1174   : > { %6682 = vrot.lane.b32.xlu1 %v8193_v28, %s9321_s24  ;;  %v6796_v43 = vsel %vm6789_vm13, %v6763_v44, %v6641_v23 }
0x1175   : > { %8305 = vmatprep.mubr.msk.f32.mxu0 %vm979_vm10, %v6796_v43 }
0x1177   : > { %v6643_v41 = vpop.permute.xlu0 %6642 }
0x1178   : > { %6686 = vrot.lane.b32.xlu1 %v8199_v52, %s9321_s24  ;;  %v6797_v48 = vsel %vm6789_vm13, %v6764_v25, %v6643_v41 }
0x1179   : > { %8306 = vmatmul.mubr.msk.f32.gmra.mxu0 %vm979_vm10, %v6797_v48 }
0x118e   : > { %v6645_v11 = vpop.permute.xlu0 %6644 }
0x118f   : > { %v6798_v29 = vsel %vm6789_vm13, %v13994_v26, %v6645_v11  ;;  %v6768_v26 = vsel %vm6756_vm12, %v13913_v47, %v13978_v31 }
0x1190   : > { %8308 = vmatprep.mubr.msk.f32.mxu0 %vm979_vm10, %v6798_v29 }
0x1192   : > { %v6647_v50 = vpop.permute.xlu0 %6646 }
0x1193   : > { %v6799_v22 = vsel %vm6789_vm13, %v14003_v34, %v6647_v50 }
0x1194   : > { %8309 = vmatmul.mubr.msk.f32.gmra.mxu0 %vm979_vm10, %v6799_v22 }
0x1195   : > { %7228 = vmatprep.mubr.f32.mxu0 %v15386_v40 }
0x1196   : > { %v6649_v39 = vpop.permute.xlu0 %6648 }
0x1197   : > { %v6800_v62 = vsel %vm6789_vm13, %v6767_v12, %v6649_v39 }
0x1198   : > { %8311 = vmatprep.mubr.msk.f32.mxu1 %vm979_vm10, %v6800_v62  ;;  %v6782_v62 = vsel %vm6756_vm12, %v13963_v51, %v14137_v42 }
0x119a   : > { %v6651_v34 = vpop.permute.xlu1 %6650 }
0x119b   : > { %v6801_v38 = vsel %vm6789_vm13, %v6768_v26, %v6651_v34 }
0x119c   : > { %8312 = vmatmul.mubr.msk.f32.vlgmr.msra.gmra.mxu1 %vm979_vm10, %v6801_v38 }
0x119e   : > { %v6653_v33 = vpop.permute.xlu0 %6652 }
0x119f   : > { %v6802_v37 = vsel %vm6789_vm13, %v14012_v21, %v6653_v33  ;;  %v15390_v33 = vld [vmem:[#allocation39_spill] sm:$0xff] }
0x11a0   : > { %8314 = vmatprep.mubr.msk.f32.mxu1 %vm979_vm10, %v6802_v37 }
0x11a2   : > { %v6655_v18 = vpop.permute.xlu1 %6654 }
0x11a3   : > { %v6803_v47 = vsel %vm6789_vm13, %v6770_v16, %v6655_v18 }
0x11a4   : > { %8315 = vmatmul.mubr.msk.f32.gmra.mxu1 %vm979_vm10, %v6803_v47 }
0x11a6   : > { %v14156_v31 = vpop.permute.xlu1 %6554  ;;  %v6657_v58 = vpop.permute.xlu0 %6656 }
0x11a7   : > { %v6804_v21 = vsel %vm6789_vm13, %v14021_v45, %v6657_v58  ;;  %v7153_v58 = vld [vmem:[%s14305_s13 + $0x8] sm:$0xff] }
0x11a8   : > { %8317 = vmatprep.mubr.msk.f32.mxu1 %vm979_vm10, %v6804_v21 }
0x11aa   : > { %v14161_v53 = vpop.permute.xlu1 %6430  ;;  %v6553_v56 = vpop.permute.xlu0 %6552 }
0x11ab   : > { %v6783_v26 = vsel %vm6756_vm12, %v13940_v14, %v6553_v56  ;;  %v6753_v16 = vsel %vm2107_vm11, %v15391_v61, %v14161_v53  ;;  %v14245_v53 = vld [vmem:[%s14304_s12] ss:$0 sm:$0xff] }
0x11ae   : > { %v14163_v2 = vpop.permute.xlu1 %6558  ;;  %v6429_v55 = vpop.permute.xlu0 %6428 }
0x11af   : > { %v6752_v51 = vsel %vm2107_vm11, %v15390_v33, %v6429_v55 }
0x11b0   : > { %v8200_v7 = vpop.f32.mrf.mxu0 }
0x11b2   : > { %v6435_v49 = vpop.permute.xlu1 %6434  ;;  %v6557_v35 = vpop.permute.xlu0 %6556 }
0x11b3   : > { %v6755_v19 = vsel %vm2107_vm11, %v15388_v24, %v6435_v49  ;;  %v8201_v63 = vpop.f32.mrf.mxu0  ;;  %v6785_v37 = vsel %vm6756_vm12, %v6752_v51, %v6557_v35 }
0x11b4   : > { %v8202_v0 = vadd.f32 %v8201_v63, %v8200_v7 }
0x11b5   : > { %v8203_v6 = vpop.f32.mrf.mxu0 }
0x11b6   : > { %v6563_v46 = vpop.permute.xlu1 %6562  ;;  %6688 = vrot.lane.b32.xlu0 %v8202_v0, %s9321_s24  ;;  %v6433_v45 = vpop.permute.xlu0 %6432 }
0x11b7   : > { %v14169_v59 = vsel %vm6756_vm12, %v6755_v19, %v6563_v46  ;;  %v6754_v54 = vsel %vm2107_vm11, %v15389_v60, %v6433_v45  ;;  %v8204_v13 = vpop.f32.mrf.mxu0 }
0x11b8   : > { %v8205_v1 = vadd.f32 %v8204_v13, %v8203_v6 }
0x11ba   : > { %v6659_v15 = vpop.permute.xlu1 %6658  ;;  %6690 = vrot.lane.b32.xlu1 %v8205_v1, %s9321_s24  ;;  %v6561_v28 = vpop.permute.xlu0 %6560 }
0x11bb   : > { %v6805_v44 = vsel %vm6789_vm13, %v13990_v57, %v6659_v15  ;;  %v14177_v8 = vsel %vm6756_vm12, %v6754_v54, %v6561_v28 }
0x11bc   : > { %8318 = vmatmul.mubr.msk.f32.gmra.mxu1 %vm979_vm10, %v6805_v44 }
0x11be   : > { %v6661_v23 = vpop.permute.xlu1 %6660 }
0x11bf   : > { %v6806_v43 = vsel %vm6789_vm13, %v13999_v9, %v6661_v23 }
0x11c0   : > { %8320 = vmatprep.mubr.msk.f32.mxu1 %vm979_vm10, %v6806_v43 }
0x11c2   : > { %v6663_v52 = vpop.permute.xlu1 %6662 }
0x11c3   : > { %v6807_v25 = vsel %vm6789_vm13, %v14008_v20, %v6663_v52 }
0x11c4   : > { %8321 = vmatmul.mubr.msk.f32.gmra.mxu1 %vm979_vm10, %v6807_v25 }
0x11c6   : > { %v6665_v41 = vpop.permute.xlu1 %6664 }
0x11c7   : > { %v6808_v57 = vsel %vm6789_vm13, %v14017_v32, %v6665_v41 }
0x11c8   : > { %8323 = vmatprep.mubr.msk.f32.mxu1 %vm979_vm10, %v6808_v57 }
0x11ca   : > { %v6667_v48 = vpop.permute.xlu1 %6666 }
0x11cb   : > { %v6809_v11 = vsel %vm6789_vm13, %v14028_v27, %v6667_v48 }
0x11cc   : > { %8324 = vmatmul.mubr.msk.f32.gmra.mxu1 %vm979_vm10, %v6809_v11 }
0x11ce   : > { %v6669_v9 = vpop.permute.xlu1 %6668 }
0x11cf   : > { %v6810_v29 = vsel %vm6789_vm13, %v14037_v5, %v6669_v9 }
0x11d0   : > { %8326 = vmatprep.mubr.msk.f32.mxu1 %vm979_vm10, %v6810_v29 }
0x11d2   : > { %v6671_v20 = vpop.permute.xlu1 %6670 }
0x11d3   : > { %v6811_v50 = vsel %vm6789_vm13, %v14045_v17, %v6671_v20 }
0x11d4   : > { %8327 = vmatmul.mubr.msk.f32.gmra.mxu1 %vm979_vm10, %v6811_v50 }
0x11d6   : > { %v6673_v32 = vpop.permute.xlu1 %6672  ;;  %v6681_v17 = vpop.permute.xlu0 %6680 }
0x11d7   : > { %v6812_v22 = vsel %vm6789_vm13, %v14054_v10, %v6673_v32 }
0x11d8   : > { %8329 = vmatprep.mubr.msk.f32.mxu1 %vm979_vm10, %v6812_v22 }
0x11da   : > { %v6675_v27 = vpop.permute.xlu1 %6674 }
0x11db   : > { %v6813_v12 = vsel %vm6789_vm13, %v14062_v30, %v6675_v27  ;;  %v6816_v30 = vsel %vm6789_vm13, %v6783_v26, %v6681_v17 }
0x11dc   : > { %8330 = vmatmul.mubr.msk.f32.gmra.mxu1 %vm979_vm10, %v6813_v12 }
0x11de   : > { %v6677_v5 = vpop.permute.xlu1 %6676  ;;  %v6685_v38 = vpop.permute.xlu0 %6684 }
0x11df   : > { %v6814_v39 = vsel %vm6789_vm13, %v14069_v4, %v6677_v5  ;;  %v6784_v4 = vsel %vm6756_vm12, %v13969_v36, %v14156_v31  ;;  %v6818_v3 = vsel %vm6789_vm13, %v6785_v37, %v6685_v38  ;;  %v6786_v36 = vsel %vm6756_vm12, %v6753_v16, %v14163_v2  ;;  %v7152_v31 = vld [vmem:[%s14305_s13] sm:$0xff] }
0x11e0   : > { %8332 = vmatprep.mubr.msk.f32.mxu1 %vm979_vm10, %v6814_v39  ;;  %7526 = vmatmul.mubr.msk.f32.vlgmr.msra.gmra.mxu0 %vm2107_vm11, %v7152_v31 }
0x11e1   : > { %7234 = vmatprep.mubr.f32.mxu0 %v15386_v40 }
0x11e2   : > { %v6679_v10 = vpop.permute.xlu1 %6678 }
0x11e3   : > { %v6815_v34 = vsel %vm6789_vm13, %v6782_v62, %v6679_v10 }
0x11e4   : > { %8333 = vmatmul.mubr.msk.f32.gmra.mxu1 %vm979_vm10, %v6815_v34  ;;  %7527 = vmatmul.mubr.msk.f32.gmra.mxu0 %vm2107_vm11, %v7153_v58 }
0x11e5   : > { %8335 = vmatprep.mubr.msk.f32.mxu1 %vm979_vm10, %v6816_v30 }
0x11e6   : > { %v6683_v42 = vpop.permute.xlu1 %6682 }
0x11e7   : > { %v6817_v14 = vsel %vm6789_vm13, %v6784_v4, %v6683_v42 }
0x11e8   : > { %8336 = vmatmul.mubr.msk.f32.gmra.mxu1 %vm979_vm10, %v6817_v14 }
0x11e9   : > { %8338 = vmatprep.mubr.msk.f32.mxu1 %vm979_vm10, %v6818_v3 }
0x11ea   : > { %v6687_v18 = vpop.permute.xlu1 %6686 }
0x11eb   : > { %v6819_v47 = vsel %vm6789_vm13, %v6786_v36, %v6687_v18 }
0x11ec   : > { %8339 = vmatmul.mubr.msk.f32.gmra.mxu1 %vm979_vm10, %v6819_v47 }
0x1221   : > { %v8298_v21 = vpop.f32.mrf.mxu0 }
0x1222   : > { %v6999_v55 = vadd.f32 %v8298_v21, %v14245_v53 }
0x1223   : > { %v6993_v56 = vpop.f32.mrf.mxu0 }
0x1224   : > { %v6994_v2 = vadd.f32 %v14245_v53, %v6993_v56 }
0x1226   : > { %7241 = vxpose.xlu0.b32.start [1/16] (narrow) %v6994_v2, 16 }
0x1228   : > { %v6689_v7 = vpop.permute.xlu0 %6688 }
0x1229   : > { %v6820_v40 = vsel %vm6789_vm13, %v14177_v8, %v6689_v7  ;;  %v8301_v49 = vpop.f32.mrf.mxu0 }
0x122a   : > { %8341 = vmatprep.mubr.msk.f32.mxu1 %vm979_vm10, %v6820_v40  ;;  %7242 = vxpose.xlu0.b32.cont [2/16] (narrow) %v6999_v55, 16  ;;  %v7009_v0 = vadd.f32 %v8301_v49, %v14245_v53 }
0x122b   : > { %v7003_v35 = vpop.f32.mrf.mxu0 }
0x122c   : > { %v6691_v24 = vpop.permute.xlu1 %6690  ;;  %v7004_v19 = vadd.f32 %v14245_v53, %v7003_v35 }
0x122d   : > { %v6821_v63 = vsel %vm6789_vm13, %v14169_v59, %v6691_v24 }
0x122e   : > { %8342 = vmatmul.mubr.msk.f32.gmra.mxu1 %vm979_vm10, %v6821_v63  ;;  %7243 = vxpose.xlu0.b32.cont [3/16] (narrow) %v7004_v19, 16 }
0x1231   : > { %v8304_v6 = vpop.f32.mrf.mxu0 }
0x1232   : > { %7244 = vxpose.xlu0.b32.cont [4/16] (narrow) %v7009_v0, 16  ;;  %v7019_v60 = vadd.f32 %v8304_v6, %v14245_v53 }
0x1233   : > { %v7013_v46 = vpop.f32.mrf.mxu0 }
0x1234   : > { %v7014_v45 = vadd.f32 %v14245_v53, %v7013_v46 }
0x1236   : > { %7245 = vxpose.xlu0.b32.cont [5/16] (narrow) %v7014_v45, 16 }
0x1239   : > { %v8307_v54 = vpop.f32.mrf.mxu0 }
0x123a   : > { %7246 = vxpose.xlu0.b32.cont [6/16] (narrow) %v7019_v60, 16  ;;  %v7029_v59 = vadd.f32 %v8307_v54, %v14245_v53 }
0x123b   : > { %v7023_v13 = vpop.f32.mrf.mxu0 }
0x123c   : > { %v7024_v1 = vadd.f32 %v14245_v53, %v7023_v13 }
0x123e   : > { %7247 = vxpose.xlu0.b32.cont [7/16] (narrow) %v7024_v1, 16 }
0x1242   : > { %7248 = vxpose.xlu0.b32.cont [8/16] (narrow) %v7029_v59, 16 }
0x1254   : > { %v8310_v15 = vpop.f32.mrf.mxu0 }
0x1255   : > { %v7039_v8 = vadd.f32 %v8310_v15, %v14245_v53 }
0x1256   : > { %v7033_v28 = vpop.f32.mrf.mxu0 }
0x1257   : > { %v7034_v44 = vadd.f32 %v14245_v53, %v7033_v28 }
0x1259   : > { %7249 = vxpose.xlu0.b32.cont [9/16] (narrow) %v7034_v44, 16 }
0x125c   : > { %v8313_v23 = vpop.f32.mrf.mxu1 }
0x125d   : > { %7250 = vxpose.xlu0.b32.cont [10/16] (narrow) %v7039_v8, 16  ;;  %v7049_v25 = vadd.f32 %v8313_v23, %v14245_v53 }
0x125e   : > { %v7043_v43 = vpop.f32.mrf.mxu1 }
0x125f   : > { %v7044_v52 = vadd.f32 %v14245_v53, %v7043_v43 }
0x1261   : > { %7251 = vxpose.xlu0.b32.cont [11/16] (narrow) %v7044_v52, 16 }
0x1264   : > { %v8316_v41 = vpop.f32.mrf.mxu1 }
0x1265   : > { %7252 = vxpose.xlu0.b32.cont [12/16] (narrow) %v7049_v25, 16  ;;  %v7059_v11 = vadd.f32 %v8316_v41, %v14245_v53 }
0x1266   : > { %v7053_v57 = vpop.f32.mrf.mxu1 }
0x1267   : > { %v7054_v48 = vadd.f32 %v14245_v53, %v7053_v57 }
0x1269   : > { %7253 = vxpose.xlu0.b32.cont [13/16] (narrow) %v7054_v48, 16 }
0x126d   : > { %7254 = vxpose.xlu0.b32.cont [14/16] (narrow) %v7059_v11, 16 }
0x127c   : > { %v8319_v9 = vpop.f32.mrf.mxu1 }
0x127d   : > { %v7069_v50 = vadd.f32 %v8319_v9, %v14245_v53 }
0x127e   : > { %v7063_v29 = vpop.f32.mrf.mxu1 }
0x127f   : > { %v7064_v20 = vadd.f32 %v14245_v53, %v7063_v29 }
0x1281   : > { %7255 = vxpose.xlu0.b32.cont [15/16] (narrow) %v7064_v20, 16 }
0x1284   : > { %v8322_v32 = vpop.f32.mrf.mxu1 }
0x1285   : > { %7256 = vxpose.xlu0.b32.end [16/16] (narrow) %v7069_v50, 16  ;;  %v7079_v12 = vadd.f32 %v8322_v32, %v14245_v53 }
0x1286   : > { %v7073_v22 = vpop.f32.mrf.mxu1 }
0x1287   : > { %v7074_v27 = vadd.f32 %v14245_v53, %v7073_v22 }
0x1289   : > { %7273 = vxpose.xlu1.b32.start [1/16] (narrow) %v7074_v27, 16 }
0x128c   : > { %v8325_v5 = vpop.f32.mrf.mxu1 }
0x128d   : > { %7274 = vxpose.xlu1.b32.cont [2/16] (narrow) %v7079_v12, 16  ;;  %v7089_v62 = vadd.f32 %v8325_v5, %v14245_v53 }
0x128e   : > { %v7083_v39 = vpop.f32.mrf.mxu1 }
0x128f   : > { %v7084_v17 = vadd.f32 %v14245_v53, %v7083_v39 }
0x1291   : > { %7275 = vxpose.xlu1.b32.cont [3/16] (narrow) %v7084_v17, 16 }
0x1294   : > { %v8328_v10 = vpop.f32.mrf.mxu1 }
0x1295   : > { %7276 = vxpose.xlu1.b32.cont [4/16] (narrow) %v7089_v62, 16  ;;  %v7099_v30 = vadd.f32 %v8328_v10, %v14245_v53 }
0x1296   : > { %v7093_v26 = vpop.f32.mrf.mxu1 }
0x1297   : > { %v7094_v34 = vadd.f32 %v14245_v53, %v7093_v26 }
0x1299   : > { %7277 = vxpose.xlu1.b32.cont [5/16] (narrow) %v7094_v34, 16 }
0x129c   : > { %v8331_v38 = vpop.f32.mrf.mxu1 }
0x129d   : > { %7278 = vxpose.xlu1.b32.cont [6/16] (narrow) %v7099_v30, 16  ;;  %v7109_v51 = vadd.f32 %v8331_v38, %v14245_v53 }
0x129e   : > { %v7103_v4 = vpop.f32.mrf.mxu1 }
0x129f   : > { %v7104_v33 = vadd.f32 %v14245_v53, %v7103_v4 }
0x12a0   : > { %v7230_v56 = vpop.f32.mrf.mxu0 }
0x12a1   : > { %7279 = vxpose.xlu1.b32.cont [7/16] (narrow) %v7104_v33, 16 }
0x12a2   : > { %v7232_v2 = vpop.f32.mrf.mxu0 }
0x12a4   : > { %v8334_v42 = vpop.f32.mrf.mxu1  ;;  %v7236_v40 = vpop.f32.mrf.mxu0 }
0x12a5   : > { %7280 = vxpose.xlu1.b32.cont [8/16] (narrow) %v7109_v51, 16  ;;  %v7119_v61 = vadd.f32 %v8334_v42, %v14245_v53 }
0x12a6   : > { %v7113_v37 = vpop.f32.mrf.mxu1  ;;  %v7238_v45 = vpop.f32.mrf.mxu0 }
0x12a7   : > { %v7114_v14 = vadd.f32 %v14245_v53, %v7113_v37 }
0x12a8   : > { %v8337_v3 = vpop.f32.mrf.mxu1 }
0x12a9   : > { %7281 = vxpose.xlu1.b32.cont [9/16] (narrow) %v7114_v14, 16  ;;  %v7129_v47 = vadd.f32 %v8337_v3, %v14245_v53 }
0x12aa   : > { %v7123_v16 = vpop.f32.mrf.mxu1 }
0x12ab   : > { %v7124_v36 = vadd.f32 %v14245_v53, %v7123_v16 }
0x12ac   : > { %v8340_v18 = vpop.f32.mrf.mxu1 }
0x12ad   : > { %7282 = vxpose.xlu1.b32.cont [10/16] (narrow) %v7119_v61, 16  ;;  %v7139_v21 = vadd.f32 %v8340_v18, %v14245_v53 }
0x12ae   : > { %v7133_v31 = vpop.f32.mrf.mxu1 }
0x12af   : > { %v7134_v58 = vadd.f32 %v14245_v53, %v7133_v31 }
0x12b1   : > { %7283 = vxpose.xlu1.b32.cont [11/16] (narrow) %v7124_v36, 16 }
0x12b5   : > { %7284 = vxpose.xlu1.b32.cont [12/16] (narrow) %v7129_v47, 16 }
0x12b9   : > { %7285 = vxpose.xlu1.b32.cont [13/16] (narrow) %v7134_v58, 16 }
0x12bd   : > { %7286 = vxpose.xlu1.b32.cont [14/16] (narrow) %v7139_v21, 16 }
0x12c5   : > { %v7257_v55 = vpop.trf.xlu0 }
0x12c6   : > { %v7305_v7 = vadd.f32 %v7257_v55, %v7230_v56 }
0x12c8   : > { %7309 = vst [vmem:[%s467_s17] sm:$0xff] %v7305_v7 }
0x12c9   : > { %v7258_v49 = vpop.trf.xlu0 }
0x12ca   : > { %v7307_v35 = vadd.f32 %v7258_v49, %v7236_v40 }
0x12cc   : > { %7311 = vst [vmem:[%s467_s17 + $0x10] sm:$0xff] %v7307_v35 }
0x12ee   : > { %v8343_v24 = vpop.f32.mrf.mxu1 }
0x12ef   : > { %v7149_v0 = vadd.f32 %v8343_v24, %v14245_v53 }
0x12f0   : > { %v7143_v19 = vpop.f32.mrf.mxu1 }
0x12f1   : > { %v7144_v63 = vadd.f32 %v14245_v53, %v7143_v19 }
0x12f3   : > { %7287 = vxpose.xlu1.b32.cont [15/16] (narrow) %v7144_v63, 16 }
0x12f7   : > { %7288 = vxpose.xlu1.b32.end [16/16] (narrow) %v7149_v0, 16 }
0x1337   : > { %v7289_v6 = vpop.trf.xlu1 }
0x1338   : > { %v7306_v46 = vadd.f32 %v7289_v6, %v7232_v2 }
0x133a   : > { %7310 = vst [vmem:[%s467_s17 + $0x8] sm:$0xff] %v7306_v46 }
0x133b   : > { %v7290_v60 = vpop.trf.xlu1 }
0x133c   : > { %v7308_v54 = vadd.f32 %v7290_v60, %v7238_v45 }
0x133e   : > { %7312 = vst [vmem:[%s467_s17 + $0x18] sm:$0xff] %v7308_v54 }
0x133f PF: > { %s24_s29 = sadd.s32 1, %s9297_s29  }
0x1340   : > { %p21_p4 = scmp.ge.s32.totalorder %s24_s29, 4  }
0x1342   :  { %23 = sbr.rel (!%p21_p4) target bundleno = 1 (0x1), region = 106 }

</bundles_post_ra>
